<compile_context>
chip_gen: v7x
topology: tpu7x:2x2x1
jax: 0.10.0
libtpu: 0.0.40
codegen_flags: <defaults>
</compile_context>

<pallas_src>
import jax
import jax.numpy as jnp
from jax import lax
from jax.experimental import pallas as pl
from jax.experimental.pallas import tpu as pltpu


CH = 8          # images per grid step (must be a multiple of 8 = sublane tile)


def _round_up(x, m):
    return (x + m - 1) // m * m


# ---------------------------------------------------------------------------
# Fused whole-network Pallas kernel (one grid step = CH images)
# ---------------------------------------------------------------------------
def _fused_cnn_kernel(a1_ref, w1_ref, b1_ref, w2_ref, b2_ref,
                      f1_ref, fb1_ref, f2_ref, fb2_ref, o_ref):
    """a1_ref : (1, 4*144*CH, 25) bf16  conv1 im2col, rows (pool-group, pixel, img)
       w1_ref : (25, 128)  bf16        conv1 weights, out-channels padded to 128
       b1_ref : (1, 128)   f32
       w2_ref : (25, 128, 128) bf16    conv2 weights per (i,j) offset, in/out padded
       b2_ref : (1, 128)   f32
       f1_ref : (2048, 512) bf16       fc1 weights in (py, px, c[128]) row order
       fb1_ref: (1, 512)   f32
       f2_ref : (512, 128) bf16        fc2 weights, 10 cols padded to 128
       fb2_ref: (1, 128)   f32         padded lanes carry -1e30
       o_ref  : (CH, 128)  f32         log-softmax output (first 10 lanes real)
    """
    ch = o_ref.shape[0]
    m1 = 144 * ch                               # rows per conv1 pool group

    # ---- conv1: im2col matmul + 2x2 max-pool + bias + ReLU -----------------
    h = jnp.dot(a1_ref[0], w1_ref[...], preferred_element_type=jnp.float32)
    p = jnp.maximum(jnp.maximum(h[0 * m1:1 * m1], h[1 * m1:2 * m1]),
                    jnp.maximum(h[2 * m1:3 * m1], h[3 * m1:4 * m1]))
    pooled1 = jnp.maximum(p + b1_ref[...], 0.0).astype(jnp.bfloat16)
    p1 = pooled1.reshape(12, 12, ch, 128)       # (y1, x1, img, chan)

    # ---- conv2: 25 shifted matmuls over the VMEM-resident feature map ------
    acc2 = jnp.zeros((8 * 8 * ch, 128), jnp.float32)
    for i in range(5):
        for j in range(5):
            win = p1[i:i + 8, j:j + 8].reshape(8 * 8 * ch, 128)
            acc2 = acc2 + jnp.dot(win, w2_ref[i * 5 + j],
                                  preferred_element_type=jnp.float32)
    acc2 = jnp.maximum(acc2 + b2_ref[...], 0.0)          # rows = (y2, x2, img)

    # ---- 2x2 max-pool over (y2, x2): pure leading-dim reshapes/maxes -------
    r = acc2.reshape(8, 4, 2, ch, 128)                   # (y2, px, xl, img, c)
    xp = jnp.maximum(r[:, :, 0], r[:, :, 1])             # (y2, px, img, c)
    r2 = xp.reshape(4, 2, 4, ch, 128)                    # (py, yl, px, img, c)
    p2 = jnp.maximum(r2[:, 0], r2[:, 1])                 # (py, px, img, c)

    # ---- flatten (128-aligned lane concat) + fc1 + ReLU + fc2 + log_softmax
    flat = jnp.concatenate(
        [p2[py, px] for py in range(4) for px in range(4)],
        axis=-1).astype(jnp.bfloat16)                    # (CH, 2048)
    h1 = jnp.dot(flat, f1_ref[...], preferred_element_type=jnp.float32)
    h1 = jnp.maximum(h1 + fb1_ref[...], 0.0)
    logits = jnp.dot(h1.astype(jnp.bfloat16), f2_ref[...],
                     preferred_element_type=jnp.float32) + fb2_ref[...]
    m = jnp.max(logits, axis=-1, keepdims=True)
    s = logits - m
    lse = jnp.log(jnp.sum(jnp.exp(s), axis=-1, keepdims=True))
    o_ref[...] = (s - lse).astype(o_ref.dtype)


# ---------------------------------------------------------------------------
# Host glue: pool-grouped conv1 im2col (per image chunk) + weight packing
# ---------------------------------------------------------------------------
def conv1_im2col_chunks(xs, ch):
    """xs: (Np, 28, 28) f32.  Returns (Np//ch, 4*144*ch, 25) bf16 with rows
    ordered (pool-group g=dy*2+dx, pooled pixel p=py*12+px, image-in-chunk)."""
    # TODO(synk): conv1's im2col could also move in-kernel, but the stride-2
    # patch gather on a C=1 input has no clean tile-aligned form; it is tiny
    # (~29 KiB/image) so it stays as XLA glue.
    np_imgs = xs.shape[0]
    groups = []
    for dy in range(2):
        for dx in range(2):
            cols = [xs[:, dy + i: dy + i + 24: 2, dx + j: dx + j + 24: 2]
                    for i in range(5) for j in range(5)]
            g = jnp.stack(cols, axis=-1)                 # (Np, 12, 12, 25)
            groups.append(g.reshape(np_imgs, 144, 25))
    a = jnp.stack(groups, axis=0)                        # (4, Np, 144, 25)
    nc = np_imgs // ch
    a = a.reshape(4, nc, ch, 144, 25)
    a = jnp.transpose(a, (1, 0, 3, 2, 4))                # (nc, 4, 144, ch, 25)
    return a.reshape(nc, 4 * 144 * ch, 25).astype(jnp.bfloat16)


def prepare_params(p):
    """One-time packing: matmul layouts, 128-lane padding, bf16 weights."""
    # conv1: OIHW (32,1,5,5) -> (k=i*5+j, c_out) with c_out padded to 128
    w1 = jnp.transpose(p["conv1_w"], (2, 3, 1, 0)).reshape(25, 32)
    w1 = jnp.pad(w1, ((0, 0), (0, 96))).astype(jnp.bfloat16)           # (25,128)
    b1 = jnp.pad(p["conv1_b"], (0, 96)).reshape(1, 128).astype(jnp.float32)

    # conv2: OIHW (64,32,5,5) -> (k, c_in pad 128, c_out pad 128)
    w2 = jnp.transpose(p["conv2_w"], (2, 3, 1, 0)).reshape(25, 32, 64)
    w2 = jnp.pad(w2, ((0, 0), (0, 96), (0, 64))).astype(jnp.bfloat16)  # (25,128,128)
    b2 = jnp.pad(p["conv2_b"], (0, 64)).reshape(1, 128).astype(jnp.float32)

    # fc1: torch rows are (c,h,w)-flattened; kernel flatten is (py,px,c[128])
    f1 = jnp.transpose(p["fc1_w"].reshape(512, 64, 4, 4), (2, 3, 1, 0))  # (4,4,64,512)
    f1 = jnp.pad(f1, ((0, 0), (0, 0), (0, 64), (0, 0)))                  # (4,4,128,512)
    f1 = f1.reshape(2048, 512).astype(jnp.bfloat16)
    fb1 = p["fc1_b"].reshape(1, 512).astype(jnp.float32)

    f2 = jnp.pad(p["fc2_w"].T, ((0, 0), (0, 118))).astype(jnp.bfloat16)  # (512,128)
    fb2 = jnp.pad(p["fc2_b"], (0, 118),
                  constant_values=-1e30).reshape(1, 128).astype(jnp.float32)
    return {"conv1_w": w1, "conv1_b": b1, "conv2_w": w2, "conv2_b": b2,
            "fc1_w": f1, "fc1_b": fb1, "fc2_w": f2, "fc2_b": fb2}


def cnn_forward(x_nchw, pp):
    n = x_nchw.shape[0]
    # fc1's 64*4*4 fan-in hard-codes 28x28x1 inputs -- fail loudly otherwise.
    assert x_nchw.shape[1:] == (1, 28, 28), "cnn_pytorch requires (N,1,28,28)"
    np_imgs = _round_up(n, CH)
    xs = x_nchw[:, 0]
    if np_imgs != n:
        xs = jnp.pad(xs, ((0, np_imgs - n), (0, 0), (0, 0)))
    a1 = conv1_im2col_chunks(xs, CH)            # (nc, 4*144*CH, 25) bf16
    nc = np_imgs // CH

    out = pl.pallas_call(
        _fused_cnn_kernel,
        out_shape=jax.ShapeDtypeStruct((np_imgs, 128), jnp.float32),
        grid=(nc,),
        in_specs=[
            pl.BlockSpec((1, 4 * 144 * CH, 25), lambda c: (c, 0, 0)),
            pl.BlockSpec((25, 128), lambda c: (0, 0)),
            pl.BlockSpec((1, 128), lambda c: (0, 0)),
            pl.BlockSpec((25, 128, 128), lambda c: (0, 0, 0)),
            pl.BlockSpec((1, 128), lambda c: (0, 0)),
            pl.BlockSpec((2048, 512), lambda c: (0, 0)),
            pl.BlockSpec((1, 512), lambda c: (0, 0)),
            pl.BlockSpec((512, 128), lambda c: (0, 0)),
            pl.BlockSpec((1, 128), lambda c: (0, 0)),
        ],
        out_specs=pl.BlockSpec((CH, 128), lambda c: (c, 0)),
        compiler_params=pltpu.CompilerParams(
            dimension_semantics=("parallel",),
            vmem_limit_bytes=32 * 1024 * 1024),   # ~12 MiB used; safe on v5e too
    )(a1, pp["conv1_w"], pp["conv1_b"], pp["conv2_w"], pp["conv2_b"],
      pp["fc1_w"], pp["fc1_b"], pp["fc2_w"], pp["fc2_b"])
    return out[:n, :10]                           # drop padded rows / lanes


# ---------------------------------------------------------------------------
# Params, pure-XLA reference, and check
# ---------------------------------------------------------------------------
def init_params(key):
    """Deterministic synthetic params with PyTorch-convention shapes."""
    ks = jax.random.split(key, 8)

    def nrm(k, shape, fan_in):
        return jax.random.normal(k, shape, jnp.float32) / jnp.sqrt(fan_in)

    return {
        "conv1_w": nrm(ks[0], (32, 1, 5, 5), 25.0),     # OIHW
        "conv1_b": nrm(ks[1], (32,), 25.0),
        "conv2_w": nrm(ks[2], (64, 32, 5, 5), 800.0),   # OIHW
        "conv2_b": nrm(ks[3], (64,), 800.0),
        "fc1_w": nrm(ks[4], (512, 1024), 1024.0),       # (out, in) like torch
        "fc1_b": nrm(ks[5], (512,), 1024.0),
        "fc2_w": nrm(ks[6], (10, 512), 512.0),
        "fc2_b": nrm(ks[7], (10,), 512.0),
    }


def reference_forward(x_nchw, p):
    """Pure-XLA f32 reference reproducing the PyTorch forward."""
    dn = ("NCHW", "OIHW", "NCHW")
    y = lax.conv_general_dilated(x_nchw, p["conv1_w"], (1, 1), "VALID",
                                 dimension_numbers=dn)
    y = jnp.maximum(y + p["conv1_b"][None, :, None, None], 0.0)
    y = lax.reduce_window(y, -jnp.inf, lax.max, (1, 1, 2, 2), (1, 1, 2, 2),
                          "VALID")
    y = lax.conv_general_dilated(y, p["conv2_w"], (1, 1), "VALID",
                                 dimension_numbers=dn)
    y = jnp.maximum(y + p["conv2_b"][None, :, None, None], 0.0)
    y = lax.reduce_window(y, -jnp.inf, lax.max, (1, 1, 2, 2), (1, 1, 2, 2),
                          "VALID")
    y = y.reshape(y.shape[0], -1)                       # NCHW flatten
    y = jnp.maximum(y @ p["fc1_w"].T + p["fc1_b"], 0.0)
    logits = y @ p["fc2_w"].T + p["fc2_b"]
    return jax.nn.log_softmax(logits, axis=1)


if __name__ == "__main__":
    key = jax.random.PRNGKey(0)
    pkey, xkey = jax.random.split(key)
    params = init_params(pkey)
    x = jax.random.normal(xkey, (2, 1, 28, 28), jnp.float32)

    packed = prepare_params(params)                     # one-time weight packing
    out = jax.jit(cnn_forward)(x, packed)
    out = jax.block_until_ready(out)

    ref = reference_forward(x, params)
    assert out.shape == (2, 10)
    # bf16 MXU operands (f32 accumulate) => slightly looser tolerance than f32.
    if not bool(jnp.allclose(out, ref, atol=5e-2, rtol=5e-2)):
        raise AssertionError(
            "Pallas output mismatch vs reference, max abs diff = "
            f"{float(jnp.max(jnp.abs(out - ref)))}")
    print("KERNEL_OK")
</pallas_src>

<mosaic_0001>
module attributes {stable_mosaic.version = 11 : i64} {
  func.func @_fused_cnn_kernel(%arg0: i32, %arg1: memref<1x4608x25xbf16, #tpu.memory_space<vmem>>, %arg2: memref<25x128xbf16, #tpu.memory_space<vmem>>, %arg3: memref<1x128xf32, #tpu.memory_space<vmem>>, %arg4: memref<25x128x128xbf16, #tpu.memory_space<vmem>>, %arg5: memref<1x128xf32, #tpu.memory_space<vmem>>, %arg6: memref<2048x512xbf16, #tpu.memory_space<vmem>>, %arg7: memref<1x512xf32, #tpu.memory_space<vmem>>, %arg8: memref<512x128xbf16, #tpu.memory_space<vmem>>, %arg9: memref<1x128xf32, #tpu.memory_space<vmem>>, %arg10: memref<8x128xf32, #tpu.memory_space<vmem>>) attributes {dimension_semantics = [#tpu.dimension_semantics<parallel>], iteration_bounds = array<i64: 1>, scalar_prefetch = 0 : i64, scratch_operands = 0 : i64, tpu.core_type = #tpu.core_type<tc>, window_params = [{transform_indices = @transform_0, window_bounds = array<i64: 1, 4608, 25>}, {pipeline_mode = #tpu.pipeline_mode<synchronous>, transform_indices = @transform_1, window_bounds = array<i64: 25, 128>}, {pipeline_mode = #tpu.pipeline_mode<synchronous>, transform_indices = @transform_2, window_bounds = array<i64: 1, 128>}, {pipeline_mode = #tpu.pipeline_mode<synchronous>, transform_indices = @transform_3, window_bounds = array<i64: 25, 128, 128>}, {pipeline_mode = #tpu.pipeline_mode<synchronous>, transform_indices = @transform_4, window_bounds = array<i64: 1, 128>}, {pipeline_mode = #tpu.pipeline_mode<synchronous>, transform_indices = @transform_5, window_bounds = array<i64: 2048, 512>}, {pipeline_mode = #tpu.pipeline_mode<synchronous>, transform_indices = @transform_6, window_bounds = array<i64: 1, 512>}, {pipeline_mode = #tpu.pipeline_mode<synchronous>, transform_indices = @transform_7, window_bounds = array<i64: 512, 128>}, {pipeline_mode = #tpu.pipeline_mode<synchronous>, transform_indices = @transform_8, window_bounds = array<i64: 1, 128>}, {transform_indices = @transform_9, window_bounds = array<i64: 8, 128>}]} {
    %c0 = arith.constant 0 : index
    %c0_0 = arith.constant 0 : index
    %c0_1 = arith.constant 0 : index
    %0 = vector.load %arg1[%c0, %c0_0, %c0_1] : memref<1x4608x25xbf16, #tpu.memory_space<vmem>>, vector<1x4608x25xbf16>
    %1 = vector.shape_cast %0 : vector<1x4608x25xbf16> to vector<4608x25xbf16>
    %c0_2 = arith.constant 0 : index
    %c0_3 = arith.constant 0 : index
    %2 = vector.load %arg2[%c0_2, %c0_3] : memref<25x128xbf16, #tpu.memory_space<vmem>>, vector<25x128xbf16>
    %cst = arith.constant dense<0.000000e+00> : vector<4608x128xf32>
    %3 = tpu.matmul %1, %2, %cst {dimension_numbers = #tpu.dot_dimension_numbers<[1], [0], [0], [1], [0, 0, 1, 1], [], []>} : vector<4608x25xbf16>, vector<25x128xbf16>, vector<4608x128xf32> -> vector<4608x128xf32>
    %4 = vector.extract_strided_slice %3 {offsets = [0, 0], sizes = [1152, 128], strides = [1, 1]} : vector<4608x128xf32> to vector<1152x128xf32>
    %5 = vector.extract_strided_slice %3 {offsets = [1152, 0], sizes = [1152, 128], strides = [1, 1]} : vector<4608x128xf32> to vector<1152x128xf32>
    %6 = arith.maximumf %4, %5 : vector<1152x128xf32>
    %7 = vector.extract_strided_slice %3 {offsets = [2304, 0], sizes = [1152, 128], strides = [1, 1]} : vector<4608x128xf32> to vector<1152x128xf32>
    %8 = vector.extract_strided_slice %3 {offsets = [3456, 0], sizes = [1152, 128], strides = [1, 1]} : vector<4608x128xf32> to vector<1152x128xf32>
    %9 = arith.maximumf %7, %8 : vector<1152x128xf32>
    %10 = arith.maximumf %6, %9 : vector<1152x128xf32>
    %c0_4 = arith.constant 0 : index
    %c0_5 = arith.constant 0 : index
    %11 = vector.load %arg3[%c0_4, %c0_5] : memref<1x128xf32, #tpu.memory_space<vmem>>, vector<1x128xf32>
    %12 = vector.broadcast %11 : vector<1x128xf32> to vector<1152x128xf32>
    %13 = arith.addf %10, %12 : vector<1152x128xf32>
    %cst_6 = arith.constant 0.000000e+00 : f32
    %14 = vector.broadcast %cst_6 : f32 to vector<1152x128xf32>
    %15 = arith.maximumf %13, %14 : vector<1152x128xf32>
    %16 = arith.truncf %15 : vector<1152x128xf32> to vector<1152x128xbf16>
    %17 = vector.shape_cast %16 : vector<1152x128xbf16> to vector<12x12x8x128xbf16>
    %cst_7 = arith.constant 0.000000e+00 : f32
    %18 = vector.broadcast %cst_7 : f32 to vector<512x128xf32>
    %19 = vector.extract_strided_slice %17 {offsets = [0, 0, 0, 0], sizes = [8, 8, 8, 128], strides = [1, 1, 1, 1]} : vector<12x12x8x128xbf16> to vector<8x8x8x128xbf16>
    %20 = vector.shape_cast %19 : vector<8x8x8x128xbf16> to vector<512x128xbf16>
    %c0_8 = arith.constant 0 : index
    %c0_9 = arith.constant 0 : index
    %c0_10 = arith.constant 0 : index
    %21 = vector.load %arg4[%c0_8, %c0_9, %c0_10] : memref<25x128x128xbf16, #tpu.memory_space<vmem>>, vector<1x128x128xbf16>
    %22 = vector.shape_cast %21 : vector<1x128x128xbf16> to vector<128x128xbf16>
    %cst_11 = arith.constant dense<0.000000e+00> : vector<512x128xf32>
    %23 = tpu.matmul %20, %22, %cst_11 {dimension_numbers = #tpu.dot_dimension_numbers<[1], [0], [0], [1], [0, 0, 1, 1], [], []>} : vector<512x128xbf16>, vector<128x128xbf16>, vector<512x128xf32> -> vector<512x128xf32>
    %24 = arith.addf %18, %23 : vector<512x128xf32>
    %25 = vector.extract_strided_slice %17 {offsets = [0, 1, 0, 0], sizes = [8, 8, 8, 128], strides = [1, 1, 1, 1]} : vector<12x12x8x128xbf16> to vector<8x8x8x128xbf16>
    %26 = vector.shape_cast %25 : vector<8x8x8x128xbf16> to vector<512x128xbf16>
    %c1 = arith.constant 1 : index
    %c0_12 = arith.constant 0 : index
    %c0_13 = arith.constant 0 : index
    %27 = vector.load %arg4[%c1, %c0_12, %c0_13] : memref<25x128x128xbf16, #tpu.memory_space<vmem>>, vector<1x128x128xbf16>
    %28 = vector.shape_cast %27 : vector<1x128x128xbf16> to vector<128x128xbf16>
    %cst_14 = arith.constant dense<0.000000e+00> : vector<512x128xf32>
    %29 = tpu.matmul %26, %28, %cst_14 {dimension_numbers = #tpu.dot_dimension_numbers<[1], [0], [0], [1], [0, 0, 1, 1], [], []>} : vector<512x128xbf16>, vector<128x128xbf16>, vector<512x128xf32> -> vector<512x128xf32>
    %30 = arith.addf %24, %29 : vector<512x128xf32>
    %31 = vector.extract_strided_slice %17 {offsets = [0, 2, 0, 0], sizes = [8, 8, 8, 128], strides = [1, 1, 1, 1]} : vector<12x12x8x128xbf16> to vector<8x8x8x128xbf16>
    %32 = vector.shape_cast %31 : vector<8x8x8x128xbf16> to vector<512x128xbf16>
    %c2 = arith.constant 2 : index
    %c0_15 = arith.constant 0 : index
    %c0_16 = arith.constant 0 : index
    %33 = vector.load %arg4[%c2, %c0_15, %c0_16] : memref<25x128x128xbf16, #tpu.memory_space<vmem>>, vector<1x128x128xbf16>
    %34 = vector.shape_cast %33 : vector<1x128x128xbf16> to vector<128x128xbf16>
    %cst_17 = arith.constant dense<0.000000e+00> : vector<512x128xf32>
    %35 = tpu.matmul %32, %34, %cst_17 {dimension_numbers = #tpu.dot_dimension_numbers<[1], [0], [0], [1], [0, 0, 1, 1], [], []>} : vector<512x128xbf16>, vector<128x128xbf16>, vector<512x128xf32> -> vector<512x128xf32>
    %36 = arith.addf %30, %35 : vector<512x128xf32>
    %37 = vector.extract_strided_slice %17 {offsets = [0, 3, 0, 0], sizes = [8, 8, 8, 128], strides = [1, 1, 1, 1]} : vector<12x12x8x128xbf16> to vector<8x8x8x128xbf16>
    %38 = vector.shape_cast %37 : vector<8x8x8x128xbf16> to vector<512x128xbf16>
    %c3 = arith.constant 3 : index
    %c0_18 = arith.constant 0 : index
    %c0_19 = arith.constant 0 : index
    %39 = vector.load %arg4[%c3, %c0_18, %c0_19] : memref<25x128x128xbf16, #tpu.memory_space<vmem>>, vector<1x128x128xbf16>
    %40 = vector.shape_cast %39 : vector<1x128x128xbf16> to vector<128x128xbf16>
    %cst_20 = arith.constant dense<0.000000e+00> : vector<512x128xf32>
    %41 = tpu.matmul %38, %40, %cst_20 {dimension_numbers = #tpu.dot_dimension_numbers<[1], [0], [0], [1], [0, 0, 1, 1], [], []>} : vector<512x128xbf16>, vector<128x128xbf16>, vector<512x128xf32> -> vector<512x128xf32>
    %42 = arith.addf %36, %41 : vector<512x128xf32>
    %43 = vector.extract_strided_slice %17 {offsets = [0, 4, 0, 0], sizes = [8, 8, 8, 128], strides = [1, 1, 1, 1]} : vector<12x12x8x128xbf16> to vector<8x8x8x128xbf16>
    %44 = vector.shape_cast %43 : vector<8x8x8x128xbf16> to vector<512x128xbf16>
    %c4 = arith.constant 4 : index
    %c0_21 = arith.constant 0 : index
    %c0_22 = arith.constant 0 : index
    %45 = vector.load %arg4[%c4, %c0_21, %c0_22] : memref<25x128x128xbf16, #tpu.memory_space<vmem>>, vector<1x128x128xbf16>
    %46 = vector.shape_cast %45 : vector<1x128x128xbf16> to vector<128x128xbf16>
    %cst_23 = arith.constant dense<0.000000e+00> : vector<512x128xf32>
    %47 = tpu.matmul %44, %46, %cst_23 {dimension_numbers = #tpu.dot_dimension_numbers<[1], [0], [0], [1], [0, 0, 1, 1], [], []>} : vector<512x128xbf16>, vector<128x128xbf16>, vector<512x128xf32> -> vector<512x128xf32>
    %48 = arith.addf %42, %47 : vector<512x128xf32>
    %49 = vector.extract_strided_slice %17 {offsets = [1, 0, 0, 0], sizes = [8, 8, 8, 128], strides = [1, 1, 1, 1]} : vector<12x12x8x128xbf16> to vector<8x8x8x128xbf16>
    %50 = vector.shape_cast %49 : vector<8x8x8x128xbf16> to vector<512x128xbf16>
    %c5 = arith.constant 5 : index
    %c0_24 = arith.constant 0 : index
    %c0_25 = arith.constant 0 : index
    %51 = vector.load %arg4[%c5, %c0_24, %c0_25] : memref<25x128x128xbf16, #tpu.memory_space<vmem>>, vector<1x128x128xbf16>
    %52 = vector.shape_cast %51 : vector<1x128x128xbf16> to vector<128x128xbf16>
    %cst_26 = arith.constant dense<0.000000e+00> : vector<512x128xf32>
    %53 = tpu.matmul %50, %52, %cst_26 {dimension_numbers = #tpu.dot_dimension_numbers<[1], [0], [0], [1], [0, 0, 1, 1], [], []>} : vector<512x128xbf16>, vector<128x128xbf16>, vector<512x128xf32> -> vector<512x128xf32>
    %54 = arith.addf %48, %53 : vector<512x128xf32>
    %55 = vector.extract_strided_slice %17 {offsets = [1, 1, 0, 0], sizes = [8, 8, 8, 128], strides = [1, 1, 1, 1]} : vector<12x12x8x128xbf16> to vector<8x8x8x128xbf16>
    %56 = vector.shape_cast %55 : vector<8x8x8x128xbf16> to vector<512x128xbf16>
    %c6 = arith.constant 6 : index
    %c0_27 = arith.constant 0 : index
    %c0_28 = arith.constant 0 : index
    %57 = vector.load %arg4[%c6, %c0_27, %c0_28] : memref<25x128x128xbf16, #tpu.memory_space<vmem>>, vector<1x128x128xbf16>
    %58 = vector.shape_cast %57 : vector<1x128x128xbf16> to vector<128x128xbf16>
    %cst_29 = arith.constant dense<0.000000e+00> : vector<512x128xf32>
    %59 = tpu.matmul %56, %58, %cst_29 {dimension_numbers = #tpu.dot_dimension_numbers<[1], [0], [0], [1], [0, 0, 1, 1], [], []>} : vector<512x128xbf16>, vector<128x128xbf16>, vector<512x128xf32> -> vector<512x128xf32>
    %60 = arith.addf %54, %59 : vector<512x128xf32>
    %61 = vector.extract_strided_slice %17 {offsets = [1, 2, 0, 0], sizes = [8, 8, 8, 128], strides = [1, 1, 1, 1]} : vector<12x12x8x128xbf16> to vector<8x8x8x128xbf16>
    %62 = vector.shape_cast %61 : vector<8x8x8x128xbf16> to vector<512x128xbf16>
    %c7 = arith.constant 7 : index
    %c0_30 = arith.constant 0 : index
    %c0_31 = arith.constant 0 : index
    %63 = vector.load %arg4[%c7, %c0_30, %c0_31] : memref<25x128x128xbf16, #tpu.memory_space<vmem>>, vector<1x128x128xbf16>
    %64 = vector.shape_cast %63 : vector<1x128x128xbf16> to vector<128x128xbf16>
    %cst_32 = arith.constant dense<0.000000e+00> : vector<512x128xf32>
    %65 = tpu.matmul %62, %64, %cst_32 {dimension_numbers = #tpu.dot_dimension_numbers<[1], [0], [0], [1], [0, 0, 1, 1], [], []>} : vector<512x128xbf16>, vector<128x128xbf16>, vector<512x128xf32> -> vector<512x128xf32>
    %66 = arith.addf %60, %65 : vector<512x128xf32>
    %67 = vector.extract_strided_slice %17 {offsets = [1, 3, 0, 0], sizes = [8, 8, 8, 128], strides = [1, 1, 1, 1]} : vector<12x12x8x128xbf16> to vector<8x8x8x128xbf16>
    %68 = vector.shape_cast %67 : vector<8x8x8x128xbf16> to vector<512x128xbf16>
    %c8 = arith.constant 8 : index
    %c0_33 = arith.constant 0 : index
    %c0_34 = arith.constant 0 : index
    %69 = vector.load %arg4[%c8, %c0_33, %c0_34] : memref<25x128x128xbf16, #tpu.memory_space<vmem>>, vector<1x128x128xbf16>
    %70 = vector.shape_cast %69 : vector<1x128x128xbf16> to vector<128x128xbf16>
    %cst_35 = arith.constant dense<0.000000e+00> : vector<512x128xf32>
    %71 = tpu.matmul %68, %70, %cst_35 {dimension_numbers = #tpu.dot_dimension_numbers<[1], [0], [0], [1], [0, 0, 1, 1], [], []>} : vector<512x128xbf16>, vector<128x128xbf16>, vector<512x128xf32> -> vector<512x128xf32>
    %72 = arith.addf %66, %71 : vector<512x128xf32>
    %73 = vector.extract_strided_slice %17 {offsets = [1, 4, 0, 0], sizes = [8, 8, 8, 128], strides = [1, 1, 1, 1]} : vector<12x12x8x128xbf16> to vector<8x8x8x128xbf16>
    %74 = vector.shape_cast %73 : vector<8x8x8x128xbf16> to vector<512x128xbf16>
    %c9 = arith.constant 9 : index
    %c0_36 = arith.constant 0 : index
    %c0_37 = arith.constant 0 : index
    %75 = vector.load %arg4[%c9, %c0_36, %c0_37] : memref<25x128x128xbf16, #tpu.memory_space<vmem>>, vector<1x128x128xbf16>
    %76 = vector.shape_cast %75 : vector<1x128x128xbf16> to vector<128x128xbf16>
    %cst_38 = arith.constant dense<0.000000e+00> : vector<512x128xf32>
    %77 = tpu.matmul %74, %76, %cst_38 {dimension_numbers = #tpu.dot_dimension_numbers<[1], [0], [0], [1], [0, 0, 1, 1], [], []>} : vector<512x128xbf16>, vector<128x128xbf16>, vector<512x128xf32> -> vector<512x128xf32>
    %78 = arith.addf %72, %77 : vector<512x128xf32>
    %79 = vector.extract_strided_slice %17 {offsets = [2, 0, 0, 0], sizes = [8, 8, 8, 128], strides = [1, 1, 1, 1]} : vector<12x12x8x128xbf16> to vector<8x8x8x128xbf16>
    %80 = vector.shape_cast %79 : vector<8x8x8x128xbf16> to vector<512x128xbf16>
    %c10 = arith.constant 10 : index
    %c0_39 = arith.constant 0 : index
    %c0_40 = arith.constant 0 : index
    %81 = vector.load %arg4[%c10, %c0_39, %c0_40] : memref<25x128x128xbf16, #tpu.memory_space<vmem>>, vector<1x128x128xbf16>
    %82 = vector.shape_cast %81 : vector<1x128x128xbf16> to vector<128x128xbf16>
    %cst_41 = arith.constant dense<0.000000e+00> : vector<512x128xf32>
    %83 = tpu.matmul %80, %82, %cst_41 {dimension_numbers = #tpu.dot_dimension_numbers<[1], [0], [0], [1], [0, 0, 1, 1], [], []>} : vector<512x128xbf16>, vector<128x128xbf16>, vector<512x128xf32> -> vector<512x128xf32>
    %84 = arith.addf %78, %83 : vector<512x128xf32>
    %85 = vector.extract_strided_slice %17 {offsets = [2, 1, 0, 0], sizes = [8, 8, 8, 128], strides = [1, 1, 1, 1]} : vector<12x12x8x128xbf16> to vector<8x8x8x128xbf16>
    %86 = vector.shape_cast %85 : vector<8x8x8x128xbf16> to vector<512x128xbf16>
    %c11 = arith.constant 11 : index
    %c0_42 = arith.constant 0 : index
    %c0_43 = arith.constant 0 : index
    %87 = vector.load %arg4[%c11, %c0_42, %c0_43] : memref<25x128x128xbf16, #tpu.memory_space<vmem>>, vector<1x128x128xbf16>
    %88 = vector.shape_cast %87 : vector<1x128x128xbf16> to vector<128x128xbf16>
    %cst_44 = arith.constant dense<0.000000e+00> : vector<512x128xf32>
    %89 = tpu.matmul %86, %88, %cst_44 {dimension_numbers = #tpu.dot_dimension_numbers<[1], [0], [0], [1], [0, 0, 1, 1], [], []>} : vector<512x128xbf16>, vector<128x128xbf16>, vector<512x128xf32> -> vector<512x128xf32>
    %90 = arith.addf %84, %89 : vector<512x128xf32>
    %91 = vector.extract_strided_slice %17 {offsets = [2, 2, 0, 0], sizes = [8, 8, 8, 128], strides = [1, 1, 1, 1]} : vector<12x12x8x128xbf16> to vector<8x8x8x128xbf16>
    %92 = vector.shape_cast %91 : vector<8x8x8x128xbf16> to vector<512x128xbf16>
    %c12 = arith.constant 12 : index
    %c0_45 = arith.constant 0 : index
    %c0_46 = arith.constant 0 : index
    %93 = vector.load %arg4[%c12, %c0_45, %c0_46] : memref<25x128x128xbf16, #tpu.memory_space<vmem>>, vector<1x128x128xbf16>
    %94 = vector.shape_cast %93 : vector<1x128x128xbf16> to vector<128x128xbf16>
    %cst_47 = arith.constant dense<0.000000e+00> : vector<512x128xf32>
    %95 = tpu.matmul %92, %94, %cst_47 {dimension_numbers = #tpu.dot_dimension_numbers<[1], [0], [0], [1], [0, 0, 1, 1], [], []>} : vector<512x128xbf16>, vector<128x128xbf16>, vector<512x128xf32> -> vector<512x128xf32>
    %96 = arith.addf %90, %95 : vector<512x128xf32>
    %97 = vector.extract_strided_slice %17 {offsets = [2, 3, 0, 0], sizes = [8, 8, 8, 128], strides = [1, 1, 1, 1]} : vector<12x12x8x128xbf16> to vector<8x8x8x128xbf16>
    %98 = vector.shape_cast %97 : vector<8x8x8x128xbf16> to vector<512x128xbf16>
    %c13 = arith.constant 13 : index
    %c0_48 = arith.constant 0 : index
    %c0_49 = arith.constant 0 : index
    %99 = vector.load %arg4[%c13, %c0_48, %c0_49] : memref<25x128x128xbf16, #tpu.memory_space<vmem>>, vector<1x128x128xbf16>
    %100 = vector.shape_cast %99 : vector<1x128x128xbf16> to vector<128x128xbf16>
    %cst_50 = arith.constant dense<0.000000e+00> : vector<512x128xf32>
    %101 = tpu.matmul %98, %100, %cst_50 {dimension_numbers = #tpu.dot_dimension_numbers<[1], [0], [0], [1], [0, 0, 1, 1], [], []>} : vector<512x128xbf16>, vector<128x128xbf16>, vector<512x128xf32> -> vector<512x128xf32>
    %102 = arith.addf %96, %101 : vector<512x128xf32>
    %103 = vector.extract_strided_slice %17 {offsets = [2, 4, 0, 0], sizes = [8, 8, 8, 128], strides = [1, 1, 1, 1]} : vector<12x12x8x128xbf16> to vector<8x8x8x128xbf16>
    %104 = vector.shape_cast %103 : vector<8x8x8x128xbf16> to vector<512x128xbf16>
    %c14 = arith.constant 14 : index
    %c0_51 = arith.constant 0 : index
    %c0_52 = arith.constant 0 : index
    %105 = vector.load %arg4[%c14, %c0_51, %c0_52] : memref<25x128x128xbf16, #tpu.memory_space<vmem>>, vector<1x128x128xbf16>
    %106 = vector.shape_cast %105 : vector<1x128x128xbf16> to vector<128x128xbf16>
    %cst_53 = arith.constant dense<0.000000e+00> : vector<512x128xf32>
    %107 = tpu.matmul %104, %106, %cst_53 {dimension_numbers = #tpu.dot_dimension_numbers<[1], [0], [0], [1], [0, 0, 1, 1], [], []>} : vector<512x128xbf16>, vector<128x128xbf16>, vector<512x128xf32> -> vector<512x128xf32>
    %108 = arith.addf %102, %107 : vector<512x128xf32>
    %109 = vector.extract_strided_slice %17 {offsets = [3, 0, 0, 0], sizes = [8, 8, 8, 128], strides = [1, 1, 1, 1]} : vector<12x12x8x128xbf16> to vector<8x8x8x128xbf16>
    %110 = vector.shape_cast %109 : vector<8x8x8x128xbf16> to vector<512x128xbf16>
    %c15 = arith.constant 15 : index
    %c0_54 = arith.constant 0 : index
    %c0_55 = arith.constant 0 : index
    %111 = vector.load %arg4[%c15, %c0_54, %c0_55] : memref<25x128x128xbf16, #tpu.memory_space<vmem>>, vector<1x128x128xbf16>
    %112 = vector.shape_cast %111 : vector<1x128x128xbf16> to vector<128x128xbf16>
    %cst_56 = arith.constant dense<0.000000e+00> : vector<512x128xf32>
    %113 = tpu.matmul %110, %112, %cst_56 {dimension_numbers = #tpu.dot_dimension_numbers<[1], [0], [0], [1], [0, 0, 1, 1], [], []>} : vector<512x128xbf16>, vector<128x128xbf16>, vector<512x128xf32> -> vector<512x128xf32>
    %114 = arith.addf %108, %113 : vector<512x128xf32>
    %115 = vector.extract_strided_slice %17 {offsets = [3, 1, 0, 0], sizes = [8, 8, 8, 128], strides = [1, 1, 1, 1]} : vector<12x12x8x128xbf16> to vector<8x8x8x128xbf16>
    %116 = vector.shape_cast %115 : vector<8x8x8x128xbf16> to vector<512x128xbf16>
    %c16 = arith.constant 16 : index
    %c0_57 = arith.constant 0 : index
    %c0_58 = arith.constant 0 : index
    %117 = vector.load %arg4[%c16, %c0_57, %c0_58] : memref<25x128x128xbf16, #tpu.memory_space<vmem>>, vector<1x128x128xbf16>
    %118 = vector.shape_cast %117 : vector<1x128x128xbf16> to vector<128x128xbf16>
    %cst_59 = arith.constant dense<0.000000e+00> : vector<512x128xf32>
    %119 = tpu.matmul %116, %118, %cst_59 {dimension_numbers = #tpu.dot_dimension_numbers<[1], [0], [0], [1], [0, 0, 1, 1], [], []>} : vector<512x128xbf16>, vector<128x128xbf16>, vector<512x128xf32> -> vector<512x128xf32>
    %120 = arith.addf %114, %119 : vector<512x128xf32>
    %121 = vector.extract_strided_slice %17 {offsets = [3, 2, 0, 0], sizes = [8, 8, 8, 128], strides = [1, 1, 1, 1]} : vector<12x12x8x128xbf16> to vector<8x8x8x128xbf16>
    %122 = vector.shape_cast %121 : vector<8x8x8x128xbf16> to vector<512x128xbf16>
    %c17 = arith.constant 17 : index
    %c0_60 = arith.constant 0 : index
    %c0_61 = arith.constant 0 : index
    %123 = vector.load %arg4[%c17, %c0_60, %c0_61] : memref<25x128x128xbf16, #tpu.memory_space<vmem>>, vector<1x128x128xbf16>
    %124 = vector.shape_cast %123 : vector<1x128x128xbf16> to vector<128x128xbf16>
    %cst_62 = arith.constant dense<0.000000e+00> : vector<512x128xf32>
    %125 = tpu.matmul %122, %124, %cst_62 {dimension_numbers = #tpu.dot_dimension_numbers<[1], [0], [0], [1], [0, 0, 1, 1], [], []>} : vector<512x128xbf16>, vector<128x128xbf16>, vector<512x128xf32> -> vector<512x128xf32>
    %126 = arith.addf %120, %125 : vector<512x128xf32>
    %127 = vector.extract_strided_slice %17 {offsets = [3, 3, 0, 0], sizes = [8, 8, 8, 128], strides = [1, 1, 1, 1]} : vector<12x12x8x128xbf16> to vector<8x8x8x128xbf16>
    %128 = vector.shape_cast %127 : vector<8x8x8x128xbf16> to vector<512x128xbf16>
    %c18 = arith.constant 18 : index
    %c0_63 = arith.constant 0 : index
    %c0_64 = arith.constant 0 : index
    %129 = vector.load %arg4[%c18, %c0_63, %c0_64] : memref<25x128x128xbf16, #tpu.memory_space<vmem>>, vector<1x128x128xbf16>
    %130 = vector.shape_cast %129 : vector<1x128x128xbf16> to vector<128x128xbf16>
    %cst_65 = arith.constant dense<0.000000e+00> : vector<512x128xf32>
    %131 = tpu.matmul %128, %130, %cst_65 {dimension_numbers = #tpu.dot_dimension_numbers<[1], [0], [0], [1], [0, 0, 1, 1], [], []>} : vector<512x128xbf16>, vector<128x128xbf16>, vector<512x128xf32> -> vector<512x128xf32>
    %132 = arith.addf %126, %131 : vector<512x128xf32>
    %133 = vector.extract_strided_slice %17 {offsets = [3, 4, 0, 0], sizes = [8, 8, 8, 128], strides = [1, 1, 1, 1]} : vector<12x12x8x128xbf16> to vector<8x8x8x128xbf16>
    %134 = vector.shape_cast %133 : vector<8x8x8x128xbf16> to vector<512x128xbf16>
    %c19 = arith.constant 19 : index
    %c0_66 = arith.constant 0 : index
    %c0_67 = arith.constant 0 : index
    %135 = vector.load %arg4[%c19, %c0_66, %c0_67] : memref<25x128x128xbf16, #tpu.memory_space<vmem>>, vector<1x128x128xbf16>
    %136 = vector.shape_cast %135 : vector<1x128x128xbf16> to vector<128x128xbf16>
    %cst_68 = arith.constant dense<0.000000e+00> : vector<512x128xf32>
    %137 = tpu.matmul %134, %136, %cst_68 {dimension_numbers = #tpu.dot_dimension_numbers<[1], [0], [0], [1], [0, 0, 1, 1], [], []>} : vector<512x128xbf16>, vector<128x128xbf16>, vector<512x128xf32> -> vector<512x128xf32>
    %138 = arith.addf %132, %137 : vector<512x128xf32>
    %139 = vector.extract_strided_slice %17 {offsets = [4, 0, 0, 0], sizes = [8, 8, 8, 128], strides = [1, 1, 1, 1]} : vector<12x12x8x128xbf16> to vector<8x8x8x128xbf16>
    %140 = vector.shape_cast %139 : vector<8x8x8x128xbf16> to vector<512x128xbf16>
    %c20 = arith.constant 20 : index
    %c0_69 = arith.constant 0 : index
    %c0_70 = arith.constant 0 : index
    %141 = vector.load %arg4[%c20, %c0_69, %c0_70] : memref<25x128x128xbf16, #tpu.memory_space<vmem>>, vector<1x128x128xbf16>
    %142 = vector.shape_cast %141 : vector<1x128x128xbf16> to vector<128x128xbf16>
    %cst_71 = arith.constant dense<0.000000e+00> : vector<512x128xf32>
    %143 = tpu.matmul %140, %142, %cst_71 {dimension_numbers = #tpu.dot_dimension_numbers<[1], [0], [0], [1], [0, 0, 1, 1], [], []>} : vector<512x128xbf16>, vector<128x128xbf16>, vector<512x128xf32> -> vector<512x128xf32>
    %144 = arith.addf %138, %143 : vector<512x128xf32>
    %145 = vector.extract_strided_slice %17 {offsets = [4, 1, 0, 0], sizes = [8, 8, 8, 128], strides = [1, 1, 1, 1]} : vector<12x12x8x128xbf16> to vector<8x8x8x128xbf16>
    %146 = vector.shape_cast %145 : vector<8x8x8x128xbf16> to vector<512x128xbf16>
    %c21 = arith.constant 21 : index
    %c0_72 = arith.constant 0 : index
    %c0_73 = arith.constant 0 : index
    %147 = vector.load %arg4[%c21, %c0_72, %c0_73] : memref<25x128x128xbf16, #tpu.memory_space<vmem>>, vector<1x128x128xbf16>
    %148 = vector.shape_cast %147 : vector<1x128x128xbf16> to vector<128x128xbf16>
    %cst_74 = arith.constant dense<0.000000e+00> : vector<512x128xf32>
    %149 = tpu.matmul %146, %148, %cst_74 {dimension_numbers = #tpu.dot_dimension_numbers<[1], [0], [0], [1], [0, 0, 1, 1], [], []>} : vector<512x128xbf16>, vector<128x128xbf16>, vector<512x128xf32> -> vector<512x128xf32>
    %150 = arith.addf %144, %149 : vector<512x128xf32>
    %151 = vector.extract_strided_slice %17 {offsets = [4, 2, 0, 0], sizes = [8, 8, 8, 128], strides = [1, 1, 1, 1]} : vector<12x12x8x128xbf16> to vector<8x8x8x128xbf16>
    %152 = vector.shape_cast %151 : vector<8x8x8x128xbf16> to vector<512x128xbf16>
    %c22 = arith.constant 22 : index
    %c0_75 = arith.constant 0 : index
    %c0_76 = arith.constant 0 : index
    %153 = vector.load %arg4[%c22, %c0_75, %c0_76] : memref<25x128x128xbf16, #tpu.memory_space<vmem>>, vector<1x128x128xbf16>
    %154 = vector.shape_cast %153 : vector<1x128x128xbf16> to vector<128x128xbf16>
    %cst_77 = arith.constant dense<0.000000e+00> : vector<512x128xf32>
    %155 = tpu.matmul %152, %154, %cst_77 {dimension_numbers = #tpu.dot_dimension_numbers<[1], [0], [0], [1], [0, 0, 1, 1], [], []>} : vector<512x128xbf16>, vector<128x128xbf16>, vector<512x128xf32> -> vector<512x128xf32>
    %156 = arith.addf %150, %155 : vector<512x128xf32>
    %157 = vector.extract_strided_slice %17 {offsets = [4, 3, 0, 0], sizes = [8, 8, 8, 128], strides = [1, 1, 1, 1]} : vector<12x12x8x128xbf16> to vector<8x8x8x128xbf16>
    %158 = vector.shape_cast %157 : vector<8x8x8x128xbf16> to vector<512x128xbf16>
    %c23 = arith.constant 23 : index
    %c0_78 = arith.constant 0 : index
    %c0_79 = arith.constant 0 : index
    %159 = vector.load %arg4[%c23, %c0_78, %c0_79] : memref<25x128x128xbf16, #tpu.memory_space<vmem>>, vector<1x128x128xbf16>
    %160 = vector.shape_cast %159 : vector<1x128x128xbf16> to vector<128x128xbf16>
    %cst_80 = arith.constant dense<0.000000e+00> : vector<512x128xf32>
    %161 = tpu.matmul %158, %160, %cst_80 {dimension_numbers = #tpu.dot_dimension_numbers<[1], [0], [0], [1], [0, 0, 1, 1], [], []>} : vector<512x128xbf16>, vector<128x128xbf16>, vector<512x128xf32> -> vector<512x128xf32>
    %162 = arith.addf %156, %161 : vector<512x128xf32>
    %163 = vector.extract_strided_slice %17 {offsets = [4, 4, 0, 0], sizes = [8, 8, 8, 128], strides = [1, 1, 1, 1]} : vector<12x12x8x128xbf16> to vector<8x8x8x128xbf16>
    %164 = vector.shape_cast %163 : vector<8x8x8x128xbf16> to vector<512x128xbf16>
    %c24 = arith.constant 24 : index
    %c0_81 = arith.constant 0 : index
    %c0_82 = arith.constant 0 : index
    %165 = vector.load %arg4[%c24, %c0_81, %c0_82] : memref<25x128x128xbf16, #tpu.memory_space<vmem>>, vector<1x128x128xbf16>
    %166 = vector.shape_cast %165 : vector<1x128x128xbf16> to vector<128x128xbf16>
    %cst_83 = arith.constant dense<0.000000e+00> : vector<512x128xf32>
    %167 = tpu.matmul %164, %166, %cst_83 {dimension_numbers = #tpu.dot_dimension_numbers<[1], [0], [0], [1], [0, 0, 1, 1], [], []>} : vector<512x128xbf16>, vector<128x128xbf16>, vector<512x128xf32> -> vector<512x128xf32>
    %168 = arith.addf %162, %167 : vector<512x128xf32>
    %c0_84 = arith.constant 0 : index
    %c0_85 = arith.constant 0 : index
    %169 = vector.load %arg5[%c0_84, %c0_85] : memref<1x128xf32, #tpu.memory_space<vmem>>, vector<1x128xf32>
    %170 = vector.broadcast %169 : vector<1x128xf32> to vector<512x128xf32>
    %171 = arith.addf %168, %170 : vector<512x128xf32>
    %cst_86 = arith.constant 0.000000e+00 : f32
    %172 = vector.broadcast %cst_86 : f32 to vector<512x128xf32>
    %173 = arith.maximumf %171, %172 : vector<512x128xf32>
    %174 = vector.shape_cast %173 : vector<512x128xf32> to vector<8x4x2x8x128xf32>
    %175 = vector.extract_strided_slice %174 {offsets = [0, 0, 0, 0, 0], sizes = [8, 4, 1, 8, 128], strides = [1, 1, 1, 1, 1]} : vector<8x4x2x8x128xf32> to vector<8x4x1x8x128xf32>
    %176 = vector.shape_cast %175 : vector<8x4x1x8x128xf32> to vector<8x4x8x128xf32>
    %177 = vector.extract_strided_slice %174 {offsets = [0, 0, 1, 0, 0], sizes = [8, 4, 1, 8, 128], strides = [1, 1, 1, 1, 1]} : vector<8x4x2x8x128xf32> to vector<8x4x1x8x128xf32>
    %178 = vector.shape_cast %177 : vector<8x4x1x8x128xf32> to vector<8x4x8x128xf32>
    %179 = arith.maximumf %176, %178 : vector<8x4x8x128xf32>
    %180 = vector.shape_cast %179 : vector<8x4x8x128xf32> to vector<4x2x4x8x128xf32>
    %181 = vector.extract_strided_slice %180 {offsets = [0, 0, 0, 0, 0], sizes = [4, 1, 4, 8, 128], strides = [1, 1, 1, 1, 1]} : vector<4x2x4x8x128xf32> to vector<4x1x4x8x128xf32>
    %182 = vector.shape_cast %181 : vector<4x1x4x8x128xf32> to vector<4x4x8x128xf32>
    %183 = vector.extract_strided_slice %180 {offsets = [0, 1, 0, 0, 0], sizes = [4, 1, 4, 8, 128], strides = [1, 1, 1, 1, 1]} : vector<4x2x4x8x128xf32> to vector<4x1x4x8x128xf32>
    %184 = vector.shape_cast %183 : vector<4x1x4x8x128xf32> to vector<4x4x8x128xf32>
    %185 = arith.maximumf %182, %184 : vector<4x4x8x128xf32>
    %186 = vector.extract_strided_slice %185 {offsets = [0, 0, 0, 0], sizes = [1, 1, 8, 128], strides = [1, 1, 1, 1]} : vector<4x4x8x128xf32> to vector<1x1x8x128xf32>
    %187 = vector.shape_cast %186 : vector<1x1x8x128xf32> to vector<8x128xf32>
    %188 = vector.extract_strided_slice %185 {offsets = [0, 1, 0, 0], sizes = [1, 1, 8, 128], strides = [1, 1, 1, 1]} : vector<4x4x8x128xf32> to vector<1x1x8x128xf32>
    %189 = vector.shape_cast %188 : vector<1x1x8x128xf32> to vector<8x128xf32>
    %190 = vector.extract_strided_slice %185 {offsets = [0, 2, 0, 0], sizes = [1, 1, 8, 128], strides = [1, 1, 1, 1]} : vector<4x4x8x128xf32> to vector<1x1x8x128xf32>
    %191 = vector.shape_cast %190 : vector<1x1x8x128xf32> to vector<8x128xf32>
    %192 = vector.extract_strided_slice %185 {offsets = [0, 3, 0, 0], sizes = [1, 1, 8, 128], strides = [1, 1, 1, 1]} : vector<4x4x8x128xf32> to vector<1x1x8x128xf32>
    %193 = vector.shape_cast %192 : vector<1x1x8x128xf32> to vector<8x128xf32>
    %194 = vector.extract_strided_slice %185 {offsets = [1, 0, 0, 0], sizes = [1, 1, 8, 128], strides = [1, 1, 1, 1]} : vector<4x4x8x128xf32> to vector<1x1x8x128xf32>
    %195 = vector.shape_cast %194 : vector<1x1x8x128xf32> to vector<8x128xf32>
    %196 = vector.extract_strided_slice %185 {offsets = [1, 1, 0, 0], sizes = [1, 1, 8, 128], strides = [1, 1, 1, 1]} : vector<4x4x8x128xf32> to vector<1x1x8x128xf32>
    %197 = vector.shape_cast %196 : vector<1x1x8x128xf32> to vector<8x128xf32>
    %198 = vector.extract_strided_slice %185 {offsets = [1, 2, 0, 0], sizes = [1, 1, 8, 128], strides = [1, 1, 1, 1]} : vector<4x4x8x128xf32> to vector<1x1x8x128xf32>
    %199 = vector.shape_cast %198 : vector<1x1x8x128xf32> to vector<8x128xf32>
    %200 = vector.extract_strided_slice %185 {offsets = [1, 3, 0, 0], sizes = [1, 1, 8, 128], strides = [1, 1, 1, 1]} : vector<4x4x8x128xf32> to vector<1x1x8x128xf32>
    %201 = vector.shape_cast %200 : vector<1x1x8x128xf32> to vector<8x128xf32>
    %202 = vector.extract_strided_slice %185 {offsets = [2, 0, 0, 0], sizes = [1, 1, 8, 128], strides = [1, 1, 1, 1]} : vector<4x4x8x128xf32> to vector<1x1x8x128xf32>
    %203 = vector.shape_cast %202 : vector<1x1x8x128xf32> to vector<8x128xf32>
    %204 = vector.extract_strided_slice %185 {offsets = [2, 1, 0, 0], sizes = [1, 1, 8, 128], strides = [1, 1, 1, 1]} : vector<4x4x8x128xf32> to vector<1x1x8x128xf32>
    %205 = vector.shape_cast %204 : vector<1x1x8x128xf32> to vector<8x128xf32>
    %206 = vector.extract_strided_slice %185 {offsets = [2, 2, 0, 0], sizes = [1, 1, 8, 128], strides = [1, 1, 1, 1]} : vector<4x4x8x128xf32> to vector<1x1x8x128xf32>
    %207 = vector.shape_cast %206 : vector<1x1x8x128xf32> to vector<8x128xf32>
    %208 = vector.extract_strided_slice %185 {offsets = [2, 3, 0, 0], sizes = [1, 1, 8, 128], strides = [1, 1, 1, 1]} : vector<4x4x8x128xf32> to vector<1x1x8x128xf32>
    %209 = vector.shape_cast %208 : vector<1x1x8x128xf32> to vector<8x128xf32>
    %210 = vector.extract_strided_slice %185 {offsets = [3, 0, 0, 0], sizes = [1, 1, 8, 128], strides = [1, 1, 1, 1]} : vector<4x4x8x128xf32> to vector<1x1x8x128xf32>
    %211 = vector.shape_cast %210 : vector<1x1x8x128xf32> to vector<8x128xf32>
    %212 = vector.extract_strided_slice %185 {offsets = [3, 1, 0, 0], sizes = [1, 1, 8, 128], strides = [1, 1, 1, 1]} : vector<4x4x8x128xf32> to vector<1x1x8x128xf32>
    %213 = vector.shape_cast %212 : vector<1x1x8x128xf32> to vector<8x128xf32>
    %214 = vector.extract_strided_slice %185 {offsets = [3, 2, 0, 0], sizes = [1, 1, 8, 128], strides = [1, 1, 1, 1]} : vector<4x4x8x128xf32> to vector<1x1x8x128xf32>
    %215 = vector.shape_cast %214 : vector<1x1x8x128xf32> to vector<8x128xf32>
    %216 = vector.extract_strided_slice %185 {offsets = [3, 3, 0, 0], sizes = [1, 1, 8, 128], strides = [1, 1, 1, 1]} : vector<4x4x8x128xf32> to vector<1x1x8x128xf32>
    %217 = vector.shape_cast %216 : vector<1x1x8x128xf32> to vector<8x128xf32>
    %218 = tpu.concatenate %187, %189, %191, %193, %195, %197, %199, %201, %203, %205, %207, %209, %211, %213, %215, %217 in 1 : vector<8x128xf32>, vector<8x128xf32>, vector<8x128xf32>, vector<8x128xf32>, vector<8x128xf32>, vector<8x128xf32>, vector<8x128xf32>, vector<8x128xf32>, vector<8x128xf32>, vector<8x128xf32>, vector<8x128xf32>, vector<8x128xf32>, vector<8x128xf32>, vector<8x128xf32>, vector<8x128xf32>, vector<8x128xf32> -> vector<8x2048xf32>
    %219 = arith.truncf %218 : vector<8x2048xf32> to vector<8x2048xbf16>
    %c0_87 = arith.constant 0 : index
    %c0_88 = arith.constant 0 : index
    %220 = vector.load %arg6[%c0_87, %c0_88] : memref<2048x512xbf16, #tpu.memory_space<vmem>>, vector<2048x512xbf16>
    %cst_89 = arith.constant dense<0.000000e+00> : vector<8x512xf32>
    %221 = tpu.matmul %219, %220, %cst_89 {dimension_numbers = #tpu.dot_dimension_numbers<[1], [0], [0], [1], [0, 0, 1, 1], [], []>} : vector<8x2048xbf16>, vector<2048x512xbf16>, vector<8x512xf32> -> vector<8x512xf32>
    %c0_90 = arith.constant 0 : index
    %c0_91 = arith.constant 0 : index
    %222 = vector.load %arg7[%c0_90, %c0_91] : memref<1x512xf32, #tpu.memory_space<vmem>>, vector<1x512xf32>
    %223 = vector.broadcast %222 : vector<1x512xf32> to vector<8x512xf32>
    %224 = arith.addf %221, %223 : vector<8x512xf32>
    %cst_92 = arith.constant 0.000000e+00 : f32
    %225 = vector.broadcast %cst_92 : f32 to vector<8x512xf32>
    %226 = arith.maximumf %224, %225 : vector<8x512xf32>
    %227 = arith.truncf %226 : vector<8x512xf32> to vector<8x512xbf16>
    %c0_93 = arith.constant 0 : index
    %c0_94 = arith.constant 0 : index
    %228 = vector.load %arg8[%c0_93, %c0_94] : memref<512x128xbf16, #tpu.memory_space<vmem>>, vector<512x128xbf16>
    %cst_95 = arith.constant dense<0.000000e+00> : vector<8x128xf32>
    %229 = tpu.matmul %227, %228, %cst_95 {dimension_numbers = #tpu.dot_dimension_numbers<[1], [0], [0], [1], [0, 0, 1, 1], [], []>} : vector<8x512xbf16>, vector<512x128xbf16>, vector<8x128xf32> -> vector<8x128xf32>
    %c0_96 = arith.constant 0 : index
    %c0_97 = arith.constant 0 : index
    %230 = vector.load %arg9[%c0_96, %c0_97] : memref<1x128xf32, #tpu.memory_space<vmem>>, vector<1x128xf32>
    %231 = vector.broadcast %230 : vector<1x128xf32> to vector<8x128xf32>
    %232 = arith.addf %229, %231 : vector<8x128xf32>
    %cst_98 = arith.constant dense<0xFF800000> : vector<8xf32>
    %233 = vector.multi_reduction <maximumf>, %232, %cst_98 [1] : vector<8x128xf32> to vector<8xf32>
    %234 = vector.shape_cast %233 : vector<8xf32> to vector<8x1xf32>
    %235 = vector.broadcast %234 : vector<8x1xf32> to vector<8x128xf32>
    %236 = arith.subf %232, %235 : vector<8x128xf32>
    %237 = math.exp %236 : vector<8x128xf32>
    %cst_99 = arith.constant dense<0.000000e+00> : vector<8xf32>
    %238 = vector.multi_reduction <add>, %237, %cst_99 [1] : vector<8x128xf32> to vector<8xf32>
    %239 = vector.shape_cast %238 : vector<8xf32> to vector<8x1xf32>
    %240 = math.log %239 : vector<8x1xf32>
    %241 = vector.broadcast %240 : vector<8x1xf32> to vector<8x128xf32>
    %242 = arith.subf %236, %241 : vector<8x128xf32>
    %c0_100 = arith.constant 0 : index
    %c0_101 = arith.constant 0 : index
    %243 = vector.load %arg10[%c0_100, %c0_101] : memref<8x128xf32, #tpu.memory_space<vmem>>, vector<8x128xf32>
    tpu.vector_store %arg10[%c0_100, %c0_101], %242 {strides = array<i32>} : memref<8x128xf32, #tpu.memory_space<vmem>>, vector<8x128xf32>,
    return
  }
  func.func @transform_0(%arg0: i32) -> (i32, i32, i32) {
    %c0_i32 = arith.constant 0 : i32
    %c0_i32_0 = arith.constant 0 : i32
    %c0_i32_1 = arith.constant 0 : i32
    return %arg0, %c0_i32, %c0_i32_0 : i32, i32, i32
  }
  func.func @transform_1(%arg0: i32) -> (i32, i32) {
    %c0_i32 = arith.constant 0 : i32
    %c0_i32_0 = arith.constant 0 : i32
    %c0_i32_1 = arith.constant 0 : i32
    return %c0_i32, %c0_i32_0 : i32, i32
  }
  func.func @transform_2(%arg0: i32) -> (i32, i32) {
    %c0_i32 = arith.constant 0 : i32
    %c0_i32_0 = arith.constant 0 : i32
    %c0_i32_1 = arith.constant 0 : i32
    return %c0_i32, %c0_i32_0 : i32, i32
  }
  func.func @transform_3(%arg0: i32) -> (i32, i32, i32) {
    %c0_i32 = arith.constant 0 : i32
    %c0_i32_0 = arith.constant 0 : i32
    %c0_i32_1 = arith.constant 0 : i32
    %c0_i32_2 = arith.constant 0 : i32
    return %c0_i32, %c0_i32_0, %c0_i32_1 : i32, i32, i32
  }
  func.func @transform_4(%arg0: i32) -> (i32, i32) {
    %c0_i32 = arith.constant 0 : i32
    %c0_i32_0 = arith.constant 0 : i32
    %c0_i32_1 = arith.constant 0 : i32
    return %c0_i32, %c0_i32_0 : i32, i32
  }
  func.func @transform_5(%arg0: i32) -> (i32, i32) {
    %c0_i32 = arith.constant 0 : i32
    %c0_i32_0 = arith.constant 0 : i32
    %c0_i32_1 = arith.constant 0 : i32
    return %c0_i32, %c0_i32_0 : i32, i32
  }
  func.func @transform_6(%arg0: i32) -> (i32, i32) {
    %c0_i32 = arith.constant 0 : i32
    %c0_i32_0 = arith.constant 0 : i32
    %c0_i32_1 = arith.constant 0 : i32
    return %c0_i32, %c0_i32_0 : i32, i32
  }
  func.func @transform_7(%arg0: i32) -> (i32, i32) {
    %c0_i32 = arith.constant 0 : i32
    %c0_i32_0 = arith.constant 0 : i32
    %c0_i32_1 = arith.constant 0 : i32
    return %c0_i32, %c0_i32_0 : i32, i32
  }
  func.func @transform_8(%arg0: i32) -> (i32, i32) {
    %c0_i32 = arith.constant 0 : i32
    %c0_i32_0 = arith.constant 0 : i32
    %c0_i32_1 = arith.constant 0 : i32
    return %c0_i32, %c0_i32_0 : i32, i32
  }
  func.func @transform_9(%arg0: i32) -> (i32, i32) {
    %c0_i32 = arith.constant 0 : i32
    %c0_i32_0 = arith.constant 0 : i32
    return %arg0, %c0_i32 : i32, i32
  }
}

</mosaic_0001>

<bundles_post_ra>
// kernel: cnn_forward.1
= control target key start
LH: loop header
LB: loop body
LE: loop exit
PB: predicated region body
PF: predicated region fallthrough
CT: control target
= control target key end

     0   :  { %vm2929_vm0 = vcmask 1043456   ;;  %vm2930_vm1 = vcmask 1044480   ;;  %vm2064_vm2 = vcmask 203776   ;;  %v29704_v1 = vmov 65535   ;;  %s36657_s1 = inlined_call_operand.vmem [shape: bf16[25,128], index: 1, kind: input, shape index: {}]   ;;  %s36658_s0 = inlined_call_operand.vmem [shape: bf16[1,4608,25], index: 0, kind: input, shape index: {}]   ;;  %s36659_s3 = inlined_call_operand.vmem [shape: bf16[25,128,128], index: 3, kind: input, shape index: {}]   ;;  %s36660_s2 = inlined_call_operand.vmem [shape: f32[1,128], index: 2, kind: input, shape index: {}]   ;;  %s36661_s5 = inlined_call_operand.vmem [shape: bf16[2048,512], index: 5, kind: input, shape index: {}]   ;;  %s36662_s4 = inlined_call_operand.vmem [shape: f32[1,128], index: 4, kind: input, shape index: {}]   ;;  %s36663_s7 = inlined_call_operand.vmem [shape: bf16[512,128], index: 7, kind: input, shape index: {}]   ;;  %s36664_s6 = inlined_call_operand.vmem [shape: f32[1,512], index: 6, kind: input, shape index: {}]   ;;  %s36665_s8 = inlined_call_operand.vmem [shape: f32[1,128], index: 8, kind: input, shape index: {}]   ;;  %s36666_s9 = inlined_call_operand.vmem [shape: f32[8,128], index: 9, kind: output, shape index: {}]  }
   0x1   :  { %v28408_v0 = vld [vmem:[%s36657_s1] sm:$0xff]   ;;  %v2931_v2 = vsel %vm2929_vm0, 4294967295, %v29704_v1  ;;  %v28409_v3 = vld [vmem:[%s36657_s1 + $0x8] sm:$0x1f]   ;;  %v28412_v8 = vld [vmem:[%s36658_s0 + $0x10] sm:$0xff]  }
   0x2   :  { %24231 = vmatprep.subr.bf16.mxu0 %v28408_v0  ;;  %v2932_v4 = vsel %vm2930_vm1, %v2931_v2, 0  ;;  %v28410_v5 = vld [vmem:[%s36658_s0] sm:$0xff]   ;;  %v28411_v7 = vld [vmem:[%s36658_s0 + $0x8] sm:$0xff]   ;;  %v28413_v9 = vld [vmem:[%s36658_s0 + $0x18] sm:$0xff]  }
   0x3   :  { %24232 = vmatpush3.bf16.msra.mxu0 %v28408_v0  ;;  %v2934_v6 = vand.u32 %v28409_v3, %v2932_v4  ;;  %24235 = vmatprep.mubr.msk.bf16.mxu0 %vm2064_vm2, %v28410_v5  ;;  %v28414_v10 = vld [vmem:[%s36658_s0 + $0x20] sm:$0xff]   ;;  %v28415_v11 = vld [vmem:[%s36658_s0 + $0x28] sm:$0xff]   ;;  %v28416_v12 = vld [vmem:[%s36658_s0 + $0x30] sm:$0xff]  }
   0x4   :  { %v28417_v13 = vld [vmem:[%s36658_s0 + $0x38] sm:$0xff]   ;;  %v28418_v14 = vld [vmem:[%s36658_s0 + $0x40] sm:$0xff]   ;;  %v28419_v15 = vld [vmem:[%s36658_s0 + $0x48] sm:$0xff]  }
   0x5   :  { %24233 = vmatprep.subr.bf16.mxu0 %v2934_v6  ;;  %v28420_v16 = vld [vmem:[%s36658_s0 + $0x50] sm:$0xff]   ;;  %v28421_v17 = vld [vmem:[%s36658_s0 + $0x58] sm:$0xff]   ;;  %v28422_v18 = vld [vmem:[%s36658_s0 + $0x60] sm:$0xff]  }
   0x6   :  { %v28423_v19 = vld [vmem:[%s36658_s0 + $0x68] sm:$0xff]   ;;  %v28424_v20 = vld [vmem:[%s36658_s0 + $0x70] sm:$0xff]   ;;  %v28425_v21 = vld [vmem:[%s36658_s0 + $0x78] sm:$0xff]  }
   0x7   :  { %24234 = vmatpush3.bf16.msra.mxu0 %v2934_v6  ;;  %v28426_v22 = vld [vmem:[%s36658_s0 + $0x80] sm:$0xff]   ;;  %v28427_v23 = vld [vmem:[%s36658_s0 + $0x88] sm:$0xff]   ;;  %v28428_v24 = vld [vmem:[%s36658_s0 + $0x90] sm:$0xff]  }
   0x8   :  { %v28429_v25 = vld [vmem:[%s36658_s0 + $0x98] sm:$0xff]   ;;  %v28430_v26 = vld [vmem:[%s36658_s0 + $0xa0] sm:$0xff]   ;;  %v28431_v27 = vld [vmem:[%s36658_s0 + $0xa8] sm:$0xff]  }
   0x9   :  { %v28432_v28 = vld [vmem:[%s36658_s0 + $0xb0] sm:$0xff]   ;;  %v28433_v29 = vld [vmem:[%s36658_s0 + $0xb8] sm:$0xff]   ;;  %v28434_v30 = vld [vmem:[%s36658_s0 + $0xc0] sm:$0xff]  }
   0xa   :  { %24236 = vmatmul.mubr.msk.bf16.vlgmr.msra.gmra.mrb[0].mxu0 %vm2064_vm2, %v28411_v7  ;;  %v28435_v31 = vld [vmem:[%s36658_s0 + $0xc8] sm:$0xff]   ;;  %v28436_v32 = vld [vmem:[%s36658_s0 + $0xd0] sm:$0xff]   ;;  %v28437_v33 = vld [vmem:[%s36658_s0 + $0xd8] sm:$0xff]  }
   0xb   :  { %24239 = vmatprep.mubr.msk.bf16.mxu0 %vm2064_vm2, %v28412_v8  ;;  %v28438_v34 = vld [vmem:[%s36658_s0 + $0xe0] sm:$0xff]   ;;  %v28439_v35 = vld [vmem:[%s36658_s0 + $0xe8] sm:$0xff]   ;;  %v28440_v36 = vld [vmem:[%s36658_s0 + $0xf0] sm:$0xff]  }
   0xc   :  { %v28441_v37 = vld [vmem:[%s36658_s0 + $0xf8] sm:$0xff]   ;;  %v28442_v38 = vld [vmem:[%s36658_s0 + $0x100] sm:$0xff]   ;;  %v28443_v39 = vld [vmem:[%s36658_s0 + $0x108] sm:$0xff]  }
   0xd   :  { %v28444_v40 = vld [vmem:[%s36658_s0 + $0x110] sm:$0xff]   ;;  %v28445_v41 = vld [vmem:[%s36658_s0 + $0x118] sm:$0xff]   ;;  %v28446_v42 = vld [vmem:[%s36658_s0 + $0x120] sm:$0xff]  }
   0xe   :  { %v28447_v43 = vld [vmem:[%s36658_s0 + $0x128] sm:$0xff]   ;;  %v28448_v44 = vld [vmem:[%s36658_s0 + $0x130] sm:$0xff]   ;;  %v28449_v45 = vld [vmem:[%s36658_s0 + $0x138] sm:$0xff]  }
   0xf   :  { %v28450_v46 = vld [vmem:[%s36658_s0 + $0x140] sm:$0xff]   ;;  %v28451_v47 = vld [vmem:[%s36658_s0 + $0x148] sm:$0xff]   ;;  %v28452_v48 = vld [vmem:[%s36658_s0 + $0x150] sm:$0xff]  }
  0x10   :  { %v28453_v49 = vld [vmem:[%s36658_s0 + $0x158] sm:$0xff]   ;;  %v28454_v50 = vld [vmem:[%s36658_s0 + $0x160] sm:$0xff]   ;;  %v28455_v51 = vld [vmem:[%s36658_s0 + $0x168] sm:$0xff]  }
  0x11   :  { %v28456_v52 = vld [vmem:[%s36658_s0 + $0x170] sm:$0xff]   ;;  %v28457_v53 = vld [vmem:[%s36658_s0 + $0x178] sm:$0xff]   ;;  %v28458_v54 = vld [vmem:[%s36658_s0 + $0x180] sm:$0xff]  }
  0x12   :  { %24240 = vmatmul.mubr.msk.bf16.gmra.mrb[4].mxu0 %vm2064_vm2, %v28413_v9  ;;  %v28459_v55 = vld [vmem:[%s36658_s0 + $0x188] sm:$0xff]   ;;  %v28460_v56 = vld [vmem:[%s36658_s0 + $0x190] sm:$0xff]   ;;  %v28461_v57 = vld [vmem:[%s36658_s0 + $0x198] sm:$0xff]  }
  0x13   :  { %24243 = vmatprep.mubr.msk.bf16.mxu0 %vm2064_vm2, %v28414_v10  ;;  %v28462_v58 = vld [vmem:[%s36658_s0 + $0x1a0] sm:$0xff]   ;;  %v28463_v59 = vld [vmem:[%s36658_s0 + $0x1a8] sm:$0xff]   ;;  %v28464_v60 = vld [vmem:[%s36658_s0 + $0x1b0] sm:$0xff]  }
  0x14   :  { %v28465_v63 = vld [vmem:[%s36658_s0 + $0x1b8] sm:$0xff]   ;;  %v28466_v1 = vld [vmem:[%s36658_s0 + $0x1c0] sm:$0xff]   ;;  %v28467_v5 = vld [vmem:[%s36658_s0 + $0x1c8] sm:$0xff]  }
  0x15   :  { %v28468_v7 = vld [vmem:[%s36658_s0 + $0x1d0] sm:$0xff]  }
  0x1a   :  { %24244 = vmatmul.mubr.msk.bf16.gmra.mrb[8].mxu0 %vm2064_vm2, %v28415_v11  ;;  %v28469_v11 = vld [vmem:[%s36658_s0 + $0x1d8] sm:$0xff]  }
  0x1b   :  { %24247 = vmatprep.mubr.msk.bf16.mxu0 %vm2064_vm2, %v28416_v12 }
  0x22   :  { %24248 = vmatmul.mubr.msk.bf16.gmra.mrb[12].mxu0 %vm2064_vm2, %v28417_v13  ;;  %v28470_v13 = vld [vmem:[%s36658_s0 + $0x1e0] sm:$0xff]  }
  0x23   :  { %24251 = vmatprep.mubr.msk.bf16.mxu0 %vm2064_vm2, %v28418_v14 }
  0x2a   :  { %24252 = vmatmul.mubr.msk.bf16.gmra.mrb[16].mxu0 %vm2064_vm2, %v28419_v15 }
  0x2b   :  { %24255 = vmatprep.mubr.msk.bf16.mxu0 %vm2064_vm2, %v28420_v16 }
  0x32   :  { %24256 = vmatmul.mubr.msk.bf16.gmra.mrb[20].mxu0 %vm2064_vm2, %v28421_v17  ;;  %v28471_v17 = vld [vmem:[%s36658_s0 + $0x1e8] sm:$0xff]  }
  0x33   :  { %24259 = vmatprep.mubr.msk.bf16.mxu0 %vm2064_vm2, %v28422_v18 }
  0x3a   :  { %24260 = vmatmul.mubr.msk.bf16.gmra.mrb[24].mxu0 %vm2064_vm2, %v28423_v19  ;;  %v28472_v19 = vld [vmem:[%s36658_s0 + $0x1f0] sm:$0xff]  }
  0x3b   :  { %24263 = vmatprep.mubr.msk.bf16.mxu0 %vm2064_vm2, %v28424_v20 }
  0x42   :  { %24264 = vmatmul.mubr.msk.bf16.gmra.mrb[28].mxu0 %vm2064_vm2, %v28425_v21 }
  0x43   :  { %24267 = vmatprep.mubr.msk.bf16.mxu0 %vm2064_vm2, %v28426_v22 }
  0x4a   :  { %24268 = vmatmul.mubr.msk.bf16.gmra.mrb[32].mxu0 %vm2064_vm2, %v28427_v23  ;;  %v28473_v23 = vld [vmem:[%s36658_s0 + $0x1f8] sm:$0xff]  }
  0x4b   :  { %24271 = vmatprep.mubr.msk.bf16.mxu0 %vm2064_vm2, %v28428_v24 }
  0x52   :  { %24272 = vmatmul.mubr.msk.bf16.gmra.mrb[36].mxu0 %vm2064_vm2, %v28429_v25  ;;  %v28474_v25 = vld [vmem:[%s36658_s0 + $0x200] sm:$0xff]  }
  0x53   :  { %24275 = vmatprep.mubr.msk.bf16.mxu0 %vm2064_vm2, %v28430_v26 }
  0x5a   :  { %24276 = vmatmul.mubr.msk.bf16.gmra.mrb[40].mxu0 %vm2064_vm2, %v28431_v27 }
  0x5b   :  { %24279 = vmatprep.mubr.msk.bf16.mxu0 %vm2064_vm2, %v28432_v28 }
  0x62   :  { %24280 = vmatmul.mubr.msk.bf16.gmra.mrb[44].mxu0 %vm2064_vm2, %v28433_v29  ;;  %v28475_v29 = vld [vmem:[%s36658_s0 + $0x208] sm:$0xff]  }
  0x63   :  { %24283 = vmatprep.mubr.msk.bf16.mxu0 %vm2064_vm2, %v28434_v30 }
  0x6a   :  { %24284 = vmatmul.mubr.msk.bf16.gmra.mrb[48].mxu0 %vm2064_vm2, %v28435_v31  ;;  %v28476_v31 = vld [vmem:[%s36658_s0 + $0x210] sm:$0xff]  }
  0x6b   :  { %24287 = vmatprep.mubr.msk.bf16.mxu0 %vm2064_vm2, %v28436_v32 }
  0x72   :  { %24288 = vmatmul.mubr.msk.bf16.gmra.mrb[52].mxu0 %vm2064_vm2, %v28437_v33 }
  0x73   :  { %24291 = vmatprep.mubr.msk.bf16.mxu0 %vm2064_vm2, %v28438_v34 }
  0x7a   :  { %24292 = vmatmul.mubr.msk.bf16.gmra.mrb[56].mxu0 %vm2064_vm2, %v28439_v35  ;;  %v28477_v35 = vld [vmem:[%s36658_s0 + $0x218] sm:$0xff]  }
  0x7b   :  { %24295 = vmatprep.mubr.msk.bf16.mxu0 %vm2064_vm2, %v28440_v36 }
  0x82   :  { %24296 = vmatmul.mubr.msk.bf16.gmra.mrb[60].mxu0 %vm2064_vm2, %v28441_v37  ;;  %v28478_v37 = vld [vmem:[%s36658_s0 + $0x220] sm:$0xff]  }
  0x83   :  { %24299 = vmatprep.mubr.msk.bf16.mxu0 %vm2064_vm2, %v28442_v38 }
  0x8a   :  { %24300 = vmatmul.mubr.msk.bf16.gmra.mrb[64].mxu0 %vm2064_vm2, %v28443_v39 }
  0x8b   :  { %24303 = vmatprep.mubr.msk.bf16.mxu0 %vm2064_vm2, %v28444_v40 }
  0x92   :  { %24304 = vmatmul.mubr.msk.bf16.gmra.mrb[68].mxu0 %vm2064_vm2, %v28445_v41  ;;  %v28479_v41 = vld [vmem:[%s36658_s0 + $0x228] sm:$0xff]  }
  0x93   :  { %24307 = vmatprep.mubr.msk.bf16.mxu0 %vm2064_vm2, %v28446_v42 }
  0x9a   :  { %24308 = vmatmul.mubr.msk.bf16.gmra.mrb[72].mxu0 %vm2064_vm2, %v28447_v43  ;;  %v28480_v43 = vld [vmem:[%s36658_s0 + $0x230] sm:$0xff]  }
  0x9b   :  { %24311 = vmatprep.mubr.msk.bf16.mxu0 %vm2064_vm2, %v28448_v44 }
  0xa2   :  { %24312 = vmatmul.mubr.msk.bf16.gmra.mrb[76].mxu0 %vm2064_vm2, %v28449_v45 }
  0xa3   :  { %24315 = vmatprep.mubr.msk.bf16.mxu0 %vm2064_vm2, %v28450_v46 }
  0xaa   :  { %24316 = vmatmul.mubr.msk.bf16.gmra.mrb[80].mxu0 %vm2064_vm2, %v28451_v47  ;;  %v28481_v47 = vld [vmem:[%s36658_s0 + $0x238] sm:$0xff]  }
  0xab   :  { %24319 = vmatprep.mubr.msk.bf16.mxu0 %vm2064_vm2, %v28452_v48 }
  0xb2   :  { %24320 = vmatmul.mubr.msk.bf16.gmra.mrb[84].mxu0 %vm2064_vm2, %v28453_v49  ;;  %v28482_v49 = vld [vmem:[%s36658_s0 + $0x240] sm:$0xff]  }
  0xb3   :  { %24323 = vmatprep.mubr.msk.bf16.mxu0 %vm2064_vm2, %v28454_v50 }
  0xba   :  { %24324 = vmatmul.mubr.msk.bf16.gmra.mrb[88].mxu0 %vm2064_vm2, %v28455_v51 }
  0xbb   :  { %24327 = vmatprep.mubr.msk.bf16.mxu0 %vm2064_vm2, %v28456_v52 }
  0xc2   :  { %24328 = vmatmul.mubr.msk.bf16.gmra.mrb[92].mxu0 %vm2064_vm2, %v28457_v53  ;;  %v28483_v53 = vld [vmem:[%s36658_s0 + $0x248] sm:$0xff]  }
  0xc3   :  { %24331 = vmatprep.mubr.msk.bf16.mxu0 %vm2064_vm2, %v28458_v54 }
  0xca   :  { %24332 = vmatmul.mubr.msk.bf16.gmra.mrb[96].mxu0 %vm2064_vm2, %v28459_v55  ;;  %v28484_v55 = vld [vmem:[%s36658_s0 + $0x250] sm:$0xff]  }
  0xcb   :  { %24335 = vmatprep.mubr.msk.bf16.mxu0 %vm2064_vm2, %v28460_v56 }
  0xd2   :  { %24336 = vmatmul.mubr.msk.bf16.gmra.mrb[100].mxu0 %vm2064_vm2, %v28461_v57 }
  0xd3   :  { %24339 = vmatprep.mubr.msk.bf16.mxu0 %vm2064_vm2, %v28462_v58 }
  0xda   :  { %24340 = vmatmul.mubr.msk.bf16.gmra.mrb[104].mxu0 %vm2064_vm2, %v28463_v59  ;;  %v28485_v59 = vld [vmem:[%s36658_s0 + $0x258] sm:$0xff]  }
  0xdb   :  { %24343 = vmatprep.mubr.msk.bf16.mxu0 %vm2064_vm2, %v28464_v60 }
  0xdd   :  { %v29981_v61 = vpop.f32.mrb[0].mxu0 }
  0xde   :  { %v29983_v62 = vpop.f32.mrb[1].mxu0 }
  0xdf   :  { %v29988_v0 = vpop.f32.mrb[2].mxu0 }
  0xe0   :  { %37111 = vst [vmem:[#allocation2_spill] sm:$0xff] %v29988_v0  ;;  %v29993_v2 = vpop.f32.mrb[3].mxu0 }
  0xe2   :  { %24344 = vmatmul.mubr.msk.bf16.gmra.mrb[108].mxu0 %vm2064_vm2, %v28465_v63  ;;  %v28486_v63 = vld [vmem:[%s36658_s0 + $0x260] sm:$0xff]  }
  0xe3   :  { %24347 = vmatprep.mubr.msk.bf16.mxu0 %vm2064_vm2, %v28466_v1 }
  0xe5   :  { %v29997_v3 = vpop.f32.mrb[4].mxu0 }
  0xe6   :  { %v29999_v4 = vpop.f32.mrb[5].mxu0 }
  0xe7   :  { %v30004_v6 = vpop.f32.mrb[6].mxu0 }
  0xe8   :  { %37112 = vst [vmem:[#allocation3_spill] sm:$0xff] %v30004_v6  ;;  %v30009_v8 = vpop.f32.mrb[7].mxu0 }
  0xea   :  { %24348 = vmatmul.mubr.msk.bf16.gmra.mrb[112].mxu0 %vm2064_vm2, %v28467_v5 }
  0xeb   :  { %24351 = vmatprep.mubr.msk.bf16.mxu0 %vm2064_vm2, %v28468_v7 }
  0xed   :  { %v30013_v9 = vpop.f32.mrb[8].mxu0 }
  0xee   :  { %v30015_v10 = vpop.f32.mrb[9].mxu0 }
  0xef   :  { %v30020_v12 = vpop.f32.mrb[10].mxu0 }
  0xf0   :  { %37113 = vst [vmem:[#allocation4_spill] sm:$0xff] %v30020_v12  ;;  %v30025_v14 = vpop.f32.mrb[11].mxu0 }
  0xf2   :  { %24352 = vmatmul.mubr.msk.bf16.gmra.mrb[116].mxu0 %vm2064_vm2, %v28469_v11  ;;  %v28487_v11 = vld [vmem:[%s36658_s0 + $0x268] sm:$0xff]  }
  0xf3   :  { %24355 = vmatprep.mubr.msk.bf16.mxu0 %vm2064_vm2, %v28470_v13 }
  0xf5   :  { %v30029_v15 = vpop.f32.mrb[12].mxu0 }
  0xf6   :  { %v30031_v16 = vpop.f32.mrb[13].mxu0 }
  0xf7   :  { %v30036_v18 = vpop.f32.mrb[14].mxu0 }
  0xf8   :  { %37114 = vst [vmem:[#allocation5_spill] sm:$0xff] %v30036_v18  ;;  %v30041_v20 = vpop.f32.mrb[15].mxu0 }
  0xfa   :  { %24356 = vmatmul.mubr.msk.bf16.gmra.mrb[120].mxu0 %vm2064_vm2, %v28471_v17  ;;  %v28488_v17 = vld [vmem:[%s36658_s0 + $0x270] sm:$0xff]  }
  0xfb   :  { %24359 = vmatprep.mubr.msk.bf16.mxu0 %vm2064_vm2, %v28472_v19 }
  0xfd   :  { %v30045_v21 = vpop.f32.mrb[16].mxu0 }
  0xfe   :  { %v30047_v22 = vpop.f32.mrb[17].mxu0 }
  0xff   :  { %v30052_v24 = vpop.f32.mrb[18].mxu0 }
 0x100   :  { %37115 = vst [vmem:[#allocation6_spill] sm:$0xff] %v30052_v24  ;;  %v30057_v26 = vpop.f32.mrb[19].mxu0 }
 0x102   :  { %24360 = vmatmul.mubr.msk.bf16.gmra.mrb[124].mxu0 %vm2064_vm2, %v28473_v23 }
 0x103   :  { %24363 = vmatprep.mubr.msk.bf16.mxu0 %vm2064_vm2, %v28474_v25 }
 0x105   :  { %v30061_v27 = vpop.f32.mrb[20].mxu0 }
 0x106   :  { %v30063_v28 = vpop.f32.mrb[21].mxu0 }
 0x107   :  { %v30068_v30 = vpop.f32.mrb[22].mxu0 }
 0x108   :  { %37116 = vst [vmem:[#allocation7_spill] sm:$0xff] %v30068_v30  ;;  %v30073_v32 = vpop.f32.mrb[23].mxu0 }
 0x109   :  { %37117 = vst [vmem:[#allocation8_spill] sm:$0xff] %v30073_v32 }
 0x10a   :  { %24364 = vmatmul.mubr.msk.bf16.gmra.mrb[128].mxu0 %vm2064_vm2, %v28475_v29  ;;  %v28489_v29 = vld [vmem:[%s36658_s0 + $0x278] sm:$0xff]  }
 0x10b   :  { %24367 = vmatprep.mubr.msk.bf16.mxu0 %vm2064_vm2, %v28476_v31 }
 0x10d   :  { %v30077_v33 = vpop.f32.mrb[24].mxu0 }
 0x10e   :  { %37118 = vst [vmem:[#allocation9_spill] sm:$0xff] %v30077_v33  ;;  %v30079_v34 = vpop.f32.mrb[25].mxu0 }
 0x10f   :  { %37119 = vst [vmem:[#allocation10_spill] sm:$0xff] %v30079_v34  ;;  %v30084_v36 = vpop.f32.mrb[26].mxu0 }
 0x110   :  { %37120 = vst [vmem:[#allocation11_spill] sm:$0xff] %v30084_v36  ;;  %v30089_v38 = vpop.f32.mrb[27].mxu0 }
 0x111   :  { %37121 = vst [vmem:[#allocation12_spill] sm:$0xff] %v30089_v38 }
 0x112   :  { %24368 = vmatmul.mubr.msk.bf16.gmra.mrb[132].mxu0 %vm2064_vm2, %v28477_v35  ;;  %v28490_v35 = vld [vmem:[%s36658_s0 + $0x280] sm:$0xff]  }
 0x113   :  { %24371 = vmatprep.mubr.msk.bf16.mxu0 %vm2064_vm2, %v28478_v37 }
 0x115   :  { %v30093_v39 = vpop.f32.mrb[28].mxu0 }
 0x116   :  { %37122 = vst [vmem:[#allocation13_spill] sm:$0xff] %v30093_v39  ;;  %v30095_v40 = vpop.f32.mrb[29].mxu0 }
 0x117   :  { %37123 = vst [vmem:[#allocation14_spill] sm:$0xff] %v30095_v40  ;;  %v30100_v42 = vpop.f32.mrb[30].mxu0  ;;  %v28624_v40 = vld [vmem:[%s36658_s0 + $0x6b0] sm:$0xff]  }
 0x118   :  { %37124 = vst [vmem:[#allocation15_spill] sm:$0xff] %v30100_v42  ;;  %v30105_v44 = vpop.f32.mrb[31].mxu0 }
 0x119   :  { %37125 = vst [vmem:[#allocation16_spill] sm:$0xff] %v30105_v44 }
 0x11a   :  { %24372 = vmatmul.mubr.msk.bf16.gmra.mrb[136].mxu0 %vm2064_vm2, %v28479_v41 }
 0x11b   :  { %24375 = vmatprep.mubr.msk.bf16.mxu0 %vm2064_vm2, %v28480_v43 }
 0x11d   :  { %v30109_v45 = vpop.f32.mrb[32].mxu0 }
 0x11e   :  { %37126 = vst [vmem:[#allocation17_spill] sm:$0xff] %v30109_v45  ;;  %v30111_v46 = vpop.f32.mrb[33].mxu0 }
 0x11f   :  { %37127 = vst [vmem:[#allocation18_spill] sm:$0xff] %v30111_v46  ;;  %v30116_v48 = vpop.f32.mrb[34].mxu0  ;;  %v28622_v46 = vld [vmem:[%s36658_s0 + $0x6a0] sm:$0xff]  }
 0x120   :  { %37128 = vst [vmem:[#allocation19_spill] sm:$0xff] %v30116_v48  ;;  %v30121_v50 = vpop.f32.mrb[35].mxu0 }
 0x121   :  { %37129 = vst [vmem:[#allocation20_spill] sm:$0xff] %v30121_v50 }
 0x122   :  { %24376 = vmatmul.mubr.msk.bf16.gmra.mrb[140].mxu0 %vm2064_vm2, %v28481_v47  ;;  %v28491_v47 = vld [vmem:[%s36658_s0 + $0x288] sm:$0xff]  }
 0x123   :  { %24379 = vmatprep.mubr.msk.bf16.mxu0 %vm2064_vm2, %v28482_v49 }
 0x125   :  { %v30125_v51 = vpop.f32.mrb[36].mxu0 }
 0x126   :  { %37130 = vst [vmem:[#allocation21_spill] sm:$0xff] %v30125_v51  ;;  %v30127_v52 = vpop.f32.mrb[37].mxu0 }
 0x127   :  { %37131 = vst [vmem:[#allocation22_spill] sm:$0xff] %v30127_v52  ;;  %v30132_v54 = vpop.f32.mrb[38].mxu0  ;;  %v28620_v52 = vld [vmem:[%s36658_s0 + $0x690] sm:$0xff]  }
 0x128   :  { %37132 = vst [vmem:[#allocation23_spill] sm:$0xff] %v30132_v54  ;;  %v30137_v56 = vpop.f32.mrb[39].mxu0 }
 0x129   :  { %37133 = vst [vmem:[#allocation24_spill] sm:$0xff] %v30137_v56 }
 0x12a   :  { %24380 = vmatmul.mubr.msk.bf16.gmra.mrb[144].mxu0 %vm2064_vm2, %v28483_v53  ;;  %v28492_v53 = vld [vmem:[%s36658_s0 + $0x290] sm:$0xff]  }
 0x12b   :  { %24383 = vmatprep.mubr.msk.bf16.mxu0 %vm2064_vm2, %v28484_v55 }
 0x12d   :  { %v30141_v57 = vpop.f32.mrb[40].mxu0 }
 0x12e   :  { %37134 = vst [vmem:[#allocation25_spill] sm:$0xff] %v30141_v57  ;;  %v30143_v58 = vpop.f32.mrb[41].mxu0 }
 0x12f   :  { %37135 = vst [vmem:[#allocation26_spill] sm:$0xff] %v30143_v58  ;;  %v30148_v60 = vpop.f32.mrb[42].mxu0  ;;  %v28618_v58 = vld [vmem:[%s36658_s0 + $0x680] sm:$0xff]  }
 0x130   :  { %37136 = vst [vmem:[#allocation27_spill] sm:$0xff] %v30148_v60  ;;  %v30153_v1 = vpop.f32.mrb[43].mxu0 }
 0x131   :  { %37137 = vst [vmem:[#allocation28_spill] sm:$0xff] %v30153_v1 }
 0x132   :  { %24384 = vmatmul.mubr.msk.bf16.gmra.mrb[148].mxu0 %vm2064_vm2, %v28485_v59 }
 0x133   :  { %24387 = vmatprep.mubr.msk.bf16.mxu0 %vm2064_vm2, %v28486_v63 }
 0x135   :  { %v30157_v5 = vpop.f32.mrb[44].mxu0 }
 0x136   :  { %37138 = vst [vmem:[#allocation29_spill] sm:$0xff] %v30157_v5  ;;  %v30159_v7 = vpop.f32.mrb[45].mxu0 }
 0x137   :  { %37139 = vst [vmem:[#allocation30_spill] sm:$0xff] %v30159_v7  ;;  %v30164_v13 = vpop.f32.mrb[46].mxu0  ;;  %v28616_v7 = vld [vmem:[%s36658_s0 + $0x670] sm:$0xff]  }
 0x138   :  { %37140 = vst [vmem:[#allocation31_spill] sm:$0xff] %v30164_v13  ;;  %v30169_v19 = vpop.f32.mrb[47].mxu0 }
 0x139   :  { %37141 = vst [vmem:[#allocation32_spill] sm:$0xff] %v30169_v19 }
 0x13a   :  { %24388 = vmatmul.mubr.msk.bf16.gmra.mrb[152].mxu0 %vm2064_vm2, %v28487_v11  ;;  %v28493_v11 = vld [vmem:[%s36658_s0 + $0x298] sm:$0xff]  }
 0x13b   :  { %24391 = vmatprep.mubr.msk.bf16.mxu0 %vm2064_vm2, %v28488_v17 }
 0x13d   :  { %v30173_v23 = vpop.f32.mrb[48].mxu0 }
 0x13e   :  { %37142 = vst [vmem:[#allocation33_spill] sm:$0xff] %v30173_v23  ;;  %v30175_v25 = vpop.f32.mrb[49].mxu0 }
 0x13f   :  { %37143 = vst [vmem:[#allocation34_spill] sm:$0xff] %v30175_v25  ;;  %v30180_v31 = vpop.f32.mrb[50].mxu0  ;;  %v28614_v25 = vld [vmem:[%s36658_s0 + $0x660] sm:$0xff]  }
 0x140   :  { %37144 = vst [vmem:[#allocation35_spill] sm:$0xff] %v30180_v31  ;;  %v30185_v37 = vpop.f32.mrb[51].mxu0 }
 0x141   :  { %37145 = vst [vmem:[#allocation36_spill] sm:$0xff] %v30185_v37 }
 0x142   :  { %24392 = vmatmul.mubr.msk.bf16.gmra.mrb[156].mxu0 %vm2064_vm2, %v28489_v29  ;;  %v28494_v29 = vld [vmem:[%s36658_s0 + $0x2a0] sm:$0xff]  }
 0x143   :  { %24395 = vmatprep.mubr.msk.bf16.mxu0 %vm2064_vm2, %v28490_v35 }
 0x145   :  { %v30189_v41 = vpop.f32.mrb[52].mxu0 }
 0x146   :  { %37146 = vst [vmem:[#allocation37_spill] sm:$0xff] %v30189_v41  ;;  %v30191_v43 = vpop.f32.mrb[53].mxu0 }
 0x147   :  { %37147 = vst [vmem:[#allocation38_spill] sm:$0xff] %v30191_v43  ;;  %v30196_v49 = vpop.f32.mrb[54].mxu0 }
 0x148   :  { %37148 = vst [vmem:[#allocation39_spill] sm:$0xff] %v30196_v49  ;;  %v30201_v55 = vpop.f32.mrb[55].mxu0 }
 0x149   :  { %37149 = vst [vmem:[#allocation40_spill] sm:$0xff] %v30201_v55 }
 0x14a   :  { %24396 = vmatmul.mubr.msk.bf16.gmra.mrb[160].mxu0 %vm2064_vm2, %v28491_v47 }
 0x14b   :  { %24399 = vmatprep.mubr.msk.bf16.mxu0 %vm2064_vm2, %v28492_v53 }
 0x14d   :  { %v30205_v59 = vpop.f32.mrb[56].mxu0 }
 0x14e   :  { %37150 = vst [vmem:[#allocation41_spill] sm:$0xff] %v30205_v59  ;;  %v30207_v63 = vpop.f32.mrb[57].mxu0 }
 0x14f   :  { %37151 = vst [vmem:[#allocation42_spill] sm:$0xff] %v30207_v63  ;;  %v30212_v17 = vpop.f32.mrb[58].mxu0  ;;  %v28495_v63 = vld [vmem:[%s36658_s0 + $0x2a8] sm:$0xff]  }
 0x150   :  { %37152 = vst [vmem:[#allocation43_spill] sm:$0xff] %v30212_v17  ;;  %v30217_v35 = vpop.f32.mrb[59].mxu0  ;;  %v28496_v17 = vld [vmem:[%s36658_s0 + $0x2b0] sm:$0xff]  }
 0x151   :  { %37153 = vst [vmem:[#allocation44_spill] sm:$0xff] %v30217_v35 }
 0x152   :  { %24400 = vmatmul.mubr.msk.bf16.gmra.mrb[164].mxu0 %vm2064_vm2, %v28493_v11 }
 0x153   :  { %24403 = vmatprep.mubr.msk.bf16.mxu0 %vm2064_vm2, %v28494_v29 }
 0x155   :  { %v30221_v47 = vpop.f32.mrb[60].mxu0 }
 0x156   :  { %37154 = vst [vmem:[#allocation45_spill] sm:$0xff] %v30221_v47  ;;  %v30223_v53 = vpop.f32.mrb[61].mxu0 }
 0x157   :  { %37155 = vst [vmem:[#allocation46_spill] sm:$0xff] %v30223_v53  ;;  %v30228_v59 = vpop.f32.mrb[62].mxu0  ;;  %v28497_v53 = vld [vmem:[%s36658_s0 + $0x2b8] sm:$0xff]  }
 0x158   :  { %37156 = vst [vmem:[#allocation47_spill] sm:$0xff] %v30228_v59  ;;  %v30233_v55 = vpop.f32.mrb[63].mxu0  ;;  %v28498_v59 = vld [vmem:[%s36658_s0 + $0x2c0] sm:$0xff]  }
 0x159   :  { %37157 = vst [vmem:[#allocation48_spill] sm:$0xff] %v30233_v55 }
 0x15a   :  { %24404 = vmatmul.mubr.msk.bf16.gmra.mrb[168].mxu0 %vm2064_vm2, %v28495_v63 }
 0x15b   :  { %24407 = vmatprep.mubr.msk.bf16.mxu0 %vm2064_vm2, %v28496_v17 }
 0x15d   :  { %v30237_v11 = vpop.f32.mrb[64].mxu0 }
 0x15e   :  { %37158 = vst [vmem:[#allocation49_spill] sm:$0xff] %v30237_v11  ;;  %v30239_v29 = vpop.f32.mrb[65].mxu0 }
 0x15f   :  { %37159 = vst [vmem:[#allocation50_spill] sm:$0xff] %v30239_v29  ;;  %v30244_v47 = vpop.f32.mrb[66].mxu0  ;;  %v28499_v29 = vld [vmem:[%s36658_s0 + $0x2c8] sm:$0xff]  }
 0x160   :  { %37160 = vst [vmem:[#allocation51_spill] sm:$0xff] %v30244_v47  ;;  %v30249_v35 = vpop.f32.mrb[67].mxu0  ;;  %v28500_v47 = vld [vmem:[%s36658_s0 + $0x2d0] sm:$0xff]  }
 0x161   :  { %37161 = vst [vmem:[#allocation52_spill] sm:$0xff] %v30249_v35 }
 0x162   :  { %24408 = vmatmul.mubr.msk.bf16.gmra.mrb[172].mxu0 %vm2064_vm2, %v28497_v53 }
 0x163   :  { %24411 = vmatprep.mubr.msk.bf16.mxu0 %vm2064_vm2, %v28498_v59 }
 0x165   :  { %v30253_v63 = vpop.f32.mrb[68].mxu0 }
 0x166   :  { %37162 = vst [vmem:[#allocation53_spill] sm:$0xff] %v30253_v63  ;;  %v30255_v17 = vpop.f32.mrb[69].mxu0 }
 0x167   :  { %37163 = vst [vmem:[#allocation54_spill] sm:$0xff] %v30255_v17  ;;  %v30260_v11 = vpop.f32.mrb[70].mxu0  ;;  %v28501_v17 = vld [vmem:[%s36658_s0 + $0x2d8] sm:$0xff]  }
 0x168   :  { %37164 = vst [vmem:[#allocation55_spill] sm:$0xff] %v30260_v11  ;;  %v30265_v55 = vpop.f32.mrb[71].mxu0  ;;  %v28502_v11 = vld [vmem:[%s36658_s0 + $0x2e0] sm:$0xff]  }
 0x169   :  { %37165 = vst [vmem:[#allocation56_spill] sm:$0xff] %v30265_v55 }
 0x16a   :  { %24412 = vmatmul.mubr.msk.bf16.gmra.mrb[176].mxu0 %vm2064_vm2, %v28499_v29 }
 0x16b   :  { %24415 = vmatprep.mubr.msk.bf16.mxu0 %vm2064_vm2, %v28500_v47 }
 0x16d   :  { %v30269_v59 = vpop.f32.mrb[72].mxu0 }
 0x16e   :  { %37166 = vst [vmem:[#allocation57_spill] sm:$0xff] %v30269_v59  ;;  %v30271_v53 = vpop.f32.mrb[73].mxu0 }
 0x16f   :  { %37167 = vst [vmem:[#allocation58_spill] sm:$0xff] %v30271_v53  ;;  %v30276_v63 = vpop.f32.mrb[74].mxu0  ;;  %v28503_v53 = vld [vmem:[%s36658_s0 + $0x2e8] sm:$0xff]  }
 0x170   :  { %37168 = vst [vmem:[#allocation59_spill] sm:$0xff] %v30276_v63  ;;  %v30281_v35 = vpop.f32.mrb[75].mxu0  ;;  %v28504_v63 = vld [vmem:[%s36658_s0 + $0x2f0] sm:$0xff]  }
 0x171   :  { %37169 = vst [vmem:[#allocation60_spill] sm:$0xff] %v30281_v35 }
 0x172   :  { %24416 = vmatmul.mubr.msk.bf16.gmra.mrb[180].mxu0 %vm2064_vm2, %v28501_v17 }
 0x173   :  { %24419 = vmatprep.mubr.msk.bf16.mxu0 %vm2064_vm2, %v28502_v11 }
 0x175   :  { %v30285_v47 = vpop.f32.mrb[76].mxu0 }
 0x176   :  { %37170 = vst [vmem:[#allocation61_spill] sm:$0xff] %v30285_v47  ;;  %v30287_v29 = vpop.f32.mrb[77].mxu0 }
 0x177   :  { %37171 = vst [vmem:[#allocation62_spill] sm:$0xff] %v30287_v29  ;;  %v30292_v59 = vpop.f32.mrb[78].mxu0  ;;  %v28505_v29 = vld [vmem:[%s36658_s0 + $0x2f8] sm:$0xff]  }
 0x178   :  { %37172 = vst [vmem:[#allocation63_spill] sm:$0xff] %v30292_v59  ;;  %v30297_v55 = vpop.f32.mrb[79].mxu0  ;;  %v28506_v59 = vld [vmem:[%s36658_s0 + $0x300] sm:$0xff]  }
 0x179   :  { %37173 = vst [vmem:[#allocation64_spill] sm:$0xff] %v30297_v55 }
 0x17a   :  { %24420 = vmatmul.mubr.msk.bf16.gmra.mrb[184].mxu0 %vm2064_vm2, %v28503_v53 }
 0x17b   :  { %24423 = vmatprep.mubr.msk.bf16.mxu0 %vm2064_vm2, %v28504_v63 }
 0x17d   :  { %v30301_v11 = vpop.f32.mrb[80].mxu0 }
 0x17e   :  { %37174 = vst [vmem:[#allocation65_spill] sm:$0xff] %v30301_v11  ;;  %v30303_v17 = vpop.f32.mrb[81].mxu0 }
 0x17f   :  { %37175 = vst [vmem:[#allocation66_spill] sm:$0xff] %v30303_v17  ;;  %v30308_v47 = vpop.f32.mrb[82].mxu0  ;;  %v28507_v17 = vld [vmem:[%s36658_s0 + $0x308] sm:$0xff]  }
 0x180   :  { %37176 = vst [vmem:[#allocation67_spill] sm:$0xff] %v30308_v47  ;;  %v30313_v35 = vpop.f32.mrb[83].mxu0  ;;  %v28508_v47 = vld [vmem:[%s36658_s0 + $0x310] sm:$0xff]  }
 0x181   :  { %37177 = vst [vmem:[#allocation68_spill] sm:$0xff] %v30313_v35 }
 0x182   :  { %24424 = vmatmul.mubr.msk.bf16.gmra.mrb[188].mxu0 %vm2064_vm2, %v28505_v29 }
 0x183   :  { %24427 = vmatprep.mubr.msk.bf16.mxu0 %vm2064_vm2, %v28506_v59 }
 0x185   :  { %v30317_v63 = vpop.f32.mrb[84].mxu0 }
 0x186   :  { %37178 = vst [vmem:[#allocation69_spill] sm:$0xff] %v30317_v63  ;;  %v30319_v53 = vpop.f32.mrb[85].mxu0 }
 0x187   :  { %37179 = vst [vmem:[#allocation70_spill] sm:$0xff] %v30319_v53  ;;  %v30324_v11 = vpop.f32.mrb[86].mxu0  ;;  %v28509_v53 = vld [vmem:[%s36658_s0 + $0x318] sm:$0xff]  }
 0x188   :  { %37180 = vst [vmem:[#allocation71_spill] sm:$0xff] %v30324_v11  ;;  %v30329_v55 = vpop.f32.mrb[87].mxu0  ;;  %v28510_v11 = vld [vmem:[%s36658_s0 + $0x320] sm:$0xff]  }
 0x189   :  { %37181 = vst [vmem:[#allocation72_spill] sm:$0xff] %v30329_v55 }
 0x18a   :  { %24428 = vmatmul.mubr.msk.bf16.gmra.mrb[192].mxu0 %vm2064_vm2, %v28507_v17 }
 0x18b   :  { %24431 = vmatprep.mubr.msk.bf16.mxu0 %vm2064_vm2, %v28508_v47 }
 0x18d   :  { %v30333_v59 = vpop.f32.mrb[88].mxu0 }
 0x18e   :  { %37182 = vst [vmem:[#allocation73_spill] sm:$0xff] %v30333_v59  ;;  %v30335_v29 = vpop.f32.mrb[89].mxu0 }
 0x18f   :  { %37183 = vst [vmem:[#allocation74_spill] sm:$0xff] %v30335_v29  ;;  %v30340_v63 = vpop.f32.mrb[90].mxu0  ;;  %v28511_v29 = vld [vmem:[%s36658_s0 + $0x328] sm:$0xff]  }
 0x190   :  { %37184 = vst [vmem:[#allocation75_spill] sm:$0xff] %v30340_v63  ;;  %v30345_v35 = vpop.f32.mrb[91].mxu0  ;;  %v28512_v63 = vld [vmem:[%s36658_s0 + $0x330] sm:$0xff]  }
 0x191   :  { %37185 = vst [vmem:[#allocation76_spill] sm:$0xff] %v30345_v35 }
 0x192   :  { %24432 = vmatmul.mubr.msk.bf16.gmra.mrb[196].mxu0 %vm2064_vm2, %v28509_v53 }
 0x193   :  { %24435 = vmatprep.mubr.msk.bf16.mxu0 %vm2064_vm2, %v28510_v11 }
 0x195   :  { %v30349_v47 = vpop.f32.mrb[92].mxu0 }
 0x196   :  { %37186 = vst [vmem:[#allocation77_spill] sm:$0xff] %v30349_v47  ;;  %v30351_v17 = vpop.f32.mrb[93].mxu0 }
 0x197   :  { %37187 = vst [vmem:[#allocation78_spill] sm:$0xff] %v30351_v17  ;;  %v30356_v59 = vpop.f32.mrb[94].mxu0  ;;  %v28513_v17 = vld [vmem:[%s36658_s0 + $0x338] sm:$0xff]  }
 0x198   :  { %37188 = vst [vmem:[#allocation79_spill] sm:$0xff] %v30356_v59  ;;  %v30361_v55 = vpop.f32.mrb[95].mxu0  ;;  %v28514_v59 = vld [vmem:[%s36658_s0 + $0x340] sm:$0xff]  }
 0x199   :  { %37189 = vst [vmem:[#allocation80_spill] sm:$0xff] %v30361_v55 }
 0x19a   :  { %24436 = vmatmul.mubr.msk.bf16.gmra.mrb[200].mxu0 %vm2064_vm2, %v28511_v29 }
 0x19b   :  { %24439 = vmatprep.mubr.msk.bf16.mxu0 %vm2064_vm2, %v28512_v63 }
 0x19d   :  { %v30365_v11 = vpop.f32.mrb[96].mxu0 }
 0x19e   :  { %37190 = vst [vmem:[#allocation81_spill] sm:$0xff] %v30365_v11  ;;  %v30367_v53 = vpop.f32.mrb[97].mxu0 }
 0x19f   :  { %37191 = vst [vmem:[#allocation82_spill] sm:$0xff] %v30367_v53  ;;  %v30372_v47 = vpop.f32.mrb[98].mxu0  ;;  %v28515_v53 = vld [vmem:[%s36658_s0 + $0x348] sm:$0xff]  }
 0x1a0   :  { %37192 = vst [vmem:[#allocation83_spill] sm:$0xff] %v30372_v47  ;;  %v30377_v35 = vpop.f32.mrb[99].mxu0  ;;  %v28516_v47 = vld [vmem:[%s36658_s0 + $0x350] sm:$0xff]  }
 0x1a1   :  { %37193 = vst [vmem:[#allocation84_spill] sm:$0xff] %v30377_v35 }
 0x1a2   :  { %24440 = vmatmul.mubr.msk.bf16.gmra.mrb[204].mxu0 %vm2064_vm2, %v28513_v17 }
 0x1a3   :  { %24443 = vmatprep.mubr.msk.bf16.mxu0 %vm2064_vm2, %v28514_v59 }
 0x1a5   :  { %v30381_v63 = vpop.f32.mrb[100].mxu0 }
 0x1a6   :  { %37194 = vst [vmem:[#allocation85_spill] sm:$0xff] %v30381_v63  ;;  %v30383_v29 = vpop.f32.mrb[101].mxu0 }
 0x1a7   :  { %37195 = vst [vmem:[#allocation86_spill] sm:$0xff] %v30383_v29  ;;  %v30388_v11 = vpop.f32.mrb[102].mxu0  ;;  %v28517_v29 = vld [vmem:[%s36658_s0 + $0x358] sm:$0xff]  }
 0x1a8   :  { %37196 = vst [vmem:[#allocation87_spill] sm:$0xff] %v30388_v11  ;;  %v30393_v55 = vpop.f32.mrb[103].mxu0  ;;  %v28518_v11 = vld [vmem:[%s36658_s0 + $0x360] sm:$0xff]  }
 0x1a9   :  { %37197 = vst [vmem:[#allocation88_spill] sm:$0xff] %v30393_v55 }
 0x1aa   :  { %24444 = vmatmul.mubr.msk.bf16.gmra.mrb[208].mxu0 %vm2064_vm2, %v28515_v53 }
 0x1ab   :  { %24447 = vmatprep.mubr.msk.bf16.mxu0 %vm2064_vm2, %v28516_v47 }
 0x1ad   :  { %v30397_v59 = vpop.f32.mrb[104].mxu0 }
 0x1ae   :  { %37198 = vst [vmem:[#allocation89_spill] sm:$0xff] %v30397_v59  ;;  %v30399_v17 = vpop.f32.mrb[105].mxu0 }
 0x1af   :  { %37199 = vst [vmem:[#allocation90_spill] sm:$0xff] %v30399_v17  ;;  %v30404_v63 = vpop.f32.mrb[106].mxu0  ;;  %v28519_v17 = vld [vmem:[%s36658_s0 + $0x368] sm:$0xff]  }
 0x1b0   :  { %37200 = vst [vmem:[#allocation91_spill] sm:$0xff] %v30404_v63  ;;  %v30409_v35 = vpop.f32.mrb[107].mxu0  ;;  %v28520_v63 = vld [vmem:[%s36658_s0 + $0x370] sm:$0xff]  }
 0x1b1   :  { %37201 = vst [vmem:[#allocation92_spill] sm:$0xff] %v30409_v35 }
 0x1b2   :  { %24448 = vmatmul.mubr.msk.bf16.gmra.mrb[212].mxu0 %vm2064_vm2, %v28517_v29 }
 0x1b3   :  { %24451 = vmatprep.mubr.msk.bf16.mxu0 %vm2064_vm2, %v28518_v11 }
 0x1b5   :  { %v30413_v47 = vpop.f32.mrb[108].mxu0 }
 0x1b6   :  { %37202 = vst [vmem:[#allocation93_spill] sm:$0xff] %v30413_v47  ;;  %v30415_v53 = vpop.f32.mrb[109].mxu0 }
 0x1b7   :  { %37203 = vst [vmem:[#allocation94_spill] sm:$0xff] %v30415_v53  ;;  %v30420_v59 = vpop.f32.mrb[110].mxu0  ;;  %v28521_v53 = vld [vmem:[%s36658_s0 + $0x378] sm:$0xff]  }
 0x1b8   :  { %37204 = vst [vmem:[#allocation95_spill] sm:$0xff] %v30420_v59  ;;  %v30425_v55 = vpop.f32.mrb[111].mxu0  ;;  %v28522_v59 = vld [vmem:[%s36658_s0 + $0x380] sm:$0xff]  }
 0x1b9   :  { %37205 = vst [vmem:[#allocation96_spill] sm:$0xff] %v30425_v55 }
 0x1ba   :  { %24452 = vmatmul.mubr.msk.bf16.gmra.mrb[216].mxu0 %vm2064_vm2, %v28519_v17 }
 0x1bb   :  { %24455 = vmatprep.mubr.msk.bf16.mxu0 %vm2064_vm2, %v28520_v63 }
 0x1bd   :  { %v30429_v11 = vpop.f32.mrb[112].mxu0 }
 0x1be   :  { %37206 = vst [vmem:[#allocation97_spill] sm:$0xff] %v30429_v11  ;;  %v30431_v29 = vpop.f32.mrb[113].mxu0 }
 0x1bf   :  { %37207 = vst [vmem:[#allocation98_spill] sm:$0xff] %v30431_v29  ;;  %v30436_v47 = vpop.f32.mrb[114].mxu0  ;;  %v28523_v29 = vld [vmem:[%s36658_s0 + $0x388] sm:$0xff]  }
 0x1c0   :  { %37208 = vst [vmem:[#allocation99_spill] sm:$0xff] %v30436_v47  ;;  %v30441_v35 = vpop.f32.mrb[115].mxu0  ;;  %v28524_v47 = vld [vmem:[%s36658_s0 + $0x390] sm:$0xff]  }
 0x1c1   :  { %37209 = vst [vmem:[#allocation100_spill] sm:$0xff] %v30441_v35 }
 0x1c2   :  { %24456 = vmatmul.mubr.msk.bf16.gmra.mrb[220].mxu0 %vm2064_vm2, %v28521_v53 }
 0x1c3   :  { %24459 = vmatprep.mubr.msk.bf16.mxu0 %vm2064_vm2, %v28522_v59 }
 0x1c5   :  { %v30445_v63 = vpop.f32.mrb[116].mxu0 }
 0x1c6   :  { %37210 = vst [vmem:[#allocation101_spill] sm:$0xff] %v30445_v63  ;;  %v30447_v17 = vpop.f32.mrb[117].mxu0 }
 0x1c7   :  { %37211 = vst [vmem:[#allocation102_spill] sm:$0xff] %v30447_v17  ;;  %v30452_v11 = vpop.f32.mrb[118].mxu0  ;;  %v28525_v17 = vld [vmem:[%s36658_s0 + $0x398] sm:$0xff]  }
 0x1c8   :  { %37212 = vst [vmem:[#allocation103_spill] sm:$0xff] %v30452_v11  ;;  %v30457_v55 = vpop.f32.mrb[119].mxu0  ;;  %v28526_v11 = vld [vmem:[%s36658_s0 + $0x3a0] sm:$0xff]  }
 0x1c9   :  { %37213 = vst [vmem:[#allocation104_spill] sm:$0xff] %v30457_v55 }
 0x1ca   :  { %24460 = vmatmul.mubr.msk.bf16.gmra.mrb[224].mxu0 %vm2064_vm2, %v28523_v29 }
 0x1cb   :  { %24463 = vmatprep.mubr.msk.bf16.mxu0 %vm2064_vm2, %v28524_v47 }
 0x1cd   :  { %v30461_v59 = vpop.f32.mrb[120].mxu0 }
 0x1ce   :  { %37214 = vst [vmem:[#allocation105_spill] sm:$0xff] %v30461_v59  ;;  %v30463_v53 = vpop.f32.mrb[121].mxu0 }
 0x1cf   :  { %37215 = vst [vmem:[#allocation106_spill] sm:$0xff] %v30463_v53  ;;  %v30468_v63 = vpop.f32.mrb[122].mxu0  ;;  %v28527_v53 = vld [vmem:[%s36658_s0 + $0x3a8] sm:$0xff]  }
 0x1d0   :  { %37216 = vst [vmem:[#allocation107_spill] sm:$0xff] %v30468_v63  ;;  %v30473_v35 = vpop.f32.mrb[123].mxu0  ;;  %v28528_v63 = vld [vmem:[%s36658_s0 + $0x3b0] sm:$0xff]  }
 0x1d1   :  { %37217 = vst [vmem:[#allocation108_spill] sm:$0xff] %v30473_v35 }
 0x1d2   :  { %24464 = vmatmul.mubr.msk.bf16.gmra.mrb[228].mxu0 %vm2064_vm2, %v28525_v17 }
 0x1d3   :  { %24467 = vmatprep.mubr.msk.bf16.mxu0 %vm2064_vm2, %v28526_v11 }
 0x1d5   :  { %v30477_v47 = vpop.f32.mrb[124].mxu0 }
 0x1d6   :  { %37218 = vst [vmem:[#allocation109_spill] sm:$0xff] %v30477_v47  ;;  %v30479_v29 = vpop.f32.mrb[125].mxu0 }
 0x1d7   :  { %37219 = vst [vmem:[#allocation110_spill] sm:$0xff] %v30479_v29  ;;  %v30484_v59 = vpop.f32.mrb[126].mxu0  ;;  %v28529_v29 = vld [vmem:[%s36658_s0 + $0x3b8] sm:$0xff]  }
 0x1d8   :  { %37220 = vst [vmem:[#allocation111_spill] sm:$0xff] %v30484_v59  ;;  %v30489_v55 = vpop.f32.mrb[127].mxu0  ;;  %v28530_v59 = vld [vmem:[%s36658_s0 + $0x3c0] sm:$0xff]  }
 0x1d9   :  { %37221 = vst [vmem:[#allocation112_spill] sm:$0xff] %v30489_v55 }
 0x1da   :  { %24468 = vmatmul.mubr.msk.bf16.gmra.mrb[232].mxu0 %vm2064_vm2, %v28527_v53 }
 0x1db   :  { %24471 = vmatprep.mubr.msk.bf16.mxu0 %vm2064_vm2, %v28528_v63 }
 0x1dd   :  { %v30493_v11 = vpop.f32.mrb[128].mxu0 }
 0x1de   :  { %37222 = vst [vmem:[#allocation113_spill] sm:$0xff] %v30493_v11  ;;  %v30495_v17 = vpop.f32.mrb[129].mxu0 }
 0x1df   :  { %37223 = vst [vmem:[#allocation114_spill] sm:$0xff] %v30495_v17  ;;  %v30500_v47 = vpop.f32.mrb[130].mxu0  ;;  %v28531_v17 = vld [vmem:[%s36658_s0 + $0x3c8] sm:$0xff]  }
 0x1e0   :  { %37224 = vst [vmem:[#allocation115_spill] sm:$0xff] %v30500_v47  ;;  %v30505_v35 = vpop.f32.mrb[131].mxu0  ;;  %v28532_v47 = vld [vmem:[%s36658_s0 + $0x3d0] sm:$0xff]  }
 0x1e1   :  { %37225 = vst [vmem:[#allocation116_spill] sm:$0xff] %v30505_v35 }
 0x1e2   :  { %24472 = vmatmul.mubr.msk.bf16.gmra.mrb[236].mxu0 %vm2064_vm2, %v28529_v29 }
 0x1e3   :  { %24475 = vmatprep.mubr.msk.bf16.mxu0 %vm2064_vm2, %v28530_v59 }
 0x1e5   :  { %v30509_v63 = vpop.f32.mrb[132].mxu0 }
 0x1e6   :  { %37226 = vst [vmem:[#allocation117_spill] sm:$0xff] %v30509_v63  ;;  %v30511_v53 = vpop.f32.mrb[133].mxu0 }
 0x1e7   :  { %37227 = vst [vmem:[#allocation118_spill] sm:$0xff] %v30511_v53  ;;  %v30516_v11 = vpop.f32.mrb[134].mxu0  ;;  %v28533_v53 = vld [vmem:[%s36658_s0 + $0x3d8] sm:$0xff]  }
 0x1e8   :  { %37228 = vst [vmem:[#allocation119_spill] sm:$0xff] %v30516_v11  ;;  %v30521_v55 = vpop.f32.mrb[135].mxu0  ;;  %v28534_v11 = vld [vmem:[%s36658_s0 + $0x3e0] sm:$0xff]  }
 0x1e9   :  { %37229 = vst [vmem:[#allocation120_spill] sm:$0xff] %v30521_v55 }
 0x1ea   :  { %24476 = vmatmul.mubr.msk.bf16.gmra.mrb[240].mxu0 %vm2064_vm2, %v28531_v17 }
 0x1eb   :  { %24479 = vmatprep.mubr.msk.bf16.mxu0 %vm2064_vm2, %v28532_v47 }
 0x1ed   :  { %v30525_v59 = vpop.f32.mrb[136].mxu0 }
 0x1ee   :  { %37230 = vst [vmem:[#allocation121_spill] sm:$0xff] %v30525_v59  ;;  %v30527_v29 = vpop.f32.mrb[137].mxu0 }
 0x1ef   :  { %37231 = vst [vmem:[#allocation122_spill] sm:$0xff] %v30527_v29  ;;  %v30532_v63 = vpop.f32.mrb[138].mxu0  ;;  %v28535_v29 = vld [vmem:[%s36658_s0 + $0x3e8] sm:$0xff]  }
 0x1f0   :  { %37232 = vst [vmem:[#allocation123_spill] sm:$0xff] %v30532_v63  ;;  %v30537_v35 = vpop.f32.mrb[139].mxu0  ;;  %v28536_v63 = vld [vmem:[%s36658_s0 + $0x3f0] sm:$0xff]  }
 0x1f1   :  { %37233 = vst [vmem:[#allocation124_spill] sm:$0xff] %v30537_v35 }
 0x1f2   :  { %24480 = vmatmul.mubr.msk.bf16.gmra.mrb[244].mxu0 %vm2064_vm2, %v28533_v53 }
 0x1f3   :  { %24483 = vmatprep.mubr.msk.bf16.mxu0 %vm2064_vm2, %v28534_v11 }
 0x1f5   :  { %v30541_v47 = vpop.f32.mrb[140].mxu0 }
 0x1f6   :  { %37234 = vst [vmem:[#allocation125_spill] sm:$0xff] %v30541_v47  ;;  %v30543_v17 = vpop.f32.mrb[141].mxu0 }
 0x1f7   :  { %37235 = vst [vmem:[#allocation126_spill] sm:$0xff] %v30543_v17  ;;  %v30548_v59 = vpop.f32.mrb[142].mxu0 }
 0x1f8   :  { %37236 = vst [vmem:[#allocation127_spill] sm:$0xff] %v30548_v59  ;;  %v30553_v55 = vpop.f32.mrb[143].mxu0  ;;  %v28537_v59 = vld [vmem:[%s36658_s0 + $0x3f8] sm:$0xff]  }
 0x1f9   :  { %37237 = vst [vmem:[#allocation128_spill] sm:$0xff] %v30553_v55 }
 0x1fa   :  { %24484 = vmatmul.mubr.msk.bf16.gmra.mrb[248].mxu0 %vm2064_vm2, %v28535_v29  ;;  %v28539_v29 = vld [vmem:[%s36658_s0 + $0x408] sm:$0xff]  }
 0x1fb   :  { %24487 = vmatprep.mubr.msk.bf16.mxu0 %vm2064_vm2, %v28536_v63  ;;  %v28538_v63 = vld [vmem:[%s36658_s0 + $0x400] sm:$0xff]  }
 0x1fd   :  { %v30557_v11 = vpop.f32.mrb[144].mxu0 }
 0x1fe   :  { %37238 = vst [vmem:[#allocation129_spill] sm:$0xff] %v30557_v11  ;;  %v30561_v17 = vpop.f32.mrb[145].mxu0 }
 0x1ff   :  { %37239 = vst [vmem:[#allocation130_spill] sm:$0xff] %v30561_v17  ;;  %v30568_v35 = vpop.f32.mrb[146].mxu0 }
 0x200   :  { %37240 = vst [vmem:[#allocation131_spill] sm:$0xff] %v30568_v35  ;;  %v30575_v55 = vpop.f32.mrb[147].mxu0 }
 0x202   :  { %24488 = vmatmul.mubr.msk.bf16.gmra.mrb[252].mxu0 %vm2064_vm2, %v28537_v59  ;;  %v28540_v59 = vld [vmem:[%s36658_s0 + $0x410] sm:$0xff]  }
 0x203   :  { %24491 = vmatprep.mubr.msk.bf16.mxu0 %vm2064_vm2, %v28538_v63  ;;  %v28541_v63 = vld [vmem:[%s36658_s0 + $0x418] sm:$0xff]  }
 0x205   :  { %v30581_v11 = vpop.f32.mrb[148].mxu0 }
 0x206   :  { %37241 = vst [vmem:[#allocation132_spill] sm:$0xff] %v30581_v11  ;;  %v30585_v17 = vpop.f32.mrb[149].mxu0 }
 0x207   :  { %37242 = vst [vmem:[#allocation133_spill] sm:$0xff] %v30585_v17  ;;  %v30592_v0 = vpop.f32.mrb[150].mxu0 }
 0x208   :  { %37243 = vst [vmem:[#allocation134_spill] sm:$0xff] %v30592_v0  ;;  %v30599_v53 = vpop.f32.mrb[151].mxu0 }
 0x20a   :  { %24492 = vmatmul.mubr.msk.bf16.gmra.mrb[0].mxu0 %vm2064_vm2, %v28539_v29  ;;  %v28542_v29 = vld [vmem:[%s36658_s0 + $0x420] sm:$0xff]  }
 0x20b   :  { %24495 = vmatprep.mubr.msk.bf16.mxu0 %vm2064_vm2, %v28540_v59  ;;  %v28543_v59 = vld [vmem:[%s36658_s0 + $0x428] sm:$0xff]  }
 0x20d   :  { %v30605_v11 = vpop.f32.mrb[152].mxu0 }
 0x20e   :  { %37244 = vst [vmem:[#allocation135_spill] sm:$0xff] %v30605_v11  ;;  %v30609_v17 = vpop.f32.mrb[153].mxu0 }
 0x20f   :  { %37245 = vst [vmem:[#allocation136_spill] sm:$0xff] %v30609_v17  ;;  %v30616_v6 = vpop.f32.mrb[154].mxu0 }
 0x210   :  { %37246 = vst [vmem:[#allocation137_spill] sm:$0xff] %v30616_v6  ;;  %v30623_v47 = vpop.f32.mrb[155].mxu0 }
 0x212   :  { %24496 = vmatmul.mubr.msk.bf16.gmra.mrb[4].mxu0 %vm2064_vm2, %v28541_v63  ;;  %v28544_v63 = vld [vmem:[%s36658_s0 + $0x430] sm:$0xff]  }
 0x213   :  { %24499 = vmatprep.mubr.msk.bf16.mxu0 %vm2064_vm2, %v28542_v29  ;;  %v28545_v29 = vld [vmem:[%s36658_s0 + $0x438] sm:$0xff]  }
 0x215   :  { %v30629_v11 = vpop.f32.mrb[156].mxu0 }
 0x216   :  { %37247 = vst [vmem:[#allocation138_spill] sm:$0xff] %v30629_v11  ;;  %v30633_v17 = vpop.f32.mrb[157].mxu0 }
 0x217   :  { %37248 = vst [vmem:[#allocation139_spill] sm:$0xff] %v30633_v17  ;;  %v30640_v12 = vpop.f32.mrb[158].mxu0 }
 0x218   :  { %37249 = vst [vmem:[#allocation140_spill] sm:$0xff] %v30640_v12  ;;  %v30647_v35 = vpop.f32.mrb[159].mxu0 }
 0x21a   :  { %24500 = vmatmul.mubr.msk.bf16.gmra.mrb[8].mxu0 %vm2064_vm2, %v28543_v59  ;;  %v28546_v59 = vld [vmem:[%s36658_s0 + $0x440] sm:$0xff]  }
 0x21b   :  { %24503 = vmatprep.mubr.msk.bf16.mxu0 %vm2064_vm2, %v28544_v63  ;;  %v28547_v63 = vld [vmem:[%s36658_s0 + $0x448] sm:$0xff]  }
 0x21d   :  { %v30653_v11 = vpop.f32.mrb[160].mxu0 }
 0x21e   :  { %37250 = vst [vmem:[#allocation141_spill] sm:$0xff] %v30653_v11  ;;  %v30657_v17 = vpop.f32.mrb[161].mxu0 }
 0x21f   :  { %37251 = vst [vmem:[#allocation142_spill] sm:$0xff] %v30657_v17  ;;  %v30664_v18 = vpop.f32.mrb[162].mxu0 }
 0x220   :  { %37252 = vst [vmem:[#allocation143_spill] sm:$0xff] %v30664_v18  ;;  %v30671_v0 = vpop.f32.mrb[163].mxu0 }
 0x222   :  { %24504 = vmatmul.mubr.msk.bf16.gmra.mrb[12].mxu0 %vm2064_vm2, %v28545_v29  ;;  %v28548_v29 = vld [vmem:[%s36658_s0 + $0x450] sm:$0xff]  }
 0x223   :  { %24507 = vmatprep.mubr.msk.bf16.mxu0 %vm2064_vm2, %v28546_v59  ;;  %v28549_v59 = vld [vmem:[%s36658_s0 + $0x458] sm:$0xff]  }
 0x225   :  { %v30677_v11 = vpop.f32.mrb[164].mxu0 }
 0x226   :  { %37253 = vst [vmem:[#allocation144_spill] sm:$0xff] %v30677_v11  ;;  %v30681_v17 = vpop.f32.mrb[165].mxu0 }
 0x227   :  { %37254 = vst [vmem:[#allocation145_spill] sm:$0xff] %v30681_v17  ;;  %v30688_v24 = vpop.f32.mrb[166].mxu0 }
 0x228   :  { %37255 = vst [vmem:[#allocation146_spill] sm:$0xff] %v30688_v24  ;;  %v30695_v6 = vpop.f32.mrb[167].mxu0 }
 0x229   :  { %37256 = vst [vmem:[#allocation147_spill] sm:$0xff] %v30695_v6  ;;  %v37592_v6 = vld [vmem:[#allocation131_spill] sm:$0xff] }
 0x22a   :  { %24508 = vmatmul.mubr.msk.bf16.gmra.mrb[16].mxu0 %vm2064_vm2, %v28547_v63  ;;  %v28550_v63 = vld [vmem:[%s36658_s0 + $0x460] sm:$0xff]  }
 0x22b   :  { %24511 = vmatprep.mubr.msk.bf16.mxu0 %vm2064_vm2, %v28548_v29  ;;  %v28551_v29 = vld [vmem:[%s36658_s0 + $0x468] sm:$0xff]  }
 0x22d   :  { %v30701_v11 = vpop.f32.mrb[168].mxu0 }
 0x22e   :  { %37257 = vst [vmem:[#allocation148_spill] sm:$0xff] %v30701_v11  ;;  %v30705_v17 = vpop.f32.mrb[169].mxu0 }
 0x22f   :  { %37258 = vst [vmem:[#allocation149_spill] sm:$0xff] %v30705_v17  ;;  %v30712_v30 = vpop.f32.mrb[170].mxu0 }
 0x230   :  { %37259 = vst [vmem:[#allocation150_spill] sm:$0xff] %v30712_v30  ;;  %v30719_v12 = vpop.f32.mrb[171].mxu0 }
 0x231   :  { %37260 = vst [vmem:[#allocation151_spill] sm:$0xff] %v30719_v12 }
 0x232   :  { %24512 = vmatmul.mubr.msk.bf16.gmra.mrb[20].mxu0 %vm2064_vm2, %v28549_v59  ;;  %v28552_v59 = vld [vmem:[%s36658_s0 + $0x470] sm:$0xff]  }
 0x233   :  { %24515 = vmatprep.mubr.msk.bf16.mxu0 %vm2064_vm2, %v28550_v63  ;;  %v28553_v63 = vld [vmem:[%s36658_s0 + $0x478] sm:$0xff]  }
 0x235   :  { %v30725_v11 = vpop.f32.mrb[172].mxu0 }
 0x236   :  { %37261 = vst [vmem:[#allocation152_spill] sm:$0xff] %v30725_v11  ;;  %v30729_v17 = vpop.f32.mrb[173].mxu0 }
 0x237   :  { %37262 = vst [vmem:[#allocation153_spill] sm:$0xff] %v30729_v17  ;;  %v30736_v36 = vpop.f32.mrb[174].mxu0 }
 0x238   :  { %37263 = vst [vmem:[#allocation154_spill] sm:$0xff] %v30736_v36  ;;  %v30743_v18 = vpop.f32.mrb[175].mxu0 }
 0x239   :  { %37264 = vst [vmem:[#allocation155_spill] sm:$0xff] %v30743_v18  ;;  %v28623_v18 = vld [vmem:[%s36658_s0 + $0x6a8] sm:$0xff]  }
 0x23a   :  { %24516 = vmatmul.mubr.msk.bf16.gmra.mrb[24].mxu0 %vm2064_vm2, %v28551_v29  ;;  %v28554_v29 = vld [vmem:[%s36658_s0 + $0x480] sm:$0xff]  }
 0x23b   :  { %24519 = vmatprep.mubr.msk.bf16.mxu0 %vm2064_vm2, %v28552_v59  ;;  %v28555_v59 = vld [vmem:[%s36658_s0 + $0x488] sm:$0xff]  }
 0x23d   :  { %v30749_v11 = vpop.f32.mrb[176].mxu0 }
 0x23e   :  { %37265 = vst [vmem:[#allocation156_spill] sm:$0xff] %v30749_v11  ;;  %v30753_v17 = vpop.f32.mrb[177].mxu0 }
 0x23f   :  { %37266 = vst [vmem:[#allocation157_spill] sm:$0xff] %v30753_v17  ;;  %v30760_v42 = vpop.f32.mrb[178].mxu0 }
 0x240   :  { %37267 = vst [vmem:[#allocation158_spill] sm:$0xff] %v30760_v42  ;;  %v30767_v24 = vpop.f32.mrb[179].mxu0 }
 0x241   :  { %37268 = vst [vmem:[#allocation159_spill] sm:$0xff] %v30767_v24  ;;  %v28621_v24 = vld [vmem:[%s36658_s0 + $0x698] sm:$0xff]  }
 0x242   :  { %24520 = vmatmul.mubr.msk.bf16.gmra.mrb[28].mxu0 %vm2064_vm2, %v28553_v63  ;;  %v28556_v63 = vld [vmem:[%s36658_s0 + $0x490] sm:$0xff]  }
 0x243   :  { %24523 = vmatprep.mubr.msk.bf16.mxu0 %vm2064_vm2, %v28554_v29  ;;  %v28557_v29 = vld [vmem:[%s36658_s0 + $0x498] sm:$0xff]  }
 0x245   :  { %v30773_v11 = vpop.f32.mrb[180].mxu0 }
 0x246   :  { %37269 = vst [vmem:[#allocation160_spill] sm:$0xff] %v30773_v11  ;;  %v30777_v17 = vpop.f32.mrb[181].mxu0 }
 0x247   :  { %37270 = vst [vmem:[#allocation161_spill] sm:$0xff] %v30777_v17  ;;  %v30784_v48 = vpop.f32.mrb[182].mxu0 }
 0x248   :  { %37271 = vst [vmem:[#allocation162_spill] sm:$0xff] %v30784_v48  ;;  %v30791_v30 = vpop.f32.mrb[183].mxu0 }
 0x249   :  { %37272 = vst [vmem:[#allocation163_spill] sm:$0xff] %v30791_v30  ;;  %v28619_v30 = vld [vmem:[%s36658_s0 + $0x688] sm:$0xff]  }
 0x24a   :  { %24524 = vmatmul.mubr.msk.bf16.gmra.mrb[32].mxu0 %vm2064_vm2, %v28555_v59  ;;  %v28558_v59 = vld [vmem:[%s36658_s0 + $0x4a0] sm:$0xff]  }
 0x24b   :  { %24527 = vmatprep.mubr.msk.bf16.mxu0 %vm2064_vm2, %v28556_v63  ;;  %v28559_v63 = vld [vmem:[%s36658_s0 + $0x4a8] sm:$0xff]  }
 0x24d   :  { %v30797_v11 = vpop.f32.mrb[184].mxu0 }
 0x24e   :  { %37273 = vst [vmem:[#allocation164_spill] sm:$0xff] %v30797_v11  ;;  %v30801_v17 = vpop.f32.mrb[185].mxu0 }
 0x24f   :  { %37274 = vst [vmem:[#allocation165_spill] sm:$0xff] %v30801_v17  ;;  %v30808_v54 = vpop.f32.mrb[186].mxu0 }
 0x250   :  { %37275 = vst [vmem:[#allocation166_spill] sm:$0xff] %v30808_v54  ;;  %v30815_v36 = vpop.f32.mrb[187].mxu0 }
 0x251   :  { %37276 = vst [vmem:[#allocation167_spill] sm:$0xff] %v30815_v36  ;;  %v28617_v36 = vld [vmem:[%s36658_s0 + $0x678] sm:$0xff]  }
 0x252   :  { %24528 = vmatmul.mubr.msk.bf16.gmra.mrb[36].mxu0 %vm2064_vm2, %v28557_v29  ;;  %v28560_v29 = vld [vmem:[%s36658_s0 + $0x4b0] sm:$0xff]  }
 0x253   :  { %24531 = vmatprep.mubr.msk.bf16.mxu0 %vm2064_vm2, %v28558_v59  ;;  %v28561_v59 = vld [vmem:[%s36658_s0 + $0x4b8] sm:$0xff]  }
 0x255   :  { %v30821_v11 = vpop.f32.mrb[188].mxu0 }
 0x256   :  { %37277 = vst [vmem:[#allocation168_spill] sm:$0xff] %v30821_v11  ;;  %v30825_v17 = vpop.f32.mrb[189].mxu0 }
 0x257   :  { %37278 = vst [vmem:[#allocation169_spill] sm:$0xff] %v30825_v17  ;;  %v30832_v60 = vpop.f32.mrb[190].mxu0 }
 0x258   :  { %37279 = vst [vmem:[#allocation170_spill] sm:$0xff] %v30832_v60  ;;  %v30839_v42 = vpop.f32.mrb[191].mxu0 }
 0x259   :  { %37280 = vst [vmem:[#allocation171_spill] sm:$0xff] %v30839_v42  ;;  %v28615_v42 = vld [vmem:[%s36658_s0 + $0x668] sm:$0xff]  }
 0x25a   :  { %24532 = vmatmul.mubr.msk.bf16.gmra.mrb[40].mxu0 %vm2064_vm2, %v28559_v63  ;;  %v28562_v63 = vld [vmem:[%s36658_s0 + $0x4c0] sm:$0xff]  }
 0x25b   :  { %24535 = vmatprep.mubr.msk.bf16.mxu0 %vm2064_vm2, %v28560_v29  ;;  %v28563_v29 = vld [vmem:[%s36658_s0 + $0x4c8] sm:$0xff]  }
 0x25d   :  { %v30845_v11 = vpop.f32.mrb[192].mxu0 }
 0x25e   :  { %37281 = vst [vmem:[#allocation172_spill] sm:$0xff] %v30845_v11  ;;  %v30849_v17 = vpop.f32.mrb[193].mxu0 }
 0x25f   :  { %37282 = vst [vmem:[#allocation173_spill] sm:$0xff] %v30849_v17  ;;  %v30856_v13 = vpop.f32.mrb[194].mxu0 }
 0x260   :  { %37283 = vst [vmem:[#allocation174_spill] sm:$0xff] %v30856_v13  ;;  %v30863_v48 = vpop.f32.mrb[195].mxu0 }
 0x261   :  { %37284 = vst [vmem:[#allocation175_spill] sm:$0xff] %v30863_v48 }
 0x262   :  { %24536 = vmatmul.mubr.msk.bf16.gmra.mrb[44].mxu0 %vm2064_vm2, %v28561_v59  ;;  %v28564_v59 = vld [vmem:[%s36658_s0 + $0x4d0] sm:$0xff]  }
 0x263   :  { %24539 = vmatprep.mubr.msk.bf16.mxu0 %vm2064_vm2, %v28562_v63  ;;  %v28565_v63 = vld [vmem:[%s36658_s0 + $0x4d8] sm:$0xff]  }
 0x265   :  { %v30869_v11 = vpop.f32.mrb[196].mxu0 }
 0x266   :  { %37285 = vst [vmem:[#allocation176_spill] sm:$0xff] %v30869_v11  ;;  %v30873_v17 = vpop.f32.mrb[197].mxu0  ;;  %v28567_v11 = vld [vmem:[%s36658_s0 + $0x4e8] sm:$0xff]  }
 0x267   :  { %37286 = vst [vmem:[#allocation177_spill] sm:$0xff] %v30873_v17  ;;  %v30880_v31 = vpop.f32.mrb[198].mxu0 }
 0x268   :  { %37287 = vst [vmem:[#allocation178_spill] sm:$0xff] %v30880_v31  ;;  %v30887_v54 = vpop.f32.mrb[199].mxu0 }
 0x269   :  { %37288 = vst [vmem:[#allocation179_spill] sm:$0xff] %v30887_v54 }
 0x26a   :  { %24540 = vmatmul.mubr.msk.bf16.gmra.mrb[48].mxu0 %vm2064_vm2, %v28563_v29  ;;  %v28566_v29 = vld [vmem:[%s36658_s0 + $0x4e0] sm:$0xff]  }
 0x26b   :  { %24543 = vmatprep.mubr.msk.bf16.mxu0 %vm2064_vm2, %v28564_v59 }
 0x26d   :  { %v30893_v41 = vpop.f32.mrb[200].mxu0 }
 0x26e   :  { %37290 = vst [vmem:[#allocation180_spill] sm:$0xff] %v30893_v41  ;;  %v30897_v43 = vpop.f32.mrb[201].mxu0  ;;  %v28569_v41 = vld [vmem:[%s36658_s0 + $0x4f8] sm:$0xff]  }
 0x26f   :  { %37292 = vst [vmem:[#allocation181_spill] sm:$0xff] %v30897_v43  ;;  %v30904_v48 = vpop.f32.mrb[202].mxu0 }
 0x270   :  { %37294 = vst [vmem:[#allocation182_spill] sm:$0xff] %v30904_v48  ;;  %v30911_v54 = vpop.f32.mrb[203].mxu0 }
 0x271   :  { %37296 = vst [vmem:[#allocation183_spill] sm:$0xff] %v30911_v54 }
 0x272   :  { %24544 = vmatmul.mubr.msk.bf16.gmra.mrb[52].mxu0 %vm2064_vm2, %v28565_v63  ;;  %v28568_v63 = vld [vmem:[%s36658_s0 + $0x4f0] sm:$0xff]  }
 0x273   :  { %24547 = vmatprep.mubr.msk.bf16.mxu0 %vm2064_vm2, %v28566_v29 }
 0x275   :  { %v30917_v13 = vpop.f32.mrb[204].mxu0 }
 0x276   :  { %37298 = vst [vmem:[#allocation184_spill] sm:$0xff] %v30917_v13  ;;  %v30921_v31 = vpop.f32.mrb[205].mxu0  ;;  %v28571_v13 = vld [vmem:[%s36658_s0 + $0x508] sm:$0xff]  }
 0x277   :  { %37300 = vst [vmem:[#allocation185_spill] sm:$0xff] %v30921_v31  ;;  %v30928_v60 = vpop.f32.mrb[206].mxu0 }
 0x278   :  { %37302 = vst [vmem:[#allocation186_spill] sm:$0xff] %v30928_v60  ;;  %v30935_v54 = vpop.f32.mrb[207].mxu0 }
 0x279   :  { %37304 = vst [vmem:[#allocation187_spill] sm:$0xff] %v30935_v54 }
 0x27a   :  { %24548 = vmatmul.mubr.msk.bf16.gmra.mrb[56].mxu0 %vm2064_vm2, %v28567_v11  ;;  %v28570_v11 = vld [vmem:[%s36658_s0 + $0x500] sm:$0xff]  }
 0x27b   :  { %24551 = vmatprep.mubr.msk.bf16.mxu0 %vm2064_vm2, %v28568_v63 }
 0x27d   :  { %v30941_v49 = vpop.f32.mrb[208].mxu0 }
 0x27e   :  { %37306 = vst [vmem:[#allocation188_spill] sm:$0xff] %v30941_v49  ;;  %v30945_v48 = vpop.f32.mrb[209].mxu0  ;;  %v28573_v49 = vld [vmem:[%s36658_s0 + $0x518] sm:$0xff]  }
 0x27f   :  { %37308 = vst [vmem:[#allocation189_spill] sm:$0xff] %v30945_v48  ;;  %v30952_v17 = vpop.f32.mrb[210].mxu0 }
 0x280   :  { %37310 = vst [vmem:[#allocation190_spill] sm:$0xff] %v30952_v17  ;;  %v30959_v54 = vpop.f32.mrb[211].mxu0 }
 0x281   :  { %37312 = vst [vmem:[#allocation191_spill] sm:$0xff] %v30959_v54 }
 0x282   :  { %24552 = vmatmul.mubr.msk.bf16.gmra.mrb[60].mxu0 %vm2064_vm2, %v28569_v41  ;;  %v28572_v41 = vld [vmem:[%s36658_s0 + $0x510] sm:$0xff]  }
 0x283   :  { %24555 = vmatprep.mubr.msk.bf16.mxu0 %vm2064_vm2, %v28570_v11 }
 0x285   :  { %v30965_v59 = vpop.f32.mrb[212].mxu0 }
 0x286   :  { %37314 = vst [vmem:[#allocation192_spill] sm:$0xff] %v30965_v59  ;;  %v30969_v60 = vpop.f32.mrb[213].mxu0  ;;  %v28575_v59 = vld [vmem:[%s36658_s0 + $0x528] sm:$0xff]  }
 0x287   :  { %37316 = vst [vmem:[#allocation193_spill] sm:$0xff] %v30969_v60  ;;  %v30976_v43 = vpop.f32.mrb[214].mxu0 }
 0x288   :  { %37318 = vst [vmem:[#allocation194_spill] sm:$0xff] %v30976_v43  ;;  %v30983_v54 = vpop.f32.mrb[215].mxu0 }
 0x289   :  { %37320 = vst [vmem:[#allocation195_spill] sm:$0xff] %v30983_v54 }
 0x28a   :  { %24556 = vmatmul.mubr.msk.bf16.gmra.mrb[64].mxu0 %vm2064_vm2, %v28571_v13  ;;  %v28574_v13 = vld [vmem:[%s36658_s0 + $0x520] sm:$0xff]  }
 0x28b   :  { %24559 = vmatprep.mubr.msk.bf16.mxu0 %vm2064_vm2, %v28572_v41 }
 0x28d   :  { %v30989_v29 = vpop.f32.mrb[216].mxu0 }
 0x28e   :  { %37322 = vst [vmem:[#allocation196_spill] sm:$0xff] %v30989_v29  ;;  %v30993_v17 = vpop.f32.mrb[217].mxu0  ;;  %v28577_v29 = vld [vmem:[%s36658_s0 + $0x538] sm:$0xff]  }
 0x28f   :  { %37324 = vst [vmem:[#allocation197_spill] sm:$0xff] %v30993_v17  ;;  %v31000_v31 = vpop.f32.mrb[218].mxu0 }
 0x290   :  { %37326 = vst [vmem:[#allocation198_spill] sm:$0xff] %v31000_v31  ;;  %v31007_v54 = vpop.f32.mrb[219].mxu0 }
 0x291   :  { %37328 = vst [vmem:[#allocation199_spill] sm:$0xff] %v31007_v54 }
 0x292   :  { %24560 = vmatmul.mubr.msk.bf16.gmra.mrb[68].mxu0 %vm2064_vm2, %v28573_v49  ;;  %v28576_v49 = vld [vmem:[%s36658_s0 + $0x530] sm:$0xff]  }
 0x293   :  { %24563 = vmatprep.mubr.msk.bf16.mxu0 %vm2064_vm2, %v28574_v13 }
 0x295   :  { %v31013_v63 = vpop.f32.mrb[220].mxu0 }
 0x296   :  { %37330 = vst [vmem:[#allocation200_spill] sm:$0xff] %v31013_v63  ;;  %v31017_v43 = vpop.f32.mrb[221].mxu0  ;;  %v28579_v63 = vld [vmem:[%s36658_s0 + $0x548] sm:$0xff]  }
 0x297   :  { %37332 = vst [vmem:[#allocation201_spill] sm:$0xff] %v31017_v43  ;;  %v31024_v48 = vpop.f32.mrb[222].mxu0 }
 0x298   :  { %37334 = vst [vmem:[#allocation202_spill] sm:$0xff] %v31024_v48  ;;  %v31031_v54 = vpop.f32.mrb[223].mxu0 }
 0x299   :  { %37336 = vst [vmem:[#allocation203_spill] sm:$0xff] %v31031_v54 }
 0x29a   :  { %24564 = vmatmul.mubr.msk.bf16.gmra.mrb[72].mxu0 %vm2064_vm2, %v28575_v59  ;;  %v28578_v59 = vld [vmem:[%s36658_s0 + $0x540] sm:$0xff]  }
 0x29b   :  { %24567 = vmatprep.mubr.msk.bf16.mxu0 %vm2064_vm2, %v28576_v49 }
 0x29d   :  { %v31037_v11 = vpop.f32.mrb[224].mxu0 }
 0x29e   :  { %37338 = vst [vmem:[#allocation204_spill] sm:$0xff] %v31037_v11  ;;  %v31041_v31 = vpop.f32.mrb[225].mxu0  ;;  %v28581_v11 = vld [vmem:[%s36658_s0 + $0x558] sm:$0xff]  }
 0x29f   :  { %37340 = vst [vmem:[#allocation205_spill] sm:$0xff] %v31041_v31  ;;  %v31048_v60 = vpop.f32.mrb[226].mxu0 }
 0x2a0   :  { %37342 = vst [vmem:[#allocation206_spill] sm:$0xff] %v31048_v60  ;;  %v31055_v54 = vpop.f32.mrb[227].mxu0 }
 0x2a1   :  { %37344 = vst [vmem:[#allocation207_spill] sm:$0xff] %v31055_v54 }
 0x2a2   :  { %24568 = vmatmul.mubr.msk.bf16.gmra.mrb[76].mxu0 %vm2064_vm2, %v28577_v29  ;;  %v28580_v29 = vld [vmem:[%s36658_s0 + $0x550] sm:$0xff]  }
 0x2a3   :  { %24571 = vmatprep.mubr.msk.bf16.mxu0 %vm2064_vm2, %v28578_v59 }
 0x2a5   :  { %v31061_v41 = vpop.f32.mrb[228].mxu0 }
 0x2a6   :  { %37346 = vst [vmem:[#allocation208_spill] sm:$0xff] %v31061_v41  ;;  %v31065_v48 = vpop.f32.mrb[229].mxu0  ;;  %v28583_v41 = vld [vmem:[%s36658_s0 + $0x568] sm:$0xff]  }
 0x2a7   :  { %37348 = vst [vmem:[#allocation209_spill] sm:$0xff] %v31065_v48  ;;  %v31072_v17 = vpop.f32.mrb[230].mxu0 }
 0x2a8   :  { %37350 = vst [vmem:[#allocation210_spill] sm:$0xff] %v31072_v17  ;;  %v31079_v54 = vpop.f32.mrb[231].mxu0 }
 0x2a9   :  { %37352 = vst [vmem:[#allocation211_spill] sm:$0xff] %v31079_v54 }
 0x2aa   :  { %24572 = vmatmul.mubr.msk.bf16.gmra.mrb[80].mxu0 %vm2064_vm2, %v28579_v63  ;;  %v28582_v63 = vld [vmem:[%s36658_s0 + $0x560] sm:$0xff]  }
 0x2ab   :  { %24575 = vmatprep.mubr.msk.bf16.mxu0 %vm2064_vm2, %v28580_v29 }
 0x2ad   :  { %v31085_v13 = vpop.f32.mrb[232].mxu0 }
 0x2ae   :  { %37354 = vst [vmem:[#allocation212_spill] sm:$0xff] %v31085_v13  ;;  %v31089_v60 = vpop.f32.mrb[233].mxu0  ;;  %v28585_v13 = vld [vmem:[%s36658_s0 + $0x578] sm:$0xff]  }
 0x2af   :  { %37356 = vst [vmem:[#allocation213_spill] sm:$0xff] %v31089_v60  ;;  %v31096_v43 = vpop.f32.mrb[234].mxu0 }
 0x2b0   :  { %37358 = vst [vmem:[#allocation214_spill] sm:$0xff] %v31096_v43  ;;  %v31103_v54 = vpop.f32.mrb[235].mxu0 }
 0x2b1   :  { %37360 = vst [vmem:[#allocation215_spill] sm:$0xff] %v31103_v54 }
 0x2b2   :  { %24576 = vmatmul.mubr.msk.bf16.gmra.mrb[84].mxu0 %vm2064_vm2, %v28581_v11  ;;  %v28584_v11 = vld [vmem:[%s36658_s0 + $0x570] sm:$0xff]  }
 0x2b3   :  { %24579 = vmatprep.mubr.msk.bf16.mxu0 %vm2064_vm2, %v28582_v63 }
 0x2b5   :  { %v31109_v49 = vpop.f32.mrb[236].mxu0 }
 0x2b6   :  { %37362 = vst [vmem:[#allocation216_spill] sm:$0xff] %v31109_v49  ;;  %v31113_v17 = vpop.f32.mrb[237].mxu0  ;;  %v28587_v49 = vld [vmem:[%s36658_s0 + $0x588] sm:$0xff]  }
 0x2b7   :  { %37364 = vst [vmem:[#allocation217_spill] sm:$0xff] %v31113_v17  ;;  %v31120_v31 = vpop.f32.mrb[238].mxu0 }
 0x2b8   :  { %37366 = vst [vmem:[#allocation218_spill] sm:$0xff] %v31120_v31  ;;  %v31127_v54 = vpop.f32.mrb[239].mxu0 }
 0x2b9   :  { %37368 = vst [vmem:[#allocation219_spill] sm:$0xff] %v31127_v54 }
 0x2ba   :  { %24580 = vmatmul.mubr.msk.bf16.gmra.mrb[88].mxu0 %vm2064_vm2, %v28583_v41  ;;  %v28586_v41 = vld [vmem:[%s36658_s0 + $0x580] sm:$0xff]  }
 0x2bb   :  { %24583 = vmatprep.mubr.msk.bf16.mxu0 %vm2064_vm2, %v28584_v11 }
 0x2bd   :  { %v31133_v59 = vpop.f32.mrb[240].mxu0 }
 0x2be   :  { %37370 = vst [vmem:[#allocation220_spill] sm:$0xff] %v31133_v59  ;;  %v31137_v43 = vpop.f32.mrb[241].mxu0  ;;  %v28589_v59 = vld [vmem:[%s36658_s0 + $0x598] sm:$0xff]  }
 0x2bf   :  { %37372 = vst [vmem:[#allocation221_spill] sm:$0xff] %v31137_v43  ;;  %v31144_v48 = vpop.f32.mrb[242].mxu0 }
 0x2c0   :  { %37374 = vst [vmem:[#allocation222_spill] sm:$0xff] %v31144_v48  ;;  %v31151_v54 = vpop.f32.mrb[243].mxu0 }
 0x2c1   :  { %37376 = vst [vmem:[#allocation223_spill] sm:$0xff] %v31151_v54 }
 0x2c2   :  { %24584 = vmatmul.mubr.msk.bf16.gmra.mrb[92].mxu0 %vm2064_vm2, %v28585_v13  ;;  %v28588_v13 = vld [vmem:[%s36658_s0 + $0x590] sm:$0xff]  }
 0x2c3   :  { %24587 = vmatprep.mubr.msk.bf16.mxu0 %vm2064_vm2, %v28586_v41 }
 0x2c5   :  { %v31157_v29 = vpop.f32.mrb[244].mxu0 }
 0x2c6   :  { %37378 = vst [vmem:[#allocation224_spill] sm:$0xff] %v31157_v29  ;;  %v31161_v31 = vpop.f32.mrb[245].mxu0  ;;  %v28591_v29 = vld [vmem:[%s36658_s0 + $0x5a8] sm:$0xff]  }
 0x2c7   :  { %37380 = vst [vmem:[#allocation225_spill] sm:$0xff] %v31161_v31  ;;  %v31168_v60 = vpop.f32.mrb[246].mxu0 }
 0x2c8   :  { %37382 = vst [vmem:[#allocation226_spill] sm:$0xff] %v31168_v60  ;;  %v31175_v54 = vpop.f32.mrb[247].mxu0 }
 0x2c9   :  { %37384 = vst [vmem:[#allocation227_spill] sm:$0xff] %v31175_v54 }
 0x2ca   :  { %24588 = vmatmul.mubr.msk.bf16.gmra.mrb[96].mxu0 %vm2064_vm2, %v28587_v49  ;;  %v28590_v49 = vld [vmem:[%s36658_s0 + $0x5a0] sm:$0xff]  }
 0x2cb   :  { %24591 = vmatprep.mubr.msk.bf16.mxu0 %vm2064_vm2, %v28588_v13 }
 0x2cd   :  { %v31181_v63 = vpop.f32.mrb[248].mxu0 }
 0x2ce   :  { %37386 = vst [vmem:[#allocation228_spill] sm:$0xff] %v31181_v63  ;;  %v31185_v48 = vpop.f32.mrb[249].mxu0  ;;  %v28593_v63 = vld [vmem:[%s36658_s0 + $0x5b8] sm:$0xff]  }
 0x2cf   :  { %37388 = vst [vmem:[#allocation229_spill] sm:$0xff] %v31185_v48  ;;  %v31192_v17 = vpop.f32.mrb[250].mxu0 }
 0x2d0   :  { %37390 = vst [vmem:[#allocation230_spill] sm:$0xff] %v31192_v17  ;;  %v31199_v54 = vpop.f32.mrb[251].mxu0 }
 0x2d1   :  { %37392 = vst [vmem:[#allocation231_spill] sm:$0xff] %v31199_v54 }
 0x2d2   :  { %24592 = vmatmul.mubr.msk.bf16.gmra.mrb[100].mxu0 %vm2064_vm2, %v28589_v59  ;;  %v28592_v59 = vld [vmem:[%s36658_s0 + $0x5b0] sm:$0xff]  }
 0x2d3   :  { %24595 = vmatprep.mubr.msk.bf16.mxu0 %vm2064_vm2, %v28590_v49 }
 0x2d5   :  { %v31205_v11 = vpop.f32.mrb[252].mxu0 }
 0x2d6   :  { %37394 = vst [vmem:[#allocation232_spill] sm:$0xff] %v31205_v11  ;;  %v31209_v60 = vpop.f32.mrb[253].mxu0  ;;  %v28595_v11 = vld [vmem:[%s36658_s0 + $0x5c8] sm:$0xff]  }
 0x2d7   :  { %37396 = vst [vmem:[#allocation233_spill] sm:$0xff] %v31209_v60  ;;  %v31216_v43 = vpop.f32.mrb[254].mxu0 }
 0x2d8   :  { %37398 = vst [vmem:[#allocation234_spill] sm:$0xff] %v31216_v43  ;;  %v31223_v54 = vpop.f32.mrb[255].mxu0 }
 0x2d9   :  { %37400 = vst [vmem:[#allocation235_spill] sm:$0xff] %v31223_v54 }
 0x2da   :  { %24596 = vmatmul.mubr.msk.bf16.gmra.mrb[104].mxu0 %vm2064_vm2, %v28591_v29  ;;  %v28594_v29 = vld [vmem:[%s36658_s0 + $0x5c0] sm:$0xff]  }
 0x2db   :  { %24599 = vmatprep.mubr.msk.bf16.mxu0 %vm2064_vm2, %v28592_v59 }
 0x2dd   :  { %v31229_v41 = vpop.f32.mrb[0].mxu0 }
 0x2de   :  { %37402 = vst [vmem:[#allocation236_spill] sm:$0xff] %v31229_v41  ;;  %v31233_v17 = vpop.f32.mrb[1].mxu0  ;;  %v28597_v41 = vld [vmem:[%s36658_s0 + $0x5d8] sm:$0xff]  }
 0x2df   :  { %37404 = vst [vmem:[#allocation237_spill] sm:$0xff] %v31233_v17  ;;  %v31240_v31 = vpop.f32.mrb[2].mxu0 }
 0x2e0   :  { %37406 = vst [vmem:[#allocation238_spill] sm:$0xff] %v31240_v31  ;;  %v31247_v54 = vpop.f32.mrb[3].mxu0 }
 0x2e1   :  { %37408 = vst [vmem:[#allocation239_spill] sm:$0xff] %v31247_v54 }
 0x2e2   :  { %24600 = vmatmul.mubr.msk.bf16.gmra.mrb[108].mxu0 %vm2064_vm2, %v28593_v63  ;;  %v28596_v63 = vld [vmem:[%s36658_s0 + $0x5d0] sm:$0xff]  }
 0x2e3   :  { %24603 = vmatprep.mubr.msk.bf16.mxu0 %vm2064_vm2, %v28594_v29 }
 0x2e5   :  { %v31253_v13 = vpop.f32.mrb[4].mxu0 }
 0x2e6   :  { %37410 = vst [vmem:[#allocation240_spill] sm:$0xff] %v31253_v13  ;;  %v31257_v43 = vpop.f32.mrb[5].mxu0  ;;  %v28599_v13 = vld [vmem:[%s36658_s0 + $0x5e8] sm:$0xff]  }
 0x2e7   :  { %37412 = vst [vmem:[#allocation241_spill] sm:$0xff] %v31257_v43  ;;  %v31264_v48 = vpop.f32.mrb[6].mxu0 }
 0x2e8   :  { %37414 = vst [vmem:[#allocation242_spill] sm:$0xff] %v31264_v48  ;;  %v31271_v54 = vpop.f32.mrb[7].mxu0 }
 0x2e9   :  { %37416 = vst [vmem:[#allocation243_spill] sm:$0xff] %v31271_v54 }
 0x2ea   :  { %24604 = vmatmul.mubr.msk.bf16.gmra.mrb[112].mxu0 %vm2064_vm2, %v28595_v11  ;;  %v28598_v11 = vld [vmem:[%s36658_s0 + $0x5e0] sm:$0xff]  }
 0x2eb   :  { %24607 = vmatprep.mubr.msk.bf16.mxu0 %vm2064_vm2, %v28596_v63 }
 0x2ed   :  { %v31277_v49 = vpop.f32.mrb[8].mxu0 }
 0x2ee   :  { %37418 = vst [vmem:[#allocation244_spill] sm:$0xff] %v31277_v49  ;;  %v31281_v31 = vpop.f32.mrb[9].mxu0  ;;  %v28601_v49 = vld [vmem:[%s36658_s0 + $0x5f8] sm:$0xff]  }
 0x2ef   :  { %37420 = vst [vmem:[#allocation245_spill] sm:$0xff] %v31281_v31  ;;  %v31288_v60 = vpop.f32.mrb[10].mxu0 }
 0x2f0   :  { %37422 = vst [vmem:[#allocation246_spill] sm:$0xff] %v31288_v60  ;;  %v31295_v54 = vpop.f32.mrb[11].mxu0 }
 0x2f1   :  { %37424 = vst [vmem:[#allocation247_spill] sm:$0xff] %v31295_v54 }
 0x2f2   :  { %24608 = vmatmul.mubr.msk.bf16.gmra.mrb[116].mxu0 %vm2064_vm2, %v28597_v41  ;;  %v28600_v41 = vld [vmem:[%s36658_s0 + $0x5f0] sm:$0xff]  }
 0x2f3   :  { %24611 = vmatprep.mubr.msk.bf16.mxu0 %vm2064_vm2, %v28598_v11 }
 0x2f5   :  { %v31301_v59 = vpop.f32.mrb[12].mxu0 }
 0x2f6   :  { %37426 = vst [vmem:[#allocation248_spill] sm:$0xff] %v31301_v59  ;;  %v31305_v48 = vpop.f32.mrb[13].mxu0  ;;  %v28603_v59 = vld [vmem:[%s36658_s0 + $0x608] sm:$0xff]  }
 0x2f7   :  { %37428 = vst [vmem:[#allocation249_spill] sm:$0xff] %v31305_v48  ;;  %v31312_v17 = vpop.f32.mrb[14].mxu0 }
 0x2f8   :  { %37430 = vst [vmem:[#allocation250_spill] sm:$0xff] %v31312_v17  ;;  %v31319_v54 = vpop.f32.mrb[15].mxu0 }
 0x2f9   :  { %37432 = vst [vmem:[#allocation251_spill] sm:$0xff] %v31319_v54 }
 0x2fa   :  { %24612 = vmatmul.mubr.msk.bf16.gmra.mrb[120].mxu0 %vm2064_vm2, %v28599_v13  ;;  %v28602_v13 = vld [vmem:[%s36658_s0 + $0x600] sm:$0xff]  }
 0x2fb   :  { %24615 = vmatprep.mubr.msk.bf16.mxu0 %vm2064_vm2, %v28600_v41 }
 0x2fd   :  { %v31325_v29 = vpop.f32.mrb[16].mxu0 }
 0x2fe   :  { %37434 = vst [vmem:[#allocation252_spill] sm:$0xff] %v31325_v29  ;;  %v31329_v60 = vpop.f32.mrb[17].mxu0  ;;  %v28605_v29 = vld [vmem:[%s36658_s0 + $0x618] sm:$0xff]  }
 0x2ff   :  { %37436 = vst [vmem:[#allocation253_spill] sm:$0xff] %v31329_v60  ;;  %v31336_v43 = vpop.f32.mrb[18].mxu0 }
 0x300   :  { %37438 = vst [vmem:[#allocation254_spill] sm:$0xff] %v31336_v43  ;;  %v31343_v54 = vpop.f32.mrb[19].mxu0 }
 0x301   :  { %37440 = vst [vmem:[#allocation255_spill] sm:$0xff] %v31343_v54 }
 0x302   :  { %24616 = vmatmul.mubr.msk.bf16.gmra.mrb[124].mxu0 %vm2064_vm2, %v28601_v49  ;;  %v28604_v49 = vld [vmem:[%s36658_s0 + $0x610] sm:$0xff]  }
 0x303   :  { %24619 = vmatprep.mubr.msk.bf16.mxu0 %vm2064_vm2, %v28602_v13 }
 0x305   :  { %v31349_v63 = vpop.f32.mrb[20].mxu0 }
 0x306   :  { %37442 = vst [vmem:[#allocation256_spill] sm:$0xff] %v31349_v63  ;;  %v31353_v17 = vpop.f32.mrb[21].mxu0  ;;  %v28607_v63 = vld [vmem:[%s36658_s0 + $0x628] sm:$0xff]  }
 0x307   :  { %37444 = vst [vmem:[#allocation257_spill] sm:$0xff] %v31353_v17  ;;  %v31360_v31 = vpop.f32.mrb[22].mxu0  ;;  %v28613_v17 = vld [vmem:[%s36658_s0 + $0x658] sm:$0xff]  }
 0x308   :  { %37446 = vst [vmem:[#allocation258_spill] sm:$0xff] %v31360_v31  ;;  %v31367_v54 = vpop.f32.mrb[23].mxu0 }
 0x309   :  { %37448 = vst [vmem:[#allocation259_spill] sm:$0xff] %v31367_v54 }
 0x30a   :  { %24620 = vmatmul.mubr.msk.bf16.gmra.mrb[128].mxu0 %vm2064_vm2, %v28603_v59  ;;  %v28606_v59 = vld [vmem:[%s36658_s0 + $0x620] sm:$0xff]  }
 0x30b   :  { %24623 = vmatprep.mubr.msk.bf16.mxu0 %vm2064_vm2, %v28604_v49 }
 0x30d   :  { %v31373_v11 = vpop.f32.mrb[24].mxu0 }
 0x30e   :  { %37450 = vst [vmem:[#allocation260_spill] sm:$0xff] %v31373_v11  ;;  %v31377_v43 = vpop.f32.mrb[25].mxu0  ;;  %v28610_v11 = vld [vmem:[%s36658_s0 + $0x640] sm:$0xff]  }
 0x30f   :  { %37452 = vst [vmem:[#allocation261_spill] sm:$0xff] %v31377_v43  ;;  %v31384_v48 = vpop.f32.mrb[26].mxu0  ;;  %v28612_v43 = vld [vmem:[%s36658_s0 + $0x650] sm:$0xff]  }
 0x310   :  { %37454 = vst [vmem:[#allocation262_spill] sm:$0xff] %v31384_v48  ;;  %v31391_v54 = vpop.f32.mrb[27].mxu0 }
 0x311   :  { %37456 = vst [vmem:[#allocation263_spill] sm:$0xff] %v31391_v54 }
 0x312   :  { %24624 = vmatmul.mubr.msk.bf16.gmra.mrb[132].mxu0 %vm2064_vm2, %v28605_v29  ;;  %v28608_v29 = vld [vmem:[%s36658_s0 + $0x630] sm:$0xff]  }
 0x313   :  { %24627 = vmatprep.mubr.msk.bf16.mxu0 %vm2064_vm2, %v28606_v59 }
 0x315   :  { %v31397_v41 = vpop.f32.mrb[28].mxu0 }
 0x316   :  { %37458 = vst [vmem:[#allocation264_spill] sm:$0xff] %v31397_v41  ;;  %v31401_v31 = vpop.f32.mrb[29].mxu0  ;;  %v28611_v41 = vld [vmem:[%s36658_s0 + $0x648] sm:$0xff]  }
 0x317   :  { %37460 = vst [vmem:[#allocation265_spill] sm:$0xff] %v31401_v31  ;;  %v31408_v60 = vpop.f32.mrb[30].mxu0  ;;  %v28609_v31 = vld [vmem:[%s36658_s0 + $0x638] sm:$0xff]  }
 0x318   :  { %37462 = vst [vmem:[#allocation266_spill] sm:$0xff] %v31408_v60  ;;  %v31415_v54 = vpop.f32.mrb[31].mxu0 }
 0x319   :  { %37464 = vst [vmem:[#allocation267_spill] sm:$0xff] %v31415_v54 }
 0x31a   :  { %24628 = vmatmul.mubr.msk.bf16.gmra.mrb[136].mxu0 %vm2064_vm2, %v28607_v63 }
 0x31b   :  { %24631 = vmatprep.mubr.msk.bf16.mxu0 %vm2064_vm2, %v28608_v29 }
 0x31d   :  { %v31421_v13 = vpop.f32.mrb[32].mxu0 }
 0x31e   :  { %v31423_v49 = vpop.f32.mrb[33].mxu0 }
 0x31f   :  { %v31428_v48 = vpop.f32.mrb[34].mxu0 }
 0x320   :  { %v31433_v60 = vpop.f32.mrb[35].mxu0 }
 0x322   :  { %24632 = vmatmul.mubr.msk.bf16.gmra.mrb[140].mxu0 %vm2064_vm2, %v28609_v31 }
 0x323   :  { %24635 = vmatprep.mubr.msk.bf16.mxu0 %vm2064_vm2, %v28610_v11 }
 0x325   :  { %v31437_v63 = vpop.f32.mrb[36].mxu0 }
 0x326   :  { %v31439_v29 = vpop.f32.mrb[37].mxu0 }
 0x327   :  { %v31444_v54 = vpop.f32.mrb[38].mxu0 }
 0x328   :  { %v31449_v59 = vpop.f32.mrb[39].mxu0 }
 0x32a   :  { %24636 = vmatmul.mubr.msk.bf16.gmra.mrb[144].mxu0 %vm2064_vm2, %v28611_v41 }
 0x32b   :  { %24639 = vmatprep.mubr.msk.bf16.mxu0 %vm2064_vm2, %v28612_v43 }
 0x32d   :  { %v31453_v31 = vpop.f32.mrb[40].mxu0 }
 0x32e   :  { %v31455_v11 = vpop.f32.mrb[41].mxu0 }
 0x32f   :  { %v31460_v37 = vpop.f32.mrb[42].mxu0 }
 0x330   :  { %v31465_v23 = vpop.f32.mrb[43].mxu0 }
 0x332   :  { %24640 = vmatmul.mubr.msk.bf16.gmra.mrb[148].mxu0 %vm2064_vm2, %v28613_v17 }
 0x333   :  { %24643 = vmatprep.mubr.msk.bf16.mxu0 %vm2064_vm2, %v28614_v25 }
 0x335   :  { %v31469_v43 = vpop.f32.mrb[44].mxu0 }
 0x336   :  { %v31471_v41 = vpop.f32.mrb[45].mxu0 }
 0x337   :  { %v31476_v19 = vpop.f32.mrb[46].mxu0 }
 0x338   :  { %v31481_v5 = vpop.f32.mrb[47].mxu0 }
 0x33a   :  { %24644 = vmatmul.mubr.msk.bf16.gmra.mrb[152].mxu0 %vm2064_vm2, %v28615_v42 }
 0x33b   :  { %24647 = vmatprep.mubr.msk.bf16.mxu0 %vm2064_vm2, %v28616_v7 }
 0x33d   :  { %v31485_v25 = vpop.f32.mrb[48].mxu0 }
 0x33e   :  { %v31487_v17 = vpop.f32.mrb[49].mxu0 }
 0x33f   :  { %v31492_v1 = vpop.f32.mrb[50].mxu0 }
 0x340   :  { %v31497_v57 = vpop.f32.mrb[51].mxu0 }
 0x342   :  { %24648 = vmatmul.mubr.msk.bf16.gmra.mrb[156].mxu0 %vm2064_vm2, %v28617_v36 }
 0x343   :  { %24651 = vmatprep.mubr.msk.bf16.mxu0 %vm2064_vm2, %v28618_v58 }
 0x345   :  { %v31501_v42 = vpop.f32.mrb[52].mxu0 }
 0x346   :  { %v31503_v7 = vpop.f32.mrb[53].mxu0 }
 0x347   :  { %v31508_v56 = vpop.f32.mrb[54].mxu0 }
 0x348   :  { %v31513_v51 = vpop.f32.mrb[55].mxu0 }
 0x349   :  { %37466 = vst [vmem:[#allocation268_spill] sm:$0xff] %v31513_v51 }
 0x34a   :  { %24652 = vmatmul.mubr.msk.bf16.gmra.mrb[160].mxu0 %vm2064_vm2, %v28619_v30 }
 0x34b   :  { %24655 = vmatprep.mubr.msk.bf16.mxu0 %vm2064_vm2, %v28620_v52 }
 0x34d   :  { %v31517_v36 = vpop.f32.mrb[56].mxu0 }
 0x34e   :  { %37467 = vst [vmem:[#allocation269_spill] sm:$0xff] %v31517_v36  ;;  %v31519_v58 = vpop.f32.mrb[57].mxu0 }
 0x34f   :  { %37468 = vst [vmem:[#allocation270_spill] sm:$0xff] %v31519_v58  ;;  %v31524_v50 = vpop.f32.mrb[58].mxu0 }
 0x350   :  { %37469 = vst [vmem:[#allocation271_spill] sm:$0xff] %v31524_v50  ;;  %v31529_v45 = vpop.f32.mrb[59].mxu0 }
 0x351   :  { %37470 = vst [vmem:[#allocation272_spill] sm:$0xff] %v31529_v45 }
 0x352   :  { %24656 = vmatmul.mubr.msk.bf16.gmra.mrb[164].mxu0 %vm2064_vm2, %v28621_v24 }
 0x353   :  { %24659 = vmatprep.mubr.msk.bf16.mxu0 %vm2064_vm2, %v28622_v46 }
 0x355   :  { %v31533_v30 = vpop.f32.mrb[60].mxu0 }
 0x356   :  { %37471 = vst [vmem:[#allocation273_spill] sm:$0xff] %v31533_v30  ;;  %v31535_v52 = vpop.f32.mrb[61].mxu0 }
 0x357   :  { %37472 = vst [vmem:[#allocation274_spill] sm:$0xff] %v31535_v52  ;;  %v31540_v44 = vpop.f32.mrb[62].mxu0  ;;  %v28625_v52 = vld [vmem:[%s36658_s0 + $0x6b8] sm:$0xff]  }
 0x358   :  { %37473 = vst [vmem:[#allocation275_spill] sm:$0xff] %v31540_v44  ;;  %v31545_v39 = vpop.f32.mrb[63].mxu0  ;;  %v28626_v44 = vld [vmem:[%s36658_s0 + $0x6c0] sm:$0xff]  }
 0x359   :  { %37474 = vst [vmem:[#allocation276_spill] sm:$0xff] %v31545_v39 }
 0x35a   :  { %24660 = vmatmul.mubr.msk.bf16.gmra.mrb[168].mxu0 %vm2064_vm2, %v28623_v18 }
 0x35b   :  { %24663 = vmatprep.mubr.msk.bf16.mxu0 %vm2064_vm2, %v28624_v40 }
 0x35d   :  { %v31549_v24 = vpop.f32.mrb[64].mxu0 }
 0x35e   :  { %37475 = vst [vmem:[#allocation277_spill] sm:$0xff] %v31549_v24  ;;  %v31551_v46 = vpop.f32.mrb[65].mxu0 }
 0x35f   :  { %37476 = vst [vmem:[#allocation278_spill] sm:$0xff] %v31551_v46  ;;  %v31556_v30 = vpop.f32.mrb[66].mxu0  ;;  %v28627_v46 = vld [vmem:[%s36658_s0 + $0x6c8] sm:$0xff]  }
 0x360   :  { %37477 = vst [vmem:[#allocation279_spill] sm:$0xff] %v31556_v30  ;;  %v31561_v12 = vpop.f32.mrb[67].mxu0  ;;  %v28628_v30 = vld [vmem:[%s36658_s0 + $0x6d0] sm:$0xff]  }
 0x361   :  { %37478 = vst [vmem:[#allocation280_spill] sm:$0xff] %v31561_v12 }
 0x362   :  { %24664 = vmatmul.mubr.msk.bf16.gmra.mrb[172].mxu0 %vm2064_vm2, %v28625_v52 }
 0x363   :  { %24667 = vmatprep.mubr.msk.bf16.mxu0 %vm2064_vm2, %v28626_v44 }
 0x365   :  { %v31565_v18 = vpop.f32.mrb[68].mxu0 }
 0x366   :  { %37479 = vst [vmem:[#allocation281_spill] sm:$0xff] %v31565_v18  ;;  %v31567_v40 = vpop.f32.mrb[69].mxu0 }
 0x367   :  { %37480 = vst [vmem:[#allocation282_spill] sm:$0xff] %v31567_v40  ;;  %v31572_v24 = vpop.f32.mrb[70].mxu0  ;;  %v28629_v40 = vld [vmem:[%s36658_s0 + $0x6d8] sm:$0xff]  }
 0x368   :  { %37481 = vst [vmem:[#allocation283_spill] sm:$0xff] %v31572_v24  ;;  %v31577_v39 = vpop.f32.mrb[71].mxu0  ;;  %v28630_v24 = vld [vmem:[%s36658_s0 + $0x6e0] sm:$0xff]  }
 0x369   :  { %37482 = vst [vmem:[#allocation284_spill] sm:$0xff] %v31577_v39 }
 0x36a   :  { %24668 = vmatmul.mubr.msk.bf16.gmra.mrb[176].mxu0 %vm2064_vm2, %v28627_v46 }
 0x36b   :  { %24671 = vmatprep.mubr.msk.bf16.mxu0 %vm2064_vm2, %v28628_v30 }
 0x36d   :  { %v31581_v44 = vpop.f32.mrb[72].mxu0 }
 0x36e   :  { %37483 = vst [vmem:[#allocation285_spill] sm:$0xff] %v31581_v44  ;;  %v31583_v52 = vpop.f32.mrb[73].mxu0 }
 0x36f   :  { %37484 = vst [vmem:[#allocation286_spill] sm:$0xff] %v31583_v52  ;;  %v31588_v18 = vpop.f32.mrb[74].mxu0  ;;  %v28631_v52 = vld [vmem:[%s36658_s0 + $0x6e8] sm:$0xff]  }
 0x370   :  { %37485 = vst [vmem:[#allocation287_spill] sm:$0xff] %v31588_v18  ;;  %v31593_v12 = vpop.f32.mrb[75].mxu0  ;;  %v28632_v18 = vld [vmem:[%s36658_s0 + $0x6f0] sm:$0xff]  }
 0x371   :  { %37486 = vst [vmem:[#allocation288_spill] sm:$0xff] %v31593_v12 }
 0x372   :  { %24672 = vmatmul.mubr.msk.bf16.gmra.mrb[180].mxu0 %vm2064_vm2, %v28629_v40 }
 0x373   :  { %24675 = vmatprep.mubr.msk.bf16.mxu0 %vm2064_vm2, %v28630_v24 }
 0x375   :  { %v31597_v30 = vpop.f32.mrb[76].mxu0 }
 0x376   :  { %37487 = vst [vmem:[#allocation289_spill] sm:$0xff] %v31597_v30  ;;  %v31599_v46 = vpop.f32.mrb[77].mxu0 }
 0x377   :  { %37488 = vst [vmem:[#allocation290_spill] sm:$0xff] %v31599_v46  ;;  %v31604_v44 = vpop.f32.mrb[78].mxu0  ;;  %v28633_v46 = vld [vmem:[%s36658_s0 + $0x6f8] sm:$0xff]  }
 0x378   :  { %37489 = vst [vmem:[#allocation291_spill] sm:$0xff] %v31604_v44  ;;  %v31609_v39 = vpop.f32.mrb[79].mxu0  ;;  %v28634_v44 = vld [vmem:[%s36658_s0 + $0x700] sm:$0xff]  }
 0x379   :  { %37490 = vst [vmem:[#allocation292_spill] sm:$0xff] %v31609_v39 }
 0x37a   :  { %24676 = vmatmul.mubr.msk.bf16.gmra.mrb[184].mxu0 %vm2064_vm2, %v28631_v52 }
 0x37b   :  { %24679 = vmatprep.mubr.msk.bf16.mxu0 %vm2064_vm2, %v28632_v18 }
 0x37d   :  { %v31613_v24 = vpop.f32.mrb[80].mxu0 }
 0x37e   :  { %37491 = vst [vmem:[#allocation293_spill] sm:$0xff] %v31613_v24  ;;  %v31615_v40 = vpop.f32.mrb[81].mxu0 }
 0x37f   :  { %37492 = vst [vmem:[#allocation294_spill] sm:$0xff] %v31615_v40  ;;  %v31620_v30 = vpop.f32.mrb[82].mxu0  ;;  %v28635_v40 = vld [vmem:[%s36658_s0 + $0x708] sm:$0xff]  }
 0x380   :  { %37493 = vst [vmem:[#allocation295_spill] sm:$0xff] %v31620_v30  ;;  %v31625_v12 = vpop.f32.mrb[83].mxu0  ;;  %v28636_v30 = vld [vmem:[%s36658_s0 + $0x710] sm:$0xff]  }
 0x381   :  { %37494 = vst [vmem:[#allocation296_spill] sm:$0xff] %v31625_v12 }
 0x382   :  { %24680 = vmatmul.mubr.msk.bf16.gmra.mrb[188].mxu0 %vm2064_vm2, %v28633_v46 }
 0x383   :  { %24683 = vmatprep.mubr.msk.bf16.mxu0 %vm2064_vm2, %v28634_v44 }
 0x385   :  { %v31629_v18 = vpop.f32.mrb[84].mxu0 }
 0x386   :  { %37495 = vst [vmem:[#allocation297_spill] sm:$0xff] %v31629_v18  ;;  %v31631_v52 = vpop.f32.mrb[85].mxu0 }
 0x387   :  { %37496 = vst [vmem:[#allocation298_spill] sm:$0xff] %v31631_v52  ;;  %v31636_v24 = vpop.f32.mrb[86].mxu0  ;;  %v28637_v52 = vld [vmem:[%s36658_s0 + $0x718] sm:$0xff]  }
 0x388   :  { %37497 = vst [vmem:[#allocation299_spill] sm:$0xff] %v31636_v24  ;;  %v31641_v39 = vpop.f32.mrb[87].mxu0  ;;  %v28638_v24 = vld [vmem:[%s36658_s0 + $0x720] sm:$0xff]  }
 0x389   :  { %37498 = vst [vmem:[#allocation300_spill] sm:$0xff] %v31641_v39 }
 0x38a   :  { %24684 = vmatmul.mubr.msk.bf16.gmra.mrb[192].mxu0 %vm2064_vm2, %v28635_v40 }
 0x38b   :  { %24687 = vmatprep.mubr.msk.bf16.mxu0 %vm2064_vm2, %v28636_v30 }
 0x38d   :  { %v31645_v44 = vpop.f32.mrb[88].mxu0 }
 0x38e   :  { %37499 = vst [vmem:[#allocation301_spill] sm:$0xff] %v31645_v44  ;;  %v31647_v46 = vpop.f32.mrb[89].mxu0 }
 0x38f   :  { %37500 = vst [vmem:[#allocation302_spill] sm:$0xff] %v31647_v46  ;;  %v31652_v18 = vpop.f32.mrb[90].mxu0  ;;  %v28639_v46 = vld [vmem:[%s36658_s0 + $0x728] sm:$0xff]  }
 0x390   :  { %37501 = vst [vmem:[#allocation303_spill] sm:$0xff] %v31652_v18  ;;  %v31657_v12 = vpop.f32.mrb[91].mxu0  ;;  %v28640_v18 = vld [vmem:[%s36658_s0 + $0x730] sm:$0xff]  }
 0x391   :  { %37502 = vst [vmem:[#allocation304_spill] sm:$0xff] %v31657_v12 }
 0x392   :  { %24688 = vmatmul.mubr.msk.bf16.gmra.mrb[196].mxu0 %vm2064_vm2, %v28637_v52 }
 0x393   :  { %24691 = vmatprep.mubr.msk.bf16.mxu0 %vm2064_vm2, %v28638_v24 }
 0x395   :  { %v31661_v30 = vpop.f32.mrb[92].mxu0 }
 0x396   :  { %37503 = vst [vmem:[#allocation305_spill] sm:$0xff] %v31661_v30  ;;  %v31663_v40 = vpop.f32.mrb[93].mxu0 }
 0x397   :  { %37504 = vst [vmem:[#allocation306_spill] sm:$0xff] %v31663_v40  ;;  %v31668_v44 = vpop.f32.mrb[94].mxu0  ;;  %v28641_v40 = vld [vmem:[%s36658_s0 + $0x738] sm:$0xff]  }
 0x398   :  { %37505 = vst [vmem:[#allocation307_spill] sm:$0xff] %v31668_v44  ;;  %v31673_v39 = vpop.f32.mrb[95].mxu0  ;;  %v28642_v44 = vld [vmem:[%s36658_s0 + $0x740] sm:$0xff]  }
 0x399   :  { %37506 = vst [vmem:[#allocation308_spill] sm:$0xff] %v31673_v39 }
 0x39a   :  { %24692 = vmatmul.mubr.msk.bf16.gmra.mrb[200].mxu0 %vm2064_vm2, %v28639_v46 }
 0x39b   :  { %24695 = vmatprep.mubr.msk.bf16.mxu0 %vm2064_vm2, %v28640_v18 }
 0x39d   :  { %v31677_v24 = vpop.f32.mrb[96].mxu0 }
 0x39e   :  { %37507 = vst [vmem:[#allocation309_spill] sm:$0xff] %v31677_v24  ;;  %v31679_v52 = vpop.f32.mrb[97].mxu0 }
 0x39f   :  { %37508 = vst [vmem:[#allocation310_spill] sm:$0xff] %v31679_v52  ;;  %v31684_v30 = vpop.f32.mrb[98].mxu0  ;;  %v28643_v52 = vld [vmem:[%s36658_s0 + $0x748] sm:$0xff]  }
 0x3a0   :  { %37509 = vst [vmem:[#allocation311_spill] sm:$0xff] %v31684_v30  ;;  %v31689_v12 = vpop.f32.mrb[99].mxu0  ;;  %v28644_v30 = vld [vmem:[%s36658_s0 + $0x750] sm:$0xff]  }
 0x3a1   :  { %37510 = vst [vmem:[#allocation312_spill] sm:$0xff] %v31689_v12 }
 0x3a2   :  { %24696 = vmatmul.mubr.msk.bf16.gmra.mrb[204].mxu0 %vm2064_vm2, %v28641_v40 }
 0x3a3   :  { %24699 = vmatprep.mubr.msk.bf16.mxu0 %vm2064_vm2, %v28642_v44 }
 0x3a5   :  { %v31693_v18 = vpop.f32.mrb[100].mxu0 }
 0x3a6   :  { %37511 = vst [vmem:[#allocation313_spill] sm:$0xff] %v31693_v18  ;;  %v31695_v46 = vpop.f32.mrb[101].mxu0 }
 0x3a7   :  { %37512 = vst [vmem:[#allocation314_spill] sm:$0xff] %v31695_v46  ;;  %v31700_v24 = vpop.f32.mrb[102].mxu0  ;;  %v28645_v46 = vld [vmem:[%s36658_s0 + $0x758] sm:$0xff]  }
 0x3a8   :  { %37513 = vst [vmem:[#allocation315_spill] sm:$0xff] %v31700_v24  ;;  %v31705_v39 = vpop.f32.mrb[103].mxu0  ;;  %v28646_v24 = vld [vmem:[%s36658_s0 + $0x760] sm:$0xff]  }
 0x3a9   :  { %37514 = vst [vmem:[#allocation316_spill] sm:$0xff] %v31705_v39 }
 0x3aa   :  { %24700 = vmatmul.mubr.msk.bf16.gmra.mrb[208].mxu0 %vm2064_vm2, %v28643_v52 }
 0x3ab   :  { %24703 = vmatprep.mubr.msk.bf16.mxu0 %vm2064_vm2, %v28644_v30  ;;  %v28678_v30 = vld [vmem:[%s36659_s3 + $0x100] sm:$0xff]  }
 0x3ac   :  { %25131 = vmatprep.subr.bf16.mxu1 %v28678_v30 }
 0x3ad   :  { %v31709_v44 = vpop.f32.mrb[104].mxu0  ;;  %25132 = vmatpush3.bf16.msra.mxu1 %v28678_v30  ;;  %v28682_v30 = vld [vmem:[%s36659_s3 + $0x110] sm:$0xff]  }
 0x3ae   :  { %37515 = vst [vmem:[#allocation317_spill] sm:$0xff] %v31709_v44  ;;  %v31711_v40 = vpop.f32.mrb[105].mxu0 }
 0x3af   :  { %37516 = vst [vmem:[#allocation318_spill] sm:$0xff] %v31711_v40  ;;  %v31716_v18 = vpop.f32.mrb[106].mxu0 }
 0x3b0   :  { %37517 = vst [vmem:[#allocation319_spill] sm:$0xff] %v31716_v18  ;;  %v31721_v12 = vpop.f32.mrb[107].mxu0  ;;  %v28647_v18 = vld [vmem:[%s36658_s0 + $0x768] sm:$0xff]  }
 0x3b1   :  { %37518 = vst [vmem:[#allocation320_spill] sm:$0xff] %v31721_v12 }
 0x3b2   :  { %24704 = vmatmul.mubr.msk.bf16.gmra.mrb[212].mxu0 %vm2064_vm2, %v28645_v46  ;;  %v28679_v46 = vld [vmem:[%s36659_s3 + $0x108] sm:$0xff]  }
 0x3b3   :  { %24707 = vmatprep.mubr.msk.bf16.mxu0 %vm2064_vm2, %v28646_v24  ;;  %v28648_v24 = vld [vmem:[%s36658_s0 + $0x770] sm:$0xff]   ;;  %25133 = vmatprep.subr.bf16.mxu1 %v28679_v46 }
 0x3b4   :  { %25134 = vmatpush3.bf16.msra.mxu1 %v28679_v46 }
 0x3b5   :  { %v31728_v52 = vpop.f32.mrb[108].mxu0  ;;  %25135 = vmatprep.subr.bf16.mxu1 %v28682_v30 }
 0x3b6   :  { %37519 = vst [vmem:[#allocation321_spill] sm:$0xff] %v31728_v52  ;;  %v31733_v40 = vpop.f32.mrb[109].mxu0 }
 0x3b7   :  { %37520 = vst [vmem:[#allocation322_spill] sm:$0xff] %v31733_v40  ;;  %v31738_v12 = vpop.f32.mrb[110].mxu0 }
 0x3b8   :  { %37521 = vst [vmem:[#allocation323_spill] sm:$0xff] %v31738_v12  ;;  %v31743_v44 = vpop.f32.mrb[111].mxu0  ;;  %v28649_v12 = vld [vmem:[%s36658_s0 + $0x778] sm:$0xff]   ;;  %25136 = vmatpush3.bf16.msra.mxu1 %v28682_v30  ;;  %v28686_v30 = vld [vmem:[%s36659_s3 + $0x120] sm:$0xff]  }
 0x3b9   :  { %37522 = vst [vmem:[#allocation324_spill] sm:$0xff] %v31743_v44 }
 0x3ba   :  { %24708 = vmatmul.mubr.msk.bf16.gmra.mrb[216].mxu0 %vm2064_vm2, %v28647_v18  ;;  %v28683_v18 = vld [vmem:[%s36659_s3 + $0x118] sm:$0xff]  }
 0x3bb   :  { %24711 = vmatprep.mubr.msk.bf16.mxu0 %vm2064_vm2, %v28648_v24  ;;  %v28650_v24 = vld [vmem:[%s36658_s0 + $0x780] sm:$0xff]   ;;  %25137 = vmatprep.subr.bf16.mxu1 %v28683_v18 }
 0x3bc   :  { %25138 = vmatpush3.bf16.msra.mxu1 %v28683_v18 }
 0x3bd   :  { %v31750_v40 = vpop.f32.mrb[112].mxu0  ;;  %25139 = vmatprep.subr.bf16.mxu1 %v28686_v30 }
 0x3be   :  { %37523 = vst [vmem:[#allocation325_spill] sm:$0xff] %v31750_v40  ;;  %v31755_v52 = vpop.f32.mrb[113].mxu0 }
 0x3bf   :  { %37524 = vst [vmem:[#allocation326_spill] sm:$0xff] %v31755_v52  ;;  %v31760_v46 = vpop.f32.mrb[114].mxu0 }
 0x3c0   :  { %37525 = vst [vmem:[#allocation327_spill] sm:$0xff] %v31760_v46  ;;  %v31765_v44 = vpop.f32.mrb[115].mxu0  ;;  %v28651_v46 = vld [vmem:[%s36658_s0 + $0x788] sm:$0xff]   ;;  %25140 = vmatpush3.bf16.msra.mxu1 %v28686_v30  ;;  %v28690_v30 = vld [vmem:[%s36659_s3 + $0x130] sm:$0xff]  }
 0x3c1   :  { %37526 = vst [vmem:[#allocation328_spill] sm:$0xff] %v31765_v44 }
 0x3c2   :  { %24712 = vmatmul.mubr.msk.bf16.gmra.mrb[220].mxu0 %vm2064_vm2, %v28649_v12  ;;  %v28687_v12 = vld [vmem:[%s36659_s3 + $0x128] sm:$0xff]  }
 0x3c3   :  { %24715 = vmatprep.mubr.msk.bf16.mxu0 %vm2064_vm2, %v28650_v24  ;;  %v28652_v24 = vld [vmem:[%s36658_s0 + $0x790] sm:$0xff]   ;;  %25141 = vmatprep.subr.bf16.mxu1 %v28687_v12 }
 0x3c4   :  { %25142 = vmatpush3.bf16.msra.mxu1 %v28687_v12 }
 0x3c5   :  { %v31772_v52 = vpop.f32.mrb[116].mxu0  ;;  %25143 = vmatprep.subr.bf16.mxu1 %v28690_v30 }
 0x3c6   :  { %37527 = vst [vmem:[#allocation329_spill] sm:$0xff] %v31772_v52  ;;  %v31777_v40 = vpop.f32.mrb[117].mxu0 }
 0x3c7   :  { %37528 = vst [vmem:[#allocation330_spill] sm:$0xff] %v31777_v40  ;;  %v31782_v18 = vpop.f32.mrb[118].mxu0 }
 0x3c8   :  { %37529 = vst [vmem:[#allocation331_spill] sm:$0xff] %v31782_v18  ;;  %v31787_v44 = vpop.f32.mrb[119].mxu0  ;;  %v28653_v18 = vld [vmem:[%s36658_s0 + $0x798] sm:$0xff]   ;;  %25144 = vmatpush3.bf16.msra.mxu1 %v28690_v30 }
 0x3c9   :  { %37530 = vst [vmem:[#allocation332_spill] sm:$0xff] %v31787_v44 }
 0x3ca   :  { %24716 = vmatmul.mubr.msk.bf16.gmra.mrb[224].mxu0 %vm2064_vm2, %v28651_v46  ;;  %v28691_v46 = vld [vmem:[%s36659_s3 + $0x138] sm:$0xff]  }
 0x3cb   :  { %24719 = vmatprep.mubr.msk.bf16.mxu0 %vm2064_vm2, %v28652_v24  ;;  %v28654_v24 = vld [vmem:[%s36658_s0 + $0x7a0] sm:$0xff]   ;;  %25145 = vmatprep.subr.bf16.mxu1 %v28691_v46 }
 0x3cc   :  { %25146 = vmatpush3.bf16.msra.mxu1 %v28691_v46 }
 0x3cd   :  { %v31794_v40 = vpop.f32.mrb[120].mxu0 }
 0x3ce   :  { %37531 = vst [vmem:[#allocation333_spill] sm:$0xff] %v31794_v40  ;;  %v31799_v52 = vpop.f32.mrb[121].mxu0 }
 0x3cf   :  { %37532 = vst [vmem:[#allocation334_spill] sm:$0xff] %v31799_v52  ;;  %v31804_v12 = vpop.f32.mrb[122].mxu0 }
 0x3d0   :  { %37533 = vst [vmem:[#allocation335_spill] sm:$0xff] %v31804_v12  ;;  %v31809_v44 = vpop.f32.mrb[123].mxu0  ;;  %v28655_v12 = vld [vmem:[%s36658_s0 + $0x7a8] sm:$0xff]  }
 0x3d1   :  { %37534 = vst [vmem:[#allocation336_spill] sm:$0xff] %v31809_v44  ;;  %v28656_v44 = vld [vmem:[%s36658_s0 + $0x7b0] sm:$0xff]  }
 0x3d2   :  { %24720 = vmatmul.mubr.msk.bf16.gmra.mrb[228].mxu0 %vm2064_vm2, %v28653_v18 }
 0x3d3   :  { %24723 = vmatprep.mubr.msk.bf16.mxu0 %vm2064_vm2, %v28654_v24  ;;  %v28657_v24 = vld [vmem:[%s36658_s0 + $0x7b8] sm:$0xff]  }
 0x3d5   :  { %v31813_v30 = vpop.f32.mrb[124].mxu0 }
 0x3d6   :  { %37535 = vst [vmem:[#allocation337_spill] sm:$0xff] %v31813_v30  ;;  %v31815_v52 = vpop.f32.mrb[125].mxu0 }
 0x3d7   :  { %37536 = vst [vmem:[#allocation338_spill] sm:$0xff] %v31815_v52  ;;  %v31820_v40 = vpop.f32.mrb[126].mxu0 }
 0x3d8   :  { %37537 = vst [vmem:[#allocation339_spill] sm:$0xff] %v31820_v40  ;;  %v31825_v39 = vpop.f32.mrb[127].mxu0  ;;  %v28658_v40 = vld [vmem:[%s36658_s0 + $0x7c0] sm:$0xff]  }
 0x3d9   :  { %37538 = vst [vmem:[#allocation340_spill] sm:$0xff] %v31825_v39 }
 0x3da   :  { %24724 = vmatmul.mubr.msk.bf16.gmra.mrb[232].mxu0 %vm2064_vm2, %v28655_v12 }
 0x3db   :  { %24727 = vmatprep.mubr.msk.bf16.mxu0 %vm2064_vm2, %v28656_v44 }
 0x3dd   :  { %v31829_v18 = vpop.f32.mrb[128].mxu0 }
 0x3de   :  { %37539 = vst [vmem:[#allocation341_spill] sm:$0xff] %v31829_v18  ;;  %v31831_v46 = vpop.f32.mrb[129].mxu0 }
 0x3df   :  { %37540 = vst [vmem:[#allocation342_spill] sm:$0xff] %v31831_v46  ;;  %v31836_v52 = vpop.f32.mrb[130].mxu0  ;;  %v28659_v46 = vld [vmem:[%s36658_s0 + $0x7c8] sm:$0xff]  }
 0x3e0   :  { %37541 = vst [vmem:[#allocation343_spill] sm:$0xff] %v31836_v52  ;;  %v31841_v30 = vpop.f32.mrb[131].mxu0  ;;  %v28660_v52 = vld [vmem:[%s36658_s0 + $0x7d0] sm:$0xff]  }
 0x3e1   :  { %37542 = vst [vmem:[#allocation344_spill] sm:$0xff] %v31841_v30 }
 0x3e2   :  { %24728 = vmatmul.mubr.msk.bf16.gmra.mrb[236].mxu0 %vm2064_vm2, %v28657_v24  ;;  %v28701_v24 = vld [vmem:[%s36659_s3 + $0x48] sm:$0xff]  }
 0x3e3   :  { %24731 = vmatprep.mubr.msk.bf16.mxu0 %vm2064_vm2, %v28658_v40  ;;  %v28700_v40 = vld [vmem:[%s36659_s3 + $0x40] sm:$0xff]  }
 0x3e4   :  { %24811 = vmatprep.subr.bf16.mxu0 %v28700_v40 }
 0x3e5   :  { %v31845_v44 = vpop.f32.mrb[132].mxu0  ;;  %24812 = vmatpush3.bf16.msra.mxu0 %v28700_v40  ;;  %v28704_v40 = vld [vmem:[%s36659_s3 + $0x50] sm:$0xff]  }
 0x3e6   :  { %37543 = vst [vmem:[#allocation345_spill] sm:$0xff] %v31845_v44  ;;  %v31847_v12 = vpop.f32.mrb[133].mxu0  ;;  %24813 = vmatprep.subr.bf16.mxu0 %v28701_v24 }
 0x3e7   :  { %37544 = vst [vmem:[#allocation346_spill] sm:$0xff] %v31847_v12  ;;  %v31852_v18 = vpop.f32.mrb[134].mxu0 }
 0x3e8   :  { %37545 = vst [vmem:[#allocation347_spill] sm:$0xff] %v31852_v18  ;;  %v31857_v39 = vpop.f32.mrb[135].mxu0 }
 0x3e9   :  { %37546 = vst [vmem:[#allocation348_spill] sm:$0xff] %v31857_v39  ;;  %v28661_v39 = vld [vmem:[%s36658_s0 + $0x7d8] sm:$0xff]   ;;  %24814 = vmatpush3.bf16.msra.mxu0 %v28701_v24  ;;  %v28663_v24 = vld [vmem:[%s36658_s0 + $0x7e8] sm:$0xff]  }
 0x3ea   :  { %24732 = vmatmul.mubr.msk.bf16.gmra.mrb[240].mxu0 %vm2064_vm2, %v28659_v46  ;;  %24815 = vmatprep.subr.bf16.mxu0 %v28704_v40 }
 0x3eb   :  { %24735 = vmatprep.mubr.msk.bf16.mxu0 %vm2064_vm2, %v28660_v52  ;;  %v28662_v52 = vld [vmem:[%s36658_s0 + $0x7e0] sm:$0xff]  }
 0x3ed   :  { %v31867_v18 = vpop.f32.mrb[136].mxu0  ;;  %24816 = vmatpush3.bf16.msra.mxu0 %v28704_v40  ;;  %v28708_v40 = vld [vmem:[%s36659_s3 + $0x60] sm:$0xff]  }
 0x3ee   :  { %37547 = vst [vmem:[#allocation349_spill] sm:$0xff] %v31867_v18  ;;  %v31869_v12 = vpop.f32.mrb[137].mxu0 }
 0x3ef   :  { %37548 = vst [vmem:[#allocation350_spill] sm:$0xff] %v31869_v12  ;;  %v31874_v44 = vpop.f32.mrb[138].mxu0 }
 0x3f0   :  { %37549 = vst [vmem:[#allocation351_spill] sm:$0xff] %v31874_v44  ;;  %v31879_v46 = vpop.f32.mrb[139].mxu0  ;;  %v28705_v44 = vld [vmem:[%s36659_s3 + $0x58] sm:$0xff]  }
 0x3f1   :  { %37550 = vst [vmem:[#allocation352_spill] sm:$0xff] %v31879_v46  ;;  %24817 = vmatprep.subr.bf16.mxu0 %v28705_v44 }
 0x3f2   :  { %24736 = vmatmul.mubr.msk.bf16.gmra.mrb[244].mxu0 %vm2064_vm2, %v28661_v39  ;;  %v28664_v39 = vld [vmem:[%s36658_s0 + $0x7f0] sm:$0xff]  }
 0x3f3   :  { %24739 = vmatprep.mubr.msk.bf16.mxu0 %vm2064_vm2, %v28662_v52  ;;  %24818 = vmatpush3.bf16.msra.mxu0 %v28705_v44  ;;  %v28665_v44 = vld [vmem:[%s36658_s0 + $0x7f8] sm:$0xff]  }
 0x3f4   :  { %24819 = vmatprep.subr.bf16.mxu0 %v28708_v40 }
 0x3f5   :  { %v31889_v12 = vpop.f32.mrb[140].mxu0 }
 0x3f6   :  { %37551 = vst [vmem:[#allocation353_spill] sm:$0xff] %v31889_v12  ;;  %v31891_v18 = vpop.f32.mrb[141].mxu0 }
 0x3f7   :  { %37552 = vst [vmem:[#allocation354_spill] sm:$0xff] %v31891_v18  ;;  %v31896_v46 = vpop.f32.mrb[142].mxu0  ;;  %24820 = vmatpush3.bf16.msra.mxu0 %v28708_v40  ;;  %v28712_v40 = vld [vmem:[%s36659_s3 + $0x70] sm:$0xff]  }
 0x3f8   :  { %37553 = vst [vmem:[#allocation355_spill] sm:$0xff] %v31896_v46  ;;  %v31901_v52 = vpop.f32.mrb[143].mxu0  ;;  %v28709_v46 = vld [vmem:[%s36659_s3 + $0x68] sm:$0xff]  }
 0x3f9   :  { %37554 = vst [vmem:[#allocation356_spill] sm:$0xff] %v31901_v52  ;;  %24821 = vmatprep.subr.bf16.mxu0 %v28709_v46 }
 0x3fa   :  { %24740 = vmatmul.mubr.msk.bf16.gmra.mrb[248].mxu0 %vm2064_vm2, %v28663_v24  ;;  %v28666_v24 = vld [vmem:[%s36658_s0 + $0x800] sm:$0xff]  }
 0x3fb   :  { %24743 = vmatprep.mubr.msk.bf16.mxu0 %vm2064_vm2, %v28664_v39  ;;  %24822 = vmatpush3.bf16.msra.mxu0 %v28709_v46  ;;  %v28667_v46 = vld [vmem:[%s36658_s0 + $0x808] sm:$0xff]  }
 0x3fc   :  { %24823 = vmatprep.subr.bf16.mxu0 %v28712_v40 }
 0x3fd   :  { %v31911_v18 = vpop.f32.mrb[144].mxu0 }
 0x3fe   :  { %37555 = vst [vmem:[#allocation357_spill] sm:$0xff] %v31911_v18  ;;  %v31913_v12 = vpop.f32.mrb[145].mxu0 }
 0x3ff   :  { %37556 = vst [vmem:[#allocation358_spill] sm:$0xff] %v31913_v12  ;;  %v31918_v52 = vpop.f32.mrb[146].mxu0  ;;  %24824 = vmatpush3.bf16.msra.mxu0 %v28712_v40 }
 0x400   :  { %37557 = vst [vmem:[#allocation359_spill] sm:$0xff] %v31918_v52  ;;  %v31923_v39 = vpop.f32.mrb[147].mxu0  ;;  %v28713_v52 = vld [vmem:[%s36659_s3 + $0x78] sm:$0xff]  }
 0x401   :  { %37558 = vst [vmem:[#allocation360_spill] sm:$0xff] %v31923_v39  ;;  %24825 = vmatprep.subr.bf16.mxu0 %v28713_v52 }
 0x402   :  { %24744 = vmatmul.mubr.msk.bf16.gmra.mrb[252].mxu0 %vm2064_vm2, %v28665_v44  ;;  %v28668_v44 = vld [vmem:[%s36658_s0 + $0x810] sm:$0xff]  }
 0x403   :  { %24747 = vmatprep.mubr.msk.bf16.mxu0 %vm2064_vm2, %v28666_v24  ;;  %24826 = vmatpush3.bf16.msra.mxu0 %v28713_v52  ;;  %v28670_v52 = vld [vmem:[%s36658_s0 + $0x820] sm:$0xff]  }
 0x405   :  { %v31933_v12 = vpop.f32.mrb[148].mxu0 }
 0x406   :  { %37559 = vst [vmem:[#allocation361_spill] sm:$0xff] %v31933_v12  ;;  %v31935_v18 = vpop.f32.mrb[149].mxu0  ;;  %v28669_v12 = vld [vmem:[%s36658_s0 + $0x818] sm:$0xff]  }
 0x407   :  { %37560 = vst [vmem:[#allocation362_spill] sm:$0xff] %v31935_v18  ;;  %v31940_v39 = vpop.f32.mrb[150].mxu0 }
 0x408   :  { %37561 = vst [vmem:[#allocation363_spill] sm:$0xff] %v31940_v39  ;;  %v31945_v24 = vpop.f32.mrb[151].mxu0 }
 0x409   :  { %37562 = vst [vmem:[#allocation364_spill] sm:$0xff] %v31945_v24 }
 0x40a   :  { %24748 = vmatmul.mubr.msk.bf16.gmra.mrb[0].mxu0 %vm2064_vm2, %v28667_v46  ;;  %v31966_v46 = vld [vmem:[%s36659_s3 + $0x140] sm:$0xff]  }
 0x40b   :  { %24751 = vmatprep.mubr.msk.bf16.mxu0 %vm2064_vm2, %v28668_v44  ;;  %25211 = vmatprep.subr.bf16.mxu1 %v31966_v46 }
 0x40d   :  { %v31949_v40 = vpop.f32.mrb[152].mxu0 }
 0x40e   :  { %37563 = vst [vmem:[#allocation365_spill] sm:$0xff] %v31949_v40  ;;  %v31951_v18 = vpop.f32.mrb[153].mxu0  ;;  %v28672_v40 = vld [vmem:[%s36658_s0 + $0x830] sm:$0xff]  }
 0x40f   :  { %37564 = vst [vmem:[#allocation366_spill] sm:$0xff] %v31951_v18  ;;  %v31956_v39 = vpop.f32.mrb[154].mxu0  ;;  %v28671_v18 = vld [vmem:[%s36658_s0 + $0x828] sm:$0xff]  }
 0x410   :  { %37565 = vst [vmem:[#allocation367_spill] sm:$0xff] %v31956_v39  ;;  %v31961_v30 = vpop.f32.mrb[155].mxu0 }
 0x411   :  { %37566 = vst [vmem:[#allocation368_spill] sm:$0xff] %v31961_v30 }
 0x412   :  { %24752 = vmatmul.mubr.msk.bf16.gmra.mrb[4].mxu0 %vm2064_vm2, %v28669_v12 }
 0x413   :  { %24755 = vmatprep.mubr.msk.bf16.mxu0 %vm2064_vm2, %v28670_v52 }
 0x415   :  { %v31971_v44 = vpop.f32.mrb[156].mxu0 }
 0x416   :  { %37567 = vst [vmem:[#allocation369_spill] sm:$0xff] %v31971_v44  ;;  %v31973_v39 = vpop.f32.mrb[157].mxu0 }
 0x417   :  { %37568 = vst [vmem:[#allocation370_spill] sm:$0xff] %v31973_v39  ;;  %v31978_v30 = vpop.f32.mrb[158].mxu0  ;;  %v28673_v39 = vld [vmem:[%s36658_s0 + $0x838] sm:$0xff]  }
 0x418   :  { %37569 = vst [vmem:[#allocation371_spill] sm:$0xff] %v31978_v30  ;;  %v31983_v24 = vpop.f32.mrb[159].mxu0  ;;  %v28674_v30 = vld [vmem:[%s36658_s0 + $0x840] sm:$0xff]  }
 0x419   :  { %37570 = vst [vmem:[#allocation372_spill] sm:$0xff] %v31983_v24 }
 0x41a   :  { %24756 = vmatmul.mubr.msk.bf16.gmra.mrb[8].mxu0 %vm2064_vm2, %v28671_v18 }
 0x41b   :  { %24759 = vmatprep.mubr.msk.bf16.mxu0 %vm2064_vm2, %v28672_v40 }
 0x41d   :  { %v31987_v12 = vpop.f32.mrb[160].mxu0 }
 0x41e   :  { %37571 = vst [vmem:[#allocation373_spill] sm:$0xff] %v31987_v12  ;;  %v31989_v52 = vpop.f32.mrb[161].mxu0 }
 0x41f   :  { %37572 = vst [vmem:[#allocation374_spill] sm:$0xff] %v31989_v52  ;;  %v31994_v44 = vpop.f32.mrb[162].mxu0  ;;  %v28675_v52 = vld [vmem:[%s36658_s0 + $0x848] sm:$0xff]  }
 0x420   :  { %37573 = vst [vmem:[#allocation375_spill] sm:$0xff] %v31994_v44  ;;  %v31999_v38 = vpop.f32.mrb[163].mxu0  ;;  %v28676_v44 = vld [vmem:[%s36658_s0 + $0x850] sm:$0xff]  }
 0x421   :  { %37574 = vst [vmem:[#allocation376_spill] sm:$0xff] %v31999_v38 }
 0x422   :  { %24760 = vmatmul.mubr.msk.bf16.gmra.mrb[12].mxu0 %vm2064_vm2, %v28673_v39 }
 0x423   :  { %24763 = vmatprep.mubr.msk.bf16.mxu0 %vm2064_vm2, %v28674_v30 }
 0x425   :  { %v32003_v18 = vpop.f32.mrb[164].mxu0 }
 0x426   :  { %37575 = vst [vmem:[#allocation377_spill] sm:$0xff] %v32003_v18  ;;  %v32005_v40 = vpop.f32.mrb[165].mxu0 }
 0x427   :  { %37576 = vst [vmem:[#allocation378_spill] sm:$0xff] %v32005_v40  ;;  %v32010_v12 = vpop.f32.mrb[166].mxu0  ;;  %v28677_v40 = vld [vmem:[%s36658_s0 + $0x858] sm:$0xff]  }
 0x428   :  { %37577 = vst [vmem:[#allocation379_spill] sm:$0xff] %v32010_v12  ;;  %v32015_v24 = vpop.f32.mrb[167].mxu0  ;;  %v28680_v12 = vld [vmem:[%s36658_s0 + $0x860] sm:$0xff]  }
 0x429   :  { %37578 = vst [vmem:[#allocation380_spill] sm:$0xff] %v32015_v24 }
 0x42a   :  { %24764 = vmatmul.mubr.msk.bf16.gmra.mrb[16].mxu0 %vm2064_vm2, %v28675_v52 }
 0x42b   :  { %24767 = vmatprep.mubr.msk.bf16.mxu0 %vm2064_vm2, %v28676_v44 }
 0x42d   :  { %v32019_v30 = vpop.f32.mrb[168].mxu0 }
 0x42e   :  { %37579 = vst [vmem:[#allocation381_spill] sm:$0xff] %v32019_v30  ;;  %v32021_v39 = vpop.f32.mrb[169].mxu0 }
 0x42f   :  { %37580 = vst [vmem:[#allocation382_spill] sm:$0xff] %v32021_v39  ;;  %v32026_v18 = vpop.f32.mrb[170].mxu0  ;;  %v28681_v39 = vld [vmem:[%s36658_s0 + $0x868] sm:$0xff]  }
 0x430   :  { %37581 = vst [vmem:[#allocation383_spill] sm:$0xff] %v32026_v18  ;;  %v32031_v38 = vpop.f32.mrb[171].mxu0  ;;  %v28684_v18 = vld [vmem:[%s36658_s0 + $0x870] sm:$0xff]  }
 0x431   :  { %37582 = vst [vmem:[#allocation384_spill] sm:$0xff] %v32031_v38 }
 0x432   :  { %24768 = vmatmul.mubr.msk.bf16.gmra.mrb[20].mxu0 %vm2064_vm2, %v28677_v40  ;;  %v32054_v40 = vld [vmem:[%s36660_s2] ss:$0 sm:$0xff] }
 0x433   :  { %24771 = vmatprep.mubr.msk.bf16.mxu0 %vm2064_vm2, %v28680_v12 }
 0x435   :  { %v32035_v44 = vpop.f32.mrb[172].mxu0 }
 0x436   :  { %37583 = vst [vmem:[#allocation385_spill] sm:$0xff] %v32035_v44  ;;  %v32037_v52 = vpop.f32.mrb[173].mxu0 }
 0x437   :  { %37584 = vst [vmem:[#allocation386_spill] sm:$0xff] %v32037_v52  ;;  %v32042_v30 = vpop.f32.mrb[174].mxu0 }
 0x438   :  { %37585 = vst [vmem:[#allocation387_spill] sm:$0xff] %v32042_v30  ;;  %v32047_v24 = vpop.f32.mrb[175].mxu0  ;;  %v28685_v30 = vld [vmem:[%s36658_s0 + $0x878] sm:$0xff]  }
 0x439   :  { %37586 = vst [vmem:[#allocation388_spill] sm:$0xff] %v32047_v24 }
 0x43a   :  { %24772 = vmatmul.mubr.msk.bf16.gmra.mrb[24].mxu0 %vm2064_vm2, %v28681_v39  ;;  %v37587_v39 = vld [vmem:[#allocation129_spill] sm:$0xff] }
 0x43b   :  { %24775 = vmatprep.mubr.msk.bf16.mxu0 %vm2064_vm2, %v28684_v18  ;;  %v28688_v18 = vld [vmem:[%s36658_s0 + $0x880] sm:$0xff]   ;;  %v37588_v45 = vmax.f32 %v29981_v61, %v37587_v39 }
 0x43d   :  { %v24669_v12 = vpop.f32.mrb[176].mxu0 }
 0x43e   :  { %v5419_v52 = vmax.f32 %v31421_v13, %v24669_v12  ;;  %v4698_v44 = vpop.f32.mrb[177].mxu0  ;;  %v37589_v13 = vld [vmem:[#allocation130_spill] sm:$0xff] }
 0x43f   :  { %v5417_v38 = vmax.f32 %v31423_v49, %v4698_v44  ;;  %v24670_v24 = vpop.f32.mrb[178].mxu0  ;;  %v37590_v12 = vmax.f32 %v29983_v62, %v37589_v13  ;;  %v37591_v44 = vld [vmem:[#allocation2_spill] sm:$0xff] }
 0x440   :  { %v5563_v34 = vmax.f32 %v37588_v45, %v5419_v52  ;;  %v5420_v50 = vmax.f32 %v31428_v48, %v24670_v24  ;;  %v4701_v33 = vpop.f32.mrb[179].mxu0  ;;  %v37593_v32 = vmax.f32 %v37591_v44, %v37592_v6  ;;  %v37594_v45 = vmax.f32 %v29993_v2, %v30575_v55 }
 0x441   :  { %v5561_v58 = vmax.f32 %v37590_v12, %v5417_v38  ;;  %v5418_v36 = vmax.f32 %v31433_v60, %v4701_v33  ;;  %v28689_v33 = vld [vmem:[%s36658_s0 + $0x888] sm:$0xff]  }
 0x442   :  { %v5714_v49 = vadd.f32 %v32054_v40, %v5563_v34  ;;  %v5564_v51 = vmax.f32 %v37593_v32, %v5420_v50  ;;  %24776 = vmatmul.mubr.msk.bf16.gmra.mrb[28].mxu0 %vm2064_vm2, %v28685_v30  ;;  %v28692_v50 = vld [vmem:[%s36658_s0 + $0x890] sm:$0xff]  }
 0x443   :  { %v5712_v61 = vadd.f32 %v32054_v40, %v5561_v58  ;;  %v5562_v48 = vmax.f32 %v37594_v45, %v5418_v36  ;;  %24779 = vmatprep.mubr.msk.bf16.mxu0 %vm2064_vm2, %v28688_v18  ;;  %v37595_v30 = vld [vmem:[#allocation132_spill] sm:$0xff]  ;;  %v37599_v45 = vld [vmem:[#allocation3_spill] sm:$0xff] }
 0x444   :  { %v5858_v62 = vmax.f32 %v5714_v49, 0.0  ;;  %v5715_v38 = vadd.f32 %v32054_v40, %v5564_v51  ;;  %v37596_v52 = vmax.f32 %v29997_v3, %v37595_v30  ;;  %v37597_v49 = vld [vmem:[#allocation133_spill] sm:$0xff]  ;;  %v37604_v30 = vld [vmem:[#allocation135_spill] sm:$0xff] }
 0x445   :  { %v5856_v34 = vmax.f32 %v5712_v61, 0.0  ;;  %v5713_v6 = vadd.f32 %v32054_v40, %v5562_v48  ;;  %v24673_v32 = vpop.f32.mrb[180].mxu0  ;;  %v37598_v44 = vmax.f32 %v29999_v4, %v37597_v49  ;;  %v37600_v48 = vld [vmem:[#allocation134_spill] sm:$0xff] }
 0x446   :  { %v5859_v60 = vmax.f32 %v5715_v38, 0.0  ;;  %v5423_v2 = vmax.f32 %v31437_v63, %v24673_v32  ;;  %v4714_v55 = vpop.f32.mrb[181].mxu0 }
 0x447   :  { %v5857_v36 = vmax.f32 %v5713_v6, 0.0  ;;  %v5421_v58 = vmax.f32 %v31439_v29, %v4714_v55  ;;  %v24674_v51 = vpop.f32.mrb[182].mxu0 }
 0x448   :  { %v32092_v24 = vpack.c.bf16 %v5859_v60, %v5858_v62  ;;  %v5567_v18 = vmax.f32 %v37596_v52, %v5423_v2  ;;  %v5424_v39 = vmax.f32 %v31444_v54, %v24674_v51  ;;  %v4717_v13 = vpop.f32.mrb[183].mxu0  ;;  %v37601_v62 = vmax.f32 %v37599_v45, %v37600_v48  ;;  %v37609_v45 = vld [vmem:[#allocation137_spill] sm:$0xff] }
 0x449   :  { %v32098_v12 = vpack.c.bf16 %v5857_v36, %v5856_v34  ;;  %v5565_v63 = vmax.f32 %v37598_v44, %v5421_v58  ;;  %v5422_v61 = vmax.f32 %v31449_v59, %v4717_v13  ;;  %v37602_v54 = vmax.f32 %v30009_v8, %v30599_v53  ;;  %v28693_v59 = vld [vmem:[%s36658_s0 + $0x898] sm:$0xff]   ;;  %v37606_v44 = vld [vmem:[#allocation136_spill] sm:$0xff] }
 0x44a   :  { %v5718_v29 = vadd.f32 %v32054_v40, %v5567_v18  ;;  %v5568_v38 = vmax.f32 %v37601_v62, %v5424_v39  ;;  %24780 = vmatmul.mubr.msk.bf16.gmra.mrb[32].mxu0 %vm2064_vm2, %v28689_v33  ;;  %v28694_v33 = vld [vmem:[%s36658_s0 + $0x8a0] sm:$0xff]   ;;  %v37605_v52 = vmax.f32 %v30013_v9, %v37604_v30  ;;  %v28715_v9 = vld [vmem:[%s36659_s3 + $0x148] sm:$0xff]  }
 0x44b   :  { %v5716_v3 = vadd.f32 %v32054_v40, %v5565_v63  ;;  %v5566_v34 = vmax.f32 %v37602_v54, %v5422_v61  ;;  %24783 = vmatprep.mubr.msk.bf16.mxu0 %vm2064_vm2, %v28692_v50  ;;  %v37607_v63 = vmax.f32 %v30015_v10, %v37606_v44  ;;  %v37611_v10 = vmax.f32 %v30025_v14, %v30623_v47  ;;  %v28695_v54 = vld [vmem:[%s36658_s0 + $0x8a8] sm:$0xff]   ;;  %v37619_v44 = vld [vmem:[#allocation140_spill] sm:$0xff] }
 0x44c   :  { %v5862_v4 = vmax.f32 %v5718_v29, 0.0  ;;  %v5719_v6 = vadd.f32 %v32054_v40, %v5568_v38  ;;  %v37608_v29 = vld [vmem:[#allocation4_spill] sm:$0xff] }
 0x44d   :  { %v5860_v32 = vmax.f32 %v5716_v3, 0.0  ;;  %v5717_v60 = vadd.f32 %v32054_v40, %v5566_v34  ;;  %v24677_v2 = vpop.f32.mrb[184].mxu0  ;;  %v37610_v48 = vmax.f32 %v37608_v29, %v37609_v45  ;;  %v28716_v34 = vld [vmem:[%s36659_s3 + $0x150] sm:$0xff]  }
 0x44e   :  { %v5863_v55 = vmax.f32 %v5719_v6, 0.0  ;;  %v5427_v8 = vmax.f32 %v31453_v31, %v24677_v2  ;;  %v4730_v53 = vpop.f32.mrb[185].mxu0  ;;  %v28696_v6 = vld [vmem:[%s36658_s0 + $0x8b0] sm:$0xff]  }
 0x44f   :  { %v5861_v50 = vmax.f32 %v5717_v60, 0.0  ;;  %v5425_v36 = vmax.f32 %v31455_v11, %v4730_v53  ;;  %v24678_v58 = vpop.f32.mrb[186].mxu0 }
 0x450   :  { %v32124_v51 = vpack.c.bf16 %v5863_v55, %v5862_v4  ;;  %v5571_v18 = vmax.f32 %v37605_v52, %v5427_v8  ;;  %v5428_v39 = vmax.f32 %v31460_v37, %v24678_v58  ;;  %v4733_v13 = vpop.f32.mrb[187].mxu0  ;;  %v37612_v8 = vld [vmem:[#allocation138_spill] sm:$0xff] }
 0x451   :  { %v32130_v49 = vpack.c.bf16 %v5861_v50, %v5860_v32  ;;  %v5569_v31 = vmax.f32 %v37607_v63, %v5425_v36  ;;  %v5426_v61 = vmax.f32 %v31465_v23, %v4733_v13  ;;  %v37613_v53 = vmax.f32 %v30029_v15, %v37612_v8  ;;  %v37618_v13 = vld [vmem:[#allocation5_spill] sm:$0xff] }
 0x452   :  { %37603 = vst [vmem:[#allocation129_spill] sm:$0xff] %v32124_v51  ;;  %v5722_v11 = vadd.f32 %v32054_v40, %v5571_v18  ;;  %v5572_v62 = vmax.f32 %v37610_v48, %v5428_v39  ;;  %24784 = vmatmul.mubr.msk.bf16.gmra.mrb[36].mxu0 %vm2064_vm2, %v28693_v59  ;;  %v37620_v15 = vmax.f32 %v37618_v13, %v37619_v44 }
 0x453   :  { %v5720_v37 = vadd.f32 %v32054_v40, %v5569_v31  ;;  %v5570_v38 = vmax.f32 %v37611_v10, %v5426_v61  ;;  %25147 = vmatprep.mubr.bf16.mxu1 %v32130_v49  ;;  %24787 = vmatprep.mubr.msk.bf16.mxu0 %vm2064_vm2, %v28694_v33 }
 0x454   :  { %v5866_v23 = vmax.f32 %v5722_v11, 0.0  ;;  %v5723_v3 = vadd.f32 %v32054_v40, %v5572_v62  ;;  %25148 = vmatmul.mubr.bf16.vlgmr.msra.gmra.mrb[0].mxu1 %v32124_v51 }
 0x455   :  { %v5864_v4 = vmax.f32 %v5720_v37, 0.0  ;;  %v5721_v14 = vadd.f32 %v32054_v40, %v5570_v38  ;;  %v24681_v47 = vpop.f32.mrb[188].mxu0  ;;  %25212 = vmatpush3.bf16.msra.mxu1 %v31966_v46  ;;  %v37616_v46 = vld [vmem:[#allocation139_spill] sm:$0xff] }
 0x456   :  { %v5867_v59 = vmax.f32 %v5723_v3, 0.0  ;;  %v5431_v32 = vmax.f32 %v31469_v43, %v24681_v47  ;;  %v4746_v60 = vpop.f32.mrb[189].mxu0  ;;  %25213 = vmatprep.subr.bf16.mxu1 %v28715_v9  ;;  %v37617_v43 = vmax.f32 %v30031_v16, %v37616_v46  ;;  %v37621_v16 = vmax.f32 %v30041_v20, %v30647_v35  ;;  %v28697_v20 = vld [vmem:[%s36658_s0 + $0x8b8] sm:$0xff]   ;;  %v28718_v35 = vld [vmem:[%s36659_s3 + $0x160] sm:$0xff]  }
 0x457   :  { %v5865_v2 = vmax.f32 %v5721_v14, 0.0  ;;  %v5429_v33 = vmax.f32 %v31471_v41, %v4746_v60  ;;  %v24682_v55 = vpop.f32.mrb[190].mxu0  ;;  %v28698_v3 = vld [vmem:[%s36658_s0 + $0x8c0] sm:$0xff]  }
 0x458   :  { %v5575_v50 = vmax.f32 %v37613_v53, %v5431_v32  ;;  %v5432_v36 = vmax.f32 %v31476_v19, %v24682_v55  ;;  %v4749_v58 = vpop.f32.mrb[191].mxu0  ;;  %v32169_v30 = vpack.c.bf16 %v5867_v59, %v5866_v23  ;;  %v28717_v19 = vld [vmem:[%s36659_s3 + $0x158] sm:$0xff]   ;;  %v37624_v59 = vld [vmem:[#allocation142_spill] sm:$0xff]  ;;  %v37627_v55 = vld [vmem:[#allocation143_spill] sm:$0xff] }
 0x459   :  { %v32171_v52 = vpack.c.bf16 %v5865_v2, %v5864_v4  ;;  %v5573_v18 = vmax.f32 %v37617_v43, %v5429_v33  ;;  %v5430_v39 = vmax.f32 %v31481_v5, %v4749_v58  ;;  %25214 = vmatpush3.bf16.msra.mxu1 %v28715_v9  ;;  %v37625_v32 = vmax.f32 %v30047_v22, %v37624_v59  ;;  %v37626_v33 = vld [vmem:[#allocation6_spill] sm:$0xff] }
 0x45a   :  { %37614 = vst [vmem:[#allocation130_spill] sm:$0xff] %v32169_v30  ;;  %v5726_v41 = vadd.f32 %v32054_v40, %v5575_v50  ;;  %v5576_v63 = vmax.f32 %v37620_v15, %v5432_v36  ;;  %24788 = vmatmul.mubr.msk.bf16.gmra.mrb[40].mxu0 %vm2064_vm2, %v28695_v54  ;;  %25215 = vmatprep.subr.bf16.mxu1 %v28716_v34  ;;  %v37622_v54 = vld [vmem:[#allocation141_spill] sm:$0xff]  ;;  %v28702_v15 = vld [vmem:[%s36658_s0 + $0x8d0] sm:$0xff]  }
 0x45b   :  { %37615 = vst [vmem:[#allocation2_spill] sm:$0xff] %v32171_v52  ;;  %v5724_v31 = vadd.f32 %v32054_v40, %v5573_v18  ;;  %v5574_v5 = vmax.f32 %v37621_v16, %v5430_v39  ;;  %25151 = vmatprep.mubr.bf16.mxu1 %v32171_v52  ;;  %24791 = vmatprep.mubr.msk.bf16.mxu0 %vm2064_vm2, %v28696_v6 }
 0x45c   :  { %v5727_v61 = vadd.f32 %v32054_v40, %v5576_v63  ;;  %25152 = vmatmul.mubr.bf16.gmra.mrb[4].mxu1 %v32169_v30  ;;  %v5870_v45 = vmax.f32 %v5726_v41, 0.0  ;;  %v37628_v8 = vmax.f32 %v37626_v33, %v37627_v55  ;;  %v37629_v22 = vmax.f32 %v30057_v26, %v30671_v0  ;;  %v28699_v41 = vld [vmem:[%s36658_s0 + $0x8c8] sm:$0xff]   ;;  %v37643_v33 = vld [vmem:[#allocation270_spill] sm:$0xff] }
 0x45d   :  { %v5725_v11 = vadd.f32 %v32054_v40, %v5574_v5  ;;  %v24685_v29 = vpop.f32.mrb[192].mxu0  ;;  %25216 = vmatpush3.bf16.msra.mxu1 %v28716_v34  ;;  %v5868_v37 = vmax.f32 %v5724_v31, 0.0  ;;  %v37623_v34 = vmax.f32 %v30045_v21, %v37622_v54  ;;  %v28719_v21 = vld [vmem:[%s36659_s3 + $0x168] sm:$0xff]  }
 0x45e   :  { %v5871_v48 = vmax.f32 %v5727_v61, 0.0  ;;  %v5435_v62 = vmax.f32 %v31485_v25, %v24685_v29  ;;  %v4762_v9 = vpop.f32.mrb[193].mxu0  ;;  %25217 = vmatprep.subr.bf16.mxu1 %v28717_v19 }
 0x45f   :  { %v5869_v10 = vmax.f32 %v5725_v11, 0.0  ;;  %v5433_v38 = vmax.f32 %v31487_v17, %v4762_v9  ;;  %v24686_v23 = vpop.f32.mrb[194].mxu0  ;;  %v37633_v11 = vld [vmem:[#allocation145_spill] sm:$0xff]  ;;  %v37636_v9 = vld [vmem:[#allocation7_spill] sm:$0xff] }
 0x460   :  { %v32205_v25 = vpack.c.bf16 %v5871_v48, %v5870_v45  ;;  %v5579_v4 = vmax.f32 %v37623_v34, %v5435_v62  ;;  %v5436_v14 = vmax.f32 %v31492_v1, %v24686_v23  ;;  %v4765_v47 = vpop.f32.mrb[195].mxu0  ;;  %v37634_v29 = vmax.f32 %v30063_v28, %v37633_v11  ;;  %v37635_v45 = vld [vmem:[#allocation268_spill] sm:$0xff]  ;;  %v32269_v34 = vld [vmem:[%s36659_s3] sm:$0xff]  }
 0x461   :  { %v32211_v6 = vpack.c.bf16 %v5869_v10, %v5868_v37  ;;  %v5577_v17 = vmax.f32 %v37625_v32, %v5433_v38  ;;  %v5434_v60 = vmax.f32 %v31497_v57, %v4765_v47  ;;  %25218 = vmatpush3.bf16.msra.mxu1 %v28717_v19  ;;  %v37631_v19 = vld [vmem:[#allocation144_spill] sm:$0xff]  ;;  %v37640_v10 = vld [vmem:[#allocation147_spill] sm:$0xff]  ;;  %v37642_v47 = vld [vmem:[#allocation269_spill] sm:$0xff]  ;;  %24891 = vmatprep.subr.bf16.mxu0 %v32269_v34 }
 0x462   :  { %v5730_v2 = vadd.f32 %v32054_v40, %v5579_v4  ;;  %v5580_v53 = vmax.f32 %v37628_v8, %v5436_v14  ;;  %24792 = vmatmul.mubr.msk.bf16.gmra.mrb[44].mxu0 %vm2064_vm2, %v28697_v20  ;;  %25219 = vmatprep.subr.bf16.mxu1 %v28718_v35  ;;  %v37637_v20 = vld [vmem:[#allocation146_spill] sm:$0xff]  ;;  %v37657_v11 = vld [vmem:[#allocation12_spill] sm:$0xff] }
 0x463   :  { %v5728_v1 = vadd.f32 %v32054_v40, %v5577_v17  ;;  %v5578_v57 = vmax.f32 %v37629_v22, %v5434_v60  ;;  %24795 = vmatprep.mubr.msk.bf16.mxu0 %vm2064_vm2, %v28698_v3  ;;  %v28703_v17 = vld [vmem:[%s36658_s0 + $0x8d8] sm:$0xff]  }
 0x464   :  { %v5731_v50 = vadd.f32 %v32054_v40, %v5580_v53  ;;  %v5874_v46 = vmax.f32 %v5730_v2, 0.0  ;;  %v28706_v53 = vld [vmem:[%s36658_s0 + $0x8e0] sm:$0xff]  }
 0x465   :  { %v5729_v36 = vadd.f32 %v32054_v40, %v5578_v57  ;;  %v24689_v58 = vpop.f32.mrb[196].mxu0  ;;  %25220 = vmatpush3.bf16.msra.mxu1 %v28718_v35  ;;  %v5872_v0 = vmax.f32 %v5728_v1, 0.0  ;;  %v37638_v35 = vmax.f32 %v37636_v9, %v37637_v20  ;;  %v37645_v1 = vld [vmem:[#allocation148_spill] sm:$0xff] }
 0x466   :  { %v5875_v43 = vmax.f32 %v5731_v50, 0.0  ;;  %v5439_v18 = vmax.f32 %v31501_v42, %v24689_v58  ;;  %v4778_v39 = vpop.f32.mrb[197].mxu0  ;;  %25221 = vmatprep.subr.bf16.mxu1 %v28719_v21  ;;  %v37632_v42 = vmax.f32 %v30061_v27, %v37631_v19  ;;  %v37647_v50 = vld [vmem:[#allocation271_spill] sm:$0xff] }
 0x467   :  { %v5873_v26 = vmax.f32 %v5729_v36, 0.0  ;;  %v5437_v13 = vmax.f32 %v31503_v7, %v4778_v39  ;;  %v24690_v44 = vpop.f32.mrb[198].mxu0  ;;  %v37651_v39 = vld [vmem:[#allocation149_spill] sm:$0xff]  ;;  %v37654_v19 = vld [vmem:[#allocation11_spill] sm:$0xff] }
 0x468   :  { %v32240_v63 = vpack.c.bf16 %v5875_v43, %v5874_v46  ;;  %v5583_v31 = vmax.f32 %v37632_v42, %v5439_v18  ;;  %v5440_v16 = vmax.f32 %v31508_v56, %v24690_v44  ;;  %v4781_v5 = vpop.f32.mrb[199].mxu0  ;;  %v37639_v56 = vld [vmem:[#allocation8_spill] sm:$0xff]  ;;  %v37650_v18 = vld [vmem:[#allocation10_spill] sm:$0xff] }
 0x469   :  { %v32246_v61 = vpack.c.bf16 %v5873_v26, %v5872_v0  ;;  %v5581_v7 = vmax.f32 %v37634_v29, %v5437_v13  ;;  %v5438_v48 = vmax.f32 %v37635_v45, %v4781_v5  ;;  %25222 = vmatpush3.bf16.msra.mxu1 %v28719_v21  ;;  %v37641_v38 = vmax.f32 %v37639_v56, %v37640_v10  ;;  %v37644_v21 = vld [vmem:[#allocation9_spill] sm:$0xff]  ;;  %v37653_v26 = vld [vmem:[#allocation272_spill] sm:$0xff]  ;;  %v37655_v42 = vld [vmem:[#allocation150_spill] sm:$0xff] }
 0x46a   :  { %37630 = vst [vmem:[#allocation131_spill] sm:$0xff] %v32240_v63  ;;  %v5734_v62 = vadd.f32 %v32054_v40, %v5583_v31  ;;  %v5584_v37 = vmax.f32 %v37638_v35, %v5440_v16  ;;  %24796 = vmatmul.mubr.msk.bf16.gmra.mrb[48].mxu0 %vm2064_vm2, %v28699_v41  ;;  %v37646_v22 = vmax.f32 %v37644_v21, %v37645_v1  ;;  %v28720_v44 = vld [vmem:[%s36659_s3 + $0x170] sm:$0xff]   ;;  %v37658_v29 = vld [vmem:[#allocation151_spill] sm:$0xff] }
 0x46b   :  { %v5732_v27 = vadd.f32 %v32054_v40, %v5581_v7  ;;  %v5582_v23 = vmax.f32 %v37641_v38, %v5438_v48  ;;  %25155 = vmatprep.mubr.bf16.mxu1 %v32246_v61  ;;  %24799 = vmatprep.mubr.msk.bf16.mxu0 %vm2064_vm2, %v28702_v15  ;;  %v37652_v41 = vmax.f32 %v37650_v18, %v37651_v39  ;;  %v28707_v10 = vld [vmem:[%s36658_s0 + $0x8e8] sm:$0xff]  }
 0x46c   :  { %v5735_v28 = vadd.f32 %v32054_v40, %v5584_v37  ;;  %25156 = vmatmul.mubr.bf16.gmra.mrb[8].mxu1 %v32240_v63  ;;  %v5878_v4 = vmax.f32 %v5734_v62, 0.0  ;;  %v37656_v31 = vmax.f32 %v37654_v19, %v37655_v42  ;;  %v37659_v7 = vmax.f32 %v37657_v11, %v37658_v29  ;;  %25223 = vmatprep.subr.bf16.mxu1 %v28720_v44  ;;  %v37660_v37 = vld [vmem:[#allocation273_spill] sm:$0xff] }
 0x46d   :  { %v5733_v3 = vadd.f32 %v32054_v40, %v5582_v23  ;;  %v24693_v54 = vpop.f32.mrb[200].mxu0  ;;  %v5876_v60 = vmax.f32 %v5732_v27, 0.0  ;;  %25224 = vmatpush3.bf16.msra.mxu1 %v28720_v44  ;;  %v37678_v29 = vld [vmem:[#allocation277_spill] sm:$0xff] }
 0x46e   :  { %v5879_v14 = vmax.f32 %v5735_v28, 0.0  ;;  %v5443_v59 = vmax.f32 %v37642_v47, %v24693_v54  ;;  %v4794_v32 = vpop.f32.mrb[201].mxu0  ;;  %v37661_v28 = vld [vmem:[#allocation274_spill] sm:$0xff]  ;;  %v37663_v47 = vld [vmem:[#allocation13_spill] sm:$0xff] }
 0x46f   :  { %v5877_v2 = vmax.f32 %v5733_v3, 0.0  ;;  %v5441_v55 = vmax.f32 %v37643_v33, %v4794_v32  ;;  %v24694_v8 = vpop.f32.mrb[202].mxu0 }
 0x470   :  { %v5587_v57 = vmax.f32 %v37646_v22, %v5443_v59  ;;  %v5444_v36 = vmax.f32 %v37647_v50, %v24694_v8  ;;  %v4797_v58 = vpop.f32.mrb[203].mxu0  ;;  %v32284_v46 = vpack.c.bf16 %v5879_v14, %v5878_v4  ;;  %v28710_v4 = vld [vmem:[%s36658_s0 + $0x8f0] sm:$0xff]   ;;  %v37668_v8 = vld [vmem:[#allocation14_spill] sm:$0xff] }
 0x471   :  { %v32286_v43 = vpack.c.bf16 %v5877_v2, %v5876_v60  ;;  %v5585_v0 = vmax.f32 %v37652_v41, %v5441_v55  ;;  %v5442_v13 = vmax.f32 %v37653_v26, %v4797_v58  ;;  %v37664_v59 = vld [vmem:[#allocation152_spill] sm:$0xff]  ;;  %v37666_v60 = vld [vmem:[#allocation275_spill] sm:$0xff]  ;;  %v37673_v58 = vld [vmem:[#allocation154_spill] sm:$0xff] }
 0x472   :  { %37648 = vst [vmem:[#allocation132_spill] sm:$0xff] %v32284_v46  ;;  %v5738_v15 = vadd.f32 %v32054_v40, %v5587_v57  ;;  %v5588_v16 = vmax.f32 %v37656_v31, %v5444_v36  ;;  %24800 = vmatmul.mubr.msk.bf16.gmra.mrb[52].mxu0 %vm2064_vm2, %v28703_v17  ;;  %v37665_v32 = vmax.f32 %v37663_v47, %v37664_v59  ;;  %v37671_v22 = vld [vmem:[#allocation276_spill] sm:$0xff]  ;;  %v37672_v36 = vld [vmem:[#allocation15_spill] sm:$0xff]  ;;  %v6145_v31 = vunpack.c.h.b16 %v32098_v12  ;;  %v37684_v47 = vld [vmem:[#allocation18_spill] sm:$0xff] }
 0x473   :  { %37649 = vst [vmem:[#allocation133_spill] sm:$0xff] %v32286_v43  ;;  %v5736_v5 = vadd.f32 %v32054_v40, %v5585_v0  ;;  %v5586_v45 = vmax.f32 %v37659_v7, %v5442_v13  ;;  %25159 = vmatprep.mubr.bf16.mxu1 %v32286_v43  ;;  %24803 = vmatprep.mubr.msk.bf16.mxu0 %vm2064_vm2, %v28706_v53  ;;  %v37669_v53 = vld [vmem:[#allocation153_spill] sm:$0xff]  ;;  %v37675_v0 = vld [vmem:[#allocation16_spill] sm:$0xff]  ;;  %v37676_v26 = vld [vmem:[#allocation155_spill] sm:$0xff] }
 0x474   :  { %v5739_v48 = vadd.f32 %v32054_v40, %v5588_v16  ;;  %25160 = vmatmul.mubr.bf16.gmra.mrb[12].mxu1 %v32284_v46  ;;  %v5882_v20 = vmax.f32 %v5738_v15, 0.0  ;;  %v37670_v21 = vmax.f32 %v37668_v8, %v37669_v53  ;;  %v37674_v18 = vmax.f32 %v37672_v36, %v37673_v58  ;;  %v37685_v59 = vld [vmem:[#allocation157_spill] sm:$0xff]  ;;  %v37688_v53 = vld [vmem:[#allocation19_spill] sm:$0xff]  ;;  %v37691_v36 = vld [vmem:[#allocation20_spill] sm:$0xff] }
 0x475   :  { %v5737_v62 = vadd.f32 %v32054_v40, %v5586_v45  ;;  %v24697_v9 = vpop.f32.mrb[204].mxu0  ;;  %v5880_v38 = vmax.f32 %v5736_v5, 0.0  ;;  %v37677_v13 = vmax.f32 %v37675_v0, %v37676_v26  ;;  %v6146_v16 = vunpack.c.l.b16 %v32092_v24  ;;  %v37692_v58 = vld [vmem:[#allocation159_spill] sm:$0xff] }
 0x476   :  { %v5883_v35 = vmax.f32 %v5739_v48, 0.0  ;;  %v5447_v27 = vmax.f32 %v37660_v37, %v24697_v9  ;;  %v4810_v56 = vpop.f32.mrb[205].mxu0  ;;  %v28711_v48 = vld [vmem:[%s36658_s0 + $0x8f8] sm:$0xff]   ;;  %v37813_v46 = vld [vmem:[#allocation307_spill] sm:$0xff] }
 0x477   :  { %v5881_v23 = vmax.f32 %v5737_v62, 0.0  ;;  %v5445_v3 = vmax.f32 %v37661_v28, %v4810_v56  ;;  %v24698_v54 = vpop.f32.mrb[206].mxu0  ;;  %v37680_v56 = vld [vmem:[#allocation17_spill] sm:$0xff]  ;;  %v37683_v28 = vld [vmem:[#allocation279_spill] sm:$0xff] }
 0x478   :  { %v32317_v14 = vpack.c.bf16 %v5883_v35, %v5882_v20  ;;  %v5591_v17 = vmax.f32 %v37665_v32, %v5447_v27  ;;  %v5448_v2 = vmax.f32 %v37666_v60, %v24698_v54  ;;  %v4813_v33 = vpop.f32.mrb[207].mxu0  ;;  %v37679_v20 = vld [vmem:[#allocation278_spill] sm:$0xff]  ;;  %v37686_v32 = vmax.f32 %v37684_v47, %v37685_v59  ;;  %v37687_v60 = vld [vmem:[#allocation280_spill] sm:$0xff]  ;;  %v37704_v47 = vld [vmem:[#allocation161_spill] sm:$0xff] }
 0x479   :  { %v32323_v55 = vpack.c.bf16 %v5881_v23, %v5880_v38  ;;  %v5589_v1 = vmax.f32 %v37670_v21, %v5445_v3  ;;  %v5446_v57 = vmax.f32 %v37671_v22, %v4813_v33  ;;  %v6321_v33 = vpack.c.b16 %v6146_v16, %v6145_v31  ;;  %v37689_v21 = vld [vmem:[#allocation158_spill] sm:$0xff]  ;;  %v37694_v16 = vld [vmem:[#allocation281_spill] sm:$0xff] }
 0x47a   :  { %37662 = vst [vmem:[#allocation3_spill] sm:$0xff] %v32317_v14  ;;  %v5742_v50 = vadd.f32 %v32054_v40, %v5591_v17  ;;  %v5592_v39 = vmax.f32 %v37674_v18, %v5448_v2  ;;  %24804 = vmatmul.mubr.msk.bf16.gmra.mrb[56].mxu0 %vm2064_vm2, %v28707_v10  ;;  %v37681_v10 = vld [vmem:[#allocation156_spill] sm:$0xff]  ;;  %v37693_v18 = vmax.f32 %v37691_v36, %v37692_v58  ;;  %v37712_v36 = vld [vmem:[#allocation163_spill] sm:$0xff] }
 0x47b   :  { %37667 = vst [vmem:[#allocation134_spill] sm:$0xff] %v32323_v55  ;;  %v5740_v41 = vadd.f32 %v32054_v40, %v5589_v1  ;;  %v5590_v44 = vmax.f32 %v37677_v13, %v5446_v57  ;;  %24807 = vmatprep.mubr.msk.bf16.mxu0 %vm2064_vm2, %v28710_v4  ;;  %v37682_v38 = vmax.f32 %v37680_v56, %v37681_v10  ;;  %v28725_v57 = vld [vmem:[%s36659_s3 + $0x178] sm:$0xff]  }
 0x47c   :  { %v5743_v15 = vadd.f32 %v32054_v40, %v5592_v39  ;;  %v5886_v5 = vmax.f32 %v5742_v50, 0.0  ;;  %v37690_v1 = vmax.f32 %v37688_v53, %v37689_v21  ;;  %25225 = vmatprep.subr.bf16.mxu1 %v28725_v57  ;;  %v37708_v53 = vld [vmem:[#allocation23_spill] sm:$0xff]  ;;  %v37709_v21 = vld [vmem:[#allocation162_spill] sm:$0xff] }
 0x47d   :  { %v5741_v19 = vadd.f32 %v32054_v40, %v5590_v44  ;;  %v24701_v42 = vpop.f32.mrb[208].mxu0  ;;  %v5884_v62 = vmax.f32 %v5740_v41, 0.0  ;;  %v6148_v41 = vunpack.c.l.b16 %v32130_v49  ;;  %v6149_v44 = vunpack.c.h.b16 %v32130_v49  ;;  %25226 = vmatpush3.bf16.msra.mxu1 %v28725_v57 }
 0x47e   :  { %v5887_v11 = vmax.f32 %v5743_v15, 0.0  ;;  %v5451_v7 = vmax.f32 %v37678_v29, %v24701_v42  ;;  %v4826_v45 = vpop.f32.mrb[209].mxu0  ;;  %v6150_v15 = vunpack.c.l.b16 %v32124_v51 }
 0x47f   :  { %v5885_v9 = vmax.f32 %v5741_v19, 0.0  ;;  %v5449_v35 = vmax.f32 %v37679_v20, %v4826_v45  ;;  %v24702_v37 = vpop.f32.mrb[210].mxu0  ;;  %v6147_v19 = vunpack.c.h.b16 %v32092_v24  ;;  %v37695_v45 = vld [vmem:[#allocation282_spill] sm:$0xff] }
 0x480   :  { %v32348_v27 = vpack.c.bf16 %v5887_v11, %v5886_v5  ;;  %v5595_v23 = vmax.f32 %v37682_v38, %v5451_v7  ;;  %v5452_v3 = vmax.f32 %v37683_v28, %v24702_v37  ;;  %v4829_v54 = vpop.f32.mrb[211].mxu0  ;;  %v37699_v37 = vld [vmem:[#allocation160_spill] sm:$0xff]  ;;  %v37701_v38 = vld [vmem:[#allocation283_spill] sm:$0xff] }
 0x481   :  { %v32354_v4 = vpack.c.bf16 %v5885_v9, %v5884_v62  ;;  %v5593_v17 = vmax.f32 %v37686_v32, %v5449_v35  ;;  %v5450_v2 = vmax.f32 %v37687_v60, %v4829_v54  ;;  %v32382_v9 = vpack.c.b16 %v6148_v41, %v6147_v19  ;;  %v37698_v35 = vld [vmem:[#allocation21_spill] sm:$0xff]  ;;  %v37703_v54 = vld [vmem:[#allocation22_spill] sm:$0xff] }
 0x482   :  { %v5746_v8 = vadd.f32 %v32054_v40, %v5595_v23  ;;  %v5596_v22 = vmax.f32 %v37690_v1, %v5452_v3  ;;  %24808 = vmatmul.mubr.msk.bf16.gmra.mrb[60].mxu0 %vm2064_vm2, %v28711_v48  ;;  %v37700_v56 = vmax.f32 %v37698_v35, %v37699_v37  ;;  %v37705_v59 = vmax.f32 %v37703_v54, %v37704_v47  ;;  %v37718_v37 = vld [vmem:[#allocation25_spill] sm:$0xff] }
 0x483   :  { %v5744_v50 = vadd.f32 %v32054_v40, %v5593_v17  ;;  %v5594_v39 = vmax.f32 %v37693_v18, %v5450_v2  ;;  %24827 = vmatprep.mubr.bf16.mxu0 %v6321_v33  ;;  %25163 = vmatprep.mubr.bf16.mxu1 %v32354_v4  ;;  %37696 = vst [vmem:[#allocation135_spill] sm:$0xff] %v32382_v9  ;;  %v37706_v17 = vld [vmem:[#allocation284_spill] sm:$0xff]  ;;  %v28722_v33 = vld [vmem:[%s36659_s3 + $0x8] sm:$0xff]   ;;  %v6151_v19 = vunpack.c.h.b16 %v32124_v51 }
 0x484   :  { %v5747_v0 = vadd.f32 %v32054_v40, %v5596_v22  ;;  %25164 = vmatmul.mubr.bf16.gmra.mrb[16].mxu1 %v32348_v27  ;;  %v5890_v42 = vmax.f32 %v5746_v8, 0.0  ;;  %v32396_v2 = vpack.c.b16 %v6150_v15, %v6149_v44  ;;  %v37710_v1 = vmax.f32 %v37708_v53, %v37709_v21  ;;  %v28723_v15 = vld [vmem:[%s36659_s3 + $0x10] sm:$0xff]  }
 0x485   :  { %v5745_v26 = vadd.f32 %v32054_v40, %v5594_v39  ;;  %v24705_v13 = vpop.f32.mrb[212].mxu0  ;;  %v5888_v29 = vmax.f32 %v5744_v50, 0.0  ;;  %v37711_v50 = vld [vmem:[#allocation24_spill] sm:$0xff]  ;;  %v6152_v39 = vunpack.c.l.b16 %v32171_v52  ;;  %v6158_v44 = vunpack.c.l.b16 %v32205_v25 }
 0x486   :  { %v5891_v31 = vmax.f32 %v5747_v0, 0.0  ;;  %v5455_v5 = vmax.f32 %v37694_v16, %v24705_v13  ;;  %v4842_v11 = vpop.f32.mrb[213].mxu0  ;;  %37707 = vst [vmem:[#allocation137_spill] sm:$0xff] %v32396_v2  ;;  %v37713_v58 = vmax.f32 %v37711_v50, %v37712_v36  ;;  %v6157_v13 = vunpack.c.h.b16 %v32211_v6  ;;  %v37714_v16 = vld [vmem:[#allocation285_spill] sm:$0xff]  ;;  %v37728_v50 = vld [vmem:[#allocation166_spill] sm:$0xff]  ;;  %v37987_v52 = vld [vmem:[#allocation220_spill] sm:$0xff] }
 0x487   :  { %v5889_v7 = vmax.f32 %v5745_v26, 0.0  ;;  %v5453_v48 = vmax.f32 %v37695_v45, %v4842_v11  ;;  %v24706_v62 = vpop.f32.mrb[214].mxu0 }
 0x488   :  { %v32384_v20 = vpack.c.bf16 %v5891_v31, %v5890_v42  ;;  %v5599_v10 = vmax.f32 %v37700_v56, %v5455_v5  ;;  %v5456_v23 = vmax.f32 %v37701_v38, %v24706_v62  ;;  %v4845_v28 = vpop.f32.mrb[215].mxu0  ;;  %v32425_v62 = vpack.c.b16 %v6152_v39, %v6151_v19  ;;  %v37719_v56 = vld [vmem:[#allocation164_spill] sm:$0xff] }
 0x489   :  { %v32390_v3 = vpack.c.bf16 %v5889_v7, %v5888_v29  ;;  %v5597_v32 = vmax.f32 %v37705_v59, %v5453_v48  ;;  %v5454_v60 = vmax.f32 %v37706_v17, %v4845_v28  ;;  %v37715_v7 = vld [vmem:[#allocation286_spill] sm:$0xff]  ;;  %v32439_v21 = vpack.c.b16 %v6158_v44, %v6157_v13  ;;  %v37730_v39 = vld [vmem:[#allocation28_spill] sm:$0xff] }
 0x48a   :  { %37697 = vst [vmem:[#allocation136_spill] sm:$0xff] %v32384_v20  ;;  %v5750_v8 = vadd.f32 %v32054_v40, %v5599_v10  ;;  %v5600_v22 = vmax.f32 %v37710_v1, %v5456_v23  ;;  %24828 = vmatmul.mubr.bf16.vlgmr.msra.gmra.mrb[64].mxu0 %v32382_v9  ;;  %37716 = vst [vmem:[#allocation138_spill] sm:$0xff] %v32425_v62  ;;  %v37720_v10 = vmax.f32 %v37718_v37, %v37719_v56  ;;  %v37721_v23 = vld [vmem:[#allocation287_spill] sm:$0xff]  ;;  %v37723_v59 = vld [vmem:[#allocation26_spill] sm:$0xff] }
 0x48b   :  { %37702 = vst [vmem:[#allocation4_spill] sm:$0xff] %v32390_v3  ;;  %v5748_v57 = vadd.f32 %v32054_v40, %v5597_v32  ;;  %v5598_v18 = vmax.f32 %v37713_v58, %v5454_v60  ;;  %24831 = vmatprep.mubr.bf16.mxu0 %v32396_v2  ;;  %25167 = vmatprep.mubr.bf16.mxu1 %v32390_v3  ;;  %v37724_v32 = vld [vmem:[#allocation165_spill] sm:$0xff]  ;;  %v6160_v44 = vunpack.c.l.b16 %v32246_v61  ;;  %v37734_v56 = vld [vmem:[#allocation290_spill] sm:$0xff]  ;;  %v37819_v2 = vld [vmem:[#allocation308_spill] sm:$0xff] }
 0x48c   :  { %v5751_v41 = vadd.f32 %v32054_v40, %v5600_v22  ;;  %25168 = vmatmul.mubr.bf16.gmra.mrb[20].mxu1 %v32384_v20  ;;  %24892 = vmatpush3.bf16.msra.mxu0 %v32269_v34  ;;  %v5894_v42 = vmax.f32 %v5750_v8, 0.0  ;;  %v37725_v17 = vmax.f32 %v37723_v59, %v37724_v32  ;;  %v37726_v8 = vld [vmem:[#allocation288_spill] sm:$0xff]  ;;  %v28724_v1 = vld [vmem:[%s36659_s3 + $0x18] sm:$0xff]   ;;  %v32447_v22 = vld [vmem:[%s36659_s3 + $0x180] sm:$0xff]  }
 0x48d   :  { %v5749_v0 = vadd.f32 %v32054_v40, %v5598_v18  ;;  %v24709_v26 = vpop.f32.mrb[216].mxu0  ;;  %24893 = vmatprep.subr.bf16.mxu0 %v28722_v33  ;;  %v5892_v34 = vmax.f32 %v5748_v57, 0.0  ;;  %v37727_v57 = vld [vmem:[#allocation27_spill] sm:$0xff]  ;;  %25291 = vmatprep.subr.bf16.mxu1 %v32447_v22 }
 0x48e   :  { %v5895_v31 = vmax.f32 %v5751_v41, 0.0  ;;  %v5459_v5 = vmax.f32 %v37714_v16, %v24709_v26  ;;  %v4858_v11 = vpop.f32.mrb[217].mxu0  ;;  %v37729_v36 = vmax.f32 %v37727_v57, %v37728_v50  ;;  %v37731_v41 = vld [vmem:[#allocation167_spill] sm:$0xff]  ;;  %v6162_v16 = vunpack.c.l.b16 %v32240_v63  ;;  %v37739_v57 = vld [vmem:[#allocation30_spill] sm:$0xff]  ;;  %v37740_v50 = vld [vmem:[#allocation169_spill] sm:$0xff] }
 0x48f   :  { %v5893_v29 = vmax.f32 %v5749_v0, 0.0  ;;  %v5457_v45 = vmax.f32 %v37715_v7, %v4858_v11  ;;  %v24710_v48 = vpop.f32.mrb[218].mxu0  ;;  %v37732_v0 = vmax.f32 %v37730_v39, %v37731_v41  ;;  %v6159_v11 = vunpack.c.h.b16 %v32205_v25  ;;  %v37733_v7 = vld [vmem:[#allocation289_spill] sm:$0xff] }
 0x490   :  { %v32427_v35 = vpack.c.bf16 %v5895_v31, %v5894_v42  ;;  %v5603_v38 = vmax.f32 %v37720_v10, %v5459_v5  ;;  %v5460_v28 = vmax.f32 %v37721_v23, %v24710_v48  ;;  %v4861_v54 = vpop.f32.mrb[219].mxu0  ;;  %24894 = vmatpush3.bf16.msra.mxu0 %v28722_v33  ;;  %v6161_v31 = vunpack.c.h.b16 %v32246_v61  ;;  %v28726_v5 = vld [vmem:[%s36659_s3 + $0x20] sm:$0xff]  }
 0x491   :  { %v32433_v47 = vpack.c.bf16 %v5893_v29, %v5892_v34  ;;  %v5601_v60 = vmax.f32 %v37725_v17, %v5457_v45  ;;  %v5458_v53 = vmax.f32 %v37726_v8, %v4861_v54  ;;  %24895 = vmatprep.subr.bf16.mxu0 %v28723_v15  ;;  %v37736_v54 = vld [vmem:[#allocation168_spill] sm:$0xff]  ;;  %v37738_v17 = vld [vmem:[#allocation291_spill] sm:$0xff] }
 0x492   :  { %37717 = vst [vmem:[#allocation139_spill] sm:$0xff] %v32427_v35  ;;  %v5754_v33 = vadd.f32 %v32054_v40, %v5603_v38  ;;  %v5604_v58 = vmax.f32 %v37729_v36, %v5460_v28  ;;  %24832 = vmatmul.mubr.bf16.gmra.mrb[68].mxu0 %v32425_v62  ;;  %v37735_v28 = vld [vmem:[#allocation29_spill] sm:$0xff]  ;;  %v37741_v36 = vmax.f32 %v37739_v57, %v37740_v50 }
 0x493   :  { %37722 = vst [vmem:[#allocation5_spill] sm:$0xff] %v32433_v47  ;;  %v5752_v18 = vadd.f32 %v32054_v40, %v5601_v60  ;;  %v5602_v26 = vmax.f32 %v37732_v0, %v5458_v53  ;;  %24835 = vmatprep.mubr.bf16.mxu0 %v32439_v21  ;;  %v37737_v59 = vmax.f32 %v37735_v28, %v37736_v54  ;;  %v28727_v0 = vld [vmem:[%s36659_s3 + $0x28] sm:$0xff]   ;;  %v37749_v28 = vld [vmem:[#allocation293_spill] sm:$0xff] }
 0x494   :  { %v5755_v13 = vadd.f32 %v32054_v40, %v5604_v58  ;;  %24896 = vmatpush3.bf16.msra.mxu0 %v28723_v15  ;;  %v5898_v34 = vmax.f32 %v5754_v33, 0.0  ;;  %v32477_v53 = vpack.c.b16 %v6160_v44, %v6159_v11  ;;  %v32485_v41 = vpack.c.b16 %v6162_v16, %v6161_v31  ;;  %v37744_v44 = vld [vmem:[#allocation170_spill] sm:$0xff]  ;;  %v37746_v11 = vld [vmem:[#allocation32_spill] sm:$0xff]  ;;  %v37817_v62 = vld [vmem:[#allocation185_spill] sm:$0xff] }
 0x495   :  { %v5753_v19 = vadd.f32 %v32054_v40, %v5602_v26  ;;  %v24713_v42 = vpop.f32.mrb[220].mxu0  ;;  %24897 = vmatprep.subr.bf16.mxu0 %v28724_v1  ;;  %v5896_v15 = vmax.f32 %v5752_v18, 0.0  ;;  %v37742_v18 = vld [vmem:[#allocation292_spill] sm:$0xff]  ;;  %v6164_v16 = vunpack.c.l.b16 %v32286_v43 }
 0x496   :  { %v5899_v29 = vmax.f32 %v5755_v13, 0.0  ;;  %v5463_v45 = vmax.f32 %v37733_v7, %v24713_v42  ;;  %v4874_v48 = vpop.f32.mrb[221].mxu0  ;;  %v37743_v13 = vld [vmem:[#allocation31_spill] sm:$0xff]  ;;  %v37877_v43 = vld [vmem:[#allocation320_spill] sm:$0xff] }
 0x497   :  { %v5897_v37 = vmax.f32 %v5753_v19, 0.0  ;;  %v5461_v10 = vmax.f32 %v37734_v56, %v4874_v48  ;;  %v24714_v38 = vpop.f32.mrb[222].mxu0  ;;  %v28728_v56 = vld [vmem:[%s36659_s3 + $0x30] sm:$0xff]  }
 0x498   :  { %v32471_v23 = vpack.c.bf16 %v5899_v29, %v5898_v34  ;;  %v5607_v32 = vmax.f32 %v37737_v59, %v5463_v45  ;;  %v5464_v60 = vmax.f32 %v37738_v17, %v24714_v38  ;;  %v4877_v8 = vpop.f32.mrb[223].mxu0  ;;  %24898 = vmatpush3.bf16.msra.mxu0 %v28724_v1  ;;  %v37745_v1 = vmax.f32 %v37743_v13, %v37744_v44  ;;  %v37747_v34 = vld [vmem:[#allocation171_spill] sm:$0xff] }
 0x499   :  { %v32479_v33 = vpack.c.bf16 %v5897_v37, %v5896_v15  ;;  %v5605_v58 = vmax.f32 %v37741_v36, %v5461_v10  ;;  %v5462_v39 = vmax.f32 %v37742_v18, %v4877_v8  ;;  %24899 = vmatprep.subr.bf16.mxu0 %v28726_v5  ;;  %v37748_v29 = vmax.f32 %v37746_v11, %v37747_v34  ;;  %v37752_v36 = vld [vmem:[#allocation33_spill] sm:$0xff]  ;;  %v37755_v13 = vld [vmem:[#allocation295_spill] sm:$0xff]  ;;  %v37758_v11 = vld [vmem:[#allocation34_spill] sm:$0xff] }
 0x49a   :  { %v5758_v26 = vadd.f32 %v32054_v40, %v5607_v32  ;;  %v5608_v19 = vmax.f32 %v37745_v1, %v5464_v60  ;;  %24836 = vmatmul.mubr.bf16.gmra.mrb[72].mxu0 %v32477_v53  ;;  %v6169_v15 = vunpack.c.h.b16 %v32323_v55  ;;  %v6170_v37 = vunpack.c.l.b16 %v32317_v14  ;;  %v37750_v60 = vld [vmem:[#allocation294_spill] sm:$0xff] }
 0x49b   :  { %v5756_v42 = vadd.f32 %v32054_v40, %v5605_v58  ;;  %v5606_v31 = vmax.f32 %v37748_v29, %v5462_v39  ;;  %24839 = vmatprep.mubr.bf16.mxu0 %v32485_v41  ;;  %25171 = vmatprep.mubr.bf16.mxu1 %v32479_v33  ;;  %v6163_v32 = vunpack.c.h.b16 %v32240_v63  ;;  %v37753_v58 = vld [vmem:[#allocation172_spill] sm:$0xff] }
 0x49c   :  { %v5759_v7 = vadd.f32 %v32054_v40, %v5608_v19  ;;  %25172 = vmatmul.mubr.bf16.gmra.mrb[24].mxu1 %v32471_v23  ;;  %24900 = vmatpush3.bf16.msra.mxu0 %v28726_v5  ;;  %v5902_v10 = vmax.f32 %v5758_v26, 0.0  ;;  %v37754_v18 = vmax.f32 %v37752_v36, %v37753_v58  ;;  %v6174_v36 = vunpack.c.l.b16 %v32348_v27 }
 0x49d   :  { %v5757_v45 = vadd.f32 %v32054_v40, %v5606_v31  ;;  %v24717_v48 = vpop.f32.mrb[224].mxu0  ;;  %24901 = vmatprep.subr.bf16.mxu0 %v28727_v0  ;;  %v5900_v5 = vmax.f32 %v5756_v42, 0.0  ;;  %v32519_v1 = vpack.c.b16 %v6164_v16, %v6163_v32  ;;  %v37759_v42 = vld [vmem:[#allocation173_spill] sm:$0xff]  ;;  %v37761_v31 = vld [vmem:[#allocation296_spill] sm:$0xff]  ;;  %v37763_v16 = vld [vmem:[#allocation35_spill] sm:$0xff] }
 0x49e   :  { %v5903_v38 = vmax.f32 %v5759_v7, 0.0  ;;  %v5467_v54 = vmax.f32 %v37749_v28, %v24717_v48  ;;  %v4890_v59 = vpop.f32.mrb[225].mxu0  ;;  %v37760_v34 = vmax.f32 %v37758_v11, %v37759_v42  ;;  %v28729_v48 = vld [vmem:[%s36659_s3 + $0x38] sm:$0xff]   ;;  %v37767_v32 = vld [vmem:[#allocation175_spill] sm:$0xff] }
 0x49f   :  { %v5901_v17 = vmax.f32 %v5757_v45, 0.0  ;;  %v5465_v8 = vmax.f32 %v37750_v60, %v4890_v59  ;;  %v24718_v57 = vpop.f32.mrb[226].mxu0  ;;  %37756 = vst [vmem:[#allocation141_spill] sm:$0xff] %v32519_v1  ;;  %v32527_v45 = vpack.c.b16 %v6170_v37, %v6169_v15  ;;  %v37766_v59 = vld [vmem:[#allocation36_spill] sm:$0xff] }
 0x4a0   :  { %v32513_v50 = vpack.c.bf16 %v5903_v38, %v5902_v10  ;;  %v5611_v39 = vmax.f32 %v37754_v18, %v5467_v54  ;;  %v5468_v44 = vmax.f32 %v37755_v13, %v24718_v57  ;;  %v4893_v26 = vpop.f32.mrb[227].mxu0  ;;  %24902 = vmatpush3.bf16.msra.mxu0 %v28727_v0  ;;  %v37764_v38 = vld [vmem:[#allocation174_spill] sm:$0xff]  ;;  %v6173_v57 = vunpack.c.h.b16 %v32354_v4 }
 0x4a1   :  { %v32521_v19 = vpack.c.bf16 %v5901_v17, %v5900_v5  ;;  %v5609_v29 = vmax.f32 %v37760_v34, %v5465_v8  ;;  %v5466_v7 = vmax.f32 %v37761_v31, %v4893_v26  ;;  %37762 = vst [vmem:[#allocation6_spill] sm:$0xff] %v32527_v45  ;;  %24903 = vmatprep.subr.bf16.mxu0 %v28728_v56  ;;  %v6172_v17 = vunpack.c.l.b16 %v32354_v4  ;;  %v37770_v34 = vld [vmem:[#allocation298_spill] sm:$0xff] }
 0x4a2   :  { %37751 = vst [vmem:[#allocation140_spill] sm:$0xff] %v32513_v50  ;;  %v5762_v10 = vadd.f32 %v32054_v40, %v5611_v39  ;;  %v37765_v0 = vmax.f32 %v37763_v16, %v37764_v38  ;;  %24840 = vmatmul.mubr.bf16.gmra.mrb[76].mxu0 %v32519_v1  ;;  %v37768_v5 = vmax.f32 %v37766_v59, %v37767_v32  ;;  %v37769_v39 = vld [vmem:[#allocation297_spill] sm:$0xff]  ;;  %v6171_v26 = vunpack.c.h.b16 %v32317_v14  ;;  %v37773_v16 = vld [vmem:[#allocation176_spill] sm:$0xff] }
 0x4a3   :  { %37757 = vst [vmem:[#allocation142_spill] sm:$0xff] %v32521_v19  ;;  %v5760_v54 = vadd.f32 %v32054_v40, %v5609_v29  ;;  %24843 = vmatprep.mubr.bf16.mxu0 %v32527_v45  ;;  %25175 = vmatprep.mubr.bf16.mxu1 %v32521_v19  ;;  %v38046_v1 = vld [vmem:[#allocation356_spill] sm:$0xff] }
 0x4a4   :  { %v5612_v28 = vmax.f32 %v37765_v0, %v5468_v44  ;;  %v5610_v15 = vmax.f32 %v37768_v5, %v5466_v7  ;;  %25176 = vmatmul.mubr.bf16.gmra.mrb[28].mxu1 %v32513_v50  ;;  %24904 = vmatpush3.bf16.msra.mxu0 %v28728_v56  ;;  %v5906_v58 = vmax.f32 %v5762_v10, 0.0  ;;  %v37772_v7 = vld [vmem:[#allocation37_spill] sm:$0xff]  ;;  %v32558_v32 = vpack.c.b16 %v6172_v17, %v6171_v26  ;;  %v37786_v17 = vld [vmem:[#allocation40_spill] sm:$0xff]  ;;  %v37787_v26 = vld [vmem:[#allocation179_spill] sm:$0xff] }
 0x4a5   :  { %v24721_v8 = vpop.f32.mrb[228].mxu0  ;;  %24905 = vmatprep.subr.bf16.mxu0 %v28729_v48  ;;  %v5904_v11 = vmax.f32 %v5760_v54, 0.0  ;;  %v37774_v38 = vmax.f32 %v37772_v7, %v37773_v16  ;;  %v37779_v54 = vld [vmem:[#allocation177_spill] sm:$0xff]  ;;  %v6181_v16 = vunpack.c.h.b16 %v32433_v47  ;;  %v37799_v50 = vld [vmem:[#allocation304_spill] sm:$0xff] }
 0x4a6   :  { %v5763_v37 = vadd.f32 %v32054_v40, %v5612_v28  ;;  %v5761_v60 = vadd.f32 %v32054_v40, %v5610_v15  ;;  %v5471_v13 = vmax.f32 %v37769_v39, %v24721_v8  ;;  %v4906_v44 = vpop.f32.mrb[229].mxu0  ;;  %v37775_v28 = vld [vmem:[#allocation299_spill] sm:$0xff]  ;;  %37776 = vst [vmem:[#allocation144_spill] sm:$0xff] %v32558_v32  ;;  %v37778_v15 = vld [vmem:[#allocation38_spill] sm:$0xff]  ;;  %v37781_v8 = vld [vmem:[#allocation300_spill] sm:$0xff] }
 0x4a7   :  { %v5469_v29 = vmax.f32 %v37770_v34, %v4906_v44  ;;  %v24722_v56 = vpop.f32.mrb[230].mxu0  ;;  %v37783_v44 = vld [vmem:[#allocation39_spill] sm:$0xff] }
 0x4a8   :  { %v5907_v18 = vmax.f32 %v5763_v37, 0.0  ;;  %v5905_v42 = vmax.f32 %v5761_v60, 0.0  ;;  %v5615_v0 = vmax.f32 %v37774_v38, %v5471_v13  ;;  %v5472_v59 = vmax.f32 %v37775_v28, %v24722_v56  ;;  %v4909_v10 = vpop.f32.mrb[231].mxu0  ;;  %24906 = vmatpush3.bf16.msra.mxu0 %v28729_v48  ;;  %v37784_v13 = vld [vmem:[#allocation178_spill] sm:$0xff] }
 0x4a9   :  { %v37780_v37 = vmax.f32 %v37778_v15, %v37779_v54  ;;  %v5470_v39 = vmax.f32 %v37781_v8, %v4909_v10  ;;  %v37785_v34 = vmax.f32 %v37783_v44, %v37784_v13  ;;  %v6182_v38 = vunpack.c.l.b16 %v32427_v35  ;;  %v37790_v8 = vld [vmem:[#allocation302_spill] sm:$0xff] }
 0x4aa   :  { %v32552_v31 = vpack.c.bf16 %v5907_v18, %v5906_v58  ;;  %v32560_v5 = vpack.c.bf16 %v5905_v42, %v5904_v11  ;;  %v32566_v58 = vpack.c.b16 %v6174_v36, %v6173_v57  ;;  %v5766_v18 = vadd.f32 %v32054_v40, %v5615_v0  ;;  %24844 = vmatmul.mubr.bf16.gmra.mrb[80].mxu0 %v32558_v32  ;;  %v37936_v32 = vld [vmem:[#allocation332_spill] sm:$0xff] }
 0x4ab   :  { %v5613_v60 = vmax.f32 %v37780_v37, %v5469_v29  ;;  %v5616_v56 = vmax.f32 %v37785_v34, %v5472_v59  ;;  %v37788_v11 = vmax.f32 %v37786_v17, %v37787_v26  ;;  %v6176_v57 = vunpack.c.l.b16 %v32390_v3  ;;  %v37789_v59 = vld [vmem:[#allocation301_spill] sm:$0xff]  ;;  %v37792_v34 = vld [vmem:[#allocation180_spill] sm:$0xff]  ;;  %v37794_v26 = vld [vmem:[#allocation303_spill] sm:$0xff] }
 0x4ac   :  { %37771 = vst [vmem:[#allocation143_spill] sm:$0xff] %v32552_v31  ;;  %37777 = vst [vmem:[#allocation145_spill] sm:$0xff] %v32560_v5  ;;  %24847 = vmatprep.mubr.bf16.mxu0 %v32566_v58  ;;  %v5910_v0 = vmax.f32 %v5766_v18, 0.0  ;;  %v6175_v54 = vunpack.c.h.b16 %v32348_v27  ;;  %v37839_v3 = vld [vmem:[#allocation312_spill] sm:$0xff] }
 0x4ad   :  { %37782 = vst [vmem:[#allocation268_spill] sm:$0xff] %v32566_v58  ;;  %v5764_v48 = vadd.f32 %v32054_v40, %v5613_v60  ;;  %v5614_v42 = vmax.f32 %v37788_v11, %v5470_v39  ;;  %v5767_v29 = vadd.f32 %v32054_v40, %v5616_v56  ;;  %v24725_v7 = vpop.f32.mrb[232].mxu0  ;;  %v37934_v58 = vld [vmem:[#allocation209_spill] sm:$0xff] }
 0x4ae   :  { %v5475_v10 = vmax.f32 %v37789_v59, %v24725_v7  ;;  %v4922_v15 = vpop.f32.mrb[233].mxu0  ;;  %v37796_v7 = vld [vmem:[#allocation42_spill] sm:$0xff]  ;;  %v37797_v59 = vld [vmem:[#allocation181_spill] sm:$0xff] }
 0x4af   :  { %v5765_v36 = vadd.f32 %v32054_v40, %v5614_v42  ;;  %v5911_v28 = vmax.f32 %v5767_v29, 0.0  ;;  %v5908_v37 = vmax.f32 %v5764_v48, 0.0  ;;  %v5473_v39 = vmax.f32 %v37790_v8, %v4922_v15  ;;  %v24726_v44 = vpop.f32.mrb[234].mxu0  ;;  %v37791_v40 = vld [vmem:[#allocation41_spill] sm:$0xff] }
 0x4b0   :  { %v37793_v56 = vmax.f32 %v37791_v40, %v37792_v34  ;;  %v5476_v11 = vmax.f32 %v37794_v26, %v24726_v44  ;;  %v4925_v18 = vpop.f32.mrb[235].mxu0  ;;  %v32592_v42 = vpack.c.b16 %v6176_v57, %v6175_v54  ;;  %v37798_v48 = vmax.f32 %v37796_v7, %v37797_v59  ;;  %v37802_v57 = vld [vmem:[#allocation182_spill] sm:$0xff]  ;;  %v37805_v44 = vld [vmem:[#allocation183_spill] sm:$0xff]  ;;  %v37807_v7 = vld [vmem:[#allocation305_spill] sm:$0xff] }
 0x4b1   :  { %v5909_v60 = vmax.f32 %v5765_v36, 0.0  ;;  %v32586_v13 = vpack.c.bf16 %v5911_v28, %v5910_v0  ;;  %v5474_v15 = vmax.f32 %v37799_v50, %v4925_v18  ;;  %v32600_v8 = vpack.c.b16 %v6182_v38, %v6181_v16  ;;  %v32605_v0 = vld [vmem:[%s36660_s2] ss:$0 sm:$0xff] }
 0x4b2   :  { %v5619_v17 = vmax.f32 %v37793_v56, %v5475_v10  ;;  %37795 = vst [vmem:[#allocation7_spill] sm:$0xff] %v32592_v42  ;;  %v5617_v36 = vmax.f32 %v37798_v48, %v5473_v39  ;;  %v37801_v10 = vld [vmem:[#allocation43_spill] sm:$0xff]  ;;  %24848 = vmatmul.mubr.bf16.gmra.mrb[84].mxu0 %v32592_v42  ;;  %v37804_v39 = vld [vmem:[#allocation44_spill] sm:$0xff]  ;;  %v6184_v40 = vunpack.c.l.b16 %v32479_v33  ;;  %v6186_v26 = vunpack.c.l.b16 %v32471_v23 }
 0x4b3   :  { %v32594_v29 = vpack.c.bf16 %v5909_v60, %v5908_v37  ;;  %37800 = vst [vmem:[#allocation146_spill] sm:$0xff] %v32600_v8  ;;  %v37803_v54 = vmax.f32 %v37801_v10, %v37802_v57  ;;  %v37806_v50 = vmax.f32 %v37804_v39, %v37805_v44  ;;  %24851 = vmatprep.mubr.bf16.mxu0 %v32600_v8  ;;  %v37808_v57 = vld [vmem:[#allocation306_spill] sm:$0xff]  ;;  %v37810_v44 = vld [vmem:[#allocation45_spill] sm:$0xff]  ;;  %v37897_v8 = vld [vmem:[#allocation324_spill] sm:$0xff] }
 0x4b4   :  { %v5770_v28 = vadd.f32 %v32605_v0, %v5619_v17  ;;  %v5768_v60 = vadd.f32 %v32605_v0, %v5617_v36  ;;  %v6185_v17 = vunpack.c.h.b16 %v32479_v33  ;;  %v6183_v36 = vunpack.c.h.b16 %v32427_v35  ;;  %v37916_v42 = vld [vmem:[#allocation328_spill] sm:$0xff] }
 0x4b5   :  { %v5620_v37 = vmax.f32 %v37803_v54, %v5476_v11  ;;  %v5618_v16 = vmax.f32 %v37806_v50, %v5474_v15  ;;  %25179 = vmatprep.mubr.bf16.mxu1 %v32594_v29  ;;  %v24729_v56 = vpop.f32.mrb[236].mxu0  ;;  %v37811_v50 = vld [vmem:[#allocation184_spill] sm:$0xff] }
 0x4b6   :  { %25180 = vmatmul.mubr.bf16.gmra.mrb[32].mxu1 %v32586_v13  ;;  %v5914_v11 = vmax.f32 %v5770_v28, 0.0  ;;  %v5479_v59 = vmax.f32 %v37807_v7, %v24729_v56  ;;  %v4938_v48 = vpop.f32.mrb[237].mxu0  ;;  %v5912_v15 = vmax.f32 %v5768_v60, 0.0  ;;  %v37816_v7 = vld [vmem:[#allocation46_spill] sm:$0xff] }
 0x4b7   :  { %v5771_v38 = vadd.f32 %v32605_v0, %v5620_v37  ;;  %v5769_v34 = vadd.f32 %v32605_v0, %v5618_v16  ;;  %v5477_v54 = vmax.f32 %v37808_v57, %v4938_v48  ;;  %v24730_v37 = vpop.f32.mrb[238].mxu0  ;;  %v37812_v16 = vmax.f32 %v37810_v44, %v37811_v50  ;;  %v37822_v44 = vld [vmem:[#allocation186_spill] sm:$0xff] }
 0x4b8   :  { %v5480_v30 = vmax.f32 %v37813_v46, %v24730_v37  ;;  %v4941_v28 = vpop.f32.mrb[239].mxu0  ;;  %v37818_v60 = vmax.f32 %v37816_v7, %v37817_v62  ;;  %v32641_v57 = vpack.c.b16 %v6186_v26, %v6185_v17  ;;  %v6193_v17 = vunpack.c.h.b16 %v32560_v5 }
 0x4b9   :  { %v5915_v18 = vmax.f32 %v5771_v38, 0.0  ;;  %v5913_v10 = vmax.f32 %v5769_v34, 0.0  ;;  %v5623_v20 = vmax.f32 %v37812_v16, %v5479_v59  ;;  %v32633_v38 = vpack.c.b16 %v6184_v40, %v6183_v36  ;;  %v37824_v40 = vld [vmem:[#allocation48_spill] sm:$0xff]  ;;  %v37825_v36 = vld [vmem:[#allocation187_spill] sm:$0xff]  ;;  %v37827_v16 = vld [vmem:[#allocation309_spill] sm:$0xff] }
 0x4ba   :  { %v5621_v34 = vmax.f32 %v37818_v60, %v5477_v54  ;;  %v5478_v48 = vmax.f32 %v37819_v2, %v4941_v28  ;;  %37820 = vst [vmem:[#allocation270_spill] sm:$0xff] %v32641_v57  ;;  %v6194_v26 = vunpack.c.l.b16 %v32552_v31  ;;  %v6187_v60 = vunpack.c.h.b16 %v32471_v23 }
 0x4bb   :  { %v32627_v39 = vpack.c.bf16 %v5915_v18, %v5914_v11  ;;  %37814 = vst [vmem:[#allocation147_spill] sm:$0xff] %v32633_v38  ;;  %v32635_v56 = vpack.c.bf16 %v5913_v10, %v5912_v15  ;;  %v5774_v11 = vadd.f32 %v32605_v0, %v5623_v20  ;;  %v37821_v18 = vld [vmem:[#allocation47_spill] sm:$0xff]  ;;  %24852 = vmatmul.mubr.bf16.gmra.mrb[88].mxu0 %v32633_v38  ;;  %v6188_v20 = vunpack.c.l.b16 %v32521_v19  ;;  %v37837_v19 = vld [vmem:[#allocation189_spill] sm:$0xff]  ;;  %v37857_v38 = vld [vmem:[#allocation316_spill] sm:$0xff] }
 0x4bc   :  { %v37823_v59 = vmax.f32 %v37821_v18, %v37822_v44  ;;  %v5772_v46 = vadd.f32 %v32605_v0, %v5621_v34  ;;  %v37826_v15 = vmax.f32 %v37824_v40, %v37825_v36  ;;  %24855 = vmatprep.mubr.bf16.mxu0 %v32641_v57  ;;  %v37828_v18 = vld [vmem:[#allocation310_spill] sm:$0xff]  ;;  %v37830_v40 = vld [vmem:[#allocation49_spill] sm:$0xff]  ;;  %v37831_v36 = vld [vmem:[#allocation188_spill] sm:$0xff] }
 0x4bd   :  { %37809 = vst [vmem:[#allocation8_spill] sm:$0xff] %v32627_v39  ;;  %37815 = vst [vmem:[#allocation269_spill] sm:$0xff] %v32635_v56  ;;  %25183 = vmatprep.mubr.bf16.mxu1 %v32635_v56  ;;  %v24733_v62 = vpop.f32.mrb[240].mxu0  ;;  %v5918_v54 = vmax.f32 %v5774_v11, 0.0  ;;  %v37855_v57 = vld [vmem:[#allocation193_spill] sm:$0xff] }
 0x4be   :  { %v5624_v50 = vmax.f32 %v37823_v59, %v5480_v30  ;;  %v5622_v10 = vmax.f32 %v37826_v15, %v5478_v48  ;;  %25184 = vmatmul.mubr.bf16.gmra.mrb[36].mxu1 %v32627_v39  ;;  %v5483_v28 = vmax.f32 %v37827_v16, %v24733_v62  ;;  %v4954_v7 = vpop.f32.mrb[241].mxu0  ;;  %v5916_v34 = vmax.f32 %v5772_v46, 0.0  ;;  %v37833_v39 = vld [vmem:[#allocation311_spill] sm:$0xff]  ;;  %v37836_v16 = vld [vmem:[#allocation50_spill] sm:$0xff] }
 0x4bf   :  { %v5481_v44 = vmax.f32 %v37828_v18, %v4954_v7  ;;  %v24734_v59 = vpop.f32.mrb[242].mxu0  ;;  %v37832_v15 = vmax.f32 %v37830_v40, %v37831_v36  ;;  %v37838_v46 = vmax.f32 %v37836_v16, %v37837_v19  ;;  %v32677_v18 = vpack.c.b16 %v6194_v26, %v6193_v17  ;;  %v37842_v40 = vld [vmem:[#allocation190_spill] sm:$0xff] }
 0x4c0   :  { %v5775_v2 = vadd.f32 %v32605_v0, %v5624_v50  ;;  %v5773_v30 = vadd.f32 %v32605_v0, %v5622_v10  ;;  %v5484_v9 = vmax.f32 %v37833_v39, %v24734_v59  ;;  %v4957_v11 = vpop.f32.mrb[243].mxu0  ;;  %v6196_v19 = vunpack.c.l.b16 %v32594_v29 }
 0x4c1   :  { %v5627_v10 = vmax.f32 %v37832_v15, %v5483_v28  ;;  %v5482_v7 = vmax.f32 %v37839_v3, %v4957_v11  ;;  %37840 = vst [vmem:[#allocation10_spill] sm:$0xff] %v32677_v18 }
 0x4c2   :  { %v5919_v37 = vmax.f32 %v5775_v2, 0.0  ;;  %v5917_v48 = vmax.f32 %v5773_v30, 0.0  ;;  %v32669_v2 = vpack.c.b16 %v6188_v20, %v6187_v60  ;;  %v5625_v30 = vmax.f32 %v37838_v46, %v5481_v44  ;;  %v37844_v20 = vld [vmem:[#allocation52_spill] sm:$0xff]  ;;  %v37845_v60 = vld [vmem:[#allocation191_spill] sm:$0xff] }
 0x4c3   :  { %v6197_v44 = vunpack.c.h.b16 %v32594_v29  ;;  %v6195_v46 = vunpack.c.h.b16 %v32552_v31 }
 0x4c4   :  { %v32663_v50 = vpack.c.bf16 %v5919_v37, %v5918_v54  ;;  %37834 = vst [vmem:[#allocation148_spill] sm:$0xff] %v32669_v2  ;;  %v32671_v62 = vpack.c.bf16 %v5917_v48, %v5916_v34  ;;  %v5778_v54 = vadd.f32 %v32605_v0, %v5627_v10  ;;  %v37841_v37 = vld [vmem:[#allocation51_spill] sm:$0xff]  ;;  %24856 = vmatmul.mubr.bf16.gmra.mrb[92].mxu0 %v32669_v2  ;;  %v37847_v10 = vld [vmem:[#allocation313_spill] sm:$0xff] }
 0x4c5   :  { %v37843_v28 = vmax.f32 %v37841_v37, %v37842_v40  ;;  %v5776_v39 = vadd.f32 %v32605_v0, %v5625_v30  ;;  %v37846_v34 = vmax.f32 %v37844_v20, %v37845_v60  ;;  %24859 = vmatprep.mubr.bf16.mxu0 %v32677_v18  ;;  %v24737_v26 = vpop.f32.mrb[244].mxu0  ;;  %v37848_v37 = vld [vmem:[#allocation314_spill] sm:$0xff]  ;;  %v37849_v20 = vld [vmem:[#allocation53_spill] sm:$0xff]  ;;  %v37850_v60 = vld [vmem:[#allocation192_spill] sm:$0xff] }
 0x4c6   :  { %37829 = vst [vmem:[#allocation9_spill] sm:$0xff] %v32663_v50  ;;  %37835 = vst [vmem:[#allocation271_spill] sm:$0xff] %v32671_v62  ;;  %v5922_v59 = vmax.f32 %v5778_v54, 0.0  ;;  %v5487_v11 = vmax.f32 %v37847_v10, %v24737_v26  ;;  %v4970_v16 = vpop.f32.mrb[245].mxu0  ;;  %v37852_v18 = vld [vmem:[#allocation315_spill] sm:$0xff]  ;;  %v37854_v10 = vld [vmem:[#allocation54_spill] sm:$0xff] }
 0x4c7   :  { %v5628_v36 = vmax.f32 %v37843_v28, %v5484_v9  ;;  %v5626_v48 = vmax.f32 %v37846_v34, %v5482_v7  ;;  %v6198_v9 = vunpack.c.l.b16 %v32586_v13  ;;  %v5920_v30 = vmax.f32 %v5776_v39, 0.0  ;;  %v24738_v28 = vpop.f32.mrb[246].mxu0 }
 0x4c8   :  { %v5485_v40 = vmax.f32 %v37848_v37, %v4970_v16  ;;  %v37851_v34 = vmax.f32 %v37849_v20, %v37850_v60  ;;  %v5488_v2 = vmax.f32 %v37852_v18, %v24738_v28  ;;  %v4973_v54 = vpop.f32.mrb[247].mxu0  ;;  %v37856_v39 = vmax.f32 %v37854_v10, %v37855_v57  ;;  %v37860_v20 = vld [vmem:[#allocation194_spill] sm:$0xff] }
 0x4c9   :  { %v5779_v3 = vadd.f32 %v32605_v0, %v5628_v36  ;;  %v5777_v17 = vadd.f32 %v32605_v0, %v5626_v48  ;;  %v5486_v16 = vmax.f32 %v37857_v38, %v4973_v54  ;;  %v32711_v37 = vpack.c.b16 %v6198_v9, %v6197_v44 }
 0x4ca   :  { %v5631_v48 = vmax.f32 %v37851_v34, %v5487_v11  ;;  %v6200_v57 = vunpack.c.l.b16 %v32635_v56  ;;  %v6205_v9 = vunpack.c.h.b16 %v32671_v62  ;;  %v37871_v56 = vld [vmem:[#allocation319_spill] sm:$0xff] }
 0x4cb   :  { %v5923_v15 = vmax.f32 %v5779_v3, 0.0  ;;  %v5921_v7 = vmax.f32 %v5777_v17, 0.0  ;;  %v32703_v3 = vpack.c.b16 %v6196_v19, %v6195_v46  ;;  %v5629_v17 = vmax.f32 %v37856_v39, %v5485_v40  ;;  %37858 = vst [vmem:[#allocation272_spill] sm:$0xff] %v32711_v37  ;;  %v37862_v19 = vld [vmem:[#allocation56_spill] sm:$0xff]  ;;  %v37863_v46 = vld [vmem:[#allocation195_spill] sm:$0xff] }
 0x4cc   :  { %v6206_v40 = vunpack.c.l.b16 %v32663_v50  ;;  %v6199_v39 = vunpack.c.h.b16 %v32586_v13 }
 0x4cd   :  { %v32697_v36 = vpack.c.bf16 %v5923_v15, %v5922_v59  ;;  %37853 = vst [vmem:[#allocation149_spill] sm:$0xff] %v32703_v3  ;;  %v32705_v26 = vpack.c.bf16 %v5921_v7, %v5920_v30  ;;  %v5782_v59 = vadd.f32 %v32605_v0, %v5631_v48  ;;  %v37859_v15 = vld [vmem:[#allocation55_spill] sm:$0xff]  ;;  %24860 = vmatmul.mubr.bf16.gmra.mrb[96].mxu0 %v32703_v3  ;;  %v24741_v44 = vpop.f32.mrb[248].mxu0  ;;  %v37865_v48 = vld [vmem:[#allocation317_spill] sm:$0xff] }
 0x4ce   :  { %v37861_v11 = vmax.f32 %v37859_v15, %v37860_v20  ;;  %v5780_v18 = vadd.f32 %v32605_v0, %v5629_v17  ;;  %v37864_v30 = vmax.f32 %v37862_v19, %v37863_v46  ;;  %24863 = vmatprep.mubr.bf16.mxu0 %v32711_v37  ;;  %v5491_v54 = vmax.f32 %v37865_v48, %v24741_v44  ;;  %v4986_v10 = vpop.f32.mrb[249].mxu0  ;;  %v37866_v15 = vld [vmem:[#allocation318_spill] sm:$0xff]  ;;  %v37868_v19 = vld [vmem:[#allocation57_spill] sm:$0xff]  ;;  %v37869_v46 = vld [vmem:[#allocation196_spill] sm:$0xff] }
 0x4cf   :  { %25187 = vmatprep.mubr.bf16.mxu1 %v32705_v26  ;;  %v5926_v28 = vmax.f32 %v5782_v59, 0.0  ;;  %v5489_v20 = vmax.f32 %v37866_v15, %v4986_v10  ;;  %v37874_v48 = vld [vmem:[#allocation58_spill] sm:$0xff]  ;;  %v37875_v3 = vld [vmem:[#allocation197_spill] sm:$0xff]  ;;  %v32747_v15 = vpack.c.b16 %v6206_v40, %v6205_v9  ;;  %v6209_v40 = vunpack.c.h.b16 %v32705_v26 }
 0x4d0   :  { %v5632_v60 = vmax.f32 %v37861_v11, %v5488_v2  ;;  %v5630_v7 = vmax.f32 %v37864_v30, %v5486_v16  ;;  %25188 = vmatmul.mubr.bf16.gmra.mrb[40].mxu1 %v32697_v36  ;;  %v5924_v17 = vmax.f32 %v5780_v18, 0.0  ;;  %v24742_v11 = vpop.f32.mrb[250].mxu0  ;;  %v37870_v30 = vmax.f32 %v37868_v19, %v37869_v46  ;;  %v37880_v19 = vld [vmem:[#allocation198_spill] sm:$0xff] }
 0x4d1   :  { %v5492_v37 = vmax.f32 %v37871_v56, %v24742_v11  ;;  %v4989_v59 = vpop.f32.mrb[251].mxu0  ;;  %v37876_v18 = vmax.f32 %v37874_v48, %v37875_v3  ;;  %37878 = vst [vmem:[#allocation151_spill] sm:$0xff] %v32747_v15  ;;  %v6208_v3 = vunpack.c.l.b16 %v32705_v26 }
 0x4d2   :  { %v5783_v38 = vadd.f32 %v32605_v0, %v5632_v60  ;;  %v5781_v2 = vadd.f32 %v32605_v0, %v5630_v7  ;;  %v5635_v7 = vmax.f32 %v37870_v30, %v5491_v54  ;;  %v5490_v10 = vmax.f32 %v37877_v43, %v4989_v59 }
 0x4d4   :  { %v5927_v34 = vmax.f32 %v5783_v38, 0.0  ;;  %v5925_v16 = vmax.f32 %v5781_v2, 0.0  ;;  %v32739_v38 = vpack.c.b16 %v6200_v57, %v6199_v39  ;;  %v5633_v2 = vmax.f32 %v37876_v18, %v5489_v20  ;;  %v37882_v57 = vld [vmem:[#allocation60_spill] sm:$0xff]  ;;  %v37883_v39 = vld [vmem:[#allocation199_spill] sm:$0xff] }
 0x4d5   :  { %v24745_v9 = vpop.f32.mrb[252].mxu0  ;;  %v6210_v20 = vunpack.c.l.b16 %v32697_v36  ;;  %v6207_v18 = vunpack.c.h.b16 %v32663_v50 }
 0x4d6   :  { %v32733_v60 = vpack.c.bf16 %v5927_v34, %v5926_v28  ;;  %37872 = vst [vmem:[#allocation150_spill] sm:$0xff] %v32739_v38  ;;  %v32741_v44 = vpack.c.bf16 %v5925_v16, %v5924_v17  ;;  %v5786_v28 = vadd.f32 %v32605_v0, %v5635_v7  ;;  %v37879_v34 = vld [vmem:[#allocation59_spill] sm:$0xff]  ;;  %24864 = vmatmul.mubr.bf16.gmra.mrb[100].mxu0 %v32739_v38  ;;  %v37885_v7 = vld [vmem:[#allocation321_spill] sm:$0xff]  ;;  %v5002_v48 = vpop.f32.mrb[253].mxu0 }
 0x4d7   :  { %v37881_v54 = vmax.f32 %v37879_v34, %v37880_v19  ;;  %v5784_v56 = vadd.f32 %v32605_v0, %v5633_v2  ;;  %v37884_v17 = vmax.f32 %v37882_v57, %v37883_v39  ;;  %24867 = vmatprep.mubr.bf16.mxu0 %v32747_v15  ;;  %v5495_v59 = vmax.f32 %v37885_v7, %v24745_v9  ;;  %v37886_v34 = vld [vmem:[#allocation322_spill] sm:$0xff]  ;;  %v37888_v57 = vld [vmem:[#allocation61_spill] sm:$0xff]  ;;  %v37889_v39 = vld [vmem:[#allocation200_spill] sm:$0xff] }
 0x4d8   :  { %37867 = vst [vmem:[#allocation11_spill] sm:$0xff] %v32733_v60  ;;  %37873 = vst [vmem:[#allocation12_spill] sm:$0xff] %v32741_v44  ;;  %25191 = vmatprep.mubr.bf16.mxu1 %v32741_v44  ;;  %v5930_v11 = vmax.f32 %v5786_v28, 0.0  ;;  %v5493_v19 = vmax.f32 %v37886_v34, %v5002_v48  ;;  %v37894_v7 = vld [vmem:[#allocation62_spill] sm:$0xff]  ;;  %v37895_v38 = vld [vmem:[#allocation201_spill] sm:$0xff]  ;;  %v32783_v34 = vpack.c.b16 %v6210_v20, %v6209_v40 }
 0x4d9   :  { %v5636_v46 = vmax.f32 %v37881_v54, %v5492_v37  ;;  %v5634_v16 = vmax.f32 %v37884_v17, %v5490_v10  ;;  %25192 = vmatmul.mubr.bf16.gmra.mrb[44].mxu1 %v32733_v60  ;;  %v5928_v2 = vmax.f32 %v5784_v56, 0.0  ;;  %v24746_v54 = vpop.f32.mrb[254].mxu0  ;;  %v37890_v17 = vmax.f32 %v37888_v57, %v37889_v39  ;;  %v37891_v60 = vld [vmem:[#allocation323_spill] sm:$0xff]  ;;  %v37900_v57 = vld [vmem:[#allocation202_spill] sm:$0xff] }
 0x4da   :  { %v5496_v15 = vmax.f32 %v37891_v60, %v24746_v54  ;;  %v5005_v28 = vpop.f32.mrb[255].mxu0  ;;  %v37896_v56 = vmax.f32 %v37894_v7, %v37895_v38  ;;  %37898 = vst [vmem:[#allocation152_spill] sm:$0xff] %v32783_v34  ;;  %v6212_v38 = vunpack.c.l.b16 %v32741_v44  ;;  %v37911_v44 = vld [vmem:[#allocation327_spill] sm:$0xff] }
 0x4db   :  { %v5787_v43 = vadd.f32 %v32605_v0, %v5636_v46  ;;  %v5785_v37 = vadd.f32 %v32605_v0, %v5634_v16  ;;  %v5639_v16 = vmax.f32 %v37890_v17, %v5495_v59  ;;  %v5494_v48 = vmax.f32 %v37897_v8, %v5005_v28 }
 0x4dd   :  { %v5931_v30 = vmax.f32 %v5787_v43, 0.0  ;;  %v5929_v10 = vmax.f32 %v5785_v37, 0.0  ;;  %v32775_v43 = vpack.c.b16 %v6208_v3, %v6207_v18  ;;  %v5637_v37 = vmax.f32 %v37896_v56, %v5493_v19  ;;  %v37902_v3 = vld [vmem:[#allocation64_spill] sm:$0xff]  ;;  %v37903_v18 = vld [vmem:[#allocation203_spill] sm:$0xff]  ;;  %v24749_v20 = vpop.f32.mrb[0].mxu0 }
 0x4de   :  { %v5018_v7 = vpop.f32.mrb[1].mxu0  ;;  %v6211_v56 = vunpack.c.h.b16 %v32697_v36 }
 0x4df   :  { %v32769_v46 = vpack.c.bf16 %v5931_v30, %v5930_v11  ;;  %37892 = vst [vmem:[#allocation274_spill] sm:$0xff] %v32775_v43  ;;  %v32777_v9 = vpack.c.bf16 %v5929_v10, %v5928_v2  ;;  %v5790_v11 = vadd.f32 %v32605_v0, %v5639_v16  ;;  %v37899_v30 = vld [vmem:[#allocation63_spill] sm:$0xff]  ;;  %24868 = vmatmul.mubr.bf16.gmra.mrb[104].mxu0 %v32775_v43  ;;  %v37905_v16 = vld [vmem:[#allocation325_spill] sm:$0xff] }
 0x4e0   :  { %v37901_v59 = vmax.f32 %v37899_v30, %v37900_v57  ;;  %v5788_v60 = vadd.f32 %v32605_v0, %v5637_v37  ;;  %v37904_v2 = vmax.f32 %v37902_v3, %v37903_v18  ;;  %24871 = vmatprep.mubr.bf16.mxu0 %v32783_v34  ;;  %v5499_v28 = vmax.f32 %v37905_v16, %v24749_v20  ;;  %v37906_v30 = vld [vmem:[#allocation326_spill] sm:$0xff]  ;;  %v37908_v3 = vld [vmem:[#allocation65_spill] sm:$0xff]  ;;  %v37909_v18 = vld [vmem:[#allocation204_spill] sm:$0xff] }
 0x4e1   :  { %37887 = vst [vmem:[#allocation273_spill] sm:$0xff] %v32769_v46  ;;  %37893 = vst [vmem:[#allocation13_spill] sm:$0xff] %v32777_v9  ;;  %v6217_v19 = vunpack.c.h.b16 %v32777_v9  ;;  %v5934_v54 = vmax.f32 %v5790_v11, 0.0  ;;  %v5497_v57 = vmax.f32 %v37906_v30, %v5018_v7  ;;  %v37913_v16 = vld [vmem:[#allocation66_spill] sm:$0xff]  ;;  %v37914_v43 = vld [vmem:[#allocation205_spill] sm:$0xff] }
 0x4e2   :  { %v5640_v39 = vmax.f32 %v37901_v59, %v5496_v15  ;;  %v5638_v10 = vmax.f32 %v37904_v2, %v5494_v48  ;;  %v6218_v15 = vunpack.c.l.b16 %v32769_v46  ;;  %v5932_v37 = vmax.f32 %v5788_v60, 0.0  ;;  %v24750_v59 = vpop.f32.mrb[2].mxu0 }
 0x4e3   :  { %v37910_v2 = vmax.f32 %v37908_v3, %v37909_v18  ;;  %v5500_v34 = vmax.f32 %v37911_v44, %v24750_v59  ;;  %v5021_v11 = vpop.f32.mrb[3].mxu0  ;;  %v37915_v60 = vmax.f32 %v37913_v16, %v37914_v43  ;;  %v37919_v3 = vld [vmem:[#allocation206_spill] sm:$0xff] }
 0x4e4   :  { %v5791_v8 = vadd.f32 %v32605_v0, %v5640_v39  ;;  %v5789_v40 = vadd.f32 %v32605_v0, %v5638_v10  ;;  %v5498_v7 = vmax.f32 %v37916_v42, %v5021_v11  ;;  %v32817_v30 = vpack.c.b16 %v6218_v15, %v6217_v19 }
 0x4e5   :  { %v5643_v10 = vmax.f32 %v37910_v2, %v5499_v28  ;;  %v24753_v19 = vpop.f32.mrb[4].mxu0 }
 0x4e6   :  { %v5935_v17 = vmax.f32 %v5791_v8, 0.0  ;;  %v5933_v48 = vmax.f32 %v5789_v40, 0.0  ;;  %v32809_v8 = vpack.c.b16 %v6212_v38, %v6211_v56  ;;  %v5641_v40 = vmax.f32 %v37915_v60, %v5497_v57  ;;  %37917 = vst [vmem:[#allocation153_spill] sm:$0xff] %v32817_v30  ;;  %v37921_v38 = vld [vmem:[#allocation68_spill] sm:$0xff]  ;;  %v37922_v56 = vld [vmem:[#allocation207_spill] sm:$0xff]  ;;  %v5034_v16 = vpop.f32.mrb[5].mxu0 }
 0x4e7   :  { %v6219_v60 = vunpack.c.h.b16 %v32769_v46 }
 0x4e8   :  { %v32803_v39 = vpack.c.bf16 %v5935_v17, %v5934_v54  ;;  %37912 = vst [vmem:[#allocation14_spill] sm:$0xff] %v32809_v8  ;;  %v32811_v20 = vpack.c.bf16 %v5933_v48, %v5932_v37  ;;  %v5794_v54 = vadd.f32 %v32605_v0, %v5643_v10  ;;  %v37918_v17 = vld [vmem:[#allocation67_spill] sm:$0xff]  ;;  %24872 = vmatmul.mubr.bf16.gmra.mrb[108].mxu0 %v32809_v8  ;;  %v37924_v10 = vld [vmem:[#allocation329_spill] sm:$0xff] }
 0x4e9   :  { %v37920_v28 = vmax.f32 %v37918_v17, %v37919_v3  ;;  %v5792_v44 = vadd.f32 %v32605_v0, %v5641_v40  ;;  %v37923_v37 = vmax.f32 %v37921_v38, %v37922_v56  ;;  %24875 = vmatprep.mubr.bf16.mxu0 %v32817_v30  ;;  %v5503_v11 = vmax.f32 %v37924_v10, %v24753_v19  ;;  %v37925_v17 = vld [vmem:[#allocation330_spill] sm:$0xff]  ;;  %v37927_v38 = vld [vmem:[#allocation69_spill] sm:$0xff]  ;;  %v37928_v56 = vld [vmem:[#allocation208_spill] sm:$0xff] }
 0x4ea   :  { %37907 = vst [vmem:[#allocation275_spill] sm:$0xff] %v32803_v39  ;;  %25195 = vmatprep.mubr.bf16.mxu1 %v32811_v20  ;;  %v6220_v43 = vunpack.c.l.b16 %v32811_v20  ;;  %v6221_v15 = vunpack.c.h.b16 %v32811_v20  ;;  %v6222_v57 = vunpack.c.l.b16 %v32803_v39  ;;  %v5938_v59 = vmax.f32 %v5794_v54, 0.0  ;;  %v37930_v30 = vld [vmem:[#allocation331_spill] sm:$0xff]  ;;  %v37933_v10 = vld [vmem:[#allocation70_spill] sm:$0xff] }
 0x4eb   :  { %v5644_v18 = vmax.f32 %v37920_v28, %v5500_v34  ;;  %v5642_v48 = vmax.f32 %v37923_v37, %v5498_v7  ;;  %25196 = vmatmul.mubr.bf16.gmra.mrb[48].mxu1 %v32803_v39  ;;  %v5936_v40 = vmax.f32 %v5792_v44, 0.0  ;;  %v5501_v3 = vmax.f32 %v37925_v17, %v5034_v16  ;;  %v24754_v28 = vpop.f32.mrb[6].mxu0 }
 0x4ec   :  { %v37929_v37 = vmax.f32 %v37927_v38, %v37928_v56  ;;  %v5504_v8 = vmax.f32 %v37930_v30, %v24754_v28  ;;  %v5037_v54 = vpop.f32.mrb[7].mxu0  ;;  %v37935_v44 = vmax.f32 %v37933_v10, %v37934_v58  ;;  %v32853_v17 = vpack.c.b16 %v6222_v57, %v6221_v15  ;;  %v37939_v38 = vld [vmem:[#allocation210_spill] sm:$0xff] }
 0x4ed   :  { %v5795_v42 = vadd.f32 %v32605_v0, %v5644_v18  ;;  %v5793_v34 = vadd.f32 %v32605_v0, %v5642_v48  ;;  %v5502_v16 = vmax.f32 %v37936_v32, %v5037_v54  ;;  %v24757_v15 = vpop.f32.mrb[8].mxu0  ;;  %v32873_v57 = vld [vmem:[%s36659_s3 + $0x80] sm:$0xff]   ;;  %v6223_v10 = vunpack.c.h.b16 %v32803_v39 }
 0x4ee   :  { %v5647_v48 = vmax.f32 %v37929_v37, %v5503_v11  ;;  %37937 = vst [vmem:[#allocation16_spill] sm:$0xff] %v32853_v17  ;;  %v37944_v37 = vld [vmem:[#allocation333_spill] sm:$0xff]  ;;  %v5050_v54 = vpop.f32.mrb[9].mxu0  ;;  %24971 = vmatprep.subr.bf16.mxu0 %v32873_v57 }
 0x4ef   :  { %v5939_v2 = vmax.f32 %v5795_v42, 0.0  ;;  %v5937_v7 = vmax.f32 %v5793_v34, 0.0  ;;  %v32845_v42 = vpack.c.b16 %v6220_v43, %v6219_v60  ;;  %v5645_v34 = vmax.f32 %v37935_v44, %v5501_v3  ;;  %v37941_v43 = vld [vmem:[#allocation72_spill] sm:$0xff]  ;;  %v37942_v60 = vld [vmem:[#allocation211_spill] sm:$0xff] }
 0x4f1   :  { %v32839_v18 = vpack.c.bf16 %v5939_v2, %v5938_v59  ;;  %37931 = vst [vmem:[#allocation15_spill] sm:$0xff] %v32845_v42  ;;  %v32847_v19 = vpack.c.bf16 %v5937_v7, %v5936_v40  ;;  %v5798_v59 = vadd.f32 %v32605_v0, %v5647_v48  ;;  %v37938_v2 = vld [vmem:[#allocation71_spill] sm:$0xff]  ;;  %24876 = vmatmul.mubr.bf16.gmra.mrb[112].mxu0 %v32845_v42 }
 0x4f2   :  { %v37940_v11 = vmax.f32 %v37938_v2, %v37939_v38  ;;  %v5796_v30 = vadd.f32 %v32605_v0, %v5645_v34  ;;  %v37943_v40 = vmax.f32 %v37941_v43, %v37942_v60  ;;  %24879 = vmatprep.mubr.bf16.mxu0 %v32853_v17  ;;  %v5507_v48 = vmax.f32 %v37944_v37, %v24757_v15  ;;  %v24758_v38 = vpop.f32.mrb[10].mxu0  ;;  %v37948_v43 = vld [vmem:[#allocation212_spill] sm:$0xff]  ;;  %v37958_v17 = vld [vmem:[#allocation214_spill] sm:$0xff] }
 0x4f3   :  { %37926 = vst [vmem:[#allocation276_spill] sm:$0xff] %v32839_v18  ;;  %37932 = vst [vmem:[#allocation154_spill] sm:$0xff] %v32847_v19  ;;  %25199 = vmatprep.mubr.bf16.mxu1 %v32847_v19  ;;  %v6224_v58 = vunpack.c.l.b16 %v32847_v19  ;;  %v5942_v3 = vmax.f32 %v5798_v59, 0.0  ;;  %v37950_v59 = vld [vmem:[#allocation335_spill] sm:$0xff] }
 0x4f4   :  { %v5648_v56 = vmax.f32 %v37940_v11, %v5504_v8  ;;  %v5646_v7 = vmax.f32 %v37943_v40, %v5502_v16  ;;  %25200 = vmatmul.mubr.bf16.gmra.mrb[52].mxu1 %v32839_v18  ;;  %v5940_v44 = vmax.f32 %v5796_v30, 0.0  ;;  %v37945_v16 = vld [vmem:[#allocation334_spill] sm:$0xff] }
 0x4f5   :  { %v5505_v2 = vmax.f32 %v37945_v16, %v5050_v54  ;;  %v32885_v15 = vpack.c.b16 %v6224_v58, %v6223_v10  ;;  %v37953_v30 = vld [vmem:[#allocation74_spill] sm:$0xff]  ;;  %v37956_v16 = vld [vmem:[#allocation336_spill] sm:$0xff] }
 0x4f6   :  { %v5799_v32 = vadd.f32 %v32605_v0, %v5648_v56  ;;  %v5797_v8 = vadd.f32 %v32605_v0, %v5646_v7  ;;  %v37947_v56 = vld [vmem:[#allocation73_spill] sm:$0xff]  ;;  %v5508_v7 = vmax.f32 %v37950_v59, %v24758_v38  ;;  %v37960_v10 = vld [vmem:[#allocation76_spill] sm:$0xff] }
 0x4f7   :  { %v37949_v60 = vmax.f32 %v37947_v56, %v37948_v43  ;;  %37951 = vst [vmem:[#allocation277_spill] sm:$0xff] %v32885_v15  ;;  %v37964_v59 = vld [vmem:[#allocation337_spill] sm:$0xff] }
 0x4f8   :  { %v5943_v28 = vmax.f32 %v5799_v32, 0.0  ;;  %v5941_v34 = vmax.f32 %v5797_v8, 0.0  ;;  %v5053_v32 = vpop.f32.mrb[11].mxu0  ;;  %v37954_v8 = vld [vmem:[#allocation213_spill] sm:$0xff] }
 0x4f9   :  { %v5651_v40 = vmax.f32 %v37949_v60, %v5507_v48  ;;  %v37955_v18 = vmax.f32 %v37953_v30, %v37954_v8  ;;  %v5506_v19 = vmax.f32 %v37956_v16, %v5053_v32  ;;  %24880 = vmatmul.mubr.bf16.gmra.mrb[116].mxu0 %v32885_v15  ;;  %v24761_v60 = vpop.f32.mrb[12].mxu0 }
 0x4fa   :  { %v32879_v11 = vpack.c.bf16 %v5943_v28, %v5942_v3  ;;  %v32887_v37 = vpack.c.bf16 %v5941_v34, %v5940_v44  ;;  %v37957_v28 = vld [vmem:[#allocation75_spill] sm:$0xff]  ;;  %v5066_v32 = vpop.f32.mrb[13].mxu0 }
 0x4fb   :  { %v5649_v54 = vmax.f32 %v37955_v18, %v5505_v2  ;;  %v5802_v3 = vadd.f32 %v32605_v0, %v5651_v40  ;;  %v37959_v42 = vmax.f32 %v37957_v28, %v37958_v17  ;;  %v37961_v44 = vld [vmem:[#allocation215_spill] sm:$0xff]  ;;  %v24762_v28 = vpop.f32.mrb[14].mxu0 }
 0x4fc   :  { %37946 = vst [vmem:[#allocation155_spill] sm:$0xff] %v32879_v11  ;;  %37952 = vst [vmem:[#allocation278_spill] sm:$0xff] %v32887_v37  ;;  %v6230_v48 = vunpack.c.l.b16 %v32879_v11  ;;  %v37962_v34 = vmax.f32 %v37960_v10, %v37961_v44  ;;  %v6229_v18 = vunpack.c.h.b16 %v32887_v37  ;;  %v37968_v10 = vld [vmem:[#allocation216_spill] sm:$0xff] }
 0x4fd   :  { %v5652_v56 = vmax.f32 %v37959_v42, %v5508_v7  ;;  %v5800_v58 = vadd.f32 %v32605_v0, %v5649_v54  ;;  %v5946_v42 = vmax.f32 %v5802_v3, 0.0  ;;  %v5511_v7 = vmax.f32 %v37964_v59, %v24761_v60  ;;  %v37965_v54 = vld [vmem:[#allocation338_spill] sm:$0xff]  ;;  %v5069_v3 = vpop.f32.mrb[15].mxu0  ;;  %v37972_v60 = vld [vmem:[#allocation217_spill] sm:$0xff]  ;;  %v37974_v59 = vld [vmem:[#allocation340_spill] sm:$0xff] }
 0x4fe   :  { %v5650_v38 = vmax.f32 %v37962_v34, %v5506_v19  ;;  %v32906_v40 = vpack.c.b16 %v6230_v48, %v6229_v18  ;;  %v5509_v16 = vmax.f32 %v37965_v54, %v5066_v32  ;;  %v37970_v48 = vld [vmem:[#allocation339_spill] sm:$0xff]  ;;  %v5510_v32 = vmax.f32 %v37974_v59, %v5069_v3 }
 0x4ff   :  { %v5803_v2 = vadd.f32 %v32605_v0, %v5652_v56  ;;  %v5944_v30 = vmax.f32 %v5800_v58, 0.0  ;;  %v37967_v56 = vld [vmem:[#allocation77_spill] sm:$0xff] }
 0x500   :  { %v5801_v43 = vadd.f32 %v32605_v0, %v5650_v38  ;;  %37963 = vst [vmem:[#allocation17_spill] sm:$0xff] %v32906_v40  ;;  %24883 = vmatprep.mubr.bf16.mxu0 %v32906_v40  ;;  %v37969_v44 = vmax.f32 %v37967_v56, %v37968_v10  ;;  %v5512_v38 = vmax.f32 %v37970_v48, %v24762_v28  ;;  %v37975_v40 = vld [vmem:[#allocation79_spill] sm:$0xff]  ;;  %v6231_v56 = vunpack.c.h.b16 %v32879_v11 }
 0x501   :  { %v5947_v17 = vmax.f32 %v5803_v2, 0.0  ;;  %v37971_v2 = vld [vmem:[#allocation78_spill] sm:$0xff] }
 0x502   :  { %v5945_v8 = vmax.f32 %v5801_v43, 0.0  ;;  %v5655_v34 = vmax.f32 %v37969_v44, %v5511_v7  ;;  %v37973_v58 = vmax.f32 %v37971_v2, %v37972_v60 }
 0x503   :  { %v32911_v19 = vpack.c.bf16 %v5947_v17, %v5946_v42  ;;  %v37976_v42 = vld [vmem:[#allocation218_spill] sm:$0xff] }
 0x504   :  { %v32917_v18 = vpack.c.bf16 %v5945_v8, %v5944_v30  ;;  %v5653_v43 = vmax.f32 %v37973_v58, %v5509_v16  ;;  %v5806_v54 = vadd.f32 %v32605_v0, %v5655_v34  ;;  %v37977_v17 = vmax.f32 %v37975_v40, %v37976_v42  ;;  %v37978_v30 = vld [vmem:[#allocation80_spill] sm:$0xff]  ;;  %v37979_v8 = vld [vmem:[#allocation219_spill] sm:$0xff] }
 0x505   :  { %37966 = vst [vmem:[#allocation156_spill] sm:$0xff] %v32911_v19  ;;  %v6234_v7 = vunpack.c.l.b16 %v32911_v19  ;;  %v37980_v10 = vmax.f32 %v37978_v30, %v37979_v8  ;;  %v37984_v30 = vld [vmem:[#allocation342_spill] sm:$0xff] }
 0x506   :  { %v5656_v15 = vmax.f32 %v37977_v17, %v5512_v38  ;;  %v5804_v28 = vadd.f32 %v32605_v0, %v5653_v43  ;;  %25203 = vmatprep.mubr.bf16.mxu1 %v32917_v18  ;;  %v6232_v16 = vunpack.c.l.b16 %v32917_v18  ;;  %v6233_v34 = vunpack.c.h.b16 %v32917_v18  ;;  %v24765_v38 = vpop.f32.mrb[16].mxu0  ;;  %v37983_v43 = vld [vmem:[#allocation341_spill] sm:$0xff] }
 0x507   :  { %v5654_v44 = vmax.f32 %v37980_v10, %v5510_v32  ;;  %25204 = vmatmul.mubr.bf16.gmra.mrb[56].mxu1 %v32911_v19  ;;  %v5950_v60 = vmax.f32 %v5806_v54, 0.0  ;;  %v5515_v59 = vmax.f32 %v37983_v43, %v24765_v38  ;;  %v5082_v32 = vpop.f32.mrb[17].mxu0 }
 0x508   :  { %v5807_v48 = vadd.f32 %v32605_v0, %v5656_v15  ;;  %v32939_v3 = vpack.c.b16 %v6232_v16, %v6231_v56  ;;  %v32941_v2 = vpack.c.b16 %v6234_v7, %v6233_v34  ;;  %v5948_v42 = vmax.f32 %v5804_v28, 0.0  ;;  %v24766_v10 = vpop.f32.mrb[18].mxu0  ;;  %v37989_v7 = vld [vmem:[#allocation343_spill] sm:$0xff]  ;;  %v37991_v28 = vld [vmem:[#allocation82_spill] sm:$0xff] }
 0x509   :  { %v5805_v40 = vadd.f32 %v32605_v0, %v5654_v44  ;;  %v5513_v8 = vmax.f32 %v37984_v30, %v5082_v32  ;;  %v37986_v44 = vld [vmem:[#allocation81_spill] sm:$0xff]  ;;  %v5516_v34 = vmax.f32 %v37989_v7, %v24766_v10  ;;  %v5085_v54 = vpop.f32.mrb[19].mxu0  ;;  %v37994_v32 = vld [vmem:[#allocation344_spill] sm:$0xff] }
 0x50a   :  { %37981 = vst [vmem:[#allocation279_spill] sm:$0xff] %v32939_v3  ;;  %37982 = vst [vmem:[#allocation18_spill] sm:$0xff] %v32941_v2  ;;  %v5951_v58 = vmax.f32 %v5807_v48, 0.0  ;;  %24884 = vmatmul.mubr.bf16.gmra.mrb[120].mxu0 %v32939_v3  ;;  %v37988_v56 = vmax.f32 %v37986_v44, %v37987_v52  ;;  %v5514_v30 = vmax.f32 %v37994_v32, %v5085_v54  ;;  %v37996_v3 = vld [vmem:[#allocation222_spill] sm:$0xff]  ;;  %v37998_v10 = vld [vmem:[#allocation84_spill] sm:$0xff] }
 0x50b   :  { %v5949_v17 = vmax.f32 %v5805_v40, 0.0  ;;  %24887 = vmatprep.mubr.bf16.mxu0 %v32941_v2  ;;  %v37992_v40 = vld [vmem:[#allocation221_spill] sm:$0xff]  ;;  %v37999_v44 = vld [vmem:[#allocation223_spill] sm:$0xff] }
 0x50c   :  { %v32946_v15 = vpack.c.bf16 %v5951_v58, %v5950_v60  ;;  %v5659_v16 = vmax.f32 %v37988_v56, %v5515_v59  ;;  %v37993_v38 = vmax.f32 %v37991_v28, %v37992_v40  ;;  %v37995_v58 = vld [vmem:[#allocation83_spill] sm:$0xff]  ;;  %v38000_v56 = vmax.f32 %v37998_v10, %v37999_v44  ;;  %v38002_v28 = vld [vmem:[#allocation345_spill] sm:$0xff] }
 0x50d   :  { %v32953_v48 = vpack.c.bf16 %v5949_v17, %v5948_v42  ;;  %v37997_v45 = vmax.f32 %v37995_v58, %v37996_v3  ;;  %v6235_v42 = vunpack.c.h.b16 %v32911_v19  ;;  %v24769_v3 = vpop.f32.mrb[20].mxu0  ;;  %v38005_v44 = vld [vmem:[#allocation85_spill] sm:$0xff] }
 0x50e   :  { %37985 = vst [vmem:[#allocation157_spill] sm:$0xff] %v32946_v15  ;;  %v5657_v43 = vmax.f32 %v37993_v38, %v5513_v8  ;;  %v5810_v60 = vadd.f32 %v32605_v0, %v5659_v16  ;;  %v5658_v7 = vmax.f32 %v38000_v56, %v5514_v30  ;;  %v5519_v40 = vmax.f32 %v38002_v28, %v24769_v3  ;;  %v5098_v38 = vpop.f32.mrb[21].mxu0  ;;  %v38003_v30 = vld [vmem:[#allocation346_spill] sm:$0xff]  ;;  %v38006_v56 = vld [vmem:[#allocation224_spill] sm:$0xff] }
 0x50f   :  { %37990 = vst [vmem:[#allocation280_spill] sm:$0xff] %v32953_v48  ;;  %v5660_v52 = vmax.f32 %v37997_v45, %v5516_v34  ;;  %25207 = vmatprep.mubr.bf16.mxu1 %v32953_v48  ;;  %v6236_v17 = vunpack.c.l.b16 %v32953_v48  ;;  %v5517_v58 = vmax.f32 %v38003_v30, %v5098_v38  ;;  %v24770_v10 = vpop.f32.mrb[22].mxu0  ;;  %v38013_v38 = vld [vmem:[#allocation348_spill] sm:$0xff]  ;;  %v38015_v48 = vld [vmem:[#allocation226_spill] sm:$0xff] }
 0x510   :  { %v5808_v59 = vadd.f32 %v32605_v0, %v5657_v43  ;;  %25208 = vmatmul.mubr.bf16.gmra.mrb[60].mxu1 %v32946_v15  ;;  %v5809_v16 = vadd.f32 %v32605_v0, %v5658_v7  ;;  %v5954_v34 = vmax.f32 %v5810_v60, 0.0  ;;  %v38007_v7 = vmax.f32 %v38005_v44, %v38006_v56  ;;  %v5101_v60 = vpop.f32.mrb[23].mxu0 }
 0x511   :  { %v5811_v8 = vadd.f32 %v32605_v0, %v5660_v52  ;;  %25227 = vmatprep.mubr.bf16.mxu1 %v32211_v6  ;;  %v32974_v45 = vpack.c.b16 %v6236_v17, %v6235_v42  ;;  %v38008_v42 = vld [vmem:[#allocation347_spill] sm:$0xff]  ;;  %v5518_v30 = vmax.f32 %v38013_v38, %v5101_v60 }
 0x512   :  { %v5952_v43 = vmax.f32 %v5808_v59, 0.0  ;;  %v5953_v32 = vmax.f32 %v5809_v16, 0.0  ;;  %v5663_v15 = vmax.f32 %v38007_v7, %v5519_v40  ;;  %v5520_v17 = vmax.f32 %v38008_v42, %v24770_v10  ;;  %v38010_v59 = vld [vmem:[#allocation86_spill] sm:$0xff]  ;;  %v38011_v16 = vld [vmem:[#allocation225_spill] sm:$0xff]  ;;  %v28731_v40 = vld [vmem:[%s36659_s3 + $0x188] sm:$0xff]  }
 0x513   :  { %38001 = vst [vmem:[#allocation19_spill] sm:$0xff] %v32974_v45  ;;  %v5955_v54 = vmax.f32 %v5811_v8, 0.0  ;;  %24888 = vmatmul.mubr.bf16.gmra.mrb[124].mxu0 %v32974_v45  ;;  %v38012_v3 = vmax.f32 %v38010_v59, %v38011_v16  ;;  %v28732_v16 = vld [vmem:[%s36659_s3 + $0x190] sm:$0xff]  }
 0x514   :  { %24907 = vmatprep.mubr.bf16.mxu0 %v32098_v12  ;;  %v32986_v8 = vpack.c.bf16 %v5953_v32, %v5952_v43  ;;  %v38017_v43 = vld [vmem:[#allocation88_spill] sm:$0xff]  ;;  %v38018_v32 = vld [vmem:[#allocation227_spill] sm:$0xff] }
 0x515   :  { %v32979_v52 = vpack.c.bf16 %v5955_v54, %v5954_v34  ;;  %v5661_v28 = vmax.f32 %v38012_v3, %v5517_v58  ;;  %v5814_v34 = vadd.f32 %v32605_v0, %v5663_v15  ;;  %v38014_v54 = vld [vmem:[#allocation87_spill] sm:$0xff]  ;;  %v38019_v10 = vmax.f32 %v38017_v43, %v38018_v32 }
 0x516   :  { %38009 = vst [vmem:[#allocation20_spill] sm:$0xff] %v32986_v8  ;;  %v38016_v45 = vmax.f32 %v38014_v54, %v38015_v48  ;;  %v24773_v48 = vpop.f32.mrb[24].mxu0 }
 0x517   :  { %38004 = vst [vmem:[#allocation158_spill] sm:$0xff] %v32979_v52  ;;  %v5812_v12 = vadd.f32 %v32605_v0, %v5661_v28  ;;  %v5662_v56 = vmax.f32 %v38019_v10, %v5518_v30  ;;  %v5958_v7 = vmax.f32 %v5814_v34, 0.0  ;;  %v5114_v59 = vpop.f32.mrb[25].mxu0  ;;  %v38023_v34 = vld [vmem:[#allocation228_spill] sm:$0xff]  ;;  %v38025_v10 = vld [vmem:[#allocation351_spill] sm:$0xff] }
 0x518   :  { %v5664_v44 = vmax.f32 %v38016_v45, %v5520_v17  ;;  %25228 = vmatmul.mubr.bf16.vlgmr.msra.gmra.mrb[0].mxu1 %v32205_v25  ;;  %v28738_v45 = vld [vmem:[%s36659_s3 + $0x88] sm:$0xff]   ;;  %v38020_v17 = vld [vmem:[#allocation349_spill] sm:$0xff]  ;;  %v24774_v30 = vpop.f32.mrb[26].mxu0 }
 0x519   :  { %v5813_v15 = vadd.f32 %v32605_v0, %v5662_v56  ;;  %25292 = vmatpush3.bf16.msra.mxu1 %v32447_v22  ;;  %25231 = vmatprep.mubr.bf16.mxu1 %v32246_v61  ;;  %v5523_v60 = vmax.f32 %v38020_v17, %v24773_v48  ;;  %v5956_v3 = vmax.f32 %v5812_v12, 0.0  ;;  %v38021_v22 = vld [vmem:[#allocation350_spill] sm:$0xff]  ;;  %v5524_v56 = vmax.f32 %v38025_v10, %v24774_v30  ;;  %v38027_v48 = vld [vmem:[#allocation229_spill] sm:$0xff] }
 0x51a   :  { %v5815_v58 = vadd.f32 %v32605_v0, %v5664_v44  ;;  %25293 = vmatprep.subr.bf16.mxu1 %v28731_v40  ;;  %v5521_v38 = vmax.f32 %v38021_v22, %v5114_v59  ;;  %v38022_v44 = vld [vmem:[#allocation89_spill] sm:$0xff]  ;;  %v38029_v22 = vld [vmem:[#allocation352_spill] sm:$0xff] }
 0x51b   :  { %v5957_v28 = vmax.f32 %v5813_v15, 0.0  ;;  %24908 = vmatmul.mubr.bf16.vlgmr.msra.gmra.mrb[64].mxu0 %v32092_v24  ;;  %v38024_v43 = vmax.f32 %v38022_v44, %v38023_v34  ;;  %v38026_v15 = vld [vmem:[#allocation90_spill] sm:$0xff] }
 0x51c   :  { %v5959_v42 = vmax.f32 %v5815_v58, 0.0  ;;  %v5117_v58 = vpop.f32.mrb[27].mxu0  ;;  %24911 = vmatprep.mubr.bf16.mxu0 %v32130_v49  ;;  %24972 = vmatpush3.bf16.msra.mxu0 %v32873_v57  ;;  %v38028_v17 = vmax.f32 %v38026_v15, %v38027_v48  ;;  %v38031_v44 = vld [vmem:[#allocation230_spill] sm:$0xff]  ;;  %v28733_v57 = vld [vmem:[%s36659_s3 + $0x198] sm:$0xff]  }
 0x51d   :  { %v5667_v32 = vmax.f32 %v38024_v43, %v5523_v60  ;;  %v33025_v12 = vpack.c.bf16 %v5957_v28, %v5956_v3  ;;  %25294 = vmatpush3.bf16.msra.mxu1 %v28731_v40  ;;  %24973 = vmatprep.subr.bf16.mxu0 %v28738_v45  ;;  %v38030_v60 = vld [vmem:[#allocation91_spill] sm:$0xff]  ;;  %v28739_v3 = vld [vmem:[%s36659_s3 + $0x90] sm:$0xff]   ;;  %v28740_v15 = vld [vmem:[%s36659_s3 + $0x98] sm:$0xff]  }
 0x51e   :  { %v33017_v54 = vpack.c.bf16 %v5959_v42, %v5958_v7  ;;  %v5665_v59 = vmax.f32 %v38028_v17, %v5521_v38  ;;  %v5522_v7 = vmax.f32 %v38029_v22, %v5117_v58  ;;  %v38032_v30 = vmax.f32 %v38030_v60, %v38031_v44  ;;  %25295 = vmatprep.subr.bf16.mxu1 %v28732_v16  ;;  %v38033_v38 = vld [vmem:[#allocation92_spill] sm:$0xff]  ;;  %v38034_v40 = vld [vmem:[#allocation231_spill] sm:$0xff]  ;;  %v24777_v58 = vpop.f32.mrb[28].mxu0 }
 0x51f   :  { %v5818_v42 = vadd.f32 %v32605_v0, %v5667_v32  ;;  %v38035_v43 = vmax.f32 %v38033_v38, %v38034_v40  ;;  %v38040_v40 = vld [vmem:[#allocation232_spill] sm:$0xff] }
 0x520   :  { %v5668_v34 = vmax.f32 %v38032_v30, %v5524_v56  ;;  %v5816_v28 = vadd.f32 %v32605_v0, %v5665_v59  ;;  %25232 = vmatmul.mubr.bf16.gmra.mrb[4].mxu1 %v32240_v63  ;;  %24974 = vmatpush3.bf16.msra.mxu0 %v28738_v45  ;;  %v38036_v59 = vld [vmem:[#allocation353_spill] sm:$0xff]  ;;  %v28734_v45 = vld [vmem:[%s36659_s3 + $0x1a0] sm:$0xff]  }
 0x521   :  { %v5666_v10 = vmax.f32 %v38035_v43, %v5522_v7  ;;  %25235 = vmatprep.mubr.bf16.mxu1 %v32323_v55  ;;  %25296 = vmatpush3.bf16.msra.mxu1 %v28732_v16  ;;  %v5962_v48 = vmax.f32 %v5818_v42, 0.0  ;;  %v5527_v22 = vmax.f32 %v38036_v59, %v24777_v58  ;;  %v5130_v7 = vpop.f32.mrb[29].mxu0  ;;  %v38037_v30 = vld [vmem:[#allocation354_spill] sm:$0xff]  ;;  %v38039_v42 = vld [vmem:[#allocation93_spill] sm:$0xff] }
 0x522   :  { %v5819_v32 = vadd.f32 %v32605_v0, %v5668_v34  ;;  %25297 = vmatprep.subr.bf16.mxu1 %v28733_v57  ;;  %24975 = vmatprep.subr.bf16.mxu0 %v28739_v3  ;;  %v5960_v60 = vmax.f32 %v5816_v28, 0.0  ;;  %v5525_v34 = vmax.f32 %v38037_v30, %v5130_v7  ;;  %v24778_v16 = vpop.f32.mrb[30].mxu0  ;;  %v38041_v43 = vmax.f32 %v38039_v42, %v38040_v40  ;;  %v38043_v28 = vld [vmem:[#allocation94_spill] sm:$0xff] }
 0x523   :  { %v5817_v56 = vadd.f32 %v32605_v0, %v5666_v10  ;;  %24912 = vmatmul.mubr.bf16.gmra.mrb[68].mxu0 %v32124_v51  ;;  %v5133_v59 = vpop.f32.mrb[31].mxu0 }
 0x524   :  { %v5963_v17 = vmax.f32 %v5819_v32, 0.0  ;;  %v5671_v10 = vmax.f32 %v38041_v43, %v5527_v22  ;;  %v38042_v32 = vld [vmem:[#allocation355_spill] sm:$0xff]  ;;  %24915 = vmatprep.mubr.bf16.mxu0 %v32211_v6  ;;  %24976 = vmatpush3.bf16.msra.mxu0 %v28739_v3  ;;  %v5526_v51 = vmax.f32 %v38046_v1, %v5133_v59  ;;  %v38048_v22 = vld [vmem:[#allocation234_spill] sm:$0xff]  ;;  %v38050_v1 = vld [vmem:[#allocation96_spill] sm:$0xff] }
 0x525   :  { %v5961_v44 = vmax.f32 %v5817_v56, 0.0  ;;  %v5528_v58 = vmax.f32 %v38042_v32, %v24778_v16  ;;  %v38044_v56 = vld [vmem:[#allocation233_spill] sm:$0xff]  ;;  %25298 = vmatpush3.bf16.msra.mxu1 %v28733_v57  ;;  %24977 = vmatprep.subr.bf16.mxu0 %v28740_v15  ;;  %v28735_v6 = vld [vmem:[%s36659_s3 + $0x1a8] sm:$0xff]   ;;  %v28742_v3 = vld [vmem:[%s36659_s3 + $0xa0] sm:$0xff]  }
 0x526   :  { %v33058_v38 = vpack.c.bf16 %v5963_v17, %v5962_v48  ;;  %v38045_v7 = vmax.f32 %v38043_v28, %v38044_v56  ;;  %v5822_v48 = vadd.f32 %v32605_v0, %v5671_v10  ;;  %v38047_v17 = vld [vmem:[#allocation95_spill] sm:$0xff]  ;;  %25299 = vmatprep.subr.bf16.mxu1 %v28734_v45  ;;  %v24781_v10 = vpop.f32.mrb[32].mxu0  ;;  %v38053_v28 = vld [vmem:[#allocation357_spill] sm:$0xff] }
 0x527   :  { %v33065_v2 = vpack.c.bf16 %v5961_v44, %v5960_v60  ;;  %v38049_v42 = vmax.f32 %v38047_v17, %v38048_v22  ;;  %v38051_v57 = vld [vmem:[#allocation235_spill] sm:$0xff]  ;;  %v5531_v56 = vmax.f32 %v38053_v28, %v24781_v10  ;;  %v38054_v17 = vld [vmem:[#allocation358_spill] sm:$0xff] }
 0x528   :  { %38038 = vst [vmem:[#allocation159_spill] sm:$0xff] %v33058_v38  ;;  %v5669_v30 = vmax.f32 %v38045_v7, %v5525_v34  ;;  %v38052_v44 = vmax.f32 %v38050_v1, %v38051_v57  ;;  %25236 = vmatmul.mubr.bf16.gmra.mrb[8].mxu1 %v32317_v14  ;;  %24978 = vmatpush3.bf16.msra.mxu0 %v28740_v15  ;;  %v28743_v32 = vld [vmem:[%s36659_s3 + $0xa8] sm:$0xff]   ;;  %v28736_v15 = vld [vmem:[%s36659_s3 + $0x1b0] sm:$0xff]  }
 0x529   :  { %v5672_v16 = vmax.f32 %v38049_v42, %v5528_v58  ;;  %25239 = vmatprep.mubr.bf16.mxu1 %v32354_v4  ;;  %25300 = vmatpush3.bf16.msra.mxu1 %v28734_v45  ;;  %v5966_v58 = vmax.f32 %v5822_v48, 0.0  ;;  %v38056_v48 = vld [vmem:[#allocation97_spill] sm:$0xff] }
 0x52a   :  { %v5820_v60 = vadd.f32 %v32605_v0, %v5669_v30  ;;  %v5670_v34 = vmax.f32 %v38052_v44, %v5526_v51  ;;  %v5146_v51 = vpop.f32.mrb[33].mxu0  ;;  %25301 = vmatprep.subr.bf16.mxu1 %v28735_v6  ;;  %24979 = vmatprep.subr.bf16.mxu0 %v28742_v3  ;;  %v38059_v44 = vld [vmem:[#allocation359_spill] sm:$0xff] }
 0x52b   :  { %v5823_v40 = vadd.f32 %v32605_v0, %v5672_v16  ;;  %v5529_v22 = vmax.f32 %v38054_v17, %v5146_v51  ;;  %v24782_v45 = vpop.f32.mrb[34].mxu0  ;;  %24916 = vmatmul.mubr.bf16.gmra.mrb[72].mxu0 %v32205_v25  ;;  %v38057_v16 = vld [vmem:[#allocation236_spill] sm:$0xff] }
 0x52c   :  { %v5821_v43 = vadd.f32 %v32605_v0, %v5670_v34  ;;  %v5964_v7 = vmax.f32 %v5820_v60, 0.0  ;;  %v38058_v1 = vmax.f32 %v38056_v48, %v38057_v16  ;;  %v5532_v34 = vmax.f32 %v38059_v44, %v24782_v45  ;;  %24919 = vmatprep.mubr.bf16.mxu0 %v32246_v61  ;;  %24980 = vmatpush3.bf16.msra.mxu0 %v28742_v3  ;;  %v38061_v60 = vld [vmem:[#allocation98_spill] sm:$0xff]  ;;  %v38064_v17 = vld [vmem:[#allocation360_spill] sm:$0xff]  ;;  %v28741_v3 = vld [vmem:[%s36659_s3 + $0x1b8] sm:$0xff]  }
 0x52d   :  { %v5967_v59 = vmax.f32 %v5823_v40, 0.0  ;;  %v5149_v40 = vpop.f32.mrb[35].mxu0  ;;  %25302 = vmatpush3.bf16.msra.mxu1 %v28735_v6  ;;  %24981 = vmatprep.subr.bf16.mxu0 %v28743_v32  ;;  %v38069_v6 = vld [vmem:[#allocation239_spill] sm:$0xff] }
 0x52e   :  { %v5965_v30 = vmax.f32 %v5821_v43, 0.0  ;;  %v5675_v57 = vmax.f32 %v38058_v1, %v5531_v56  ;;  %v38062_v43 = vld [vmem:[#allocation237_spill] sm:$0xff]  ;;  %v5530_v38 = vmax.f32 %v38064_v17, %v5149_v40  ;;  %v38066_v56 = vld [vmem:[#allocation238_spill] sm:$0xff]  ;;  %25303 = vmatprep.subr.bf16.mxu1 %v28736_v15 }
 0x52f   :  { %v33098_v42 = vpack.c.bf16 %v5967_v59, %v5966_v58  ;;  %v38063_v28 = vmax.f32 %v38061_v60, %v38062_v43  ;;  %v38065_v59 = vld [vmem:[#allocation99_spill] sm:$0xff]  ;;  %v28745_v40 = vld [vmem:[%s36659_s3 + $0xb8] sm:$0xff]  }
 0x530   :  { %v33105_v10 = vpack.c.bf16 %v5965_v30, %v5964_v7  ;;  %v5826_v58 = vadd.f32 %v32605_v0, %v5675_v57  ;;  %v38067_v48 = vmax.f32 %v38065_v59, %v38066_v56  ;;  %v28744_v7 = vld [vmem:[%s36659_s3 + $0xb0] sm:$0xff]   ;;  %25240 = vmatmul.mubr.bf16.gmra.mrb[12].mxu1 %v32348_v27  ;;  %24982 = vmatpush3.bf16.msra.mxu0 %v28743_v32  ;;  %v33136_v32 = vld [vmem:[%s36659_s3 + $0x1c0] sm:$0xff]  }
 0x531   :  { %38055 = vst [vmem:[#allocation281_spill] sm:$0xff] %v33098_v42  ;;  %v5673_v51 = vmax.f32 %v38063_v28, %v5529_v22  ;;  %v38068_v22 = vld [vmem:[#allocation100_spill] sm:$0xff]  ;;  %25243 = vmatprep.mubr.bf16.mxu1 %v32433_v47  ;;  %25304 = vmatpush3.bf16.msra.mxu1 %v28736_v15  ;;  %v38071_v28 = vld [vmem:[#allocation361_spill] sm:$0xff]  ;;  %v38072_v56 = vld [vmem:[#allocation362_spill] sm:$0xff] }
 0x532   :  { %38060 = vst [vmem:[#allocation282_spill] sm:$0xff] %v33105_v10  ;;  %v5676_v45 = vmax.f32 %v38067_v48, %v5532_v34  ;;  %v38070_v16 = vmax.f32 %v38068_v22, %v38069_v6  ;;  %v24785_v34 = vpop.f32.mrb[36].mxu0  ;;  %v5970_v60 = vmax.f32 %v5826_v58, 0.0  ;;  %25305 = vmatprep.subr.bf16.mxu1 %v28741_v3  ;;  %24983 = vmatprep.subr.bf16.mxu0 %v28744_v7  ;;  %v38074_v58 = vld [vmem:[#allocation101_spill] sm:$0xff]  ;;  %v38075_v22 = vld [vmem:[#allocation240_spill] sm:$0xff] }
 0x533   :  { %v5824_v30 = vadd.f32 %v32605_v0, %v5673_v51  ;;  %v5535_v51 = vmax.f32 %v38071_v28, %v24785_v34  ;;  %24920 = vmatmul.mubr.bf16.gmra.mrb[76].mxu0 %v32240_v63  ;;  %v38076_v6 = vmax.f32 %v38074_v58, %v38075_v22  ;;  %v38082_v42 = vld [vmem:[#allocation364_spill] sm:$0xff] }
 0x534   :  { %v5674_v1 = vmax.f32 %v38070_v16, %v5530_v38  ;;  %v5827_v57 = vadd.f32 %v32605_v0, %v5676_v45  ;;  %v5162_v38 = vpop.f32.mrb[37].mxu0  ;;  %24923 = vmatprep.mubr.bf16.mxu0 %v32323_v55  ;;  %24984 = vmatpush3.bf16.msra.mxu0 %v28744_v7 }
 0x535   :  { %v5968_v17 = vmax.f32 %v5824_v30, 0.0  ;;  %v5533_v15 = vmax.f32 %v38072_v56, %v5162_v38  ;;  %v24786_v48 = vpop.f32.mrb[38].mxu0  ;;  %v5679_v16 = vmax.f32 %v38076_v6, %v5535_v51  ;;  %v38079_v30 = vld [vmem:[#allocation102_spill] sm:$0xff]  ;;  %25306 = vmatpush3.bf16.msra.mxu1 %v28741_v3  ;;  %24985 = vmatprep.subr.bf16.mxu0 %v28745_v40 }
 0x536   :  { %v5825_v44 = vadd.f32 %v32605_v0, %v5674_v1  ;;  %v5971_v43 = vmax.f32 %v5827_v57, 0.0  ;;  %v38077_v1 = vld [vmem:[#allocation363_spill] sm:$0xff]  ;;  %v5165_v34 = vpop.f32.mrb[39].mxu0  ;;  %v38084_v51 = vld [vmem:[#allocation242_spill] sm:$0xff]  ;;  %25371 = vmatprep.subr.bf16.mxu1 %v33136_v32 }
 0x537   :  { %v5536_v57 = vmax.f32 %v38077_v1, %v24786_v48  ;;  %v5534_v10 = vmax.f32 %v38082_v42, %v5165_v34  ;;  %v24789_v3 = vpop.f32.mrb[40].mxu0 }
 0x538   :  { %v5969_v59 = vmax.f32 %v5825_v44, 0.0  ;;  %v33140_v45 = vpack.c.bf16 %v5971_v43, %v5970_v60  ;;  %v38080_v44 = vld [vmem:[#allocation241_spill] sm:$0xff]  ;;  %v5830_v60 = vadd.f32 %v32605_v0, %v5679_v16  ;;  %v38083_v43 = vld [vmem:[#allocation103_spill] sm:$0xff]  ;;  %25244 = vmatmul.mubr.bf16.gmra.mrb[16].mxu1 %v32427_v35  ;;  %24986 = vmatpush3.bf16.msra.mxu0 %v28745_v40 }
 0x539   :  { %v38081_v38 = vmax.f32 %v38079_v30, %v38080_v44  ;;  %v38085_v58 = vmax.f32 %v38083_v43, %v38084_v51  ;;  %25247 = vmatprep.mubr.bf16.mxu1 %v32479_v33  ;;  %v5178_v30 = vpop.f32.mrb[41].mxu0  ;;  %v38092_v40 = vld [vmem:[#allocation105_spill] sm:$0xff] }
 0x53a   :  { %38073 = vst [vmem:[#allocation21_spill] sm:$0xff] %v33140_v45  ;;  %v33147_v28 = vpack.c.bf16 %v5969_v59, %v5968_v17  ;;  %v38086_v17 = vld [vmem:[#allocation104_spill] sm:$0xff]  ;;  %v38087_v59 = vld [vmem:[#allocation243_spill] sm:$0xff]  ;;  %v5974_v16 = vmax.f32 %v5830_v60, 0.0 }
 0x53b   :  { %v5677_v56 = vmax.f32 %v38081_v38, %v5533_v15  ;;  %v5680_v48 = vmax.f32 %v38085_v58, %v5536_v57  ;;  %v38088_v22 = vmax.f32 %v38086_v17, %v38087_v59  ;;  %v38089_v57 = vld [vmem:[#allocation365_spill] sm:$0xff]  ;;  %24924 = vmatmul.mubr.bf16.gmra.mrb[80].mxu0 %v32317_v14  ;;  %v38093_v58 = vld [vmem:[#allocation244_spill] sm:$0xff]  ;;  %v38095_v17 = vld [vmem:[#allocation367_spill] sm:$0xff] }
 0x53c   :  { %38078 = vst [vmem:[#allocation160_spill] sm:$0xff] %v33147_v28  ;;  %v5539_v34 = vmax.f32 %v38089_v57, %v24789_v3  ;;  %24927 = vmatprep.mubr.bf16.mxu0 %v32354_v4  ;;  %v38100_v3 = vld [vmem:[#allocation368_spill] sm:$0xff]  ;;  %v38231_v28 = vld [vmem:[#allocation19_spill] sm:$0xff] }
 0x53d   :  { %v5828_v7 = vadd.f32 %v32605_v0, %v5677_v56  ;;  %v5678_v6 = vmax.f32 %v38088_v22, %v5534_v10  ;;  %v5831_v15 = vadd.f32 %v32605_v0, %v5680_v48  ;;  %v38090_v56 = vld [vmem:[#allocation366_spill] sm:$0xff]  ;;  %v24790_v10 = vpop.f32.mrb[42].mxu0 }
 0x53e   :  { %v5537_v43 = vmax.f32 %v38090_v56, %v5178_v30  ;;  %v5540_v59 = vmax.f32 %v38095_v17, %v24790_v10  ;;  %v5181_v60 = vpop.f32.mrb[43].mxu0  ;;  %v38102_v30 = vld [vmem:[#allocation246_spill] sm:$0xff] }
 0x53f   :  { %v5829_v42 = vadd.f32 %v32605_v0, %v5678_v6  ;;  %v5975_v1 = vmax.f32 %v5831_v15, 0.0  ;;  %v5972_v44 = vmax.f32 %v5828_v7, 0.0  ;;  %v38094_v0 = vmax.f32 %v38092_v40, %v38093_v58  ;;  %v38097_v7 = vld [vmem:[#allocation106_spill] sm:$0xff]  ;;  %v38098_v6 = vld [vmem:[#allocation245_spill] sm:$0xff]  ;;  %v38105_v40 = vld [vmem:[#allocation247_spill] sm:$0xff] }
 0x540   :  { %v38099_v15 = vmax.f32 %v38097_v7, %v38098_v6  ;;  %v5538_v57 = vmax.f32 %v38100_v3, %v5181_v60  ;;  %25248 = vmatmul.mubr.bf16.gmra.mrb[20].mxu1 %v32471_v23  ;;  %v24793_v60 = vpop.f32.mrb[44].mxu0  ;;  %v38107_v6 = vld [vmem:[#allocation369_spill] sm:$0xff] }
 0x541   :  { %v5973_v38 = vmax.f32 %v5829_v42, 0.0  ;;  %v33169_v51 = vpack.c.bf16 %v5975_v1, %v5974_v16  ;;  %v5683_v48 = vmax.f32 %v38094_v0, %v5539_v34  ;;  %v33185_v16 = vld [vmem:[%s36660_s2] ss:$0 sm:$0xff]  ;;  %v38101_v34 = vld [vmem:[#allocation107_spill] sm:$0xff]  ;;  %25251 = vmatprep.mubr.bf16.mxu1 %v32560_v5 }
 0x542   :  { %v5681_v42 = vmax.f32 %v38099_v15, %v5537_v43  ;;  %v38103_v56 = vmax.f32 %v38101_v34, %v38102_v30  ;;  %v5543_v15 = vmax.f32 %v38107_v6, %v24793_v60  ;;  %v38108_v34 = vld [vmem:[#allocation370_spill] sm:$0xff]  ;;  %v38115_v60 = vld [vmem:[#allocation249_spill] sm:$0xff]  ;;  %v38117_v6 = vld [vmem:[#allocation372_spill] sm:$0xff] }
 0x543   :  { %38091 = vst [vmem:[#allocation283_spill] sm:$0xff] %v33169_v51  ;;  %v33176_v22 = vpack.c.bf16 %v5973_v38, %v5972_v44  ;;  %v5834_v1 = vadd.f32 %v33185_v16, %v5683_v48  ;;  %v38104_v38 = vld [vmem:[#allocation108_spill] sm:$0xff]  ;;  %24928 = vmatmul.mubr.bf16.gmra.mrb[84].mxu0 %v32348_v27 }
 0x544   :  { %v5684_v10 = vmax.f32 %v38103_v56, %v5540_v59  ;;  %v5832_v44 = vadd.f32 %v33185_v16, %v5681_v42  ;;  %v38106_v58 = vmax.f32 %v38104_v38, %v38105_v40  ;;  %v5194_v59 = vpop.f32.mrb[45].mxu0  ;;  %v38111_v38 = vld [vmem:[#allocation248_spill] sm:$0xff]  ;;  %24931 = vmatprep.mubr.bf16.mxu0 %v32433_v47 }
 0x545   :  { %38096 = vst [vmem:[#allocation22_spill] sm:$0xff] %v33176_v22  ;;  %v5978_v48 = vmax.f32 %v5834_v1, 0.0  ;;  %v5541_v30 = vmax.f32 %v38108_v34, %v5194_v59  ;;  %v24794_v56 = vpop.f32.mrb[46].mxu0 }
 0x546   :  { %v5682_v0 = vmax.f32 %v38106_v58, %v5538_v57  ;;  %v5835_v43 = vadd.f32 %v33185_v16, %v5684_v10  ;;  %v5976_v3 = vmax.f32 %v5832_v44, 0.0  ;;  %v38110_v10 = vld [vmem:[#allocation109_spill] sm:$0xff]  ;;  %v5197_v1 = vpop.f32.mrb[47].mxu0 }
 0x547   :  { %v38112_v40 = vmax.f32 %v38110_v10, %v38111_v38  ;;  %v5542_v59 = vmax.f32 %v38117_v6, %v5197_v1  ;;  %v38123_v38 = vld [vmem:[#allocation251_spill] sm:$0xff]  ;;  %v38125_v1 = vld [vmem:[#allocation373_spill] sm:$0xff] }
 0x548   :  { %v5833_v17 = vadd.f32 %v33185_v16, %v5682_v0  ;;  %v5979_v7 = vmax.f32 %v5835_v43, 0.0  ;;  %v38113_v0 = vld [vmem:[#allocation371_spill] sm:$0xff]  ;;  %v38114_v43 = vld [vmem:[#allocation110_spill] sm:$0xff]  ;;  %25252 = vmatmul.mubr.bf16.gmra.mrb[24].mxu1 %v32552_v31 }
 0x549   :  { %v5687_v58 = vmax.f32 %v38112_v40, %v5543_v15  ;;  %v5544_v51 = vmax.f32 %v38113_v0, %v24794_v56  ;;  %v38116_v44 = vmax.f32 %v38114_v43, %v38115_v60  ;;  %v38122_v56 = vld [vmem:[#allocation112_spill] sm:$0xff]  ;;  %25255 = vmatprep.mubr.bf16.mxu1 %v32594_v29  ;;  %v38126_v60 = vld [vmem:[#allocation374_spill] sm:$0xff] }
 0x54a   :  { %v5977_v42 = vmax.f32 %v5833_v17, 0.0  ;;  %v33202_v57 = vpack.c.bf16 %v5979_v7, %v5978_v48  ;;  %v38119_v7 = vld [vmem:[#allocation111_spill] sm:$0xff]  ;;  %v38124_v40 = vmax.f32 %v38122_v56, %v38123_v38 }
 0x54b   :  { %v5685_v17 = vmax.f32 %v38116_v44, %v5541_v30  ;;  %v5838_v48 = vadd.f32 %v33185_v16, %v5687_v58  ;;  %24932 = vmatmul.mubr.bf16.gmra.mrb[88].mxu0 %v32427_v35  ;;  %v38131_v38 = vld [vmem:[#allocation375_spill] sm:$0xff] }
 0x54c   :  { %38109 = vst [vmem:[#allocation161_spill] sm:$0xff] %v33202_v57  ;;  %v33213_v34 = vpack.c.bf16 %v5977_v42, %v5976_v3  ;;  %v38120_v57 = vld [vmem:[#allocation250_spill] sm:$0xff]  ;;  %v5686_v0 = vmax.f32 %v38124_v40, %v5542_v59  ;;  %v24797_v3 = vpop.f32.mrb[48].mxu0  ;;  %v38128_v59 = vld [vmem:[#allocation113_spill] sm:$0xff]  ;;  %24935 = vmatprep.mubr.bf16.mxu0 %v32479_v33 }
 0x54d   :  { %v38121_v22 = vmax.f32 %v38119_v7, %v38120_v57  ;;  %v5836_v15 = vadd.f32 %v33185_v16, %v5685_v17  ;;  %v5982_v42 = vmax.f32 %v5838_v48, 0.0  ;;  %v5547_v57 = vmax.f32 %v38125_v1, %v24797_v3  ;;  %v38129_v7 = vld [vmem:[#allocation252_spill] sm:$0xff] }
 0x54e   :  { %38118 = vst [vmem:[#allocation284_spill] sm:$0xff] %v33213_v34  ;;  %v5837_v30 = vadd.f32 %v33185_v16, %v5686_v0  ;;  %v38134_v0 = vld [vmem:[#allocation253_spill] sm:$0xff]  ;;  %v38136_v1 = vld [vmem:[#allocation376_spill] sm:$0xff] }
 0x54f   :  { %v5688_v10 = vmax.f32 %v38121_v22, %v5544_v51  ;;  %v5210_v51 = vpop.f32.mrb[49].mxu0  ;;  %v5980_v22 = vmax.f32 %v5836_v15, 0.0  ;;  %v38133_v15 = vld [vmem:[#allocation114_spill] sm:$0xff] }
 0x550   :  { %v5981_v43 = vmax.f32 %v5837_v30, 0.0  ;;  %v5545_v44 = vmax.f32 %v38126_v60, %v5210_v51  ;;  %v24798_v17 = vpop.f32.mrb[50].mxu0  ;;  %v38135_v30 = vmax.f32 %v38133_v15, %v38134_v0  ;;  %v38138_v60 = vld [vmem:[#allocation254_spill] sm:$0xff]  ;;  %25256 = vmatmul.mubr.bf16.gmra.mrb[28].mxu1 %v32586_v13  ;;  %v38143_v15 = vld [vmem:[#allocation377_spill] sm:$0xff] }
 0x551   :  { %v5839_v45 = vadd.f32 %v33185_v16, %v5688_v10  ;;  %v38130_v10 = vmax.f32 %v38128_v59, %v38129_v7  ;;  %v5548_v40 = vmax.f32 %v38131_v38, %v24798_v17  ;;  %v5213_v48 = vpop.f32.mrb[51].mxu0  ;;  %v38140_v17 = vld [vmem:[#allocation116_spill] sm:$0xff]  ;;  %v38141_v7 = vld [vmem:[#allocation255_spill] sm:$0xff]  ;;  %25259 = vmatprep.mubr.bf16.mxu1 %v32671_v62 }
 0x552   :  { %v5689_v3 = vmax.f32 %v38135_v30, %v5545_v44  ;;  %v5546_v51 = vmax.f32 %v38136_v1, %v5213_v48  ;;  %v24801_v44 = vpop.f32.mrb[52].mxu0 }
 0x553   :  { %v5983_v58 = vmax.f32 %v5839_v45, 0.0  ;;  %v5691_v56 = vmax.f32 %v38130_v10, %v5547_v57  ;;  %v33237_v45 = vpack.c.bf16 %v5981_v43, %v5980_v22  ;;  %v38142_v10 = vmax.f32 %v38140_v17, %v38141_v7  ;;  %24936 = vmatmul.mubr.bf16.gmra.mrb[92].mxu0 %v32471_v23 }
 0x554   :  { %v5840_v57 = vadd.f32 %v33185_v16, %v5689_v3  ;;  %v5551_v0 = vmax.f32 %v38143_v15, %v24801_v44  ;;  %v38144_v3 = vld [vmem:[#allocation378_spill] sm:$0xff]  ;;  %24939 = vmatprep.mubr.bf16.mxu0 %v32560_v5 }
 0x555   :  { %v33230_v6 = vpack.c.bf16 %v5983_v58, %v5982_v42  ;;  %38132 = vst [vmem:[#allocation162_spill] sm:$0xff] %v33237_v45  ;;  %v5842_v42 = vadd.f32 %v33185_v16, %v5691_v56  ;;  %v38137_v58 = vld [vmem:[#allocation115_spill] sm:$0xff]  ;;  %v5690_v38 = vmax.f32 %v38142_v10, %v5546_v51 }
 0x556   :  { %v38149_v10 = vld [vmem:[#allocation379_spill] sm:$0xff] }
 0x557   :  { %38127 = vst [vmem:[#allocation23_spill] sm:$0xff] %v33230_v6  ;;  %v38139_v6 = vmax.f32 %v38137_v58, %v38138_v60  ;;  %v5841_v43 = vadd.f32 %v33185_v16, %v5690_v38  ;;  %v5986_v56 = vmax.f32 %v5842_v42, 0.0  ;;  %v38146_v60 = vld [vmem:[#allocation117_spill] sm:$0xff] }
 0x558   :  { %25260 = vmatmul.mubr.bf16.gmra.mrb[32].mxu1 %v32663_v50 }
 0x559   :  { %v5692_v59 = vmax.f32 %v38139_v6, %v5548_v40  ;;  %v5226_v6 = vpop.f32.mrb[53].mxu0  ;;  %v5984_v40 = vmax.f32 %v5840_v57, 0.0  ;;  %v5985_v30 = vmax.f32 %v5841_v43, 0.0  ;;  %v38151_v57 = vld [vmem:[#allocation118_spill] sm:$0xff]  ;;  %v38152_v43 = vld [vmem:[#allocation257_spill] sm:$0xff]  ;;  %25263 = vmatprep.mubr.bf16.mxu1 %v32705_v26 }
 0x55a   :  { %v5549_v1 = vmax.f32 %v38144_v3, %v5226_v6  ;;  %v24802_v58 = vpop.f32.mrb[54].mxu0  ;;  %v38153_v44 = vmax.f32 %v38151_v57, %v38152_v43  ;;  %v38154_v6 = vld [vmem:[#allocation380_spill] sm:$0xff]  ;;  %v38161_v57 = vld [vmem:[#allocation381_spill] sm:$0xff] }
 0x55b   :  { %v5843_v22 = vadd.f32 %v33185_v16, %v5692_v59  ;;  %v38147_v59 = vld [vmem:[#allocation256_spill] sm:$0xff]  ;;  %v5552_v38 = vmax.f32 %v38149_v10, %v24802_v58  ;;  %v5229_v42 = vpop.f32.mrb[55].mxu0  ;;  %24940 = vmatmul.mubr.bf16.gmra.mrb[96].mxu0 %v32552_v31 }
 0x55c   :  { %v38148_v17 = vmax.f32 %v38146_v60, %v38147_v59  ;;  %v5693_v15 = vmax.f32 %v38153_v44, %v5549_v1  ;;  %v5550_v3 = vmax.f32 %v38154_v6, %v5229_v42  ;;  %v38158_v58 = vld [vmem:[#allocation120_spill] sm:$0xff]  ;;  %v38159_v59 = vld [vmem:[#allocation259_spill] sm:$0xff]  ;;  %v24805_v1 = vpop.f32.mrb[56].mxu0  ;;  %v38162_v44 = vld [vmem:[#allocation382_spill] sm:$0xff]  ;;  %24943 = vmatprep.mubr.bf16.mxu0 %v32594_v29 }
 0x55d   :  { %v5987_v48 = vmax.f32 %v5843_v22, 0.0  ;;  %v33265_v22 = vpack.c.bf16 %v5985_v30, %v5984_v40 }
 0x55e   :  { %v5695_v7 = vmax.f32 %v38148_v17, %v5551_v0  ;;  %v5844_v0 = vadd.f32 %v33185_v16, %v5693_v15  ;;  %v38160_v17 = vmax.f32 %v38158_v58, %v38159_v59 }
 0x55f   :  { %v33258_v51 = vpack.c.bf16 %v5987_v48, %v5986_v56  ;;  %38150 = vst [vmem:[#allocation163_spill] sm:$0xff] %v33265_v22  ;;  %v38155_v48 = vld [vmem:[#allocation119_spill] sm:$0xff] }
 0x560   :  { %v5846_v56 = vadd.f32 %v33185_v16, %v5695_v7  ;;  %v5694_v10 = vmax.f32 %v38160_v17, %v5550_v3  ;;  %v38167_v17 = vld [vmem:[#allocation383_spill] sm:$0xff]  ;;  %25264 = vmatmul.mubr.bf16.gmra.mrb[36].mxu1 %v32697_v36 }
 0x561   :  { %38145 = vst [vmem:[#allocation24_spill] sm:$0xff] %v33258_v51  ;;  %v38156_v51 = vld [vmem:[#allocation258_spill] sm:$0xff]  ;;  %25267 = vmatprep.mubr.bf16.mxu1 %v32777_v9 }
 0x562   :  { %v38157_v45 = vmax.f32 %v38155_v48, %v38156_v51  ;;  %v5845_v30 = vadd.f32 %v33185_v16, %v5694_v10  ;;  %v5990_v7 = vmax.f32 %v5846_v56, 0.0  ;;  %v5555_v51 = vmax.f32 %v38161_v57, %v24805_v1  ;;  %v38164_v48 = vld [vmem:[#allocation121_spill] sm:$0xff]  ;;  %v38171_v57 = vld [vmem:[#allocation384_spill] sm:$0xff] }
 0x563   :  { %v38169_v1 = vld [vmem:[#allocation261_spill] sm:$0xff]  ;;  %24944 = vmatmul.mubr.bf16.gmra.mrb[100].mxu0 %v32586_v13 }
 0x564   :  { %v5696_v60 = vmax.f32 %v38157_v45, %v5552_v38  ;;  %v5242_v45 = vpop.f32.mrb[57].mxu0  ;;  %v5988_v38 = vmax.f32 %v5844_v0, 0.0  ;;  %v5989_v43 = vmax.f32 %v5845_v30, 0.0  ;;  %24947 = vmatprep.mubr.bf16.mxu0 %v32671_v62  ;;  %v6246_v62 = vunpack.c.l.b16 %v33017_v54 }
 0x565   :  { %v5553_v15 = vmax.f32 %v38162_v44, %v5242_v45  ;;  %v24806_v6 = vpop.f32.mrb[58].mxu0 }
 0x566   :  { %v5847_v40 = vadd.f32 %v33185_v16, %v5696_v60  ;;  %v38165_v60 = vld [vmem:[#allocation260_spill] sm:$0xff]  ;;  %v5556_v10 = vmax.f32 %v38167_v17, %v24806_v6  ;;  %v5245_v56 = vpop.f32.mrb[59].mxu0  ;;  %v33297_v44 = vpack.c.bf16 %v5989_v43, %v5988_v38 }
 0x567   :  { %v38166_v58 = vmax.f32 %v38164_v48, %v38165_v60  ;;  %v5554_v45 = vmax.f32 %v38171_v57, %v5245_v56  ;;  %v38176_v6 = vld [vmem:[#allocation124_spill] sm:$0xff]  ;;  %v38177_v60 = vld [vmem:[#allocation263_spill] sm:$0xff]  ;;  %v24809_v38 = vpop.f32.mrb[60].mxu0  ;;  %v38179_v56 = vld [vmem:[#allocation385_spill] sm:$0xff] }
 0x568   :  { %v5991_v42 = vmax.f32 %v5847_v40, 0.0  ;;  %v38168_v40 = vld [vmem:[#allocation122_spill] sm:$0xff]  ;;  %38172 = vst [vmem:[#allocation286_spill] sm:$0xff] %v33297_v44  ;;  %25268 = vmatmul.mubr.bf16.gmra.mrb[40].mxu1 %v32769_v46  ;;  %v38227_v44 = vld [vmem:[#allocation12_spill] sm:$0xff] }
 0x569   :  { %v5699_v59 = vmax.f32 %v38166_v58, %v5555_v51  ;;  %v38170_v0 = vmax.f32 %v38168_v40, %v38169_v1  ;;  %v38178_v58 = vmax.f32 %v38176_v6, %v38177_v60  ;;  %v38180_v1 = vld [vmem:[#allocation386_spill] sm:$0xff]  ;;  %v38185_v60 = vld [vmem:[#allocation387_spill] sm:$0xff]  ;;  %25271 = vmatprep.mubr.bf16.mxu1 %v32811_v20 }
 0x56a   :  { %v33286_v3 = vpack.c.bf16 %v5991_v42, %v5990_v7  ;;  %v38173_v42 = vld [vmem:[#allocation123_spill] sm:$0xff] }
 0x56b   :  { %v5697_v30 = vmax.f32 %v38170_v0, %v5553_v15  ;;  %v5850_v7 = vadd.f32 %v33185_v16, %v5699_v59  ;;  %v5698_v17 = vmax.f32 %v38178_v58, %v5554_v45  ;;  %v38182_v45 = vld [vmem:[#allocation125_spill] sm:$0xff]  ;;  %24948 = vmatmul.mubr.bf16.gmra.mrb[104].mxu0 %v32663_v50 }
 0x56c   :  { %38163 = vst [vmem:[#allocation285_spill] sm:$0xff] %v33286_v3  ;;  %v38174_v3 = vld [vmem:[#allocation262_spill] sm:$0xff]  ;;  %24951 = vmatprep.mubr.bf16.mxu0 %v32705_v26 }
 0x56d   :  { %v38175_v22 = vmax.f32 %v38173_v42, %v38174_v3  ;;  %v5848_v51 = vadd.f32 %v33185_v16, %v5697_v30  ;;  %v5849_v15 = vadd.f32 %v33185_v16, %v5698_v17  ;;  %v5994_v43 = vmax.f32 %v5850_v7, 0.0  ;;  %v38183_v42 = vld [vmem:[#allocation264_spill] sm:$0xff]  ;;  %v38188_v17 = vld [vmem:[#allocation265_spill] sm:$0xff] }
 0x56e   :  { %v5559_v3 = vmax.f32 %v38179_v56, %v24809_v38  ;;  %v38190_v56 = vld [vmem:[#allocation388_spill] sm:$0xff] }
 0x56f   :  { %v5700_v48 = vmax.f32 %v38175_v22, %v5556_v10  ;;  %v5258_v22 = vpop.f32.mrb[61].mxu0  ;;  %v5992_v10 = vmax.f32 %v5848_v51, 0.0  ;;  %v5993_v40 = vmax.f32 %v5849_v15, 0.0  ;;  %v38187_v51 = vld [vmem:[#allocation126_spill] sm:$0xff] }
 0x570   :  { %v5557_v0 = vmax.f32 %v38180_v1, %v5258_v22  ;;  %v24810_v30 = vpop.f32.mrb[62].mxu0  ;;  %v38189_v15 = vmax.f32 %v38187_v51, %v38188_v17  ;;  %v38192_v1 = vld [vmem:[#allocation266_spill] sm:$0xff]  ;;  %25272 = vmatmul.mubr.bf16.gmra.mrb[44].mxu1 %v32803_v39  ;;  %v28747_v17 = vld [vmem:[%s36659_s3 + $0x1c8] sm:$0xff]  }
 0x571   :  { %v5851_v34 = vadd.f32 %v33185_v16, %v5700_v48  ;;  %v38184_v48 = vmax.f32 %v38182_v45, %v38183_v42  ;;  %v5560_v58 = vmax.f32 %v38185_v60, %v24810_v30  ;;  %v5261_v7 = vpop.f32.mrb[63].mxu0  ;;  %v38194_v30 = vld [vmem:[#allocation128_spill] sm:$0xff]  ;;  %v38195_v42 = vld [vmem:[#allocation267_spill] sm:$0xff]  ;;  %25275 = vmatprep.mubr.bf16.mxu1 %v32887_v37 }
 0x572   :  { %v5701_v38 = vmax.f32 %v38189_v15, %v5557_v0  ;;  %v5558_v22 = vmax.f32 %v38190_v56, %v5261_v7  ;;  %v28754_v15 = vld [vmem:[%s36659_s3 + $0xc8] sm:$0xff]   ;;  %v38200_v56 = vld [vmem:[#allocation141_spill] sm:$0xff] }
 0x573   :  { %v5995_v59 = vmax.f32 %v5851_v34, 0.0  ;;  %v5703_v6 = vmax.f32 %v38184_v48, %v5559_v3  ;;  %v33321_v34 = vpack.c.bf16 %v5993_v40, %v5992_v10  ;;  %v38196_v48 = vmax.f32 %v38194_v30, %v38195_v42  ;;  %24952 = vmatmul.mubr.bf16.gmra.mrb[108].mxu0 %v32697_v36  ;;  %v38204_v30 = vld [vmem:[#allocation268_spill] sm:$0xff]  ;;  %v28759_v42 = vld [vmem:[%s36659_s3 + $0xe8] sm:$0xff]  }
 0x574   :  { %v5852_v3 = vadd.f32 %v33185_v16, %v5701_v38  ;;  %24955 = vmatprep.mubr.bf16.mxu0 %v32777_v9  ;;  %v28755_v38 = vld [vmem:[%s36659_s3 + $0xd0] sm:$0xff]   ;;  %v6245_v9 = vunpack.c.h.b16 %v33025_v12 }
 0x575   :  { %v33314_v57 = vpack.c.bf16 %v5995_v59, %v5994_v43  ;;  %38186 = vst [vmem:[#allocation164_spill] sm:$0xff] %v33321_v34  ;;  %v5854_v43 = vadd.f32 %v33185_v16, %v5703_v6  ;;  %v38191_v59 = vld [vmem:[#allocation127_spill] sm:$0xff]  ;;  %v5702_v60 = vmax.f32 %v38196_v48, %v5558_v22  ;;  %v38201_v22 = vld [vmem:[#allocation6_spill] sm:$0xff]  ;;  %v28752_v48 = vld [vmem:[%s36659_s3 + $0x1f0] sm:$0xff]  }
 0x576   :  { %v5996_v7 = vmax.f32 %v5852_v3, 0.0  ;;  %v38203_v3 = vld [vmem:[#allocation144_spill] sm:$0xff]  ;;  %v38226_v34 = vld [vmem:[#allocation17_spill] sm:$0xff] }
 0x577   :  { %38181 = vst [vmem:[#allocation25_spill] sm:$0xff] %v33314_v57  ;;  %v38193_v57 = vmax.f32 %v38191_v59, %v38192_v1  ;;  %v5853_v40 = vadd.f32 %v33185_v16, %v5702_v60  ;;  %v5998_v0 = vmax.f32 %v5854_v43, 0.0  ;;  %v28750_v43 = vld [vmem:[%s36659_s3 + $0x1e0] sm:$0xff]   ;;  %v28751_v1 = vld [vmem:[%s36659_s3 + $0x1e8] sm:$0xff]   ;;  %v28757_v60 = vld [vmem:[%s36659_s3 + $0x1f8] sm:$0xff]  }
 0x578   :  { %25276 = vmatmul.mubr.bf16.gmra.mrb[48].mxu1 %v32879_v11  ;;  %v38202_v59 = vld [vmem:[#allocation2_spill] sm:$0xff] }
 0x579   :  { %v5704_v45 = vmax.f32 %v38193_v57, %v5560_v58  ;;  %v5997_v51 = vmax.f32 %v5853_v40, 0.0  ;;  %25279 = vmatprep.mubr.bf16.mxu1 %v32917_v18  ;;  %v38205_v40 = vld [vmem:[#allocation7_spill] sm:$0xff] }
 0x57b   :  { %v5855_v10 = vadd.f32 %v33185_v16, %v5704_v45  ;;  %v33343_v58 = vpack.c.bf16 %v5997_v51, %v5996_v7  ;;  %v28753_v16 = vld [vmem:[%s36659_s3 + $0xc0] sm:$0xff]   ;;  %24956 = vmatmul.mubr.bf16.gmra.mrb[112].mxu0 %v32769_v46  ;;  %v38207_v51 = vld [vmem:[#allocation133_spill] sm:$0xff] }
 0x57c   :  { %25051 = vmatprep.subr.bf16.mxu0 %v28753_v16  ;;  %24959 = vmatprep.mubr.bf16.mxu0 %v32811_v20  ;;  %v28758_v45 = vld [vmem:[%s36659_s3 + $0xe0] sm:$0xff]  }
 0x57d   :  { %v5999_v6 = vmax.f32 %v5855_v10, 0.0  ;;  %38198 = vst [vmem:[#allocation26_spill] sm:$0xff] %v33343_v58  ;;  %v28760_v10 = vld [vmem:[%s36659_s3 + $0xf0] sm:$0xff]   ;;  %v33428_v7 = vld [vmem:[%s36659_s3 + $0x200] sm:$0xff]   ;;  %v38225_v58 = vld [vmem:[#allocation277_spill] sm:$0xff] }
 0x57f   :  { %v33340_v57 = vpack.c.bf16 %v5999_v6, %v5998_v0  ;;  %v38206_v0 = vld [vmem:[#allocation146_spill] sm:$0xff]  ;;  %v28761_v6 = vld [vmem:[%s36659_s3 + $0xf8] sm:$0xff]  }
 0x580   :  { %25280 = vmatmul.mubr.bf16.gmra.mrb[52].mxu1 %v32911_v19 }
 0x581   :  { %38197 = vst [vmem:[#allocation287_spill] sm:$0xff] %v33340_v57  ;;  %25283 = vmatprep.mubr.bf16.mxu1 %v32986_v8  ;;  %v38224_v57 = vld [vmem:[#allocation16_spill] sm:$0xff] }
 0x583   :  { %24960 = vmatmul.mubr.bf16.gmra.mrb[116].mxu0 %v32803_v39 }
 0x584   :  { %24963 = vmatprep.mubr.bf16.mxu0 %v32887_v37  ;;  %v38232_v37 = vld [vmem:[#allocation154_spill] sm:$0xff] }
 0x588   :  { %25284 = vmatmul.mubr.bf16.gmra.mrb[56].mxu1 %v32979_v52 }
 0x589   :  { %25287 = vmatprep.mubr.bf16.mxu1 %v33025_v12 }
 0x58b   :  { %24964 = vmatmul.mubr.bf16.gmra.mrb[120].mxu0 %v32879_v11 }
 0x58c   :  { %24967 = vmatprep.mubr.bf16.mxu0 %v32917_v18 }
 0x590   :  { %25288 = vmatmul.mubr.bf16.gmra.mrb[60].mxu1 %v33017_v54 }
 0x591   :  { %25307 = vmatprep.mubr.bf16.mxu1 %v32439_v21  ;;  %v28748_v21 = vld [vmem:[%s36659_s3 + $0x1d0] sm:$0xff]  }
 0x593   :  { %24968 = vmatmul.mubr.bf16.gmra.mrb[124].mxu0 %v32911_v19 }
 0x594   :  { %24987 = vmatprep.mubr.bf16.mxu0 %v32092_v24  ;;  %v38199_v24 = vld [vmem:[#allocation129_spill] sm:$0xff] }
 0x598   :  { %25308 = vmatmul.mubr.bf16.vlgmr.msra.gmra.mrb[0].mxu1 %v32477_v53 }
 0x599   :  { %25372 = vmatpush3.bf16.msra.mxu1 %v33136_v32  ;;  %25311 = vmatprep.mubr.bf16.mxu1 %v32485_v41  ;;  %v28749_v32 = vld [vmem:[%s36659_s3 + $0x1d8] sm:$0xff]  }
 0x59a   :  { %25373 = vmatprep.subr.bf16.mxu1 %v28747_v17 }
 0x59b   :  { %24988 = vmatmul.mubr.bf16.vlgmr.msra.gmra.mrb[64].mxu0 %v32130_v49  ;;  %v28756_v49 = vld [vmem:[%s36659_s3 + $0xd8] sm:$0xff]  }
 0x59c   :  { %24991 = vmatprep.mubr.bf16.mxu0 %v38199_v24  ;;  %25052 = vmatpush3.bf16.msra.mxu0 %v28753_v16  ;;  %v38208_v16 = vld [vmem:[#allocation147_spill] sm:$0xff]  ;;  %v38212_v24 = vld [vmem:[#allocation4_spill] sm:$0xff] }
 0x59d   :  { %25374 = vmatpush3.bf16.msra.mxu1 %v28747_v17  ;;  %25053 = vmatprep.subr.bf16.mxu0 %v28754_v15  ;;  %v38209_v17 = vld [vmem:[#allocation270_spill] sm:$0xff] }
 0x59e   :  { %25375 = vmatprep.subr.bf16.mxu1 %v28748_v21 }
 0x5a0   :  { %25312 = vmatmul.mubr.bf16.gmra.mrb[4].mxu1 %v38200_v56  ;;  %25054 = vmatpush3.bf16.msra.mxu0 %v28754_v15  ;;  %v38210_v15 = vld [vmem:[#allocation148_spill] sm:$0xff] }
 0x5a1   :  { %25315 = vmatprep.mubr.bf16.mxu1 %v38201_v22  ;;  %25376 = vmatpush3.bf16.msra.mxu1 %v28748_v21  ;;  %v38211_v21 = vld [vmem:[#allocation10_spill] sm:$0xff] }
 0x5a2   :  { %25377 = vmatprep.subr.bf16.mxu1 %v28749_v32  ;;  %25055 = vmatprep.subr.bf16.mxu0 %v28755_v38 }
 0x5a3   :  { %24992 = vmatmul.mubr.bf16.gmra.mrb[68].mxu0 %v38202_v59 }
 0x5a4   :  { %24995 = vmatprep.mubr.bf16.mxu0 %v32205_v25  ;;  %25056 = vmatpush3.bf16.msra.mxu0 %v28755_v38  ;;  %v38214_v38 = vld [vmem:[#allocation272_spill] sm:$0xff] }
 0x5a5   :  { %25378 = vmatpush3.bf16.msra.mxu1 %v28749_v32  ;;  %25057 = vmatprep.subr.bf16.mxu0 %v28756_v49  ;;  %v38213_v32 = vld [vmem:[#allocation149_spill] sm:$0xff] }
 0x5a6   :  { %25379 = vmatprep.subr.bf16.mxu1 %v28750_v43 }
 0x5a8   :  { %25316 = vmatmul.mubr.bf16.gmra.mrb[8].mxu1 %v38203_v3  ;;  %25058 = vmatpush3.bf16.msra.mxu0 %v28756_v49  ;;  %v38215_v49 = vld [vmem:[#allocation150_spill] sm:$0xff] }
 0x5a9   :  { %25319 = vmatprep.mubr.bf16.mxu1 %v38204_v30  ;;  %25380 = vmatpush3.bf16.msra.mxu1 %v28750_v43  ;;  %v38216_v43 = vld [vmem:[#allocation151_spill] sm:$0xff] }
 0x5aa   :  { %25381 = vmatprep.subr.bf16.mxu1 %v28751_v1  ;;  %25059 = vmatprep.subr.bf16.mxu0 %v28758_v45 }
 0x5ab   :  { %24996 = vmatmul.mubr.bf16.gmra.mrb[72].mxu0 %v32246_v61 }
 0x5ac   :  { %24999 = vmatprep.mubr.bf16.mxu0 %v32240_v63  ;;  %25060 = vmatpush3.bf16.msra.mxu0 %v28758_v45  ;;  %v38218_v45 = vld [vmem:[#allocation274_spill] sm:$0xff] }
 0x5ad   :  { %25382 = vmatpush3.bf16.msra.mxu1 %v28751_v1  ;;  %25061 = vmatprep.subr.bf16.mxu0 %v28759_v42  ;;  %v38217_v1 = vld [vmem:[#allocation142_spill] sm:$0xff] }
 0x5ae   :  { %25383 = vmatprep.subr.bf16.mxu1 %v28752_v48 }
 0x5b0   :  { %25320 = vmatmul.mubr.bf16.gmra.mrb[12].mxu1 %v38205_v40  ;;  %25062 = vmatpush3.bf16.msra.mxu0 %v28759_v42  ;;  %v38219_v42 = vld [vmem:[#allocation152_spill] sm:$0xff] }
 0x5b1   :  { %25323 = vmatprep.mubr.bf16.mxu1 %v38206_v0  ;;  %25384 = vmatpush3.bf16.msra.mxu1 %v28752_v48  ;;  %v38220_v48 = vld [vmem:[#allocation14_spill] sm:$0xff]  ;;  %v6242_v0 = vunpack.c.l.b16 %v32979_v52 }
 0x5b2   :  { %25385 = vmatprep.subr.bf16.mxu1 %v28757_v60  ;;  %25063 = vmatprep.subr.bf16.mxu0 %v28760_v10 }
 0x5b3   :  { %25000 = vmatmul.mubr.bf16.gmra.mrb[76].mxu0 %v38207_v51 }
 0x5b4   :  { %25003 = vmatprep.mubr.bf16.mxu0 %v32317_v14  ;;  %25064 = vmatpush3.bf16.msra.mxu0 %v28760_v10  ;;  %v38222_v10 = vld [vmem:[#allocation269_spill] sm:$0xff] }
 0x5b5   :  { %25386 = vmatpush3.bf16.msra.mxu1 %v28757_v60  ;;  %25065 = vmatprep.subr.bf16.mxu0 %v28761_v6  ;;  %v38221_v60 = vld [vmem:[#allocation153_spill] sm:$0xff] }
 0x5b6   :  { %25451 = vmatprep.subr.bf16.mxu1 %v33428_v7 }
 0x5b8   :  { %25324 = vmatmul.mubr.bf16.gmra.mrb[16].mxu1 %v38208_v16  ;;  %25066 = vmatpush3.bf16.msra.mxu0 %v28761_v6  ;;  %v38223_v6 = vld [vmem:[#allocation15_spill] sm:$0xff] }
 0x5b9   :  { %25327 = vmatprep.mubr.bf16.mxu1 %v38209_v17 }
 0x5bb   :  { %25004 = vmatmul.mubr.bf16.gmra.mrb[80].mxu0 %v32354_v4 }
 0x5bc   :  { %25007 = vmatprep.mubr.bf16.mxu0 %v32348_v27 }
 0x5c0   :  { %25328 = vmatmul.mubr.bf16.gmra.mrb[20].mxu1 %v38210_v15 }
 0x5c1   :  { %25331 = vmatprep.mubr.bf16.mxu1 %v38211_v21  ;;  %v6241_v21 = vunpack.c.h.b16 %v32986_v8  ;;  %v6243_v8 = vunpack.c.h.b16 %v32979_v52 }
 0x5c3   :  { %25008 = vmatmul.mubr.bf16.gmra.mrb[84].mxu0 %v38212_v24  ;;  %v33471_v22 = vpack.c.b16 %v6242_v0, %v6241_v21  ;;  %v33483_v0 = vpack.c.b16 %v6246_v62, %v6245_v9  ;;  %v6248_v21 = vunpack.c.l.b16 %v33065_v2  ;;  %v38236_v62 = vld [vmem:[#allocation280_spill] sm:$0xff]  ;;  %v38237_v9 = vld [vmem:[#allocation135_spill] sm:$0xff] }
 0x5c4   :  { %25011 = vmatprep.mubr.bf16.mxu0 %v32427_v35 }
 0x5c5   :  { %38230 = vst [vmem:[#allocation165_spill] sm:$0xff] %v33471_v22  ;;  %38234 = vst [vmem:[#allocation27_spill] sm:$0xff] %v33483_v0 }
 0x5c8   :  { %25332 = vmatmul.mubr.bf16.gmra.mrb[24].mxu1 %v38213_v32 }
 0x5c9   :  { %25335 = vmatprep.mubr.bf16.mxu1 %v38214_v38 }
 0x5cb   :  { %25012 = vmatmul.mubr.bf16.gmra.mrb[88].mxu0 %v32479_v33 }
 0x5cc   :  { %25015 = vmatprep.mubr.bf16.mxu0 %v32471_v23 }
 0x5d0   :  { %25336 = vmatmul.mubr.bf16.gmra.mrb[28].mxu1 %v38215_v49 }
 0x5d1   :  { %25339 = vmatprep.mubr.bf16.mxu1 %v38216_v43  ;;  %v38229_v43 = vld [vmem:[#allocation18_spill] sm:$0xff] }
 0x5d3   :  { %25016 = vmatmul.mubr.bf16.gmra.mrb[92].mxu0 %v38217_v1 }
 0x5d4   :  { %25019 = vmatprep.mubr.bf16.mxu0 %v32552_v31 }
 0x5d8   :  { %25340 = vmatmul.mubr.bf16.gmra.mrb[32].mxu1 %v38218_v45 }
 0x5d9   :  { %25343 = vmatprep.mubr.bf16.mxu1 %v38219_v42 }
 0x5db   :  { %25020 = vmatmul.mubr.bf16.gmra.mrb[96].mxu0 %v32594_v29 }
 0x5dc   :  { %25023 = vmatprep.mubr.bf16.mxu0 %v32586_v13 }
 0x5e0   :  { %25344 = vmatmul.mubr.bf16.gmra.mrb[36].mxu1 %v38220_v48 }
 0x5e1   :  { %25347 = vmatprep.mubr.bf16.mxu1 %v38221_v60  ;;  %v38228_v60 = vld [vmem:[#allocation279_spill] sm:$0xff] }
 0x5e3   :  { %25024 = vmatmul.mubr.bf16.gmra.mrb[100].mxu0 %v38222_v10 }
 0x5e4   :  { %25027 = vmatprep.mubr.bf16.mxu0 %v32663_v50 }
 0x5e8   :  { %25348 = vmatmul.mubr.bf16.gmra.mrb[40].mxu1 %v38223_v6 }
 0x5e9   :  { %25351 = vmatprep.mubr.bf16.mxu1 %v38224_v57 }
 0x5eb   :  { %25028 = vmatmul.mubr.bf16.gmra.mrb[104].mxu0 %v32705_v26 }
 0x5ec   :  { %25031 = vmatprep.mubr.bf16.mxu0 %v32697_v36 }
 0x5f0   :  { %25352 = vmatmul.mubr.bf16.gmra.mrb[44].mxu1 %v38225_v58 }
 0x5f1   :  { %25355 = vmatprep.mubr.bf16.mxu1 %v38226_v34  ;;  %v6244_v34 = vunpack.c.l.b16 %v33025_v12 }
 0x5f3   :  { %25032 = vmatmul.mubr.bf16.gmra.mrb[108].mxu0 %v38227_v44  ;;  %v33481_v5 = vpack.c.b16 %v6244_v34, %v6243_v8  ;;  %v28763_v8 = vld [vmem:[%s36659_s3 + $0x208] sm:$0xff]   ;;  %v28764_v34 = vld [vmem:[%s36659_s3 + $0x210] sm:$0xff]  }
 0x5f4   :  { %25035 = vmatprep.mubr.bf16.mxu0 %v32769_v46 }
 0x5f5   :  { %38233 = vst [vmem:[#allocation288_spill] sm:$0xff] %v33481_v5 }
 0x5f8   :  { %25356 = vmatmul.mubr.bf16.gmra.mrb[48].mxu1 %v38228_v60 }
 0x5f9   :  { %25359 = vmatprep.mubr.bf16.mxu1 %v38229_v43 }
 0x5fb   :  { %25036 = vmatmul.mubr.bf16.gmra.mrb[112].mxu0 %v32811_v20 }
 0x5fc   :  { %25039 = vmatprep.mubr.bf16.mxu0 %v32803_v39 }
 0x600   :  { %25360 = vmatmul.mubr.bf16.gmra.mrb[52].mxu1 %v38231_v28 }
 0x601   :  { %25363 = vmatprep.mubr.bf16.mxu1 %v33471_v22  ;;  %v6247_v22 = vunpack.c.h.b16 %v33017_v54 }
 0x603   :  { %25040 = vmatmul.mubr.bf16.gmra.mrb[116].mxu0 %v38232_v37  ;;  %v33491_v47 = vpack.c.b16 %v6248_v21, %v6247_v22  ;;  %v38239_v22 = vld [vmem:[#allocation138_spill] sm:$0xff]  ;;  %v6153_v21 = vunpack.c.h.b16 %v38202_v59  ;;  %v28767_v59 = vld [vmem:[%s36659_s3 + $0x228] sm:$0xff]  }
 0x604   :  { %25043 = vmatprep.mubr.bf16.mxu0 %v32879_v11 }
 0x605   :  { %38235 = vst [vmem:[#allocation166_spill] sm:$0xff] %v33491_v47 }
 0x608   :  { %25364 = vmatmul.mubr.bf16.gmra.mrb[56].mxu1 %v33481_v5 }
 0x609   :  { %25367 = vmatprep.mubr.bf16.mxu1 %v33483_v0 }
 0x60b   :  { %25044 = vmatmul.mubr.bf16.gmra.mrb[120].mxu0 %v32917_v18 }
 0x60c   :  { %25047 = vmatprep.mubr.bf16.mxu0 %v32911_v19 }
 0x610   :  { %25368 = vmatmul.mubr.bf16.gmra.mrb[60].mxu1 %v33491_v47 }
 0x611   :  { %25387 = vmatprep.mubr.bf16.mxu1 %v32205_v25  ;;  %v38238_v25 = vld [vmem:[#allocation137_spill] sm:$0xff] }
 0x613   :  { %25048 = vmatmul.mubr.bf16.gmra.mrb[124].mxu0 %v38236_v62 }
 0x614   :  { %25067 = vmatprep.mubr.bf16.mxu0 %v38237_v9  ;;  %v38240_v9 = vld [vmem:[#allocation130_spill] sm:$0xff] }
 0x615   :  { %v6154_v55 = vunpack.c.l.b16 %v38240_v9  ;;  %v33541_v9 = vld [vmem:[%s36659_s3 + $0x240] sm:$0xff]  }
 0x618   :  { %25388 = vmatmul.mubr.bf16.vlgmr.msra.gmra.mrb[0].mxu1 %v32246_v61 }
 0x619   :  { %25452 = vmatpush3.bf16.msra.mxu1 %v33428_v7  ;;  %25391 = vmatprep.mubr.bf16.mxu1 %v32240_v63  ;;  %v28765_v7 = vld [vmem:[%s36659_s3 + $0x218] sm:$0xff]   ;;  %v7574_v63 = vpack.c.b16 %v6154_v55, %v6153_v21  ;;  %v28768_v55 = vld [vmem:[%s36659_s3 + $0x230] sm:$0xff]  }
 0x61a   :  { %25453 = vmatprep.subr.bf16.mxu1 %v28763_v8 }
 0x61b   :  { %25068 = vmatmul.mubr.bf16.vlgmr.msra.gmra.mrb[64].mxu0 %v38238_v25  ;;  %v28766_v25 = vld [vmem:[%s36659_s3 + $0x220] sm:$0xff]  }
 0x61c   :  { %25071 = vmatprep.mubr.bf16.mxu0 %v38239_v22  ;;  %v28769_v22 = vld [vmem:[%s36659_s3 + $0x238] sm:$0xff]  }
 0x61d   :  { %25454 = vmatpush3.bf16.msra.mxu1 %v28763_v8  ;;  %v38241_v8 = vld [vmem:[#allocation132_spill] sm:$0xff] }
 0x61e   :  { %25455 = vmatprep.subr.bf16.mxu1 %v28764_v34 }
 0x620   :  { %25392 = vmatmul.mubr.bf16.gmra.mrb[4].mxu1 %v38207_v51 }
 0x621   :  { %25395 = vmatprep.mubr.bf16.mxu1 %v32317_v14  ;;  %25456 = vmatpush3.bf16.msra.mxu1 %v28764_v34  ;;  %v6166_v34 = vunpack.c.l.b16 %v38241_v8  ;;  %v6213_v14 = vunpack.c.h.b16 %v38227_v44 }
 0x622   :  { %25457 = vmatprep.subr.bf16.mxu1 %v28765_v7 }
 0x623   :  { %25072 = vmatmul.mubr.bf16.gmra.mrb[68].mxu0 %v7574_v63  ;;  %v6165_v63 = vunpack.c.h.b16 %v38207_v51 }
 0x624   :  { %25075 = vmatprep.mubr.bf16.mxu0 %v32477_v53 }
 0x625   :  { %25458 = vmatpush3.bf16.msra.mxu1 %v28765_v7  ;;  %v33535_v21 = vpack.c.b16 %v6166_v34, %v6165_v63  ;;  %v38242_v7 = vld [vmem:[#allocation136_spill] sm:$0xff] }
 0x626   :  { %25459 = vmatprep.subr.bf16.mxu1 %v28766_v25  ;;  %v38243_v63 = vld [vmem:[#allocation140_spill] sm:$0xff] }
 0x627   :  { %v6190_v34 = vunpack.c.l.b16 %v38243_v63 }
 0x628   :  { %25396 = vmatmul.mubr.bf16.gmra.mrb[8].mxu1 %v32354_v4 }
 0x629   :  { %25399 = vmatprep.mubr.bf16.mxu1 %v32348_v27  ;;  %25460 = vmatpush3.bf16.msra.mxu1 %v28766_v25  ;;  %v6178_v25 = vunpack.c.l.b16 %v38242_v7 }
 0x62a   :  { %25461 = vmatprep.subr.bf16.mxu1 %v28767_v59 }
 0x62b   :  { %25076 = vmatmul.mubr.bf16.gmra.mrb[72].mxu0 %v32485_v41 }
 0x62c   :  { %25079 = vmatprep.mubr.bf16.mxu0 %v38200_v56 }
 0x62d   :  { %25462 = vmatpush3.bf16.msra.mxu1 %v28767_v59  ;;  %v6177_v59 = vunpack.c.h.b16 %v38212_v24 }
 0x62e   :  { %25463 = vmatprep.subr.bf16.mxu1 %v28768_v55 }
 0x630   :  { %25400 = vmatmul.mubr.bf16.gmra.mrb[12].mxu1 %v38212_v24 }
 0x631   :  { %25403 = vmatprep.mubr.bf16.mxu1 %v32427_v35  ;;  %25464 = vmatpush3.bf16.msra.mxu1 %v28768_v55  ;;  %v33554_v55 = vpack.c.b16 %v6178_v25, %v6177_v59  ;;  %v38244_v59 = vld [vmem:[#allocation8_spill] sm:$0xff]  ;;  %v6201_v35 = vunpack.c.h.b16 %v38222_v10 }
 0x632   :  { %25465 = vmatprep.subr.bf16.mxu1 %v28769_v22 }
 0x633   :  { %25080 = vmatmul.mubr.bf16.gmra.mrb[76].mxu0 %v33535_v21 }
 0x634   :  { %25083 = vmatprep.mubr.bf16.mxu0 %v38203_v3 }
 0x635   :  { %25466 = vmatpush3.bf16.msra.mxu1 %v28769_v22  ;;  %v6189_v22 = vunpack.c.h.b16 %v38217_v1 }
 0x636   :  { %25531 = vmatprep.subr.bf16.mxu1 %v33541_v9 }
 0x637   :  { %v33566_v25 = vpack.c.b16 %v6190_v34, %v6189_v22  ;;  %v38245_v22 = vld [vmem:[#allocation11_spill] sm:$0xff] }
 0x638   :  { %25404 = vmatmul.mubr.bf16.gmra.mrb[16].mxu1 %v32479_v33 }
 0x639   :  { %25407 = vmatprep.mubr.bf16.mxu1 %v32471_v23 }
 0x63b   :  { %25084 = vmatmul.mubr.bf16.gmra.mrb[80].mxu0 %v38204_v30 }
 0x63c   :  { %25087 = vmatprep.mubr.bf16.mxu0 %v38205_v40 }
 0x640   :  { %25408 = vmatmul.mubr.bf16.gmra.mrb[20].mxu1 %v38217_v1 }
 0x641   :  { %25411 = vmatprep.mubr.bf16.mxu1 %v32552_v31  ;;  %v6202_v31 = vunpack.c.l.b16 %v38244_v59 }
 0x643   :  { %25088 = vmatmul.mubr.bf16.gmra.mrb[84].mxu0 %v33554_v55  ;;  %v33578_v34 = vpack.c.b16 %v6202_v31, %v6201_v35  ;;  %v38247_v31 = vld [vmem:[#allocation276_spill] sm:$0xff] }
 0x644   :  { %25091 = vmatprep.mubr.bf16.mxu0 %v38208_v16 }
 0x648   :  { %25412 = vmatmul.mubr.bf16.gmra.mrb[24].mxu1 %v32594_v29 }
 0x649   :  { %25415 = vmatprep.mubr.bf16.mxu1 %v32586_v13 }
 0x64b   :  { %25092 = vmatmul.mubr.bf16.gmra.mrb[88].mxu0 %v38209_v17 }
 0x64c   :  { %25095 = vmatprep.mubr.bf16.mxu0 %v38210_v15 }
 0x650   :  { %25416 = vmatmul.mubr.bf16.gmra.mrb[28].mxu1 %v38222_v10 }
 0x651   :  { %25419 = vmatprep.mubr.bf16.mxu1 %v32663_v50  ;;  %v6214_v50 = vunpack.c.l.b16 %v38245_v22 }
 0x653   :  { %25096 = vmatmul.mubr.bf16.gmra.mrb[92].mxu0 %v33566_v25  ;;  %v33590_v35 = vpack.c.b16 %v6214_v50, %v6213_v14  ;;  %v38249_v50 = vld [vmem:[#allocation157_spill] sm:$0xff] }
 0x654   :  { %25099 = vmatprep.mubr.bf16.mxu0 %v38213_v32 }
 0x655   :  { %38246 = vst [vmem:[#allocation28_spill] sm:$0xff] %v33590_v35 }
 0x658   :  { %25420 = vmatmul.mubr.bf16.gmra.mrb[32].mxu1 %v32705_v26 }
 0x659   :  { %25423 = vmatprep.mubr.bf16.mxu1 %v32697_v36 }
 0x65b   :  { %25100 = vmatmul.mubr.bf16.gmra.mrb[96].mxu0 %v38214_v38 }
 0x65c   :  { %25103 = vmatprep.mubr.bf16.mxu0 %v38215_v49 }
 0x660   :  { %25424 = vmatmul.mubr.bf16.gmra.mrb[36].mxu1 %v38227_v44 }
 0x661   :  { %25427 = vmatprep.mubr.bf16.mxu1 %v32769_v46  ;;  %v6226_v46 = vunpack.c.l.b16 %v38247_v31 }
 0x663   :  { %25104 = vmatmul.mubr.bf16.gmra.mrb[100].mxu0 %v33578_v34 }
 0x664   :  { %25107 = vmatprep.mubr.bf16.mxu0 %v38218_v45 }
 0x668   :  { %25428 = vmatmul.mubr.bf16.gmra.mrb[40].mxu1 %v32811_v20 }
 0x669   :  { %25431 = vmatprep.mubr.bf16.mxu1 %v32803_v39  ;;  %v6225_v39 = vunpack.c.h.b16 %v38232_v37 }
 0x66b   :  { %25108 = vmatmul.mubr.bf16.gmra.mrb[104].mxu0 %v38219_v42  ;;  %v33602_v14 = vpack.c.b16 %v6226_v46, %v6225_v39  ;;  %v28771_v39 = vld [vmem:[%s36659_s3 + $0x248] sm:$0xff]  }
 0x66c   :  { %25111 = vmatprep.mubr.bf16.mxu0 %v38220_v48 }
 0x66d   :  { %38248 = vst [vmem:[#allocation167_spill] sm:$0xff] %v33602_v14 }
 0x670   :  { %25432 = vmatmul.mubr.bf16.gmra.mrb[44].mxu1 %v38232_v37 }
 0x671   :  { %25435 = vmatprep.mubr.bf16.mxu1 %v32879_v11  ;;  %v6238_v11 = vunpack.c.l.b16 %v38249_v50 }
 0x673   :  { %25112 = vmatmul.mubr.bf16.gmra.mrb[108].mxu0 %v33590_v35 }
 0x674   :  { %25115 = vmatprep.mubr.bf16.mxu0 %v38223_v6 }
 0x678   :  { %25436 = vmatmul.mubr.bf16.gmra.mrb[48].mxu1 %v32917_v18 }
 0x679   :  { %25439 = vmatprep.mubr.bf16.mxu1 %v32911_v19  ;;  %v6237_v19 = vunpack.c.h.b16 %v38236_v62 }
 0x67b   :  { %25116 = vmatmul.mubr.bf16.gmra.mrb[112].mxu0 %v38224_v57  ;;  %v33614_v46 = vpack.c.b16 %v6238_v11, %v6237_v19  ;;  %v28775_v11 = vld [vmem:[%s36659_s3 + $0x268] sm:$0xff]   ;;  %v28776_v19 = vld [vmem:[%s36659_s3 + $0x270] sm:$0xff]  }
 0x67c   :  { %25119 = vmatprep.mubr.bf16.mxu0 %v38225_v58 }
 0x67d   :  { %38250 = vst [vmem:[#allocation289_spill] sm:$0xff] %v33614_v46 }
 0x680   :  { %25440 = vmatmul.mubr.bf16.gmra.mrb[52].mxu1 %v38236_v62 }
 0x681   :  { %25443 = vmatprep.mubr.bf16.mxu1 %v32979_v52  ;;  %v28772_v52 = vld [vmem:[%s36659_s3 + $0x250] sm:$0xff]  }
 0x683   :  { %25120 = vmatmul.mubr.bf16.gmra.mrb[116].mxu0 %v33602_v14 }
 0x684   :  { %25123 = vmatprep.mubr.bf16.mxu0 %v38228_v60 }
 0x688   :  { %25444 = vmatmul.mubr.bf16.gmra.mrb[56].mxu1 %v33025_v12 }
 0x689   :  { %25447 = vmatprep.mubr.bf16.mxu1 %v33017_v54 }
 0x68b   :  { %25124 = vmatmul.mubr.bf16.gmra.mrb[120].mxu0 %v38229_v43 }
 0x68c   :  { %25127 = vmatprep.mubr.bf16.mxu0 %v38231_v28 }
 0x690   :  { %25448 = vmatmul.mubr.bf16.gmra.mrb[60].mxu1 %v33065_v2 }
 0x691   :  { %25467 = vmatprep.mubr.bf16.mxu1 %v32477_v53  ;;  %v28773_v53 = vld [vmem:[%s36659_s3 + $0x258] sm:$0xff]  }
 0x693   :  { %25128 = vmatmul.mubr.bf16.gmra.mrb[124].mxu0 %v33614_v46 }
 0x698   :  { %25468 = vmatmul.mubr.bf16.vlgmr.msra.gmra.mrb[0].mxu1 %v32485_v41  ;;  %v28774_v41 = vld [vmem:[%s36659_s3 + $0x260] sm:$0xff]  }
 0x699   :  { %25532 = vmatpush3.bf16.msra.mxu1 %v33541_v9  ;;  %25471 = vmatprep.mubr.bf16.mxu1 %v38200_v56  ;;  %v28778_v56 = vld [vmem:[%s36659_s3 + $0x280] sm:$0xff]  }
 0x69a   :  { %25533 = vmatprep.subr.bf16.mxu1 %v28771_v39 }
 0x69d   :  { %25534 = vmatpush3.bf16.msra.mxu1 %v28771_v39 }
 0x69e   :  { %25535 = vmatprep.subr.bf16.mxu1 %v28772_v52 }
 0x6a0   :  { %25472 = vmatmul.mubr.bf16.gmra.mrb[4].mxu1 %v33535_v21 }
 0x6a1   :  { %25475 = vmatprep.mubr.bf16.mxu1 %v38203_v3  ;;  %25536 = vmatpush3.bf16.msra.mxu1 %v28772_v52  ;;  %v28777_v52 = vld [vmem:[%s36659_s3 + $0x278] sm:$0xff]  }
 0x6a2   :  { %25537 = vmatprep.subr.bf16.mxu1 %v28773_v53 }
 0x6a5   :  { %25538 = vmatpush3.bf16.msra.mxu1 %v28773_v53 }
 0x6a6   :  { %25539 = vmatprep.subr.bf16.mxu1 %v28774_v41 }
 0x6a8   :  { %25476 = vmatmul.mubr.bf16.gmra.mrb[8].mxu1 %v38204_v30 }
 0x6a9   :  { %25479 = vmatprep.mubr.bf16.mxu1 %v38205_v40  ;;  %25540 = vmatpush3.bf16.msra.mxu1 %v28774_v41 }
 0x6aa   :  { %25541 = vmatprep.subr.bf16.mxu1 %v28775_v11 }
 0x6ad   :  { %25542 = vmatpush3.bf16.msra.mxu1 %v28775_v11 }
 0x6ae   :  { %25543 = vmatprep.subr.bf16.mxu1 %v28776_v19 }
 0x6b0   :  { %25480 = vmatmul.mubr.bf16.gmra.mrb[12].mxu1 %v33554_v55 }
 0x6b1   :  { %25483 = vmatprep.mubr.bf16.mxu1 %v38208_v16  ;;  %25544 = vmatpush3.bf16.msra.mxu1 %v28776_v19 }
 0x6b2   :  { %25545 = vmatprep.subr.bf16.mxu1 %v28777_v52 }
 0x6b5   :  { %25546 = vmatpush3.bf16.msra.mxu1 %v28777_v52 }
 0x6b6   :  { %25611 = vmatprep.subr.bf16.mxu1 %v28778_v56 }
 0x6b8   :  { %25484 = vmatmul.mubr.bf16.gmra.mrb[16].mxu1 %v38209_v17 }
 0x6b9   :  { %25487 = vmatprep.mubr.bf16.mxu1 %v38210_v15 }
 0x6c0   :  { %25488 = vmatmul.mubr.bf16.gmra.mrb[20].mxu1 %v33566_v25 }
 0x6c1   :  { %25491 = vmatprep.mubr.bf16.mxu1 %v38213_v32 }
 0x6c8   :  { %25492 = vmatmul.mubr.bf16.gmra.mrb[24].mxu1 %v38214_v38 }
 0x6c9   :  { %25495 = vmatprep.mubr.bf16.mxu1 %v38215_v49 }
 0x6d0   :  { %25496 = vmatmul.mubr.bf16.gmra.mrb[28].mxu1 %v33578_v34 }
 0x6d1   :  { %25499 = vmatprep.mubr.bf16.mxu1 %v38218_v45 }
 0x6d8   :  { %25500 = vmatmul.mubr.bf16.gmra.mrb[32].mxu1 %v38219_v42 }
 0x6d9   :  { %25503 = vmatprep.mubr.bf16.mxu1 %v38220_v48 }
 0x6e0   :  { %25504 = vmatmul.mubr.bf16.gmra.mrb[36].mxu1 %v33590_v35 }
 0x6e1   :  { %25507 = vmatprep.mubr.bf16.mxu1 %v38223_v6 }
 0x6e8   :  { %25508 = vmatmul.mubr.bf16.gmra.mrb[40].mxu1 %v38224_v57 }
 0x6e9   :  { %25511 = vmatprep.mubr.bf16.mxu1 %v38225_v58 }
 0x6ee   :  { %v33664_v21 = vpop.f32.mrb[64].mxu0 }
 0x6ef   :  { %38251 = vst [vmem:[#allocation290_spill] sm:$0xff] %v33664_v21  ;;  %v33666_v9 = vpop.f32.mrb[65].mxu0 }
 0x6f0   :  { %38252 = vst [vmem:[#allocation29_spill] sm:$0xff] %v33666_v9  ;;  %v33668_v39 = vpop.f32.mrb[66].mxu0  ;;  %25512 = vmatmul.mubr.bf16.gmra.mrb[44].mxu1 %v33602_v14 }
 0x6f1   :  { %38253 = vst [vmem:[#allocation168_spill] sm:$0xff] %v33668_v39  ;;  %v33671_v53 = vpop.f32.mrb[67].mxu0  ;;  %25515 = vmatprep.mubr.bf16.mxu1 %v38228_v60 }
 0x6f2   :  { %38254 = vst [vmem:[#allocation291_spill] sm:$0xff] %v33671_v53 }
 0x6f6   :  { %v33674_v41 = vpop.f32.mrb[68].mxu0 }
 0x6f7   :  { %38255 = vst [vmem:[#allocation30_spill] sm:$0xff] %v33674_v41  ;;  %v33676_v11 = vpop.f32.mrb[69].mxu0 }
 0x6f8   :  { %38256 = vst [vmem:[#allocation169_spill] sm:$0xff] %v33676_v11  ;;  %v33678_v19 = vpop.f32.mrb[70].mxu0  ;;  %25516 = vmatmul.mubr.bf16.gmra.mrb[48].mxu1 %v38229_v43 }
 0x6f9   :  { %38257 = vst [vmem:[#allocation292_spill] sm:$0xff] %v33678_v19  ;;  %v33681_v52 = vpop.f32.mrb[71].mxu0  ;;  %25519 = vmatprep.mubr.bf16.mxu1 %v38231_v28 }
 0x6fa   :  { %38258 = vst [vmem:[#allocation31_spill] sm:$0xff] %v33681_v52 }
 0x6fe   :  { %v33684_v9 = vpop.f32.mrb[72].mxu0 }
 0x6ff   :  { %38259 = vst [vmem:[#allocation170_spill] sm:$0xff] %v33684_v9  ;;  %v33686_v39 = vpop.f32.mrb[73].mxu0 }
 0x700   :  { %38260 = vst [vmem:[#allocation32_spill] sm:$0xff] %v33686_v39  ;;  %v33688_v21 = vpop.f32.mrb[74].mxu0  ;;  %25520 = vmatmul.mubr.bf16.gmra.mrb[52].mxu1 %v33614_v46  ;;  %v38267_v39 = vld [vmem:[#allocation159_spill] sm:$0xff] }
 0x701   :  { %38261 = vst [vmem:[#allocation171_spill] sm:$0xff] %v33688_v21  ;;  %v33691_v53 = vpop.f32.mrb[75].mxu0  ;;  %25523 = vmatprep.mubr.bf16.mxu1 %v33481_v5  ;;  %v6249_v21 = vunpack.c.h.b16 %v33065_v2  ;;  %v6250_v9 = vunpack.c.l.b16 %v38267_v39 }
 0x702   :  { %38262 = vst [vmem:[#allocation293_spill] sm:$0xff] %v33691_v53 }
 0x703   :  { %v33708_v53 = vpack.c.b16 %v6250_v9, %v6249_v21  ;;  %v38276_v9 = vld [vmem:[#allocation131_spill] sm:$0xff] }
 0x705   :  { %38269 = vst [vmem:[#allocation173_spill] sm:$0xff] %v33708_v53 }
 0x706   :  { %v33694_v11 = vpop.f32.mrb[76].mxu0 }
 0x707   :  { %38263 = vst [vmem:[#allocation294_spill] sm:$0xff] %v33694_v11  ;;  %v33696_v19 = vpop.f32.mrb[77].mxu0 }
 0x708   :  { %38264 = vst [vmem:[#allocation33_spill] sm:$0xff] %v33696_v19  ;;  %v33698_v41 = vpop.f32.mrb[78].mxu0  ;;  %25524 = vmatmul.mubr.bf16.gmra.mrb[56].mxu1 %v33483_v0  ;;  %v28779_v19 = vld [vmem:[%s36659_s3 + $0x288] sm:$0xff]  }
 0x709   :  { %38265 = vst [vmem:[#allocation172_spill] sm:$0xff] %v33698_v41  ;;  %v33701_v52 = vpop.f32.mrb[79].mxu0  ;;  %25527 = vmatprep.mubr.bf16.mxu1 %v33491_v47 }
 0x70a   :  { %38266 = vst [vmem:[#allocation295_spill] sm:$0xff] %v33701_v52 }
 0x70e   :  { %v33706_v46 = vpop.f32.mrb[80].mxu0 }
 0x70f   :  { %38268 = vst [vmem:[#allocation34_spill] sm:$0xff] %v33706_v46  ;;  %v33710_v14 = vpop.f32.mrb[81].mxu0  ;;  %v38329_v46 = vld [vmem:[#allocation273_spill] sm:$0xff] }
 0x710   :  { %38270 = vst [vmem:[#allocation296_spill] sm:$0xff] %v33710_v14  ;;  %v33712_v11 = vpop.f32.mrb[82].mxu0  ;;  %25528 = vmatmul.mubr.bf16.gmra.mrb[60].mxu1 %v33708_v53  ;;  %v38327_v14 = vld [vmem:[#allocation9_spill] sm:$0xff] }
 0x711   :  { %38271 = vst [vmem:[#allocation35_spill] sm:$0xff] %v33712_v11  ;;  %v33715_v41 = vpop.f32.mrb[83].mxu0  ;;  %25547 = vmatprep.mubr.bf16.mxu1 %v32246_v61  ;;  %v28780_v61 = vld [vmem:[%s36659_s3 + $0x290] sm:$0xff]  }
 0x712   :  { %38272 = vst [vmem:[#allocation174_spill] sm:$0xff] %v33715_v41  ;;  %v38325_v41 = vld [vmem:[#allocation143_spill] sm:$0xff] }
 0x716   :  { %v33718_v52 = vpop.f32.mrb[84].mxu0 }
 0x717   :  { %38273 = vst [vmem:[#allocation36_spill] sm:$0xff] %v33718_v52  ;;  %v33723_v35 = vpop.f32.mrb[85].mxu0 }
 0x718   :  { %38274 = vst [vmem:[#allocation175_spill] sm:$0xff] %v33723_v35  ;;  %v33725_v21 = vpop.f32.mrb[86].mxu0  ;;  %25548 = vmatmul.mubr.bf16.vlgmr.msra.gmra.mrb[0].mxu1 %v38276_v9 }
 0x719   :  { %38275 = vst [vmem:[#allocation297_spill] sm:$0xff] %v33725_v21  ;;  %25612 = vmatpush3.bf16.msra.mxu1 %v28778_v56  ;;  %v33728_v11 = vpop.f32.mrb[87].mxu0  ;;  %25551 = vmatprep.mubr.bf16.mxu1 %v38207_v51  ;;  %v28781_v21 = vld [vmem:[%s36659_s3 + $0x298] sm:$0xff]  }
 0x71a   :  { %38277 = vst [vmem:[#allocation298_spill] sm:$0xff] %v33728_v11  ;;  %25613 = vmatprep.subr.bf16.mxu1 %v28779_v19 }
 0x71d   :  { %25614 = vmatpush3.bf16.msra.mxu1 %v28779_v19  ;;  %v28782_v19 = vld [vmem:[%s36659_s3 + $0x2a0] sm:$0xff]  }
 0x71e   :  { %v33734_v52 = vpop.f32.mrb[88].mxu0  ;;  %25615 = vmatprep.subr.bf16.mxu1 %v28780_v61 }
 0x71f   :  { %38278 = vst [vmem:[#allocation37_spill] sm:$0xff] %v33734_v52  ;;  %v33739_v35 = vpop.f32.mrb[89].mxu0 }
 0x720   :  { %38279 = vst [vmem:[#allocation176_spill] sm:$0xff] %v33739_v35  ;;  %v33741_v56 = vpop.f32.mrb[90].mxu0  ;;  %25552 = vmatmul.mubr.bf16.gmra.mrb[4].mxu1 %v38241_v8 }
 0x721   :  { %38280 = vst [vmem:[#allocation299_spill] sm:$0xff] %v33741_v56  ;;  %v33744_v51 = vpop.f32.mrb[91].mxu0  ;;  %25555 = vmatprep.mubr.bf16.mxu1 %v32354_v4  ;;  %25616 = vmatpush3.bf16.msra.mxu1 %v28780_v61  ;;  %v28783_v56 = vld [vmem:[%s36659_s3 + $0x2a8] sm:$0xff]  }
 0x722   :  { %38281 = vst [vmem:[#allocation38_spill] sm:$0xff] %v33744_v51  ;;  %25617 = vmatprep.subr.bf16.mxu1 %v28781_v21 }
 0x725   :  { %25618 = vmatpush3.bf16.msra.mxu1 %v28781_v21  ;;  %v28784_v21 = vld [vmem:[%s36659_s3 + $0x2b0] sm:$0xff]  }
 0x726   :  { %v33750_v9 = vpop.f32.mrb[92].mxu0  ;;  %25619 = vmatprep.subr.bf16.mxu1 %v28782_v19 }
 0x727   :  { %38282 = vst [vmem:[#allocation177_spill] sm:$0xff] %v33750_v9  ;;  %v33755_v35 = vpop.f32.mrb[93].mxu0 }
 0x728   :  { %38283 = vst [vmem:[#allocation300_spill] sm:$0xff] %v33755_v35  ;;  %v33757_v8 = vpop.f32.mrb[94].mxu0  ;;  %25556 = vmatmul.mubr.bf16.gmra.mrb[8].mxu1 %v32348_v27 }
 0x729   :  { %38284 = vst [vmem:[#allocation39_spill] sm:$0xff] %v33757_v8  ;;  %v33760_v61 = vpop.f32.mrb[95].mxu0  ;;  %25559 = vmatprep.mubr.bf16.mxu1 %v38212_v24  ;;  %25620 = vmatpush3.bf16.msra.mxu1 %v28782_v19  ;;  %v28785_v8 = vld [vmem:[%s36659_s3 + $0x2b8] sm:$0xff]  }
 0x72a   :  { %38285 = vst [vmem:[#allocation178_spill] sm:$0xff] %v33760_v61  ;;  %25621 = vmatprep.subr.bf16.mxu1 %v28783_v56 }
 0x72d   :  { %25622 = vmatpush3.bf16.msra.mxu1 %v28783_v56  ;;  %v28786_v56 = vld [vmem:[%s36659_s3 + $0x2c0] sm:$0xff]  }
 0x72e   :  { %v33766_v9 = vpop.f32.mrb[96].mxu0  ;;  %25623 = vmatprep.subr.bf16.mxu1 %v28784_v21 }
 0x72f   :  { %38286 = vst [vmem:[#allocation40_spill] sm:$0xff] %v33766_v9  ;;  %v33771_v35 = vpop.f32.mrb[97].mxu0 }
 0x730   :  { %38287 = vst [vmem:[#allocation179_spill] sm:$0xff] %v33771_v35  ;;  %v33773_v51 = vpop.f32.mrb[98].mxu0  ;;  %25560 = vmatmul.mubr.bf16.gmra.mrb[12].mxu1 %v38242_v7 }
 0x731   :  { %38288 = vst [vmem:[#allocation301_spill] sm:$0xff] %v33773_v51  ;;  %v33776_v19 = vpop.f32.mrb[99].mxu0  ;;  %25563 = vmatprep.mubr.bf16.mxu1 %v32479_v33  ;;  %25624 = vmatpush3.bf16.msra.mxu1 %v28784_v21 }
 0x732   :  { %38289 = vst [vmem:[#allocation302_spill] sm:$0xff] %v33776_v19  ;;  %25625 = vmatprep.subr.bf16.mxu1 %v28785_v8 }
 0x735   :  { %25626 = vmatpush3.bf16.msra.mxu1 %v28785_v8 }
 0x736   :  { %v33782_v9 = vpop.f32.mrb[100].mxu0  ;;  %25691 = vmatprep.subr.bf16.mxu1 %v28786_v56 }
 0x737   :  { %38290 = vst [vmem:[#allocation41_spill] sm:$0xff] %v33782_v9  ;;  %v33784_v61 = vpop.f32.mrb[101].mxu0 }
 0x738   :  { %38291 = vst [vmem:[#allocation180_spill] sm:$0xff] %v33784_v61  ;;  %v33786_v35 = vpop.f32.mrb[102].mxu0  ;;  %25564 = vmatmul.mubr.bf16.gmra.mrb[16].mxu1 %v32471_v23 }
 0x739   :  { %38292 = vst [vmem:[#allocation303_spill] sm:$0xff] %v33786_v35  ;;  %v33789_v51 = vpop.f32.mrb[103].mxu0  ;;  %25567 = vmatprep.mubr.bf16.mxu1 %v38217_v1 }
 0x73a   :  { %38293 = vst [vmem:[#allocation42_spill] sm:$0xff] %v33789_v51 }
 0x73e   :  { %v33792_v21 = vpop.f32.mrb[104].mxu0 }
 0x73f   :  { %38294 = vst [vmem:[#allocation181_spill] sm:$0xff] %v33792_v21  ;;  %v33794_v19 = vpop.f32.mrb[105].mxu0 }
 0x740   :  { %38295 = vst [vmem:[#allocation304_spill] sm:$0xff] %v33794_v19  ;;  %v33796_v52 = vpop.f32.mrb[106].mxu0  ;;  %25568 = vmatmul.mubr.bf16.gmra.mrb[20].mxu1 %v38243_v63 }
 0x741   :  { %38296 = vst [vmem:[#allocation43_spill] sm:$0xff] %v33796_v52  ;;  %v33799_v8 = vpop.f32.mrb[107].mxu0  ;;  %25571 = vmatprep.mubr.bf16.mxu1 %v32594_v29 }
 0x742   :  { %38297 = vst [vmem:[#allocation182_spill] sm:$0xff] %v33799_v8 }
 0x746   :  { %v33802_v61 = vpop.f32.mrb[108].mxu0 }
 0x747   :  { %38298 = vst [vmem:[#allocation44_spill] sm:$0xff] %v33802_v61  ;;  %v33804_v35 = vpop.f32.mrb[109].mxu0 }
 0x748   :  { %38299 = vst [vmem:[#allocation183_spill] sm:$0xff] %v33804_v35  ;;  %v33806_v9 = vpop.f32.mrb[110].mxu0  ;;  %25572 = vmatmul.mubr.bf16.gmra.mrb[24].mxu1 %v32586_v13 }
 0x749   :  { %38300 = vst [vmem:[#allocation305_spill] sm:$0xff] %v33806_v9  ;;  %v33809_v51 = vpop.f32.mrb[111].mxu0  ;;  %25575 = vmatprep.mubr.bf16.mxu1 %v38222_v10 }
 0x74a   :  { %38301 = vst [vmem:[#allocation306_spill] sm:$0xff] %v33809_v51 }
 0x74e   :  { %v33812_v19 = vpop.f32.mrb[112].mxu0 }
 0x74f   :  { %38302 = vst [vmem:[#allocation45_spill] sm:$0xff] %v33812_v19  ;;  %v33814_v52 = vpop.f32.mrb[113].mxu0 }
 0x750   :  { %38303 = vst [vmem:[#allocation184_spill] sm:$0xff] %v33814_v52  ;;  %v33816_v21 = vpop.f32.mrb[114].mxu0  ;;  %25576 = vmatmul.mubr.bf16.gmra.mrb[28].mxu1 %v38244_v59  ;;  %v38339_v59 = vld [vmem:[#allocation146_spill] sm:$0xff] }
 0x751   :  { %38304 = vst [vmem:[#allocation307_spill] sm:$0xff] %v33816_v21  ;;  %v33819_v8 = vpop.f32.mrb[115].mxu0  ;;  %25579 = vmatprep.mubr.bf16.mxu1 %v32705_v26 }
 0x752   :  { %38305 = vst [vmem:[#allocation46_spill] sm:$0xff] %v33819_v8 }
 0x756   :  { %v33822_v35 = vpop.f32.mrb[116].mxu0 }
 0x757   :  { %38306 = vst [vmem:[#allocation185_spill] sm:$0xff] %v33822_v35  ;;  %v33824_v9 = vpop.f32.mrb[117].mxu0 }
 0x758   :  { %38307 = vst [vmem:[#allocation308_spill] sm:$0xff] %v33824_v9  ;;  %v33826_v61 = vpop.f32.mrb[118].mxu0  ;;  %25580 = vmatmul.mubr.bf16.gmra.mrb[32].mxu1 %v32697_v36 }
 0x759   :  { %38308 = vst [vmem:[#allocation47_spill] sm:$0xff] %v33826_v61  ;;  %v33829_v51 = vpop.f32.mrb[119].mxu0  ;;  %25583 = vmatprep.mubr.bf16.mxu1 %v38227_v44 }
 0x75a   :  { %38309 = vst [vmem:[#allocation186_spill] sm:$0xff] %v33829_v51  ;;  %v38317_v51 = vld [vmem:[#allocation275_spill] sm:$0xff] }
 0x75e   :  { %v33832_v52 = vpop.f32.mrb[120].mxu0 }
 0x75f   :  { %38310 = vst [vmem:[#allocation48_spill] sm:$0xff] %v33832_v52  ;;  %v33834_v21 = vpop.f32.mrb[121].mxu0  ;;  %v38324_v52 = vld [vmem:[#allocation145_spill] sm:$0xff] }
 0x760   :  { %38311 = vst [vmem:[#allocation187_spill] sm:$0xff] %v33834_v21  ;;  %v33836_v19 = vpop.f32.mrb[122].mxu0  ;;  %25584 = vmatmul.mubr.bf16.gmra.mrb[36].mxu1 %v38245_v22  ;;  %v38323_v21 = vld [vmem:[#allocation139_spill] sm:$0xff]  ;;  %v28796_v22 = vld [vmem:[%s36659_s3 + $0x310] sm:$0xff]  }
 0x761   :  { %38312 = vst [vmem:[#allocation309_spill] sm:$0xff] %v33836_v19  ;;  %v33839_v8 = vpop.f32.mrb[123].mxu0  ;;  %25587 = vmatprep.mubr.bf16.mxu1 %v32811_v20  ;;  %v38319_v19 = vld [vmem:[#allocation156_spill] sm:$0xff] }
 0x762   :  { %38313 = vst [vmem:[#allocation310_spill] sm:$0xff] %v33839_v8  ;;  %v38322_v8 = vld [vmem:[#allocation5_spill] sm:$0xff] }
 0x766   :  { %v33842_v9 = vpop.f32.mrb[124].mxu0 }
 0x767   :  { %38314 = vst [vmem:[#allocation49_spill] sm:$0xff] %v33842_v9  ;;  %v33844_v61 = vpop.f32.mrb[125].mxu0  ;;  %v28788_v9 = vld [vmem:[%s36659_s3 + $0x2d0] sm:$0xff]  }
 0x768   :  { %38315 = vst [vmem:[#allocation188_spill] sm:$0xff] %v33844_v61  ;;  %v33846_v35 = vpop.f32.mrb[126].mxu0  ;;  %25588 = vmatmul.mubr.bf16.gmra.mrb[40].mxu1 %v38317_v51  ;;  %v38321_v61 = vld [vmem:[#allocation3_spill] sm:$0xff] }
 0x769   :  { %38316 = vst [vmem:[#allocation311_spill] sm:$0xff] %v33846_v35  ;;  %v33849_v11 = vpop.f32.mrb[127].mxu0  ;;  %25591 = vmatprep.mubr.bf16.mxu1 %v38232_v37  ;;  %v28787_v35 = vld [vmem:[%s36659_s3 + $0x2c8] sm:$0xff]  }
 0x76a   :  { %38318 = vst [vmem:[#allocation50_spill] sm:$0xff] %v33849_v11  ;;  %v38320_v11 = vld [vmem:[#allocation134_spill] sm:$0xff] }
 0x770   :  { %25592 = vmatmul.mubr.bf16.gmra.mrb[44].mxu1 %v38247_v31  ;;  %v38338_v31 = vld [vmem:[#allocation6_spill] sm:$0xff] }
 0x771   :  { %25595 = vmatprep.mubr.bf16.mxu1 %v32917_v18 }
 0x778   :  { %25596 = vmatmul.mubr.bf16.gmra.mrb[48].mxu1 %v38319_v19 }
 0x779   :  { %25599 = vmatprep.mubr.bf16.mxu1 %v38236_v62 }
 0x780   :  { %25600 = vmatmul.mubr.bf16.gmra.mrb[52].mxu1 %v38249_v50  ;;  %v38336_v50 = vld [vmem:[#allocation160_spill] sm:$0xff] }
 0x781   :  { %25603 = vmatprep.mubr.bf16.mxu1 %v33025_v12  ;;  %v6257_v7 = vunpack.c.h.b16 %v38336_v50 }
 0x788   :  { %25604 = vmatmul.mubr.bf16.gmra.mrb[56].mxu1 %v33017_v54 }
 0x789   :  { %25607 = vmatprep.mubr.bf16.mxu1 %v33065_v2 }
 0x790   :  { %25608 = vmatmul.mubr.bf16.gmra.mrb[60].mxu1 %v38267_v39  ;;  %v38335_v39 = vld [vmem:[#allocation281_spill] sm:$0xff] }
 0x791   :  { %25627 = vmatprep.mubr.bf16.mxu1 %v38320_v11  ;;  %v28789_v11 = vld [vmem:[%s36659_s3 + $0x2d8] sm:$0xff]   ;;  %v6255_v53 = vunpack.c.h.b16 %v38335_v39 }
 0x798   :  { %25628 = vmatmul.mubr.bf16.vlgmr.msra.gmra.mrb[0].mxu1 %v38321_v61 }
 0x799   :  { %25692 = vmatpush3.bf16.msra.mxu1 %v28786_v56  ;;  %25631 = vmatprep.mubr.bf16.mxu1 %v32354_v4  ;;  %v28790_v56 = vld [vmem:[%s36659_s3 + $0x2e0] sm:$0xff]  }
 0x79a   :  { %25693 = vmatprep.subr.bf16.mxu1 %v28787_v35 }
 0x79d   :  { %25694 = vmatpush3.bf16.msra.mxu1 %v28787_v35  ;;  %v28791_v35 = vld [vmem:[%s36659_s3 + $0x2e8] sm:$0xff]  }
 0x79e   :  { %25695 = vmatprep.subr.bf16.mxu1 %v28788_v9 }
 0x7a0   :  { %25632 = vmatmul.mubr.bf16.gmra.mrb[4].mxu1 %v32348_v27 }
 0x7a1   :  { %25635 = vmatprep.mubr.bf16.mxu1 %v38322_v8  ;;  %25696 = vmatpush3.bf16.msra.mxu1 %v28788_v9  ;;  %v28792_v9 = vld [vmem:[%s36659_s3 + $0x2f0] sm:$0xff]   ;;  %v38333_v8 = vld [vmem:[#allocation158_spill] sm:$0xff] }
 0x7a2   :  { %25697 = vmatprep.subr.bf16.mxu1 %v28789_v11 }
 0x7a5   :  { %25698 = vmatpush3.bf16.msra.mxu1 %v28789_v11  ;;  %v28793_v11 = vld [vmem:[%s36659_s3 + $0x2f8] sm:$0xff]  }
 0x7a6   :  { %25699 = vmatprep.subr.bf16.mxu1 %v28790_v56 }
 0x7a8   :  { %25636 = vmatmul.mubr.bf16.gmra.mrb[8].mxu1 %v38323_v21 }
 0x7a9   :  { %25639 = vmatprep.mubr.bf16.mxu1 %v32479_v33  ;;  %25700 = vmatpush3.bf16.msra.mxu1 %v28790_v56  ;;  %v28794_v56 = vld [vmem:[%s36659_s3 + $0x300] sm:$0xff]  }
 0x7aa   :  { %25701 = vmatprep.subr.bf16.mxu1 %v28791_v35 }
 0x7ad   :  { %25702 = vmatpush3.bf16.msra.mxu1 %v28791_v35  ;;  %v38326_v35 = vld [vmem:[#allocation271_spill] sm:$0xff] }
 0x7ae   :  { %25703 = vmatprep.subr.bf16.mxu1 %v28792_v9 }
 0x7b0   :  { %25640 = vmatmul.mubr.bf16.gmra.mrb[12].mxu1 %v32471_v23 }
 0x7b1   :  { %25643 = vmatprep.mubr.bf16.mxu1 %v38324_v52  ;;  %25704 = vmatpush3.bf16.msra.mxu1 %v28792_v9  ;;  %v38328_v9 = vld [vmem:[#allocation13_spill] sm:$0xff]  ;;  %v38331_v52 = vld [vmem:[#allocation155_spill] sm:$0xff] }
 0x7b2   :  { %25705 = vmatprep.subr.bf16.mxu1 %v28793_v11 }
 0x7b5   :  { %25706 = vmatpush3.bf16.msra.mxu1 %v28793_v11  ;;  %v38330_v11 = vld [vmem:[#allocation278_spill] sm:$0xff] }
 0x7b6   :  { %25771 = vmatprep.subr.bf16.mxu1 %v28794_v56 }
 0x7b8   :  { %25644 = vmatmul.mubr.bf16.gmra.mrb[16].mxu1 %v38325_v41 }
 0x7b9   :  { %25647 = vmatprep.mubr.bf16.mxu1 %v32594_v29 }
 0x7c0   :  { %25648 = vmatmul.mubr.bf16.gmra.mrb[20].mxu1 %v32586_v13 }
 0x7c1   :  { %25651 = vmatprep.mubr.bf16.mxu1 %v38326_v35  ;;  %v38332_v35 = vld [vmem:[#allocation20_spill] sm:$0xff] }
 0x7c8   :  { %25652 = vmatmul.mubr.bf16.gmra.mrb[24].mxu1 %v38327_v14 }
 0x7c9   :  { %25655 = vmatprep.mubr.bf16.mxu1 %v32705_v26 }
 0x7d0   :  { %25656 = vmatmul.mubr.bf16.gmra.mrb[28].mxu1 %v32697_v36 }
 0x7d1   :  { %25659 = vmatprep.mubr.bf16.mxu1 %v38328_v9  ;;  %v38334_v9 = vld [vmem:[#allocation282_spill] sm:$0xff] }
 0x7d8   :  { %25660 = vmatmul.mubr.bf16.gmra.mrb[32].mxu1 %v38329_v46 }
 0x7d9   :  { %25663 = vmatprep.mubr.bf16.mxu1 %v32811_v20 }
 0x7e0   :  { %25664 = vmatmul.mubr.bf16.gmra.mrb[36].mxu1 %v38317_v51 }
 0x7e1   :  { %25667 = vmatprep.mubr.bf16.mxu1 %v38330_v11  ;;  %v38337_v11 = vld [vmem:[#allocation21_spill] sm:$0xff] }
 0x7e8   :  { %25668 = vmatmul.mubr.bf16.gmra.mrb[40].mxu1 %v38331_v52 }
 0x7e9   :  { %25671 = vmatprep.mubr.bf16.mxu1 %v32917_v18 }
 0x7f0   :  { %25672 = vmatmul.mubr.bf16.gmra.mrb[44].mxu1 %v38319_v19 }
 0x7f1   :  { %25675 = vmatprep.mubr.bf16.mxu1 %v38332_v35  ;;  %v28795_v35 = vld [vmem:[%s36659_s3 + $0x308] sm:$0xff]  }
 0x7f8   :  { %25676 = vmatmul.mubr.bf16.gmra.mrb[48].mxu1 %v38333_v8 }
 0x7f9   :  { %25679 = vmatprep.mubr.bf16.mxu1 %v33025_v12 }
 0x800   :  { %25680 = vmatmul.mubr.bf16.gmra.mrb[52].mxu1 %v33017_v54 }
 0x801   :  { %25683 = vmatprep.mubr.bf16.mxu1 %v38334_v9 }
 0x808   :  { %25684 = vmatmul.mubr.bf16.gmra.mrb[56].mxu1 %v38335_v39 }
 0x809   :  { %25687 = vmatprep.mubr.bf16.mxu1 %v38336_v50 }
 0x810   :  { %25688 = vmatmul.mubr.bf16.gmra.mrb[60].mxu1 %v38337_v11 }
 0x811   :  { %25707 = vmatprep.mubr.bf16.mxu1 %v38338_v31  ;;  %v28797_v31 = vld [vmem:[%s36659_s3 + $0x318] sm:$0xff]  }
 0x818   :  { %25708 = vmatmul.mubr.bf16.vlgmr.msra.gmra.mrb[0].mxu1 %v38203_v3 }
 0x819   :  { %25772 = vmatpush3.bf16.msra.mxu1 %v28794_v56  ;;  %25711 = vmatprep.mubr.bf16.mxu1 %v38204_v30  ;;  %v28798_v56 = vld [vmem:[%s36659_s3 + $0x320] sm:$0xff]  }
 0x81a   :  { %25773 = vmatprep.subr.bf16.mxu1 %v28795_v35 }
 0x81d   :  { %25774 = vmatpush3.bf16.msra.mxu1 %v28795_v35  ;;  %v28799_v35 = vld [vmem:[%s36659_s3 + $0x328] sm:$0xff]  }
 0x81e   :  { %25775 = vmatprep.subr.bf16.mxu1 %v28796_v22 }
 0x820   :  { %25712 = vmatmul.mubr.bf16.gmra.mrb[4].mxu1 %v38205_v40 }
 0x821   :  { %25715 = vmatprep.mubr.bf16.mxu1 %v38339_v59  ;;  %25776 = vmatpush3.bf16.msra.mxu1 %v28796_v22  ;;  %v28800_v22 = vld [vmem:[%s36659_s3 + $0x330] sm:$0xff]   ;;  %v38340_v59 = vld [vmem:[#allocation10_spill] sm:$0xff] }
 0x822   :  { %25777 = vmatprep.subr.bf16.mxu1 %v28797_v31 }
 0x825   :  { %25778 = vmatpush3.bf16.msra.mxu1 %v28797_v31  ;;  %v28801_v31 = vld [vmem:[%s36659_s3 + $0x338] sm:$0xff]  }
 0x826   :  { %25779 = vmatprep.subr.bf16.mxu1 %v28798_v56 }
 0x828   :  { %25716 = vmatmul.mubr.bf16.gmra.mrb[8].mxu1 %v38208_v16 }
 0x829   :  { %25719 = vmatprep.mubr.bf16.mxu1 %v38209_v17  ;;  %25780 = vmatpush3.bf16.msra.mxu1 %v28798_v56  ;;  %v28802_v56 = vld [vmem:[%s36659_s3 + $0x340] sm:$0xff]  }
 0x82a   :  { %25781 = vmatprep.subr.bf16.mxu1 %v28799_v35 }
 0x82d   :  { %25782 = vmatpush3.bf16.msra.mxu1 %v28799_v35  ;;  %v38341_v35 = vld [vmem:[#allocation151_spill] sm:$0xff] }
 0x82e   :  { %25783 = vmatprep.subr.bf16.mxu1 %v28800_v22 }
 0x830   :  { %25720 = vmatmul.mubr.bf16.gmra.mrb[12].mxu1 %v38210_v15 }
 0x831   :  { %25723 = vmatprep.mubr.bf16.mxu1 %v38340_v59  ;;  %25784 = vmatpush3.bf16.msra.mxu1 %v28800_v22  ;;  %v38342_v22 = vld [vmem:[#allocation153_spill] sm:$0xff]  ;;  %v6254_v59 = vunpack.c.l.b16 %v38335_v39 }
 0x832   :  { %25785 = vmatprep.subr.bf16.mxu1 %v28801_v31 }
 0x835   :  { %25786 = vmatpush3.bf16.msra.mxu1 %v28801_v31  ;;  %v38343_v31 = vld [vmem:[#allocation17_spill] sm:$0xff] }
 0x836   :  { %25851 = vmatprep.subr.bf16.mxu1 %v28802_v56 }
 0x838   :  { %25724 = vmatmul.mubr.bf16.gmra.mrb[16].mxu1 %v38213_v32 }
 0x839   :  { %25727 = vmatprep.mubr.bf16.mxu1 %v38214_v38 }
 0x840   :  { %25728 = vmatmul.mubr.bf16.gmra.mrb[20].mxu1 %v38215_v49 }
 0x841   :  { %25731 = vmatprep.mubr.bf16.mxu1 %v38341_v35  ;;  %v38344_v35 = vld [vmem:[#allocation165_spill] sm:$0xff] }
 0x848   :  { %25732 = vmatmul.mubr.bf16.gmra.mrb[24].mxu1 %v38218_v45 }
 0x849   :  { %25735 = vmatprep.mubr.bf16.mxu1 %v38219_v42 }
 0x850   :  { %25736 = vmatmul.mubr.bf16.gmra.mrb[28].mxu1 %v38220_v48 }
 0x851   :  { %25739 = vmatprep.mubr.bf16.mxu1 %v38342_v22  ;;  %v6253_v22 = vunpack.c.h.b16 %v38334_v9 }
 0x853   :  { %v33970_v63 = vpack.c.b16 %v6254_v59, %v6253_v22  ;;  %v38348_v59 = vld [vmem:[#allocation22_spill] sm:$0xff] }
 0x854   :  { %v6260_v22 = vunpack.c.l.b16 %v38348_v59 }
 0x855   :  { %38345 = vst [vmem:[#allocation189_spill] sm:$0xff] %v33970_v63 }
 0x858   :  { %25740 = vmatmul.mubr.bf16.gmra.mrb[32].mxu1 %v38223_v6 }
 0x859   :  { %25743 = vmatprep.mubr.bf16.mxu1 %v38224_v57 }
 0x860   :  { %25744 = vmatmul.mubr.bf16.gmra.mrb[36].mxu1 %v38225_v58 }
 0x861   :  { %25747 = vmatprep.mubr.bf16.mxu1 %v38343_v31  ;;  %v6256_v31 = vunpack.c.l.b16 %v38336_v50 }
 0x868   :  { %25748 = vmatmul.mubr.bf16.gmra.mrb[40].mxu1 %v38228_v60 }
 0x869   :  { %25751 = vmatprep.mubr.bf16.mxu1 %v38229_v43 }
 0x870   :  { %25752 = vmatmul.mubr.bf16.gmra.mrb[44].mxu1 %v38231_v28 }
 0x871   :  { %25755 = vmatprep.mubr.bf16.mxu1 %v38344_v35  ;;  %v6258_v35 = vunpack.c.l.b16 %v38337_v11 }
 0x878   :  { %25756 = vmatmul.mubr.bf16.gmra.mrb[48].mxu1 %v33481_v5  ;;  %v33978_v5 = vpack.c.b16 %v6256_v31, %v6255_v53  ;;  %v28803_v53 = vld [vmem:[%s36659_s3 + $0x348] sm:$0xff]   ;;  %v28809_v31 = vld [vmem:[%s36659_s3 + $0x378] sm:$0xff]  }
 0x879   :  { %25759 = vmatprep.mubr.bf16.mxu1 %v33483_v0  ;;  %v33980_v0 = vpack.c.b16 %v6258_v35, %v6257_v7  ;;  %v28804_v7 = vld [vmem:[%s36659_s3 + $0x350] sm:$0xff]  }
 0x87a   :  { %38346 = vst [vmem:[#allocation312_spill] sm:$0xff] %v33978_v5  ;;  %v28808_v35 = vld [vmem:[%s36659_s3 + $0x370] sm:$0xff]  }
 0x87b   :  { %38347 = vst [vmem:[#allocation51_spill] sm:$0xff] %v33980_v0 }
 0x880   :  { %25760 = vmatmul.mubr.bf16.gmra.mrb[52].mxu1 %v33491_v47 }
 0x881   :  { %25763 = vmatprep.mubr.bf16.mxu1 %v33970_v63  ;;  %v6259_v63 = vunpack.c.h.b16 %v38337_v11 }
 0x883   :  { %v33986_v9 = vpack.c.b16 %v6260_v22, %v6259_v63  ;;  %v28805_v63 = vld [vmem:[%s36659_s3 + $0x358] sm:$0xff]   ;;  %v28810_v22 = vld [vmem:[%s36659_s3 + $0x380] sm:$0xff]  }
 0x885   :  { %38349 = vst [vmem:[#allocation190_spill] sm:$0xff] %v33986_v9 }
 0x888   :  { %25764 = vmatmul.mubr.bf16.gmra.mrb[56].mxu1 %v33978_v5 }
 0x889   :  { %25767 = vmatprep.mubr.bf16.mxu1 %v33980_v0 }
 0x890   :  { %25768 = vmatmul.mubr.bf16.gmra.mrb[60].mxu1 %v33986_v9 }
 0x891   :  { %25787 = vmatprep.mubr.bf16.mxu1 %v38321_v61  ;;  %v28806_v61 = vld [vmem:[%s36659_s3 + $0x360] sm:$0xff]  }
 0x898   :  { %25788 = vmatmul.mubr.bf16.vlgmr.msra.gmra.mrb[0].mxu1 %v32354_v4 }
 0x899   :  { %25852 = vmatpush3.bf16.msra.mxu1 %v28802_v56  ;;  %25791 = vmatprep.mubr.bf16.mxu1 %v32348_v27  ;;  %v28807_v56 = vld [vmem:[%s36659_s3 + $0x368] sm:$0xff]  }
 0x89a   :  { %25853 = vmatprep.subr.bf16.mxu1 %v28803_v53 }
 0x89d   :  { %25854 = vmatpush3.bf16.msra.mxu1 %v28803_v53  ;;  %v28811_v53 = vld [vmem:[%s36659_s3 + $0x388] sm:$0xff]  }
 0x89e   :  { %25855 = vmatprep.subr.bf16.mxu1 %v28804_v7 }
 0x8a0   :  { %25792 = vmatmul.mubr.bf16.gmra.mrb[4].mxu1 %v38212_v24 }
 0x8a1   :  { %25795 = vmatprep.mubr.bf16.mxu1 %v38323_v21  ;;  %25856 = vmatpush3.bf16.msra.mxu1 %v28804_v7  ;;  %v28812_v7 = vld [vmem:[%s36659_s3 + $0x390] sm:$0xff]  }
 0x8a2   :  { %25857 = vmatprep.subr.bf16.mxu1 %v28805_v63 }
 0x8a5   :  { %25858 = vmatpush3.bf16.msra.mxu1 %v28805_v63  ;;  %v28817_v63 = vld [vmem:[%s36659_s3 + $0x3b8] sm:$0xff]  }
 0x8a6   :  { %25859 = vmatprep.subr.bf16.mxu1 %v28806_v61 }
 0x8a8   :  { %25796 = vmatmul.mubr.bf16.gmra.mrb[8].mxu1 %v32479_v33 }
 0x8a9   :  { %25799 = vmatprep.mubr.bf16.mxu1 %v32471_v23  ;;  %25860 = vmatpush3.bf16.msra.mxu1 %v28806_v61  ;;  %v28818_v61 = vld [vmem:[%s36659_s3 + $0x3c0] sm:$0xff]  }
 0x8aa   :  { %25861 = vmatprep.subr.bf16.mxu1 %v28807_v56 }
 0x8ad   :  { %25862 = vmatpush3.bf16.msra.mxu1 %v28807_v56  ;;  %v38350_v56 = vld [vmem:[#allocation28_spill] sm:$0xff] }
 0x8ae   :  { %25863 = vmatprep.subr.bf16.mxu1 %v28808_v35 }
 0x8b0   :  { %25800 = vmatmul.mubr.bf16.gmra.mrb[12].mxu1 %v38217_v1 }
 0x8b1   :  { %25803 = vmatprep.mubr.bf16.mxu1 %v38325_v41  ;;  %25864 = vmatpush3.bf16.msra.mxu1 %v28808_v35  ;;  %v38351_v35 = vld [vmem:[#allocation167_spill] sm:$0xff] }
 0x8b2   :  { %25865 = vmatprep.subr.bf16.mxu1 %v28809_v31 }
 0x8b5   :  { %25866 = vmatpush3.bf16.msra.mxu1 %v28809_v31  ;;  %v38352_v31 = vld [vmem:[#allocation289_spill] sm:$0xff] }
 0x8b6   :  { %25931 = vmatprep.subr.bf16.mxu1 %v28810_v22 }
 0x8b8   :  { %25804 = vmatmul.mubr.bf16.gmra.mrb[16].mxu1 %v32594_v29 }
 0x8b9   :  { %25807 = vmatprep.mubr.bf16.mxu1 %v32586_v13 }
 0x8c0   :  { %25808 = vmatmul.mubr.bf16.gmra.mrb[20].mxu1 %v38222_v10 }
 0x8c1   :  { %25811 = vmatprep.mubr.bf16.mxu1 %v38327_v14 }
 0x8c8   :  { %25812 = vmatmul.mubr.bf16.gmra.mrb[24].mxu1 %v32705_v26 }
 0x8c9   :  { %25815 = vmatprep.mubr.bf16.mxu1 %v32697_v36 }
 0x8d0   :  { %25816 = vmatmul.mubr.bf16.gmra.mrb[28].mxu1 %v38227_v44 }
 0x8d1   :  { %25819 = vmatprep.mubr.bf16.mxu1 %v38329_v46 }
 0x8d8   :  { %25820 = vmatmul.mubr.bf16.gmra.mrb[32].mxu1 %v32811_v20 }
 0x8d9   :  { %25823 = vmatprep.mubr.bf16.mxu1 %v38317_v51 }
 0x8e0   :  { %25824 = vmatmul.mubr.bf16.gmra.mrb[36].mxu1 %v38232_v37 }
 0x8e1   :  { %25827 = vmatprep.mubr.bf16.mxu1 %v38331_v52 }
 0x8e8   :  { %25828 = vmatmul.mubr.bf16.gmra.mrb[40].mxu1 %v32917_v18 }
 0x8e9   :  { %25831 = vmatprep.mubr.bf16.mxu1 %v38319_v19 }
 0x8f0   :  { %25832 = vmatmul.mubr.bf16.gmra.mrb[44].mxu1 %v38236_v62 }
 0x8f1   :  { %25835 = vmatprep.mubr.bf16.mxu1 %v38333_v8 }
 0x8f8   :  { %25836 = vmatmul.mubr.bf16.gmra.mrb[48].mxu1 %v33025_v12 }
 0x8f9   :  { %25839 = vmatprep.mubr.bf16.mxu1 %v33017_v54 }
 0x900   :  { %25840 = vmatmul.mubr.bf16.gmra.mrb[52].mxu1 %v33065_v2 }
 0x901   :  { %25843 = vmatprep.mubr.bf16.mxu1 %v38335_v39 }
 0x908   :  { %25844 = vmatmul.mubr.bf16.gmra.mrb[56].mxu1 %v38336_v50 }
 0x909   :  { %25847 = vmatprep.mubr.bf16.mxu1 %v38337_v11 }
 0x910   :  { %25848 = vmatmul.mubr.bf16.gmra.mrb[60].mxu1 %v38348_v59 }
 0x911   :  { %25867 = vmatprep.mubr.bf16.mxu1 %v38203_v3  ;;  %v28813_v3 = vld [vmem:[%s36659_s3 + $0x398] sm:$0xff]  }
 0x918   :  { %25868 = vmatmul.mubr.bf16.vlgmr.msra.gmra.mrb[0].mxu1 %v38204_v30  ;;  %v28814_v30 = vld [vmem:[%s36659_s3 + $0x3a0] sm:$0xff]  }
 0x919   :  { %25932 = vmatpush3.bf16.msra.mxu1 %v28810_v22  ;;  %25871 = vmatprep.mubr.bf16.mxu1 %v38205_v40  ;;  %v28815_v40 = vld [vmem:[%s36659_s3 + $0x3a8] sm:$0xff]   ;;  %v38353_v22 = vld [vmem:[#allocation288_spill] sm:$0xff] }
 0x91a   :  { %25933 = vmatprep.subr.bf16.mxu1 %v28811_v53 }
 0x91d   :  { %25934 = vmatpush3.bf16.msra.mxu1 %v28811_v53  ;;  %v38354_v53 = vld [vmem:[#allocation27_spill] sm:$0xff] }
 0x91e   :  { %25935 = vmatprep.subr.bf16.mxu1 %v28812_v7 }
 0x920   :  { %25872 = vmatmul.mubr.bf16.gmra.mrb[4].mxu1 %v33554_v55  ;;  %v28816_v55 = vld [vmem:[%s36659_s3 + $0x3b0] sm:$0xff]  }
 0x921   :  { %25875 = vmatprep.mubr.bf16.mxu1 %v38208_v16  ;;  %25936 = vmatpush3.bf16.msra.mxu1 %v28812_v7  ;;  %v38355_v7 = vld [vmem:[#allocation173_spill] sm:$0xff] }
 0x922   :  { %25937 = vmatprep.subr.bf16.mxu1 %v28813_v3 }
 0x925   :  { %25938 = vmatpush3.bf16.msra.mxu1 %v28813_v3  ;;  %v6261_v3 = vunpack.c.h.b16 %v38348_v59 }
 0x926   :  { %25939 = vmatprep.subr.bf16.mxu1 %v28814_v30 }
 0x928   :  { %25876 = vmatmul.mubr.bf16.gmra.mrb[8].mxu1 %v38209_v17 }
 0x929   :  { %25879 = vmatprep.mubr.bf16.mxu1 %v38210_v15  ;;  %25940 = vmatpush3.bf16.msra.mxu1 %v28814_v30  ;;  %v38356_v30 = vld [vmem:[#allocation283_spill] sm:$0xff] }
 0x92a   :  { %25941 = vmatprep.subr.bf16.mxu1 %v28815_v40 }
 0x92d   :  { %25942 = vmatpush3.bf16.msra.mxu1 %v28815_v40  ;;  %v6262_v40 = vunpack.c.l.b16 %v38356_v30 }
 0x92e   :  { %25943 = vmatprep.subr.bf16.mxu1 %v28816_v55 }
 0x930   :  { %25880 = vmatmul.mubr.bf16.gmra.mrb[12].mxu1 %v33566_v25 }
 0x931   :  { %25883 = vmatprep.mubr.bf16.mxu1 %v38213_v32  ;;  %25944 = vmatpush3.bf16.msra.mxu1 %v28816_v55  ;;  %v34102_v55 = vpack.c.b16 %v6262_v40, %v6261_v3  ;;  %v38358_v3 = vld [vmem:[#allocation136_spill] sm:$0xff] }
 0x932   :  { %25945 = vmatprep.subr.bf16.mxu1 %v28817_v63  ;;  %v38359_v40 = vld [vmem:[#allocation140_spill] sm:$0xff] }
 0x933   :  { %38357 = vst [vmem:[#allocation52_spill] sm:$0xff] %v34102_v55 }
 0x935   :  { %25946 = vmatpush3.bf16.msra.mxu1 %v28817_v63  ;;  %v28819_v63 = vld [vmem:[%s36659_s3 + $0x3c8] sm:$0xff]  }
 0x936   :  { %26011 = vmatprep.subr.bf16.mxu1 %v28818_v61 }
 0x938   :  { %25884 = vmatmul.mubr.bf16.gmra.mrb[16].mxu1 %v38214_v38 }
 0x939   :  { %25887 = vmatprep.mubr.bf16.mxu1 %v38215_v49 }
 0x940   :  { %25888 = vmatmul.mubr.bf16.gmra.mrb[20].mxu1 %v33578_v34 }
 0x941   :  { %25891 = vmatprep.mubr.bf16.mxu1 %v38218_v45 }
 0x948   :  { %25892 = vmatmul.mubr.bf16.gmra.mrb[24].mxu1 %v38219_v42 }
 0x949   :  { %25895 = vmatprep.mubr.bf16.mxu1 %v38220_v48 }
 0x950   :  { %25896 = vmatmul.mubr.bf16.gmra.mrb[28].mxu1 %v38350_v56 }
 0x951   :  { %25899 = vmatprep.mubr.bf16.mxu1 %v38223_v6 }
 0x958   :  { %25900 = vmatmul.mubr.bf16.gmra.mrb[32].mxu1 %v38224_v57 }
 0x959   :  { %25903 = vmatprep.mubr.bf16.mxu1 %v38225_v58 }
 0x960   :  { %25904 = vmatmul.mubr.bf16.gmra.mrb[36].mxu1 %v38351_v35 }
 0x961   :  { %25907 = vmatprep.mubr.bf16.mxu1 %v38228_v60 }
 0x968   :  { %25908 = vmatmul.mubr.bf16.gmra.mrb[40].mxu1 %v38229_v43 }
 0x969   :  { %25911 = vmatprep.mubr.bf16.mxu1 %v38231_v28 }
 0x970   :  { %25912 = vmatmul.mubr.bf16.gmra.mrb[44].mxu1 %v38352_v31 }
 0x971   :  { %25915 = vmatprep.mubr.bf16.mxu1 %v38353_v22 }
 0x978   :  { %25916 = vmatmul.mubr.bf16.gmra.mrb[48].mxu1 %v38354_v53 }
 0x979   :  { %25919 = vmatprep.mubr.bf16.mxu1 %v33491_v47 }
 0x980   :  { %25920 = vmatmul.mubr.bf16.gmra.mrb[52].mxu1 %v38355_v7  ;;  %v28820_v7 = vld [vmem:[%s36659_s3 + $0x3d0] sm:$0xff]  }
 0x981   :  { %25923 = vmatprep.mubr.bf16.mxu1 %v33978_v5 }
 0x988   :  { %25924 = vmatmul.mubr.bf16.gmra.mrb[56].mxu1 %v33980_v0 }
 0x989   :  { %25927 = vmatprep.mubr.bf16.mxu1 %v33986_v9 }
 0x990   :  { %25928 = vmatmul.mubr.bf16.gmra.mrb[60].mxu1 %v34102_v55 }
 0x991   :  { %25947 = vmatprep.mubr.bf16.mxu1 %v32354_v4  ;;  %v28821_v4 = vld [vmem:[%s36659_s3 + $0x3d8] sm:$0xff]  }
 0x998   :  { %25948 = vmatmul.mubr.bf16.vlgmr.msra.gmra.mrb[0].mxu1 %v32348_v27  ;;  %v28822_v27 = vld [vmem:[%s36659_s3 + $0x3e0] sm:$0xff]  }
 0x999   :  { %26012 = vmatpush3.bf16.msra.mxu1 %v28818_v61  ;;  %25951 = vmatprep.mubr.bf16.mxu1 %v38212_v24  ;;  %v28823_v24 = vld [vmem:[%s36659_s3 + $0x3e8] sm:$0xff]   ;;  %v28824_v61 = vld [vmem:[%s36659_s3 + $0x3f0] sm:$0xff]  }
 0x99a   :  { %26013 = vmatprep.subr.bf16.mxu1 %v28819_v63 }
 0x99d   :  { %26014 = vmatpush3.bf16.msra.mxu1 %v28819_v63  ;;  %v28826_v63 = vld [vmem:[%s36659_s3 + $0x400] sm:$0xff]  }
 0x99e   :  { %26015 = vmatprep.subr.bf16.mxu1 %v28820_v7 }
 0x9a0   :  { %25952 = vmatmul.mubr.bf16.gmra.mrb[4].mxu1 %v38358_v3  ;;  %v38361_v3 = vld [vmem:[#allocation11_spill] sm:$0xff] }
 0x9a1   :  { %25955 = vmatprep.mubr.bf16.mxu1 %v32479_v33  ;;  %26016 = vmatpush3.bf16.msra.mxu1 %v28820_v7  ;;  %v28825_v7 = vld [vmem:[%s36659_s3 + $0x3f8] sm:$0xff]  }
 0x9a2   :  { %26017 = vmatprep.subr.bf16.mxu1 %v28821_v4 }
 0x9a5   :  { %26018 = vmatpush3.bf16.msra.mxu1 %v28821_v4  ;;  %v38360_v4 = vld [vmem:[#allocation8_spill] sm:$0xff] }
 0x9a6   :  { %26019 = vmatprep.subr.bf16.mxu1 %v28822_v27 }
 0x9a8   :  { %25956 = vmatmul.mubr.bf16.gmra.mrb[8].mxu1 %v32471_v23 }
 0x9a9   :  { %25959 = vmatprep.mubr.bf16.mxu1 %v38217_v1  ;;  %26020 = vmatpush3.bf16.msra.mxu1 %v28822_v27  ;;  %v38362_v27 = vld [vmem:[#allocation276_spill] sm:$0xff] }
 0x9aa   :  { %26021 = vmatprep.subr.bf16.mxu1 %v28823_v24 }
 0x9ad   :  { %26022 = vmatpush3.bf16.msra.mxu1 %v28823_v24  ;;  %v38363_v24 = vld [vmem:[#allocation157_spill] sm:$0xff] }
 0x9ae   :  { %26023 = vmatprep.subr.bf16.mxu1 %v28824_v61 }
 0x9b0   :  { %25960 = vmatmul.mubr.bf16.gmra.mrb[12].mxu1 %v38359_v40  ;;  %v38377_v40 = vld [vmem:[#allocation10_spill] sm:$0xff] }
 0x9b1   :  { %25963 = vmatprep.mubr.bf16.mxu1 %v32594_v29  ;;  %26024 = vmatpush3.bf16.msra.mxu1 %v28824_v61  ;;  %v38364_v61 = vld [vmem:[#allocation159_spill] sm:$0xff] }
 0x9b2   :  { %26025 = vmatprep.subr.bf16.mxu1 %v28825_v7 }
 0x9b5   :  { %26026 = vmatpush3.bf16.msra.mxu1 %v28825_v7  ;;  %v38365_v7 = vld [vmem:[#allocation5_spill] sm:$0xff] }
 0x9b6   :  { %26091 = vmatprep.subr.bf16.mxu1 %v28826_v63 }
 0x9b8   :  { %25964 = vmatmul.mubr.bf16.gmra.mrb[16].mxu1 %v32586_v13 }
 0x9b9   :  { %25967 = vmatprep.mubr.bf16.mxu1 %v38222_v10 }
 0x9c0   :  { %25968 = vmatmul.mubr.bf16.gmra.mrb[20].mxu1 %v38360_v4  ;;  %v28836_v4 = vld [vmem:[%s36659_s3 + $0x450] sm:$0xff]  }
 0x9c1   :  { %25971 = vmatprep.mubr.bf16.mxu1 %v32705_v26 }
 0x9c8   :  { %25972 = vmatmul.mubr.bf16.gmra.mrb[24].mxu1 %v32697_v36 }
 0x9c9   :  { %25975 = vmatprep.mubr.bf16.mxu1 %v38227_v44 }
 0x9d0   :  { %25976 = vmatmul.mubr.bf16.gmra.mrb[28].mxu1 %v38361_v3  ;;  %v38376_v3 = vld [vmem:[#allocation146_spill] sm:$0xff] }
 0x9d1   :  { %25979 = vmatprep.mubr.bf16.mxu1 %v32811_v20 }
 0x9d8   :  { %25980 = vmatmul.mubr.bf16.gmra.mrb[32].mxu1 %v38317_v51 }
 0x9d9   :  { %25983 = vmatprep.mubr.bf16.mxu1 %v38232_v37 }
 0x9e0   :  { %25984 = vmatmul.mubr.bf16.gmra.mrb[36].mxu1 %v38362_v27  ;;  %v38374_v27 = vld [vmem:[#allocation162_spill] sm:$0xff] }
 0x9e1   :  { %25987 = vmatprep.mubr.bf16.mxu1 %v32917_v18 }
 0x9e8   :  { %25988 = vmatmul.mubr.bf16.gmra.mrb[40].mxu1 %v38319_v19 }
 0x9e9   :  { %25991 = vmatprep.mubr.bf16.mxu1 %v38236_v62 }
 0x9f0   :  { %25992 = vmatmul.mubr.bf16.gmra.mrb[44].mxu1 %v38363_v24  ;;  %v28827_v24 = vld [vmem:[%s36659_s3 + $0x408] sm:$0xff]  }
 0x9f1   :  { %25995 = vmatprep.mubr.bf16.mxu1 %v33025_v12 }
 0x9f8   :  { %25996 = vmatmul.mubr.bf16.gmra.mrb[48].mxu1 %v33017_v54 }
 0x9f9   :  { %25999 = vmatprep.mubr.bf16.mxu1 %v33065_v2 }
 0xa00   :  { %26000 = vmatmul.mubr.bf16.gmra.mrb[52].mxu1 %v38364_v61  ;;  %v28828_v61 = vld [vmem:[%s36659_s3 + $0x410] sm:$0xff]  }
 0xa01   :  { %26003 = vmatprep.mubr.bf16.mxu1 %v38336_v50 }
 0xa08   :  { %26004 = vmatmul.mubr.bf16.gmra.mrb[56].mxu1 %v38337_v11 }
 0xa09   :  { %26007 = vmatprep.mubr.bf16.mxu1 %v38348_v59 }
 0xa10   :  { %26008 = vmatmul.mubr.bf16.gmra.mrb[60].mxu1 %v38356_v30  ;;  %v38366_v30 = vld [vmem:[#allocation145_spill] sm:$0xff] }
 0xa11   :  { %26027 = vmatprep.mubr.bf16.mxu1 %v38365_v7  ;;  %v28829_v7 = vld [vmem:[%s36659_s3 + $0x418] sm:$0xff]  }
 0xa18   :  { %26028 = vmatmul.mubr.bf16.vlgmr.msra.gmra.mrb[0].mxu1 %v38323_v21 }
 0xa19   :  { %26092 = vmatpush3.bf16.msra.mxu1 %v28826_v63  ;;  %26031 = vmatprep.mubr.bf16.mxu1 %v32479_v33  ;;  %v28830_v63 = vld [vmem:[%s36659_s3 + $0x420] sm:$0xff]  }
 0xa1a   :  { %26093 = vmatprep.subr.bf16.mxu1 %v28827_v24 }
 0xa1d   :  { %26094 = vmatpush3.bf16.msra.mxu1 %v28827_v24  ;;  %v28831_v24 = vld [vmem:[%s36659_s3 + $0x428] sm:$0xff]  }
 0xa1e   :  { %26095 = vmatprep.subr.bf16.mxu1 %v28828_v61 }
 0xa20   :  { %26032 = vmatmul.mubr.bf16.gmra.mrb[4].mxu1 %v32471_v23 }
 0xa21   :  { %26035 = vmatprep.mubr.bf16.mxu1 %v38366_v30  ;;  %26096 = vmatpush3.bf16.msra.mxu1 %v28828_v61  ;;  %v28832_v61 = vld [vmem:[%s36659_s3 + $0x430] sm:$0xff]   ;;  %v38367_v30 = vld [vmem:[#allocation271_spill] sm:$0xff] }
 0xa22   :  { %26097 = vmatprep.subr.bf16.mxu1 %v28829_v7 }
 0xa25   :  { %26098 = vmatpush3.bf16.msra.mxu1 %v28829_v7  ;;  %v28833_v7 = vld [vmem:[%s36659_s3 + $0x438] sm:$0xff]  }
 0xa26   :  { %26099 = vmatprep.subr.bf16.mxu1 %v28830_v63 }
 0xa28   :  { %26036 = vmatmul.mubr.bf16.gmra.mrb[8].mxu1 %v38325_v41 }
 0xa29   :  { %26039 = vmatprep.mubr.bf16.mxu1 %v32594_v29  ;;  %26100 = vmatpush3.bf16.msra.mxu1 %v28830_v63  ;;  %v28834_v63 = vld [vmem:[%s36659_s3 + $0x440] sm:$0xff]  }
 0xa2a   :  { %26101 = vmatprep.subr.bf16.mxu1 %v28831_v24 }
 0xa2d   :  { %26102 = vmatpush3.bf16.msra.mxu1 %v28831_v24  ;;  %v38368_v24 = vld [vmem:[#allocation13_spill] sm:$0xff] }
 0xa2e   :  { %26103 = vmatprep.subr.bf16.mxu1 %v28832_v61 }
 0xa30   :  { %26040 = vmatmul.mubr.bf16.gmra.mrb[12].mxu1 %v32586_v13 }
 0xa31   :  { %26043 = vmatprep.mubr.bf16.mxu1 %v38367_v30  ;;  %26104 = vmatpush3.bf16.msra.mxu1 %v28832_v61  ;;  %v38369_v61 = vld [vmem:[#allocation278_spill] sm:$0xff]  ;;  %v38373_v30 = vld [vmem:[#allocation161_spill] sm:$0xff] }
 0xa32   :  { %26105 = vmatprep.subr.bf16.mxu1 %v28833_v7 }
 0xa35   :  { %26106 = vmatpush3.bf16.msra.mxu1 %v28833_v7  ;;  %v38370_v7 = vld [vmem:[#allocation20_spill] sm:$0xff] }
 0xa36   :  { %26171 = vmatprep.subr.bf16.mxu1 %v28834_v63 }
 0xa38   :  { %26044 = vmatmul.mubr.bf16.gmra.mrb[16].mxu1 %v38327_v14 }
 0xa39   :  { %26047 = vmatprep.mubr.bf16.mxu1 %v32705_v26 }
 0xa40   :  { %26048 = vmatmul.mubr.bf16.gmra.mrb[20].mxu1 %v32697_v36 }
 0xa41   :  { %26051 = vmatprep.mubr.bf16.mxu1 %v38368_v24  ;;  %v38371_v24 = vld [vmem:[#allocation282_spill] sm:$0xff] }
 0xa48   :  { %26052 = vmatmul.mubr.bf16.gmra.mrb[24].mxu1 %v38329_v46 }
 0xa49   :  { %26055 = vmatprep.mubr.bf16.mxu1 %v32811_v20 }
 0xa50   :  { %26056 = vmatmul.mubr.bf16.gmra.mrb[28].mxu1 %v38317_v51 }
 0xa51   :  { %26059 = vmatprep.mubr.bf16.mxu1 %v38369_v61  ;;  %v38372_v61 = vld [vmem:[#allocation284_spill] sm:$0xff] }
 0xa58   :  { %26060 = vmatmul.mubr.bf16.gmra.mrb[32].mxu1 %v38331_v52 }
 0xa59   :  { %26063 = vmatprep.mubr.bf16.mxu1 %v32917_v18 }
 0xa60   :  { %26064 = vmatmul.mubr.bf16.gmra.mrb[36].mxu1 %v38319_v19 }
 0xa61   :  { %26067 = vmatprep.mubr.bf16.mxu1 %v38370_v7  ;;  %v38375_v7 = vld [vmem:[#allocation23_spill] sm:$0xff] }
 0xa68   :  { %26068 = vmatmul.mubr.bf16.gmra.mrb[40].mxu1 %v38333_v8 }
 0xa69   :  { %26071 = vmatprep.mubr.bf16.mxu1 %v33025_v12 }
 0xa70   :  { %26072 = vmatmul.mubr.bf16.gmra.mrb[44].mxu1 %v33017_v54 }
 0xa71   :  { %26075 = vmatprep.mubr.bf16.mxu1 %v38371_v24  ;;  %v28835_v24 = vld [vmem:[%s36659_s3 + $0x448] sm:$0xff]  }
 0xa78   :  { %26076 = vmatmul.mubr.bf16.gmra.mrb[48].mxu1 %v38335_v39 }
 0xa79   :  { %26079 = vmatprep.mubr.bf16.mxu1 %v38336_v50 }
 0xa80   :  { %26080 = vmatmul.mubr.bf16.gmra.mrb[52].mxu1 %v38337_v11 }
 0xa81   :  { %26083 = vmatprep.mubr.bf16.mxu1 %v38372_v61 }
 0xa88   :  { %26084 = vmatmul.mubr.bf16.gmra.mrb[56].mxu1 %v38373_v30 }
 0xa89   :  { %26087 = vmatprep.mubr.bf16.mxu1 %v38374_v27 }
 0xa90   :  { %26088 = vmatmul.mubr.bf16.gmra.mrb[60].mxu1 %v38375_v7 }
 0xa91   :  { %26107 = vmatprep.mubr.bf16.mxu1 %v38376_v3  ;;  %v28837_v3 = vld [vmem:[%s36659_s3 + $0x458] sm:$0xff]  }
 0xa98   :  { %26108 = vmatmul.mubr.bf16.vlgmr.msra.gmra.mrb[0].mxu1 %v38208_v16 }
 0xa99   :  { %26172 = vmatpush3.bf16.msra.mxu1 %v28834_v63  ;;  %26111 = vmatprep.mubr.bf16.mxu1 %v38209_v17  ;;  %v28838_v63 = vld [vmem:[%s36659_s3 + $0x460] sm:$0xff]  }
 0xa9a   :  { %26173 = vmatprep.subr.bf16.mxu1 %v28835_v24 }
 0xa9d   :  { %26174 = vmatpush3.bf16.msra.mxu1 %v28835_v24  ;;  %v28839_v24 = vld [vmem:[%s36659_s3 + $0x468] sm:$0xff]  }
 0xa9e   :  { %26175 = vmatprep.subr.bf16.mxu1 %v28836_v4 }
 0xaa0   :  { %26112 = vmatmul.mubr.bf16.gmra.mrb[4].mxu1 %v38210_v15 }
 0xaa1   :  { %26115 = vmatprep.mubr.bf16.mxu1 %v38377_v40  ;;  %26176 = vmatpush3.bf16.msra.mxu1 %v28836_v4  ;;  %v28840_v4 = vld [vmem:[%s36659_s3 + $0x470] sm:$0xff]   ;;  %v38378_v40 = vld [vmem:[#allocation151_spill] sm:$0xff] }
 0xaa2   :  { %26177 = vmatprep.subr.bf16.mxu1 %v28837_v3 }
 0xaa5   :  { %26178 = vmatpush3.bf16.msra.mxu1 %v28837_v3  ;;  %v28841_v3 = vld [vmem:[%s36659_s3 + $0x478] sm:$0xff]  }
 0xaa6   :  { %26179 = vmatprep.subr.bf16.mxu1 %v28838_v63 }
 0xaa8   :  { %26116 = vmatmul.mubr.bf16.gmra.mrb[8].mxu1 %v38213_v32 }
 0xaa9   :  { %26119 = vmatprep.mubr.bf16.mxu1 %v38214_v38  ;;  %26180 = vmatpush3.bf16.msra.mxu1 %v28838_v63  ;;  %v28842_v63 = vld [vmem:[%s36659_s3 + $0x480] sm:$0xff]  }
 0xaaa   :  { %26181 = vmatprep.subr.bf16.mxu1 %v28839_v24 }
 0xaad   :  { %26182 = vmatpush3.bf16.msra.mxu1 %v28839_v24  ;;  %v38379_v24 = vld [vmem:[#allocation153_spill] sm:$0xff] }
 0xaae   :  { %26183 = vmatprep.subr.bf16.mxu1 %v28840_v4 }
 0xab0   :  { %26120 = vmatmul.mubr.bf16.gmra.mrb[12].mxu1 %v38215_v49 }
 0xab1   :  { %26123 = vmatprep.mubr.bf16.mxu1 %v38378_v40  ;;  %26184 = vmatpush3.bf16.msra.mxu1 %v28840_v4  ;;  %v38380_v4 = vld [vmem:[#allocation17_spill] sm:$0xff]  ;;  %v6266_v40 = vunpack.c.l.b16 %v38373_v30 }
 0xab2   :  { %26185 = vmatprep.subr.bf16.mxu1 %v28841_v3 }
 0xab5   :  { %26186 = vmatpush3.bf16.msra.mxu1 %v28841_v3  ;;  %v38381_v3 = vld [vmem:[#allocation165_spill] sm:$0xff] }
 0xab6   :  { %26251 = vmatprep.subr.bf16.mxu1 %v28842_v63 }
 0xab8   :  { %26124 = vmatmul.mubr.bf16.gmra.mrb[16].mxu1 %v38218_v45 }
 0xab9   :  { %26127 = vmatprep.mubr.bf16.mxu1 %v38219_v42 }
 0xac0   :  { %26128 = vmatmul.mubr.bf16.gmra.mrb[20].mxu1 %v38220_v48 }
 0xac1   :  { %26131 = vmatprep.mubr.bf16.mxu1 %v38379_v24  ;;  %v38382_v24 = vld [vmem:[#allocation189_spill] sm:$0xff] }
 0xac8   :  { %26132 = vmatmul.mubr.bf16.gmra.mrb[24].mxu1 %v38223_v6 }
 0xac9   :  { %26135 = vmatprep.mubr.bf16.mxu1 %v38224_v57 }
 0xad0   :  { %26136 = vmatmul.mubr.bf16.gmra.mrb[28].mxu1 %v38225_v58 }
 0xad1   :  { %26139 = vmatprep.mubr.bf16.mxu1 %v38380_v4  ;;  %v6265_v4 = vunpack.c.h.b16 %v38372_v61 }
 0xad3   :  { %v34270_v55 = vpack.c.b16 %v6266_v40, %v6265_v4  ;;  %v38385_v40 = vld [vmem:[#allocation163_spill] sm:$0xff] }
 0xad4   :  { %v6272_v4 = vunpack.c.l.b16 %v38385_v40 }
 0xad5   :  { %38383 = vst [vmem:[#allocation191_spill] sm:$0xff] %v34270_v55 }
 0xad8   :  { %26140 = vmatmul.mubr.bf16.gmra.mrb[32].mxu1 %v38228_v60 }
 0xad9   :  { %26143 = vmatprep.mubr.bf16.mxu1 %v38229_v43 }
 0xae0   :  { %26144 = vmatmul.mubr.bf16.gmra.mrb[36].mxu1 %v38231_v28 }
 0xae1   :  { %26147 = vmatprep.mubr.bf16.mxu1 %v38381_v3  ;;  %v6268_v3 = vunpack.c.l.b16 %v38374_v27 }
 0xae8   :  { %26148 = vmatmul.mubr.bf16.gmra.mrb[40].mxu1 %v38353_v22 }
 0xae9   :  { %26151 = vmatprep.mubr.bf16.mxu1 %v38354_v53 }
 0xaf0   :  { %26152 = vmatmul.mubr.bf16.gmra.mrb[44].mxu1 %v33491_v47  ;;  %v6269_v47 = vunpack.c.h.b16 %v38374_v27 }
 0xaf1   :  { %26155 = vmatprep.mubr.bf16.mxu1 %v38382_v24  ;;  %v6270_v24 = vunpack.c.l.b16 %v38375_v7 }
 0xaf8   :  { %26156 = vmatmul.mubr.bf16.gmra.mrb[48].mxu1 %v33978_v5  ;;  %v6267_v5 = vunpack.c.h.b16 %v38373_v30 }
 0xaf9   :  { %26159 = vmatprep.mubr.bf16.mxu1 %v33980_v0  ;;  %v34280_v0 = vpack.c.b16 %v6270_v24, %v6269_v47  ;;  %v28844_v47 = vld [vmem:[%s36659_s3 + $0x490] sm:$0xff]  }
 0xafa   :  { %v34278_v53 = vpack.c.b16 %v6268_v3, %v6267_v5  ;;  %v28843_v5 = vld [vmem:[%s36659_s3 + $0x488] sm:$0xff]   ;;  %v28848_v24 = vld [vmem:[%s36659_s3 + $0x4b0] sm:$0xff]   ;;  %v28849_v3 = vld [vmem:[%s36659_s3 + $0x4b8] sm:$0xff]  }
 0xafc   :  { %38384 = vst [vmem:[#allocation313_spill] sm:$0xff] %v34278_v53 }
 0xb00   :  { %26160 = vmatmul.mubr.bf16.gmra.mrb[52].mxu1 %v33986_v9 }
 0xb01   :  { %26163 = vmatprep.mubr.bf16.mxu1 %v34270_v55  ;;  %v6271_v55 = vunpack.c.h.b16 %v38375_v7 }
 0xb03   :  { %v34286_v61 = vpack.c.b16 %v6272_v4, %v6271_v55  ;;  %v28846_v55 = vld [vmem:[%s36659_s3 + $0x4a0] sm:$0xff]  }
 0xb04   :  { %v28850_v4 = vld [vmem:[%s36659_s3 + $0x4c0] sm:$0xff]  }
 0xb08   :  { %26164 = vmatmul.mubr.bf16.gmra.mrb[56].mxu1 %v34278_v53 }
 0xb09   :  { %26167 = vmatprep.mubr.bf16.mxu1 %v34280_v0 }
 0xb10   :  { %26168 = vmatmul.mubr.bf16.gmra.mrb[60].mxu1 %v34286_v61 }
 0xb11   :  { %26187 = vmatprep.mubr.bf16.mxu1 %v38323_v21  ;;  %v28845_v21 = vld [vmem:[%s36659_s3 + $0x498] sm:$0xff]  }
 0xb18   :  { %26188 = vmatmul.mubr.bf16.vlgmr.msra.gmra.mrb[0].mxu1 %v32479_v33 }
 0xb19   :  { %26252 = vmatpush3.bf16.msra.mxu1 %v28842_v63  ;;  %26191 = vmatprep.mubr.bf16.mxu1 %v32471_v23  ;;  %v28847_v63 = vld [vmem:[%s36659_s3 + $0x4a8] sm:$0xff]  }
 0xb1a   :  { %26253 = vmatprep.subr.bf16.mxu1 %v28843_v5 }
 0xb1d   :  { %26254 = vmatpush3.bf16.msra.mxu1 %v28843_v5  ;;  %v28851_v5 = vld [vmem:[%s36659_s3 + $0x4c8] sm:$0xff]  }
 0xb1e   :  { %26255 = vmatprep.subr.bf16.mxu1 %v28844_v47 }
 0xb20   :  { %26192 = vmatmul.mubr.bf16.gmra.mrb[4].mxu1 %v38217_v1 }
 0xb21   :  { %26195 = vmatprep.mubr.bf16.mxu1 %v38325_v41  ;;  %26256 = vmatpush3.bf16.msra.mxu1 %v28844_v47  ;;  %v28852_v47 = vld [vmem:[%s36659_s3 + $0x4d0] sm:$0xff]  }
 0xb22   :  { %26257 = vmatprep.subr.bf16.mxu1 %v28845_v21 }
 0xb25   :  { %26258 = vmatpush3.bf16.msra.mxu1 %v28845_v21  ;;  %v28857_v21 = vld [vmem:[%s36659_s3 + $0x4f8] sm:$0xff]  }
 0xb26   :  { %26259 = vmatprep.subr.bf16.mxu1 %v28846_v55 }
 0xb28   :  { %26196 = vmatmul.mubr.bf16.gmra.mrb[8].mxu1 %v32594_v29 }
 0xb29   :  { %26199 = vmatprep.mubr.bf16.mxu1 %v32586_v13  ;;  %26260 = vmatpush3.bf16.msra.mxu1 %v28846_v55  ;;  %v28858_v55 = vld [vmem:[%s36659_s3 + $0x500] sm:$0xff]  }
 0xb2a   :  { %26261 = vmatprep.subr.bf16.mxu1 %v28847_v63 }
 0xb2d   :  { %26262 = vmatpush3.bf16.msra.mxu1 %v28847_v63  ;;  %v38386_v63 = vld [vmem:[#allocation27_spill] sm:$0xff] }
 0xb2e   :  { %26263 = vmatprep.subr.bf16.mxu1 %v28848_v24 }
 0xb30   :  { %26200 = vmatmul.mubr.bf16.gmra.mrb[12].mxu1 %v38222_v10 }
 0xb31   :  { %26203 = vmatprep.mubr.bf16.mxu1 %v38327_v14  ;;  %26264 = vmatpush3.bf16.msra.mxu1 %v28848_v24  ;;  %v38387_v24 = vld [vmem:[#allocation166_spill] sm:$0xff] }
 0xb32   :  { %26265 = vmatprep.subr.bf16.mxu1 %v28849_v3 }
 0xb35   :  { %26266 = vmatpush3.bf16.msra.mxu1 %v28849_v3  ;;  %v38388_v3 = vld [vmem:[#allocation173_spill] sm:$0xff] }
 0xb36   :  { %26331 = vmatprep.subr.bf16.mxu1 %v28850_v4 }
 0xb38   :  { %26204 = vmatmul.mubr.bf16.gmra.mrb[16].mxu1 %v32705_v26 }
 0xb39   :  { %26207 = vmatprep.mubr.bf16.mxu1 %v32697_v36 }
 0xb40   :  { %26208 = vmatmul.mubr.bf16.gmra.mrb[20].mxu1 %v38227_v44 }
 0xb41   :  { %26211 = vmatprep.mubr.bf16.mxu1 %v38329_v46 }
 0xb48   :  { %26212 = vmatmul.mubr.bf16.gmra.mrb[24].mxu1 %v32811_v20 }
 0xb49   :  { %26215 = vmatprep.mubr.bf16.mxu1 %v38317_v51 }
 0xb50   :  { %26216 = vmatmul.mubr.bf16.gmra.mrb[28].mxu1 %v38232_v37 }
 0xb51   :  { %26219 = vmatprep.mubr.bf16.mxu1 %v38331_v52 }
 0xb58   :  { %26220 = vmatmul.mubr.bf16.gmra.mrb[32].mxu1 %v32917_v18 }
 0xb59   :  { %26223 = vmatprep.mubr.bf16.mxu1 %v38319_v19 }
 0xb60   :  { %26224 = vmatmul.mubr.bf16.gmra.mrb[36].mxu1 %v38236_v62 }
 0xb61   :  { %26227 = vmatprep.mubr.bf16.mxu1 %v38333_v8 }
 0xb68   :  { %26228 = vmatmul.mubr.bf16.gmra.mrb[40].mxu1 %v33025_v12 }
 0xb69   :  { %26231 = vmatprep.mubr.bf16.mxu1 %v33017_v54 }
 0xb70   :  { %26232 = vmatmul.mubr.bf16.gmra.mrb[44].mxu1 %v33065_v2 }
 0xb71   :  { %26235 = vmatprep.mubr.bf16.mxu1 %v38335_v39 }
 0xb78   :  { %26236 = vmatmul.mubr.bf16.gmra.mrb[48].mxu1 %v38336_v50 }
 0xb79   :  { %26239 = vmatprep.mubr.bf16.mxu1 %v38337_v11 }
 0xb80   :  { %26240 = vmatmul.mubr.bf16.gmra.mrb[52].mxu1 %v38348_v59 }
 0xb81   :  { %26243 = vmatprep.mubr.bf16.mxu1 %v38373_v30 }
 0xb88   :  { %26244 = vmatmul.mubr.bf16.gmra.mrb[56].mxu1 %v38374_v27 }
 0xb89   :  { %26247 = vmatprep.mubr.bf16.mxu1 %v38375_v7 }
 0xb90   :  { %26248 = vmatmul.mubr.bf16.gmra.mrb[60].mxu1 %v38385_v40 }
 0xb91   :  { %26267 = vmatprep.mubr.bf16.mxu1 %v38208_v16  ;;  %v28853_v16 = vld [vmem:[%s36659_s3 + $0x4d8] sm:$0xff]  }
 0xb98   :  { %26268 = vmatmul.mubr.bf16.vlgmr.msra.gmra.mrb[0].mxu1 %v38209_v17  ;;  %v28854_v17 = vld [vmem:[%s36659_s3 + $0x4e0] sm:$0xff]  }
 0xb99   :  { %26332 = vmatpush3.bf16.msra.mxu1 %v28850_v4  ;;  %26271 = vmatprep.mubr.bf16.mxu1 %v38210_v15  ;;  %v28855_v15 = vld [vmem:[%s36659_s3 + $0x4e8] sm:$0xff]   ;;  %v38389_v4 = vld [vmem:[#allocation312_spill] sm:$0xff] }
 0xb9a   :  { %26333 = vmatprep.subr.bf16.mxu1 %v28851_v5 }
 0xb9d   :  { %26334 = vmatpush3.bf16.msra.mxu1 %v28851_v5  ;;  %v38390_v5 = vld [vmem:[#allocation51_spill] sm:$0xff] }
 0xb9e   :  { %26335 = vmatprep.subr.bf16.mxu1 %v28852_v47 }
 0xba0   :  { %26272 = vmatmul.mubr.bf16.gmra.mrb[4].mxu1 %v33566_v25  ;;  %v28856_v25 = vld [vmem:[%s36659_s3 + $0x4f0] sm:$0xff]  }
 0xba1   :  { %26275 = vmatprep.mubr.bf16.mxu1 %v38213_v32  ;;  %26336 = vmatpush3.bf16.msra.mxu1 %v28852_v47  ;;  %v38391_v47 = vld [vmem:[#allocation52_spill] sm:$0xff] }
 0xba2   :  { %26337 = vmatprep.subr.bf16.mxu1 %v28853_v16 }
 0xba5   :  { %26338 = vmatpush3.bf16.msra.mxu1 %v28853_v16  ;;  %v6273_v16 = vunpack.c.h.b16 %v38385_v40 }
 0xba6   :  { %26339 = vmatprep.subr.bf16.mxu1 %v28854_v17 }
 0xba8   :  { %26276 = vmatmul.mubr.bf16.gmra.mrb[8].mxu1 %v38214_v38 }
 0xba9   :  { %26279 = vmatprep.mubr.bf16.mxu1 %v38215_v49  ;;  %26340 = vmatpush3.bf16.msra.mxu1 %v28854_v17  ;;  %v38392_v17 = vld [vmem:[#allocation24_spill] sm:$0xff] }
 0xbaa   :  { %26341 = vmatprep.subr.bf16.mxu1 %v28855_v15 }
 0xbad   :  { %26342 = vmatpush3.bf16.msra.mxu1 %v28855_v15  ;;  %v6274_v15 = vunpack.c.l.b16 %v38392_v17 }
 0xbae   :  { %26343 = vmatprep.subr.bf16.mxu1 %v28856_v25 }
 0xbb0   :  { %26280 = vmatmul.mubr.bf16.gmra.mrb[12].mxu1 %v33578_v34 }
 0xbb1   :  { %26283 = vmatprep.mubr.bf16.mxu1 %v38218_v45  ;;  %26344 = vmatpush3.bf16.msra.mxu1 %v28856_v25  ;;  %v34402_v25 = vpack.c.b16 %v6274_v15, %v6273_v16  ;;  %v38394_v16 = vld [vmem:[#allocation140_spill] sm:$0xff] }
 0xbb2   :  { %26345 = vmatprep.subr.bf16.mxu1 %v28857_v21  ;;  %v38395_v15 = vld [vmem:[#allocation8_spill] sm:$0xff] }
 0xbb3   :  { %38393 = vst [vmem:[#allocation314_spill] sm:$0xff] %v34402_v25 }
 0xbb5   :  { %26346 = vmatpush3.bf16.msra.mxu1 %v28857_v21  ;;  %v28859_v21 = vld [vmem:[%s36659_s3 + $0x508] sm:$0xff]  }
 0xbb6   :  { %26411 = vmatprep.subr.bf16.mxu1 %v28858_v55 }
 0xbb8   :  { %26284 = vmatmul.mubr.bf16.gmra.mrb[16].mxu1 %v38219_v42 }
 0xbb9   :  { %26287 = vmatprep.mubr.bf16.mxu1 %v38220_v48 }
 0xbc0   :  { %26288 = vmatmul.mubr.bf16.gmra.mrb[20].mxu1 %v38350_v56 }
 0xbc1   :  { %26291 = vmatprep.mubr.bf16.mxu1 %v38223_v6 }
 0xbc8   :  { %26292 = vmatmul.mubr.bf16.gmra.mrb[24].mxu1 %v38224_v57 }
 0xbc9   :  { %26295 = vmatprep.mubr.bf16.mxu1 %v38225_v58 }
 0xbd0   :  { %26296 = vmatmul.mubr.bf16.gmra.mrb[28].mxu1 %v38351_v35 }
 0xbd1   :  { %26299 = vmatprep.mubr.bf16.mxu1 %v38228_v60 }
 0xbd8   :  { %26300 = vmatmul.mubr.bf16.gmra.mrb[32].mxu1 %v38229_v43 }
 0xbd9   :  { %26303 = vmatprep.mubr.bf16.mxu1 %v38231_v28 }
 0xbe0   :  { %26304 = vmatmul.mubr.bf16.gmra.mrb[36].mxu1 %v38352_v31 }
 0xbe1   :  { %26307 = vmatprep.mubr.bf16.mxu1 %v38353_v22 }
 0xbe8   :  { %26308 = vmatmul.mubr.bf16.gmra.mrb[40].mxu1 %v38386_v63 }
 0xbe9   :  { %26311 = vmatprep.mubr.bf16.mxu1 %v38387_v24 }
 0xbf0   :  { %26312 = vmatmul.mubr.bf16.gmra.mrb[44].mxu1 %v38388_v3 }
 0xbf1   :  { %26315 = vmatprep.mubr.bf16.mxu1 %v38389_v4 }
 0xbf8   :  { %26316 = vmatmul.mubr.bf16.gmra.mrb[48].mxu1 %v38390_v5 }
 0xbf9   :  { %26319 = vmatprep.mubr.bf16.mxu1 %v33986_v9 }
 0xc00   :  { %26320 = vmatmul.mubr.bf16.gmra.mrb[52].mxu1 %v38391_v47  ;;  %v28860_v47 = vld [vmem:[%s36659_s3 + $0x510] sm:$0xff]  }
 0xc01   :  { %26323 = vmatprep.mubr.bf16.mxu1 %v34278_v53 }
 0xc08   :  { %26324 = vmatmul.mubr.bf16.gmra.mrb[56].mxu1 %v34280_v0 }
 0xc09   :  { %26327 = vmatprep.mubr.bf16.mxu1 %v34286_v61 }
 0xc10   :  { %26328 = vmatmul.mubr.bf16.gmra.mrb[60].mxu1 %v34402_v25 }
 0xc11   :  { %26347 = vmatprep.mubr.bf16.mxu1 %v32479_v33  ;;  %v28861_v33 = vld [vmem:[%s36659_s3 + $0x518] sm:$0xff]  }
 0xc18   :  { %26348 = vmatmul.mubr.bf16.vlgmr.msra.gmra.mrb[0].mxu1 %v32471_v23  ;;  %v28862_v23 = vld [vmem:[%s36659_s3 + $0x520] sm:$0xff]  }
 0xc19   :  { %26412 = vmatpush3.bf16.msra.mxu1 %v28858_v55  ;;  %26351 = vmatprep.mubr.bf16.mxu1 %v38217_v1  ;;  %v28863_v1 = vld [vmem:[%s36659_s3 + $0x528] sm:$0xff]   ;;  %v28864_v55 = vld [vmem:[%s36659_s3 + $0x530] sm:$0xff]  }
 0xc1a   :  { %26413 = vmatprep.subr.bf16.mxu1 %v28859_v21 }
 0xc1d   :  { %26414 = vmatpush3.bf16.msra.mxu1 %v28859_v21  ;;  %v28866_v21 = vld [vmem:[%s36659_s3 + $0x540] sm:$0xff]  }
 0xc1e   :  { %26415 = vmatprep.subr.bf16.mxu1 %v28860_v47 }
 0xc20   :  { %26352 = vmatmul.mubr.bf16.gmra.mrb[4].mxu1 %v38394_v16  ;;  %v38397_v16 = vld [vmem:[#allocation276_spill] sm:$0xff] }
 0xc21   :  { %26355 = vmatprep.mubr.bf16.mxu1 %v32594_v29  ;;  %26416 = vmatpush3.bf16.msra.mxu1 %v28860_v47  ;;  %v28865_v47 = vld [vmem:[%s36659_s3 + $0x538] sm:$0xff]  }
 0xc22   :  { %26417 = vmatprep.subr.bf16.mxu1 %v28861_v33 }
 0xc25   :  { %26418 = vmatpush3.bf16.msra.mxu1 %v28861_v33  ;;  %v38396_v33 = vld [vmem:[#allocation11_spill] sm:$0xff] }
 0xc26   :  { %26419 = vmatprep.subr.bf16.mxu1 %v28862_v23 }
 0xc28   :  { %26356 = vmatmul.mubr.bf16.gmra.mrb[8].mxu1 %v32586_v13 }
 0xc29   :  { %26359 = vmatprep.mubr.bf16.mxu1 %v38222_v10  ;;  %26420 = vmatpush3.bf16.msra.mxu1 %v28862_v23  ;;  %v38398_v23 = vld [vmem:[#allocation157_spill] sm:$0xff] }
 0xc2a   :  { %26421 = vmatprep.subr.bf16.mxu1 %v28863_v1 }
 0xc2d   :  { %26422 = vmatpush3.bf16.msra.mxu1 %v28863_v1  ;;  %v38399_v1 = vld [vmem:[#allocation159_spill] sm:$0xff] }
 0xc2e   :  { %26423 = vmatprep.subr.bf16.mxu1 %v28864_v55 }
 0xc30   :  { %26360 = vmatmul.mubr.bf16.gmra.mrb[12].mxu1 %v38395_v15  ;;  %v38413_v15 = vld [vmem:[#allocation151_spill] sm:$0xff] }
 0xc31   :  { %26363 = vmatprep.mubr.bf16.mxu1 %v32705_v26  ;;  %26424 = vmatpush3.bf16.msra.mxu1 %v28864_v55  ;;  %v38400_v55 = vld [vmem:[#allocation283_spill] sm:$0xff] }
 0xc32   :  { %26425 = vmatprep.subr.bf16.mxu1 %v28865_v47 }
 0xc35   :  { %26426 = vmatpush3.bf16.msra.mxu1 %v28865_v47  ;;  %v38401_v47 = vld [vmem:[#allocation145_spill] sm:$0xff] }
 0xc36   :  { %26491 = vmatprep.subr.bf16.mxu1 %v28866_v21 }
 0xc38   :  { %26364 = vmatmul.mubr.bf16.gmra.mrb[16].mxu1 %v32697_v36 }
 0xc39   :  { %26367 = vmatprep.mubr.bf16.mxu1 %v38227_v44 }
 0xc40   :  { %26368 = vmatmul.mubr.bf16.gmra.mrb[20].mxu1 %v38396_v33  ;;  %v28876_v33 = vld [vmem:[%s36659_s3 + $0x590] sm:$0xff]  }
 0xc41   :  { %26371 = vmatprep.mubr.bf16.mxu1 %v32811_v20 }
 0xc48   :  { %26372 = vmatmul.mubr.bf16.gmra.mrb[24].mxu1 %v38317_v51 }
 0xc49   :  { %26375 = vmatprep.mubr.bf16.mxu1 %v38232_v37 }
 0xc50   :  { %26376 = vmatmul.mubr.bf16.gmra.mrb[28].mxu1 %v38397_v16  ;;  %v38412_v16 = vld [vmem:[#allocation10_spill] sm:$0xff] }
 0xc51   :  { %26379 = vmatprep.mubr.bf16.mxu1 %v32917_v18 }
 0xc58   :  { %26380 = vmatmul.mubr.bf16.gmra.mrb[32].mxu1 %v38319_v19 }
 0xc59   :  { %26383 = vmatprep.mubr.bf16.mxu1 %v38236_v62 }
 0xc60   :  { %26384 = vmatmul.mubr.bf16.gmra.mrb[36].mxu1 %v38398_v23  ;;  %v38410_v23 = vld [vmem:[#allocation164_spill] sm:$0xff] }
 0xc61   :  { %26387 = vmatprep.mubr.bf16.mxu1 %v33025_v12 }
 0xc68   :  { %26388 = vmatmul.mubr.bf16.gmra.mrb[40].mxu1 %v33017_v54 }
 0xc69   :  { %26391 = vmatprep.mubr.bf16.mxu1 %v33065_v2 }
 0xc70   :  { %26392 = vmatmul.mubr.bf16.gmra.mrb[44].mxu1 %v38399_v1  ;;  %v28867_v1 = vld [vmem:[%s36659_s3 + $0x548] sm:$0xff]  }
 0xc71   :  { %26395 = vmatprep.mubr.bf16.mxu1 %v38336_v50 }
 0xc78   :  { %26396 = vmatmul.mubr.bf16.gmra.mrb[48].mxu1 %v38337_v11 }
 0xc79   :  { %26399 = vmatprep.mubr.bf16.mxu1 %v38348_v59 }
 0xc80   :  { %26400 = vmatmul.mubr.bf16.gmra.mrb[52].mxu1 %v38400_v55  ;;  %v28868_v55 = vld [vmem:[%s36659_s3 + $0x550] sm:$0xff]  }
 0xc81   :  { %26403 = vmatprep.mubr.bf16.mxu1 %v38374_v27 }
 0xc88   :  { %26404 = vmatmul.mubr.bf16.gmra.mrb[56].mxu1 %v38375_v7 }
 0xc89   :  { %26407 = vmatprep.mubr.bf16.mxu1 %v38385_v40 }
 0xc90   :  { %26408 = vmatmul.mubr.bf16.gmra.mrb[60].mxu1 %v38392_v17  ;;  %v38402_v17 = vld [vmem:[#allocation271_spill] sm:$0xff] }
 0xc91   :  { %26427 = vmatprep.mubr.bf16.mxu1 %v38401_v47  ;;  %v28869_v47 = vld [vmem:[%s36659_s3 + $0x558] sm:$0xff]  }
 0xc98   :  { %26428 = vmatmul.mubr.bf16.vlgmr.msra.gmra.mrb[0].mxu1 %v38325_v41 }
 0xc99   :  { %26492 = vmatpush3.bf16.msra.mxu1 %v28866_v21  ;;  %26431 = vmatprep.mubr.bf16.mxu1 %v32594_v29  ;;  %v28870_v21 = vld [vmem:[%s36659_s3 + $0x560] sm:$0xff]  }
 0xc9a   :  { %26493 = vmatprep.subr.bf16.mxu1 %v28867_v1 }
 0xc9d   :  { %26494 = vmatpush3.bf16.msra.mxu1 %v28867_v1  ;;  %v28871_v1 = vld [vmem:[%s36659_s3 + $0x568] sm:$0xff]  }
 0xc9e   :  { %26495 = vmatprep.subr.bf16.mxu1 %v28868_v55 }
 0xca0   :  { %26432 = vmatmul.mubr.bf16.gmra.mrb[4].mxu1 %v32586_v13 }
 0xca1   :  { %26435 = vmatprep.mubr.bf16.mxu1 %v38402_v17  ;;  %26496 = vmatpush3.bf16.msra.mxu1 %v28868_v55  ;;  %v28872_v17 = vld [vmem:[%s36659_s3 + $0x570] sm:$0xff]   ;;  %v28873_v55 = vld [vmem:[%s36659_s3 + $0x578] sm:$0xff]  }
 0xca2   :  { %26497 = vmatprep.subr.bf16.mxu1 %v28869_v47 }
 0xca5   :  { %26498 = vmatpush3.bf16.msra.mxu1 %v28869_v47  ;;  %v38403_v47 = vld [vmem:[#allocation13_spill] sm:$0xff] }
 0xca6   :  { %26499 = vmatprep.subr.bf16.mxu1 %v28870_v21 }
 0xca8   :  { %26436 = vmatmul.mubr.bf16.gmra.mrb[8].mxu1 %v38327_v14 }
 0xca9   :  { %26439 = vmatprep.mubr.bf16.mxu1 %v32705_v26  ;;  %26500 = vmatpush3.bf16.msra.mxu1 %v28870_v21  ;;  %v28874_v21 = vld [vmem:[%s36659_s3 + $0x580] sm:$0xff]  }
 0xcaa   :  { %26501 = vmatprep.subr.bf16.mxu1 %v28871_v1 }
 0xcad   :  { %26502 = vmatpush3.bf16.msra.mxu1 %v28871_v1  ;;  %v38404_v1 = vld [vmem:[#allocation278_spill] sm:$0xff] }
 0xcae   :  { %26503 = vmatprep.subr.bf16.mxu1 %v28872_v17 }
 0xcb0   :  { %26440 = vmatmul.mubr.bf16.gmra.mrb[12].mxu1 %v32697_v36 }
 0xcb1   :  { %26443 = vmatprep.mubr.bf16.mxu1 %v38403_v47  ;;  %26504 = vmatpush3.bf16.msra.mxu1 %v28872_v17  ;;  %v38405_v17 = vld [vmem:[#allocation20_spill] sm:$0xff] }
 0xcb2   :  { %26505 = vmatprep.subr.bf16.mxu1 %v28873_v55  ;;  %v38407_v47 = vld [vmem:[#allocation284_spill] sm:$0xff] }
 0xcb5   :  { %26506 = vmatpush3.bf16.msra.mxu1 %v28873_v55  ;;  %v38406_v55 = vld [vmem:[#allocation282_spill] sm:$0xff] }
 0xcb6   :  { %26571 = vmatprep.subr.bf16.mxu1 %v28874_v21 }
 0xcb8   :  { %26444 = vmatmul.mubr.bf16.gmra.mrb[16].mxu1 %v38329_v46 }
 0xcb9   :  { %26447 = vmatprep.mubr.bf16.mxu1 %v32811_v20 }
 0xcc0   :  { %26448 = vmatmul.mubr.bf16.gmra.mrb[20].mxu1 %v38317_v51 }
 0xcc1   :  { %26451 = vmatprep.mubr.bf16.mxu1 %v38404_v1  ;;  %v38408_v1 = vld [vmem:[#allocation286_spill] sm:$0xff] }
 0xcc8   :  { %26452 = vmatmul.mubr.bf16.gmra.mrb[24].mxu1 %v38331_v52 }
 0xcc9   :  { %26455 = vmatprep.mubr.bf16.mxu1 %v32917_v18 }
 0xcd0   :  { %26456 = vmatmul.mubr.bf16.gmra.mrb[28].mxu1 %v38319_v19 }
 0xcd1   :  { %26459 = vmatprep.mubr.bf16.mxu1 %v38405_v17  ;;  %v38409_v17 = vld [vmem:[#allocation285_spill] sm:$0xff] }
 0xcd8   :  { %26460 = vmatmul.mubr.bf16.gmra.mrb[32].mxu1 %v38333_v8 }
 0xcd9   :  { %26463 = vmatprep.mubr.bf16.mxu1 %v33025_v12 }
 0xce0   :  { %26464 = vmatmul.mubr.bf16.gmra.mrb[36].mxu1 %v33017_v54 }
 0xce1   :  { %26467 = vmatprep.mubr.bf16.mxu1 %v38406_v55  ;;  %v38411_v55 = vld [vmem:[#allocation25_spill] sm:$0xff] }
 0xce8   :  { %26468 = vmatmul.mubr.bf16.gmra.mrb[40].mxu1 %v38335_v39 }
 0xce9   :  { %26471 = vmatprep.mubr.bf16.mxu1 %v38336_v50 }
 0xcf0   :  { %26472 = vmatmul.mubr.bf16.gmra.mrb[44].mxu1 %v38337_v11 }
 0xcf1   :  { %26475 = vmatprep.mubr.bf16.mxu1 %v38407_v47  ;;  %v28875_v47 = vld [vmem:[%s36659_s3 + $0x588] sm:$0xff]  }
 0xcf8   :  { %26476 = vmatmul.mubr.bf16.gmra.mrb[48].mxu1 %v38373_v30 }
 0xcf9   :  { %26479 = vmatprep.mubr.bf16.mxu1 %v38374_v27 }
 0xd00   :  { %26480 = vmatmul.mubr.bf16.gmra.mrb[52].mxu1 %v38375_v7 }
 0xd01   :  { %26483 = vmatprep.mubr.bf16.mxu1 %v38408_v1 }
 0xd08   :  { %26484 = vmatmul.mubr.bf16.gmra.mrb[56].mxu1 %v38409_v17 }
 0xd09   :  { %26487 = vmatprep.mubr.bf16.mxu1 %v38410_v23 }
 0xd10   :  { %26488 = vmatmul.mubr.bf16.gmra.mrb[60].mxu1 %v38411_v55 }
 0xd11   :  { %26507 = vmatprep.mubr.bf16.mxu1 %v38412_v16  ;;  %v28877_v16 = vld [vmem:[%s36659_s3 + $0x598] sm:$0xff]  }
 0xd18   :  { %26508 = vmatmul.mubr.bf16.vlgmr.msra.gmra.mrb[0].mxu1 %v38213_v32 }
 0xd19   :  { %26572 = vmatpush3.bf16.msra.mxu1 %v28874_v21  ;;  %26511 = vmatprep.mubr.bf16.mxu1 %v38214_v38  ;;  %v28878_v21 = vld [vmem:[%s36659_s3 + $0x5a0] sm:$0xff]  }
 0xd1a   :  { %26573 = vmatprep.subr.bf16.mxu1 %v28875_v47 }
 0xd1d   :  { %26574 = vmatpush3.bf16.msra.mxu1 %v28875_v47  ;;  %v28879_v47 = vld [vmem:[%s36659_s3 + $0x5a8] sm:$0xff]  }
 0xd1e   :  { %26575 = vmatprep.subr.bf16.mxu1 %v28876_v33 }
 0xd20   :  { %26512 = vmatmul.mubr.bf16.gmra.mrb[4].mxu1 %v38215_v49 }
 0xd21   :  { %26515 = vmatprep.mubr.bf16.mxu1 %v38413_v15  ;;  %26576 = vmatpush3.bf16.msra.mxu1 %v28876_v33  ;;  %v28880_v15 = vld [vmem:[%s36659_s3 + $0x5b0] sm:$0xff]   ;;  %v28881_v33 = vld [vmem:[%s36659_s3 + $0x5b8] sm:$0xff]  }
 0xd22   :  { %26577 = vmatprep.subr.bf16.mxu1 %v28877_v16 }
 0xd25   :  { %26578 = vmatpush3.bf16.msra.mxu1 %v28877_v16  ;;  %v38414_v16 = vld [vmem:[#allocation153_spill] sm:$0xff] }
 0xd26   :  { %26579 = vmatprep.subr.bf16.mxu1 %v28878_v21 }
 0xd28   :  { %26516 = vmatmul.mubr.bf16.gmra.mrb[8].mxu1 %v38218_v45 }
 0xd29   :  { %26519 = vmatprep.mubr.bf16.mxu1 %v38219_v42  ;;  %26580 = vmatpush3.bf16.msra.mxu1 %v28878_v21  ;;  %v28882_v21 = vld [vmem:[%s36659_s3 + $0x5c0] sm:$0xff]  }
 0xd2a   :  { %26581 = vmatprep.subr.bf16.mxu1 %v28879_v47 }
 0xd2d   :  { %26582 = vmatpush3.bf16.msra.mxu1 %v28879_v47  ;;  %v38415_v47 = vld [vmem:[#allocation17_spill] sm:$0xff] }
 0xd2e   :  { %26583 = vmatprep.subr.bf16.mxu1 %v28880_v15 }
 0xd30   :  { %26520 = vmatmul.mubr.bf16.gmra.mrb[12].mxu1 %v38220_v48 }
 0xd31   :  { %26523 = vmatprep.mubr.bf16.mxu1 %v38414_v16  ;;  %26584 = vmatpush3.bf16.msra.mxu1 %v28880_v15  ;;  %v38416_v15 = vld [vmem:[#allocation165_spill] sm:$0xff]  ;;  %v38418_v16 = vld [vmem:[#allocation191_spill] sm:$0xff] }
 0xd32   :  { %26585 = vmatprep.subr.bf16.mxu1 %v28881_v33 }
 0xd35   :  { %26586 = vmatpush3.bf16.msra.mxu1 %v28881_v33  ;;  %v38417_v33 = vld [vmem:[#allocation189_spill] sm:$0xff] }
 0xd36   :  { %26651 = vmatprep.subr.bf16.mxu1 %v28882_v21 }
 0xd38   :  { %26524 = vmatmul.mubr.bf16.gmra.mrb[16].mxu1 %v38223_v6 }
 0xd39   :  { %26527 = vmatprep.mubr.bf16.mxu1 %v38224_v57 }
 0xd40   :  { %26528 = vmatmul.mubr.bf16.gmra.mrb[20].mxu1 %v38225_v58 }
 0xd41   :  { %26531 = vmatprep.mubr.bf16.mxu1 %v38415_v47  ;;  %v6277_v47 = vunpack.c.h.b16 %v38408_v1  ;;  %v38419_v1 = vld [vmem:[#allocation26_spill] sm:$0xff] }
 0xd48   :  { %26532 = vmatmul.mubr.bf16.gmra.mrb[24].mxu1 %v38228_v60 }
 0xd49   :  { %26535 = vmatprep.mubr.bf16.mxu1 %v38229_v43 }
 0xd50   :  { %26536 = vmatmul.mubr.bf16.gmra.mrb[28].mxu1 %v38231_v28 }
 0xd51   :  { %26539 = vmatprep.mubr.bf16.mxu1 %v38416_v15  ;;  %v6278_v15 = vunpack.c.l.b16 %v38409_v17 }
 0xd53   :  { %v15204_v25 = vpack.c.b16 %v6278_v15, %v6277_v47  ;;  %v6284_v47 = vunpack.c.l.b16 %v38419_v1 }
 0xd58   :  { %26540 = vmatmul.mubr.bf16.gmra.mrb[32].mxu1 %v38353_v22 }
 0xd59   :  { %26543 = vmatprep.mubr.bf16.mxu1 %v38386_v63 }
 0xd60   :  { %26544 = vmatmul.mubr.bf16.gmra.mrb[36].mxu1 %v38387_v24 }
 0xd61   :  { %26547 = vmatprep.mubr.bf16.mxu1 %v38417_v33  ;;  %v6280_v33 = vunpack.c.l.b16 %v38410_v23 }
 0xd68   :  { %26548 = vmatmul.mubr.bf16.gmra.mrb[40].mxu1 %v38389_v4 }
 0xd69   :  { %26551 = vmatprep.mubr.bf16.mxu1 %v38390_v5  ;;  %v6281_v5 = vunpack.c.h.b16 %v38410_v23 }
 0xd70   :  { %26552 = vmatmul.mubr.bf16.gmra.mrb[44].mxu1 %v33986_v9  ;;  %v6282_v9 = vunpack.c.l.b16 %v38411_v55 }
 0xd71   :  { %26555 = vmatprep.mubr.bf16.mxu1 %v38418_v16  ;;  %v6279_v16 = vunpack.c.h.b16 %v38409_v17 }
 0xd73   :  { %v34575_v4 = vpack.c.b16 %v6280_v33, %v6279_v16  ;;  %v28883_v33 = vld [vmem:[%s36659_s3 + $0x5c8] sm:$0xff]   ;;  %v28889_v16 = vld [vmem:[%s36659_s3 + $0x5f8] sm:$0xff]  }
 0xd78   :  { %26556 = vmatmul.mubr.bf16.gmra.mrb[48].mxu1 %v34278_v53  ;;  %v34577_v53 = vpack.c.b16 %v6282_v9, %v6281_v5  ;;  %v28884_v9 = vld [vmem:[%s36659_s3 + $0x5d0] sm:$0xff]   ;;  %v28886_v5 = vld [vmem:[%s36659_s3 + $0x5e0] sm:$0xff]  }
 0xd79   :  { %26559 = vmatprep.mubr.bf16.mxu1 %v34280_v0 }
 0xd80   :  { %26560 = vmatmul.mubr.bf16.gmra.mrb[52].mxu1 %v34286_v61 }
 0xd81   :  { %26563 = vmatprep.mubr.bf16.mxu1 %v15204_v25  ;;  %v6283_v25 = vunpack.c.h.b16 %v38411_v55 }
 0xd83   :  { %v34583_v15 = vpack.c.b16 %v6284_v47, %v6283_v25  ;;  %v28890_v47 = vld [vmem:[%s36659_s3 + $0x600] sm:$0xff]  }
 0xd84   :  { %v28919_v25 = vld [vmem:[%s36661_s5 + $0xe0] ss:$16 sps:$4 sm:$0xff]  }
 0xd88   :  { %26564 = vmatmul.mubr.bf16.gmra.mrb[56].mxu1 %v34575_v4 }
 0xd89   :  { %26567 = vmatprep.mubr.bf16.mxu1 %v34577_v53 }
 0xd90   :  { %26568 = vmatmul.mubr.bf16.gmra.mrb[60].mxu1 %v34583_v15 }
 0xd91   :  { %26587 = vmatprep.mubr.bf16.mxu1 %v38325_v41  ;;  %v28885_v41 = vld [vmem:[%s36659_s3 + $0x5d8] sm:$0xff]  }
 0xd98   :  { %26588 = vmatmul.mubr.bf16.vlgmr.msra.gmra.mrb[0].mxu1 %v32594_v29 }
 0xd99   :  { %26652 = vmatpush3.bf16.msra.mxu1 %v28882_v21  ;;  %26591 = vmatprep.mubr.bf16.mxu1 %v32586_v13  ;;  %v28887_v21 = vld [vmem:[%s36659_s3 + $0x5e8] sm:$0xff]  }
 0xd9a   :  { %26653 = vmatprep.subr.bf16.mxu1 %v28883_v33 }
 0xd9d   :  { %26654 = vmatpush3.bf16.msra.mxu1 %v28883_v33  ;;  %v28927_v33 = vld [vmem:[%s36661_s5 + $0x124] ss:$16 sps:$4 sm:$0xff]  }
 0xd9e   :  { %26655 = vmatprep.subr.bf16.mxu1 %v28884_v9 }
 0xda0   :  { %26592 = vmatmul.mubr.bf16.gmra.mrb[4].mxu1 %v38222_v10 }
 0xda1   :  { %26595 = vmatprep.mubr.bf16.mxu1 %v38327_v14  ;;  %26656 = vmatpush3.bf16.msra.mxu1 %v28884_v9  ;;  %v28888_v14 = vld [vmem:[%s36659_s3 + $0x5f0] sm:$0xff]  }
 0xda2   :  { %26657 = vmatprep.subr.bf16.mxu1 %v28885_v41  ;;  %v28925_v9 = vld [vmem:[%s36661_s5 + $0x120] ss:$16 sps:$4 sm:$0xff]  }
 0xda5   :  { %26658 = vmatpush3.bf16.msra.mxu1 %v28885_v41  ;;  %v28928_v41 = vld [vmem:[%s36661_s5 + $0x140] ss:$16 sps:$4 sm:$0xff]  }
 0xda6   :  { %26659 = vmatprep.subr.bf16.mxu1 %v28886_v5 }
 0xda8   :  { %26596 = vmatmul.mubr.bf16.gmra.mrb[8].mxu1 %v32705_v26 }
 0xda9   :  { %26599 = vmatprep.mubr.bf16.mxu1 %v32697_v36  ;;  %26660 = vmatpush3.bf16.msra.mxu1 %v28886_v5  ;;  %v28933_v5 = vld [vmem:[%s36661_s5 + $0x164] ss:$16 sps:$4 sm:$0xff]  }
 0xdaa   :  { %26661 = vmatprep.subr.bf16.mxu1 %v28887_v21 }
 0xdad   :  { %26662 = vmatpush3.bf16.msra.mxu1 %v28887_v21  ;;  %v28931_v21 = vld [vmem:[%s36661_s5 + $0x160] ss:$16 sps:$4 sm:$0xff]  }
 0xdae   :  { %26663 = vmatprep.subr.bf16.mxu1 %v28888_v14 }
 0xdb0   :  { %26600 = vmatmul.mubr.bf16.gmra.mrb[12].mxu1 %v38227_v44 }
 0xdb1   :  { %26603 = vmatprep.mubr.bf16.mxu1 %v38329_v46  ;;  %26664 = vmatpush3.bf16.msra.mxu1 %v28888_v14  ;;  %v28891_v46 = vld [vmem:[%s36659_s3 + $0x608] sm:$0xff]   ;;  %v28936_v14 = vld [vmem:[%s36661_s5 + $0x184] ss:$16 sps:$4 sm:$0xff]  }
 0xdb2   :  { %26665 = vmatprep.subr.bf16.mxu1 %v28889_v16 }
 0xdb5   :  { %26666 = vmatpush3.bf16.msra.mxu1 %v28889_v16  ;;  %v38429_v16 = vld [vmem:[#allocation276_spill] sm:$0xff] }
 0xdb6   :  { %26731 = vmatprep.subr.bf16.mxu1 %v28890_v47 }
 0xdb8   :  { %26604 = vmatmul.mubr.bf16.gmra.mrb[16].mxu1 %v32811_v20 }
 0xdb9   :  { %26607 = vmatprep.mubr.bf16.mxu1 %v38317_v51 }
 0xdc0   :  { %26608 = vmatmul.mubr.bf16.gmra.mrb[20].mxu1 %v38232_v37 }
 0xdc1   :  { %26611 = vmatprep.mubr.bf16.mxu1 %v38331_v52 }
 0xdc8   :  { %26612 = vmatmul.mubr.bf16.gmra.mrb[24].mxu1 %v32917_v18 }
 0xdc9   :  { %26615 = vmatprep.mubr.bf16.mxu1 %v38319_v19 }
 0xdd0   :  { %26616 = vmatmul.mubr.bf16.gmra.mrb[28].mxu1 %v38236_v62 }
 0xdd1   :  { %26619 = vmatprep.mubr.bf16.mxu1 %v38333_v8  ;;  %v28898_v8 = vld [vmem:[%s36661_s5] ss:$16 sps:$4 sm:$0xff]  }
 0xdd8   :  { %26620 = vmatmul.mubr.bf16.gmra.mrb[32].mxu1 %v33025_v12 }
 0xdd9   :  { %26623 = vmatprep.mubr.bf16.mxu1 %v33017_v54 }
 0xde0   :  { %26624 = vmatmul.mubr.bf16.gmra.mrb[36].mxu1 %v33065_v2 }
 0xde1   :  { %26627 = vmatprep.mubr.bf16.mxu1 %v38335_v39  ;;  %v28892_v39 = vld [vmem:[%s36659_s3 + $0x610] sm:$0xff]  }
 0xde8   :  { %26628 = vmatmul.mubr.bf16.gmra.mrb[40].mxu1 %v38336_v50 }
 0xde9   :  { %26631 = vmatprep.mubr.bf16.mxu1 %v38337_v11 }
 0xdf0   :  { %26632 = vmatmul.mubr.bf16.gmra.mrb[44].mxu1 %v38348_v59 }
 0xdf1   :  { %26635 = vmatprep.mubr.bf16.mxu1 %v38373_v30  ;;  %v28909_v30 = vld [vmem:[%s36661_s5 + $0x64] ss:$16 sps:$4 sm:$0xff]  }
 0xdf8   :  { %26636 = vmatmul.mubr.bf16.gmra.mrb[48].mxu1 %v38374_v27 }
 0xdf9   :  { %26639 = vmatprep.mubr.bf16.mxu1 %v38375_v7 }
 0xe00   :  { %26640 = vmatmul.mubr.bf16.gmra.mrb[52].mxu1 %v38385_v40 }
 0xe01   :  { %26643 = vmatprep.mubr.bf16.mxu1 %v38409_v17  ;;  %v28921_v17 = vld [vmem:[%s36661_s5 + $0xe4] ss:$16 sps:$4 sm:$0xff]  }
 0xe08   :  { %26644 = vmatmul.mubr.bf16.gmra.mrb[56].mxu1 %v38410_v23 }
 0xe09   :  { %26647 = vmatprep.mubr.bf16.mxu1 %v38411_v55 }
 0xe10   :  { %26648 = vmatmul.mubr.bf16.gmra.mrb[60].mxu1 %v38419_v1 }
 0xe11   :  { %26667 = vmatprep.mubr.bf16.mxu1 %v38213_v32  ;;  %v28893_v32 = vld [vmem:[%s36659_s3 + $0x618] sm:$0xff]  }
 0xe18   :  { %26668 = vmatmul.mubr.bf16.vlgmr.msra.gmra.mrb[0].mxu1 %v38214_v38  ;;  %v28894_v38 = vld [vmem:[%s36659_s3 + $0x620] sm:$0xff]  }
 0xe19   :  { %26732 = vmatpush3.bf16.msra.mxu1 %v28890_v47  ;;  %26671 = vmatprep.mubr.bf16.mxu1 %v38215_v49  ;;  %v28895_v49 = vld [vmem:[%s36659_s3 + $0x628] sm:$0xff]   ;;  %v38430_v47 = vld [vmem:[#allocation157_spill] sm:$0xff] }
 0xe1a   :  { %26733 = vmatprep.subr.bf16.mxu1 %v28891_v46 }
 0xe1d   :  { %26734 = vmatpush3.bf16.msra.mxu1 %v28891_v46  ;;  %v38435_v46 = vld [vmem:[#allocation29_spill] sm:$0xff] }
 0xe1e   :  { %26735 = vmatprep.subr.bf16.mxu1 %v28892_v39 }
 0xe20   :  { %26672 = vmatmul.mubr.bf16.gmra.mrb[4].mxu1 %v33578_v34  ;;  %v28897_v34 = vld [vmem:[%s36659_s3 + $0x638] sm:$0xff]  }
 0xe21   :  { %26675 = vmatprep.mubr.bf16.mxu1 %v38218_v45  ;;  %26736 = vmatpush3.bf16.msra.mxu1 %v28892_v39  ;;  %v28896_v45 = vld [vmem:[%s36659_s3 + $0x630] sm:$0xff]  }
 0xe22   :  { %26737 = vmatprep.subr.bf16.mxu1 %v28893_v32 }
 0xe25   :  { %26738 = vmatpush3.bf16.msra.mxu1 %v28893_v32 }
 0xe26   :  { %26739 = vmatprep.subr.bf16.mxu1 %v28894_v38 }
 0xe28   :  { %26676 = vmatmul.mubr.bf16.gmra.mrb[8].mxu1 %v38219_v42  ;;  %v38422_v42 = vld [vmem:[#allocation190_spill] sm:$0xff] }
 0xe29   :  { %26679 = vmatprep.mubr.bf16.mxu1 %v38220_v48  ;;  %26740 = vmatpush3.bf16.msra.mxu1 %v28894_v38  ;;  %v38423_v48 = vld [vmem:[#allocation52_spill] sm:$0xff] }
 0xe2a   :  { %26741 = vmatprep.subr.bf16.mxu1 %v28895_v49  ;;  %v38436_v38 = vld [vmem:[#allocation168_spill] sm:$0xff] }
 0xe2d   :  { %26742 = vmatpush3.bf16.msra.mxu1 %v28895_v49 }
 0xe2e   :  { %26743 = vmatprep.subr.bf16.mxu1 %v28896_v45 }
 0xe30   :  { %26680 = vmatmul.mubr.bf16.gmra.mrb[12].mxu1 %v38350_v56 }
 0xe31   :  { %26683 = vmatprep.mubr.bf16.mxu1 %v38223_v6  ;;  %26744 = vmatpush3.bf16.msra.mxu1 %v28896_v45  ;;  %v38426_v6 = vld [vmem:[#allocation287_spill] sm:$0xff] }
 0xe32   :  { %26745 = vmatprep.subr.bf16.mxu1 %v28897_v34  ;;  %v6286_v52 = vunpack.c.l.b16 %v38426_v6 }
 0xe35   :  { %26746 = vmatpush3.bf16.msra.mxu1 %v28897_v34  ;;  %v38437_v34 = vld [vmem:[#allocation291_spill] sm:$0xff] }
 0xe38   :  { %26684 = vmatmul.mubr.bf16.gmra.mrb[16].mxu1 %v38224_v57  ;;  %v38420_v57 = vld [vmem:[#allocation312_spill] sm:$0xff] }
 0xe39   :  { %26687 = vmatprep.mubr.bf16.mxu1 %v38225_v58  ;;  %v38421_v58 = vld [vmem:[#allocation51_spill] sm:$0xff] }
 0xe40   :  { %26688 = vmatmul.mubr.bf16.gmra.mrb[20].mxu1 %v38351_v35  ;;  %v28901_v35 = vld [vmem:[%s36661_s5 + $0x20] ss:$16 sps:$4 sm:$0xff]  }
 0xe41   :  { %26691 = vmatprep.mubr.bf16.mxu1 %v38228_v60  ;;  %v6285_v60 = vunpack.c.h.b16 %v38419_v1 }
 0xe43   :  { %v16050_v56 = vpack.c.b16 %v6286_v52, %v6285_v60 }
 0xe48   :  { %26692 = vmatmul.mubr.bf16.gmra.mrb[24].mxu1 %v38229_v43  ;;  %v38424_v43 = vld [vmem:[#allocation313_spill] sm:$0xff] }
 0xe49   :  { %26695 = vmatprep.mubr.bf16.mxu1 %v38231_v28  ;;  %v38425_v28 = vld [vmem:[#allocation314_spill] sm:$0xff] }
 0xe50   :  { %26696 = vmatmul.mubr.bf16.gmra.mrb[28].mxu1 %v38352_v31  ;;  %v28903_v31 = vld [vmem:[%s36661_s5 + $0x24] ss:$16 sps:$4 sm:$0xff]  }
 0xe51   :  { %26699 = vmatprep.mubr.bf16.mxu1 %v38353_v22  ;;  %v28906_v22 = vld [vmem:[%s36661_s5 + $0x44] ss:$16 sps:$4 sm:$0xff]  }
 0xe58   :  { %26700 = vmatmul.mubr.bf16.gmra.mrb[32].mxu1 %v38386_v63  ;;  %v28910_v63 = vld [vmem:[%s36661_s5 + $0x80] ss:$16 sps:$4 sm:$0xff]  }
 0xe59   :  { %26703 = vmatprep.mubr.bf16.mxu1 %v38387_v24  ;;  %v28915_v24 = vld [vmem:[%s36661_s5 + $0xa4] ss:$16 sps:$4 sm:$0xff]  }
 0xe60   :  { %26704 = vmatmul.mubr.bf16.gmra.mrb[36].mxu1 %v38388_v3  ;;  %v28918_v3 = vld [vmem:[%s36661_s5 + $0xc4] ss:$16 sps:$4 sm:$0xff]  }
 0xe61   :  { %26707 = vmatprep.mubr.bf16.mxu1 %v38420_v57 }
 0xe68   :  { %26708 = vmatmul.mubr.bf16.gmra.mrb[40].mxu1 %v38421_v58 }
 0xe69   :  { %26711 = vmatprep.mubr.bf16.mxu1 %v38422_v42 }
 0xe70   :  { %26712 = vmatmul.mubr.bf16.gmra.mrb[44].mxu1 %v38423_v48 }
 0xe71   :  { %26715 = vmatprep.mubr.bf16.mxu1 %v38424_v43 }
 0xe78   :  { %26716 = vmatmul.mubr.bf16.gmra.mrb[48].mxu1 %v34280_v0  ;;  %v28900_v0 = vld [vmem:[%s36661_s5 + $0x4] ss:$16 sps:$4 sm:$0xff]  }
 0xe79   :  { %26719 = vmatprep.mubr.bf16.mxu1 %v34286_v61  ;;  %20166 = vmatprep.subr.bf16.mxu0 %v28900_v0  ;;  %v28912_v61 = vld [vmem:[%s36661_s5 + $0x84] ss:$16 sps:$4 sm:$0xff]  }
 0xe7a   :  { %20167 = vmatpush1.bf16.msra.mxu0 %v28898_v8  ;;  %v38438_v8 = vld [vmem:[#allocation30_spill] sm:$0xff] }
 0xe7b   :  { %20168 = vmatprep.subr.bf16.mxu0 %v28903_v31  ;;  %v38439_v31 = vld [vmem:[#allocation169_spill] sm:$0xff] }
 0xe7e   :  { %20169 = vmatpush1.bf16.msra.mxu0 %v28901_v35 }
 0xe7f   :  { %20170 = vmatprep.subr.bf16.mxu0 %v28906_v22 }
 0xe80   :  { %26720 = vmatmul.mubr.bf16.gmra.mrb[52].mxu1 %v38425_v28 }
 0xe81   :  { %26723 = vmatprep.mubr.bf16.mxu1 %v34575_v4  ;;  %v28916_v4 = vld [vmem:[%s36661_s5 + $0xc0] ss:$16 sps:$4 sm:$0xff]  }
 0xe88   :  { %26724 = vmatmul.mubr.bf16.gmra.mrb[56].mxu1 %v34577_v53  ;;  %v28904_v53 = vld [vmem:[%s36661_s5 + $0x40] ss:$16 sps:$4 sm:$0xff]  }
 0xe89   :  { %26727 = vmatprep.mubr.bf16.mxu1 %v34583_v15  ;;  %20171 = vmatpush1.bf16.msra.mxu0 %v28904_v53  ;;  %v28924_v15 = vld [vmem:[%s36661_s5 + $0x104] ss:$16 sps:$4 sm:$0xff]  }
 0xe8a   :  { %20172 = vmatprep.subr.bf16.mxu0 %v28909_v30 }
 0xe90   :  { %26728 = vmatmul.mubr.bf16.gmra.mrb[60].mxu1 %v16050_v56 }
 0xe91   :  { %26747 = vmatprep.mubr.bf16.mxu1 %v32594_v29  ;;  %v28907_v29 = vld [vmem:[%s36661_s5 + $0x60] ss:$16 sps:$4 sm:$0xff]  }
 0xe92   :  { %20173 = vmatpush1.bf16.msra.mxu0 %v28907_v29  ;;  %v38440_v29 = vld [vmem:[#allocation292_spill] sm:$0xff] }
 0xe93   :  { %20174 = vmatprep.subr.bf16.mxu0 %v28912_v61 }
 0xe96   :  { %20175 = vmatpush1.bf16.msra.mxu0 %v28910_v63 }
 0xe97   :  { %20176 = vmatprep.subr.bf16.mxu0 %v28915_v24 }
 0xe98   :  { %26748 = vmatmul.mubr.bf16.vlgmr.msra.gmra.mrb[0].mxu1 %v32586_v13  ;;  %v28913_v13 = vld [vmem:[%s36661_s5 + $0xa0] ss:$16 sps:$4 sm:$0xff]  }
 0xe99   :  { %26751 = vmatprep.mubr.bf16.mxu1 %v38222_v10  ;;  %v38427_v10 = vld [vmem:[#allocation8_spill] sm:$0xff] }
 0xe9a   :  { %20177 = vmatpush1.bf16.msra.mxu0 %v28913_v13  ;;  %v38441_v13 = vld [vmem:[#allocation31_spill] sm:$0xff] }
 0xe9b   :  { %20178 = vmatprep.subr.bf16.mxu0 %v28918_v3 }
 0xe9e   :  { %20179 = vmatpush1.bf16.msra.mxu0 %v28916_v4 }
 0xe9f   :  { %20180 = vmatprep.subr.bf16.mxu0 %v28921_v17 }
 0xea0   :  { %26752 = vmatmul.mubr.bf16.gmra.mrb[4].mxu1 %v38427_v10 }
 0xea1   :  { %26755 = vmatprep.mubr.bf16.mxu1 %v32705_v26  ;;  %v28922_v26 = vld [vmem:[%s36661_s5 + $0x100] ss:$16 sps:$4 sm:$0xff]  }
 0xea2   :  { %20181 = vmatpush1.bf16.msra.mxu0 %v28919_v25 }
 0xea3   :  { %20182 = vmatprep.subr.bf16.mxu0 %v28924_v15 }
 0xea6   :  { %20183 = vmatpush1.bf16.msra.mxu0 %v28922_v26 }
 0xea7   :  { %20184 = vmatprep.subr.bf16.mxu0 %v28927_v33 }
 0xea8   :  { %26756 = vmatmul.mubr.bf16.gmra.mrb[8].mxu1 %v32697_v36  ;;  %v28930_v36 = vld [vmem:[%s36661_s5 + $0x144] ss:$16 sps:$4 sm:$0xff]  }
 0xea9   :  { %26759 = vmatprep.mubr.bf16.mxu1 %v38227_v44  ;;  %v38428_v44 = vld [vmem:[#allocation11_spill] sm:$0xff] }
 0xeaa   :  { %20185 = vmatpush1.bf16.msra.mxu0 %v28925_v9 }
 0xeab   :  { %20186 = vmatprep.subr.bf16.mxu0 %v28930_v36  ;;  %v38442_v36 = vld [vmem:[#allocation170_spill] sm:$0xff] }
 0xeae   :  { %20187 = vmatpush1.bf16.msra.mxu0 %v28928_v41 }
 0xeaf   :  { %20188 = vmatprep.subr.bf16.mxu0 %v28933_v5 }
 0xeb0   :  { %26760 = vmatmul.mubr.bf16.gmra.mrb[12].mxu1 %v38428_v44 }
 0xeb1   :  { %26763 = vmatprep.mubr.bf16.mxu1 %v32811_v20  ;;  %v28934_v20 = vld [vmem:[%s36661_s5 + $0x180] ss:$16 sps:$4 sm:$0xff]  }
 0xeb2   :  { %20189 = vmatpush1.bf16.msra.mxu0 %v28931_v21  ;;  %v38443_v21 = vld [vmem:[#allocation32_spill] sm:$0xff] }
 0xeb3   :  { %20190 = vmatprep.subr.bf16.mxu0 %v28936_v14 }
 0xeb6   :  { %20191 = vmatpush1.bf16.msra.mxu0 %v28934_v20 }
 0xeb8   :  { %26764 = vmatmul.mubr.bf16.gmra.mrb[16].mxu1 %v38317_v51  ;;  %v28945_v51 = vld [vmem:[%s36661_s5 + $0x1e4] ss:$16 sps:$4 sm:$0xff]  }
 0xeb9   :  { %26767 = vmatprep.mubr.bf16.mxu1 %v38232_v37  ;;  %v38431_v37 = vld [vmem:[#allocation159_spill] sm:$0xff] }
 0xec0   :  { %26768 = vmatmul.mubr.bf16.gmra.mrb[20].mxu1 %v38429_v16 }
 0xec1   :  { %26771 = vmatprep.mubr.bf16.mxu1 %v32917_v18  ;;  %v38432_v18 = vld [vmem:[#allocation283_spill] sm:$0xff] }
 0xec8   :  { %26772 = vmatmul.mubr.bf16.gmra.mrb[24].mxu1 %v38319_v19  ;;  %v28943_v19 = vld [vmem:[%s36661_s5 + $0x1e0] ss:$16 sps:$4 sm:$0xff]  }
 0xec9   :  { %26775 = vmatprep.mubr.bf16.mxu1 %v38236_v62  ;;  %v28942_v62 = vld [vmem:[%s36661_s5 + $0x1c4] ss:$16 sps:$4 sm:$0xff]  }
 0xed0   :  { %26776 = vmatmul.mubr.bf16.gmra.mrb[28].mxu1 %v38430_v47  ;;  %v38444_v47 = vld [vmem:[#allocation171_spill] sm:$0xff] }
 0xed1   :  { %26779 = vmatprep.mubr.bf16.mxu1 %v33025_v12  ;;  %v28937_v12 = vld [vmem:[%s36661_s5 + $0x1a0] ss:$16 sps:$4 sm:$0xff]  }
 0xed8   :  { %26780 = vmatmul.mubr.bf16.gmra.mrb[32].mxu1 %v33017_v54  ;;  %v28940_v54 = vld [vmem:[%s36661_s5 + $0x1c0] ss:$16 sps:$4 sm:$0xff]  }
 0xed9   :  { %26783 = vmatprep.mubr.bf16.mxu1 %v33065_v2  ;;  %v28939_v2 = vld [vmem:[%s36661_s5 + $0x1a4] ss:$16 sps:$4 sm:$0xff]  }
 0xeda   :  { %20192 = vmatprep.subr.bf16.mxu0 %v28939_v2  ;;  %v38445_v2 = vld [vmem:[#allocation293_spill] sm:$0xff] }
 0xedb   :  { %20193 = vmatpush1.bf16.msra.mxu0 %v28937_v12 }
 0xedc   :  { %20194 = vmatprep.subr.bf16.mxu0 %v28942_v62 }
 0xedf   :  { %20195 = vmatpush1.bf16.msra.mxu0 %v28940_v54 }
 0xee0   :  { %26784 = vmatmul.mubr.bf16.gmra.mrb[36].mxu1 %v38431_v37  ;;  %20196 = vmatprep.subr.bf16.mxu0 %v28945_v51 }
 0xee1   :  { %26787 = vmatprep.mubr.bf16.mxu1 %v38336_v50  ;;  %v38433_v50 = vld [vmem:[#allocation24_spill] sm:$0xff] }
 0xee3   :  { %20197 = vmatpush1.bf16.msra.mxu0 %v28943_v19 }
 0xee8   :  { %26788 = vmatmul.mubr.bf16.gmra.mrb[40].mxu1 %v38337_v11  ;;  %v28948_v11 = vld [vmem:[%s36661_s5 + $0x204] ss:$16 sps:$4 sm:$0xff]  }
 0xee9   :  { %26791 = vmatprep.mubr.bf16.mxu1 %v38348_v59  ;;  %20207 = vmatprep.subr.bf16.mxu0 %v28948_v11 }
 0xef0   :  { %26792 = vmatmul.mubr.bf16.gmra.mrb[44].mxu1 %v38432_v18 }
 0xef1   :  { %26795 = vmatprep.mubr.bf16.mxu1 %v38374_v27  ;;  %v34830_v27 = vld [vmem:[%s36662_s4] ss:$0 sm:$0xff] }
 0xef8   :  { %26796 = vmatmul.mubr.bf16.gmra.mrb[48].mxu1 %v38375_v7  ;;  %v38434_v7 = vld [vmem:[#allocation290_spill] sm:$0xff] }
 0xef9   :  { %26799 = vmatprep.mubr.bf16.mxu1 %v38385_v40 }
 0xf00   :  { %26800 = vmatmul.mubr.bf16.gmra.mrb[52].mxu1 %v38433_v50 }
 0xf01   :  { %26803 = vmatprep.mubr.bf16.mxu1 %v38410_v23 }
 0xf08   :  { %26804 = vmatmul.mubr.bf16.gmra.mrb[56].mxu1 %v38411_v55 }
 0xf09   :  { %26807 = vmatprep.mubr.bf16.mxu1 %v38419_v1 }
 0xf10   :  { %26808 = vmatmul.mubr.bf16.gmra.mrb[60].mxu1 %v38426_v6 }
 0xf6b   :  { %v26749_v59 = vpop.f32.mrb[0].mxu1 }
 0xf6c   :  { %v26811_v40 = vadd.f32 %v26749_v59, %v38434_v7  ;;  %v16554_v23 = vpop.f32.mrb[1].mxu1 }
 0xf6d   :  { %v26812_v55 = vadd.f32 %v16554_v23, %v38435_v46  ;;  %v26750_v39 = vpop.f32.mrb[2].mxu1  ;;  %v38446_v23 = vld [vmem:[#allocation294_spill] sm:$0xff] }
 0xf6e   :  { %v16882_v32 = vadd.f32 %v26811_v40, %v34830_v27  ;;  %v26813_v49 = vadd.f32 %v26750_v39, %v38436_v38  ;;  %v16557_v1 = vpop.f32.mrb[3].mxu1 }
 0xf6f   :  { %v16880_v45 = vadd.f32 %v26812_v55, %v34830_v27  ;;  %v26814_v57 = vadd.f32 %v16557_v1, %v38437_v34 }
 0xf70   :  { %v16883_v58 = vadd.f32 %v26813_v49, %v34830_v27  ;;  %v16946_v48 = vmax.f32 %v16882_v32, 0.0  ;;  %v38447_v32 = vld [vmem:[#allocation33_spill] sm:$0xff] }
 0xf71   :  { %v16881_v42 = vadd.f32 %v26814_v57, %v34830_v27  ;;  %v16944_v28 = vmax.f32 %v16880_v45, 0.0  ;;  %v38448_v45 = vld [vmem:[#allocation172_spill] sm:$0xff] }
 0xf72   :  { %v16947_v43 = vmax.f32 %v16883_v58, 0.0 }
 0xf73   :  { %v16945_v60 = vmax.f32 %v16881_v42, 0.0  ;;  %v26753_v6 = vpop.f32.mrb[4].mxu1 }
 0xf74   :  { %v17009_v52 = vmax.f32 %v16946_v48, %v16947_v43  ;;  %v26815_v0 = vadd.f32 %v26753_v6, %v38438_v8  ;;  %v16570_v56 = vpop.f32.mrb[5].mxu1  ;;  %v38449_v43 = vld [vmem:[#allocation295_spill] sm:$0xff]  ;;  %v28946_v8 = vld [vmem:[%s36661_s5 + $0x200] ss:$16 sps:$4 sm:$0xff]  }
 0xf75   :  { %v17008_v35 = vmax.f32 %v16944_v28, %v16945_v60  ;;  %v26816_v22 = vadd.f32 %v16570_v56, %v38439_v31  ;;  %v26754_v53 = vpop.f32.mrb[6].mxu1 }
 0xf76   :  { %v16886_v30 = vadd.f32 %v26815_v0, %v34830_v27  ;;  %v26817_v61 = vadd.f32 %v26754_v53, %v38440_v29  ;;  %v16573_v63 = vpop.f32.mrb[7].mxu1 }
 0xf77   :  { %v16884_v24 = vadd.f32 %v26816_v22, %v34830_v27  ;;  %v26818_v3 = vadd.f32 %v16573_v63, %v38441_v13  ;;  %v28949_v13 = vld [vmem:[%s36661_s5 + $0x220] ss:$16 sps:$4 sm:$0xff]  }
 0xf78   :  { %v16887_v10 = vadd.f32 %v26817_v61, %v34830_v27  ;;  %v16950_v17 = vmax.f32 %v16886_v30, 0.0  ;;  %v38450_v61 = vld [vmem:[#allocation34_spill] sm:$0xff] }
 0xf79   :  { %v16885_v4 = vadd.f32 %v26818_v3, %v34830_v27  ;;  %v16948_v15 = vmax.f32 %v16884_v24, 0.0 }
 0xf7a   :  { %v16951_v25 = vmax.f32 %v16887_v10, 0.0  ;;  %v38451_v10 = vld [vmem:[#allocation296_spill] sm:$0xff] }
 0xf7b   :  { %v16949_v26 = vmax.f32 %v16885_v4, 0.0  ;;  %v26757_v33 = vpop.f32.mrb[8].mxu1 }
 0xf7c   :  { %v17011_v9 = vmax.f32 %v16950_v17, %v16951_v25  ;;  %v26819_v44 = vadd.f32 %v26757_v33, %v38442_v36  ;;  %v16586_v41 = vpop.f32.mrb[9].mxu1  ;;  %v28954_v25 = vld [vmem:[%s36661_s5 + $0x244] ss:$16 sps:$4 sm:$0xff]  }
 0xf7d   :  { %v17010_v5 = vmax.f32 %v16948_v15, %v16949_v26  ;;  %v26820_v14 = vadd.f32 %v16586_v41, %v38443_v21  ;;  %v26758_v20 = vpop.f32.mrb[10].mxu1  ;;  %v38452_v26 = vld [vmem:[#allocation35_spill] sm:$0xff] }
 0xf7e   :  { %v16890_v16 = vadd.f32 %v26819_v44, %v34830_v27  ;;  %v26821_v37 = vadd.f32 %v26758_v20, %v38444_v47  ;;  %v16589_v18 = vpop.f32.mrb[11].mxu1  ;;  %v28952_v47 = vld [vmem:[%s36661_s5 + $0x240] ss:$16 sps:$4 sm:$0xff]  }
 0xf7f   :  { %v16888_v12 = vadd.f32 %v26820_v14, %v34830_v27  ;;  %v26822_v54 = vadd.f32 %v16589_v18, %v38445_v2  ;;  %v38453_v14 = vld [vmem:[#allocation174_spill] sm:$0xff] }
 0xf80   :  { %v16891_v62 = vadd.f32 %v26821_v37, %v34830_v27  ;;  %v16954_v51 = vmax.f32 %v16890_v16, 0.0 }
 0xf81   :  { %v16889_v50 = vadd.f32 %v26822_v54, %v34830_v27  ;;  %v16952_v11 = vmax.f32 %v16888_v12, 0.0 }
 0xf82   :  { %v16955_v19 = vmax.f32 %v16891_v62, 0.0 }
 0xf83   :  { %v16953_v59 = vmax.f32 %v16889_v50, 0.0  ;;  %v26761_v7 = vpop.f32.mrb[12].mxu1 }
 0xf84   :  { %v17013_v40 = vmax.f32 %v16954_v51, %v16955_v19  ;;  %v26823_v46 = vadd.f32 %v26761_v7, %v38446_v23  ;;  %v16602_v55 = vpop.f32.mrb[13].mxu1  ;;  %v38454_v51 = vld [vmem:[#allocation36_spill] sm:$0xff] }
 0xf85   :  { %v17012_v39 = vmax.f32 %v16952_v11, %v16953_v59  ;;  %v26824_v38 = vadd.f32 %v16602_v55, %v38447_v32  ;;  %v26762_v49 = vpop.f32.mrb[14].mxu1  ;;  %v28955_v59 = vld [vmem:[%s36661_s5 + $0x260] ss:$16 sps:$4 sm:$0xff]   ;;  %v28960_v55 = vld [vmem:[%s36661_s5 + $0x284] ss:$16 sps:$4 sm:$0xff]   ;;  %v38456_v32 = vld [vmem:[#allocation297_spill] sm:$0xff] }
 0xf86   :  { %v16894_v1 = vadd.f32 %v26823_v46, %v34830_v27  ;;  %v26825_v34 = vadd.f32 %v26762_v49, %v38448_v45  ;;  %v16605_v57 = vpop.f32.mrb[15].mxu1  ;;  %v17041_v58 = vmax.f32 %v17009_v52, %v17013_v40  ;;  %v28951_v52 = vld [vmem:[%s36661_s5 + $0x224] ss:$16 sps:$4 sm:$0xff]   ;;  %v38455_v40 = vld [vmem:[#allocation175_spill] sm:$0xff] }
 0xf87   :  { %v17040_v42 = vmax.f32 %v17008_v35, %v17012_v39  ;;  %v16892_v48 = vadd.f32 %v26824_v38, %v34830_v27  ;;  %v26826_v28 = vadd.f32 %v16605_v57, %v38449_v43  ;;  %v38457_v45 = vld [vmem:[#allocation298_spill] sm:$0xff] }
 0xf88   :  { %v16895_v60 = vadd.f32 %v26825_v34, %v34830_v27  ;;  %v34863_v6 = vpack.c.bf16 %v17041_v58, %v17041_v58  ;;  %v16958_v35 = vmax.f32 %v16894_v1, 0.0  ;;  %v28958_v58 = vld [vmem:[%s36661_s5 + $0x280] ss:$16 sps:$4 sm:$0xff]  }
 0xf89   :  { %v34868_v0 = vpack.c.bf16 %v17040_v42, %v17040_v42  ;;  %v16893_v56 = vadd.f32 %v26826_v28, %v34830_v27  ;;  %v16956_v22 = vmax.f32 %v16892_v48, 0.0  ;;  %v28963_v48 = vld [vmem:[%s36661_s5 + $0x2a4] ss:$16 sps:$4 sm:$0xff]  }
 0xf8a   :  { %v16959_v31 = vmax.f32 %v16895_v60, 0.0  ;;  %20198 = vmatprep.mubr.bf16.mxu0 %v34863_v6 }
 0xf8b   :  { %v16957_v53 = vmax.f32 %v16893_v56, 0.0  ;;  %v26765_v30 = vpop.f32.mrb[16].mxu1  ;;  %20199 = vmatmul.mubr.bf16.vlgmr.msra.gmra.mrb[128].mxu0 %v34868_v0 }
 0xf8c   :  { %v17015_v29 = vmax.f32 %v16958_v35, %v16959_v31  ;;  %v26827_v63 = vadd.f32 %v26765_v30, %v38450_v61  ;;  %20208 = vmatpush1.bf16.msra.mxu0 %v28946_v8  ;;  %v16618_v24 = vpop.f32.mrb[17].mxu1  ;;  %v38458_v35 = vld [vmem:[#allocation37_spill] sm:$0xff] }
 0xf8d   :  { %v17014_v3 = vmax.f32 %v16956_v22, %v16957_v53  ;;  %v26828_v4 = vadd.f32 %v16618_v24, %v38451_v10  ;;  %v26766_v17 = vpop.f32.mrb[18].mxu1  ;;  %20209 = vmatprep.subr.bf16.mxu0 %v28951_v52  ;;  %v28961_v53 = vld [vmem:[%s36661_s5 + $0x2a0] ss:$16 sps:$4 sm:$0xff]   ;;  %v28966_v24 = vld [vmem:[%s36661_s5 + $0x2c4] ss:$16 sps:$4 sm:$0xff]  }
 0xf8e   :  { %v16898_v15 = vadd.f32 %v26827_v63, %v34830_v27  ;;  %v26829_v33 = vadd.f32 %v26766_v17, %v38452_v26  ;;  %v16621_v36 = vpop.f32.mrb[19].mxu1  ;;  %v17043_v44 = vmax.f32 %v17011_v9, %v17015_v29  ;;  %v28957_v9 = vld [vmem:[%s36661_s5 + $0x264] ss:$16 sps:$4 sm:$0xff]  }
 0xf8f   :  { %v34886_v41 = vmax.f32 %v17010_v5, %v17014_v3  ;;  %v16896_v21 = vadd.f32 %v26828_v4, %v34830_v27  ;;  %v26830_v20 = vadd.f32 %v16621_v36, %v38453_v14  ;;  %v38459_v29 = vld [vmem:[#allocation176_spill] sm:$0xff]  ;;  %v38460_v3 = vld [vmem:[#allocation299_spill] sm:$0xff] }
 0xf90   :  { %v16899_v16 = vadd.f32 %v26829_v33, %v34830_v27  ;;  %20210 = vmatpush1.bf16.msra.mxu0 %v28949_v13  ;;  %v34894_v37 = vpack.c.bf16 %v17043_v44, %v17043_v44  ;;  %v16962_v5 = vmax.f32 %v16898_v15, 0.0  ;;  %v28964_v33 = vld [vmem:[%s36661_s5 + $0x2c0] ss:$16 sps:$4 sm:$0xff]   ;;  %v28969_v44 = vld [vmem:[%s36661_s5 + $0x2e4] ss:$16 sps:$4 sm:$0xff]  }
 0xf91   :  { %v16897_v18 = vadd.f32 %v26830_v20, %v34830_v27  ;;  %20211 = vmatprep.subr.bf16.mxu0 %v28954_v25  ;;  %v16960_v2 = vmax.f32 %v16896_v21, 0.0  ;;  %v38461_v25 = vld [vmem:[#allocation38_spill] sm:$0xff] }
 0xf92   :  { %v16963_v12 = vmax.f32 %v16899_v16, 0.0  ;;  %20239 = vmatprep.mubr.bf16.mxu0 %v34894_v37 }
 0xf93   :  { %v16961_v54 = vmax.f32 %v16897_v18, 0.0  ;;  %v26769_v62 = vpop.f32.mrb[20].mxu1 }
 0xf94   :  { %v34901_v50 = vmax.f32 %v16962_v5, %v16963_v12  ;;  %v26831_v19 = vadd.f32 %v26769_v62, %v38454_v51  ;;  %20212 = vmatpush1.bf16.msra.mxu0 %v28952_v47  ;;  %v16634_v11 = vpop.f32.mrb[21].mxu1  ;;  %v38463_v62 = vld [vmem:[#allocation300_spill] sm:$0xff] }
 0xf95   :  { %v17016_v7 = vmax.f32 %v16960_v2, %v16961_v54  ;;  %v26832_v23 = vadd.f32 %v16634_v11, %v38455_v40  ;;  %v26770_v46 = vpop.f32.mrb[22].mxu1  ;;  %20213 = vmatprep.subr.bf16.mxu0 %v28957_v9  ;;  %v38462_v9 = vld [vmem:[#allocation177_spill] sm:$0xff]  ;;  %v28967_v2 = vld [vmem:[%s36661_s5 + $0x2e0] ss:$16 sps:$4 sm:$0xff]   ;;  %v28972_v11 = vld [vmem:[%s36661_s5 + $0x304] ss:$16 sps:$4 sm:$0xff]  }
 0xf96   :  { %v16902_v39 = vadd.f32 %v26831_v19, %v34830_v27  ;;  %v26833_v38 = vadd.f32 %v26770_v46, %v38456_v32  ;;  %v16637_v49 = vpop.f32.mrb[23].mxu1  ;;  %v38464_v40 = vld [vmem:[#allocation39_spill] sm:$0xff] }
 0xf97   :  { %v16900_v1 = vadd.f32 %v26832_v23, %v34830_v27  ;;  %v26834_v34 = vadd.f32 %v16637_v49, %v38457_v45  ;;  %v28970_v45 = vld [vmem:[%s36661_s5 + $0x300] ss:$16 sps:$4 sm:$0xff]  }
 0xf98   :  { %v16903_v57 = vadd.f32 %v26833_v38, %v34830_v27  ;;  %20214 = vmatpush1.bf16.msra.mxu0 %v28955_v59  ;;  %v16966_v43 = vmax.f32 %v16902_v39, 0.0  ;;  %v38465_v38 = vld [vmem:[#allocation178_spill] sm:$0xff] }
 0xf99   :  { %v16901_v42 = vadd.f32 %v26834_v34, %v34830_v27  ;;  %20215 = vmatprep.subr.bf16.mxu0 %v28960_v55  ;;  %v16964_v60 = vmax.f32 %v16900_v1, 0.0 }
 0xf9a   :  { %v16967_v28 = vmax.f32 %v16903_v57, 0.0 }
 0xf9b   :  { %v16965_v8 = vmax.f32 %v16901_v42, 0.0  ;;  %v26773_v56 = vpop.f32.mrb[24].mxu1 }
 0xf9c   :  { %v34923_v52 = vmax.f32 %v16966_v43, %v16967_v28  ;;  %v26835_v31 = vadd.f32 %v26773_v56, %v38458_v35  ;;  %20216 = vmatpush1.bf16.msra.mxu0 %v28958_v58  ;;  %v16650_v22 = vpop.f32.mrb[25].mxu1  ;;  %v38466_v28 = vld [vmem:[#allocation40_spill] sm:$0xff] }
 0xf9d   :  { %v34929_v30 = vmax.f32 %v16964_v60, %v16965_v8  ;;  %v26836_v61 = vadd.f32 %v16650_v22, %v38459_v29  ;;  %v26774_v63 = vpop.f32.mrb[26].mxu1  ;;  %20217 = vmatprep.subr.bf16.mxu0 %v28963_v48  ;;  %v28973_v56 = vld [vmem:[%s36661_s5 + $0x320] ss:$16 sps:$4 sm:$0xff]   ;;  %v28978_v29 = vld [vmem:[%s36661_s5 + $0x344] ss:$16 sps:$4 sm:$0xff]  }
 0xf9e   :  { %v16906_v13 = vadd.f32 %v26835_v31, %v34830_v27  ;;  %v26837_v10 = vadd.f32 %v26774_v63, %v38460_v3  ;;  %v16653_v4 = vpop.f32.mrb[27].mxu1  ;;  %v38467_v31 = vld [vmem:[#allocation179_spill] sm:$0xff]  ;;  %v38468_v63 = vld [vmem:[#allocation301_spill] sm:$0xff] }
 0xf9f   :  { %v16904_v17 = vadd.f32 %v26836_v61, %v34830_v27  ;;  %v26838_v15 = vadd.f32 %v16653_v4, %v38461_v25 }
 0xfa0   :  { %v16907_v26 = vadd.f32 %v26837_v10, %v34830_v27  ;;  %20218 = vmatpush1.bf16.msra.mxu0 %v28961_v53  ;;  %v16970_v21 = vmax.f32 %v16906_v13, 0.0 }
 0xfa1   :  { %v16905_v36 = vadd.f32 %v26838_v15, %v34830_v27  ;;  %20219 = vmatprep.subr.bf16.mxu0 %v28966_v24  ;;  %v16968_v20 = vmax.f32 %v16904_v17, 0.0  ;;  %v38469_v17 = vld [vmem:[#allocation302_spill] sm:$0xff] }
 0xfa2   :  { %v16971_v14 = vmax.f32 %v16907_v26, 0.0  ;;  %v28976_v26 = vld [vmem:[%s36661_s5 + $0x340] ss:$16 sps:$4 sm:$0xff]  }
 0xfa3   :  { %v16969_v16 = vmax.f32 %v16905_v36, 0.0  ;;  %v26777_v47 = vpop.f32.mrb[28].mxu1 }
 0xfa4   :  { %v17021_v18 = vmax.f32 %v16970_v21, %v16971_v14  ;;  %v26839_v5 = vadd.f32 %v26777_v47, %v38462_v9  ;;  %20220 = vmatpush1.bf16.msra.mxu0 %v28964_v33  ;;  %v16666_v12 = vpop.f32.mrb[29].mxu1  ;;  %v28979_v9 = vld [vmem:[%s36661_s5 + $0x360] ss:$16 sps:$4 sm:$0xff]  }
 0xfa5   :  { %v17020_v54 = vmax.f32 %v16968_v20, %v16969_v16  ;;  %v26840_v51 = vadd.f32 %v16666_v12, %v38463_v62  ;;  %v26778_v19 = vpop.f32.mrb[30].mxu1  ;;  %20221 = vmatprep.subr.bf16.mxu0 %v28969_v44  ;;  %v38470_v16 = vld [vmem:[#allocation41_spill] sm:$0xff]  ;;  %v38471_v12 = vld [vmem:[#allocation180_spill] sm:$0xff] }
 0xfa6   :  { %v16910_v59 = vadd.f32 %v26839_v5, %v34830_v27  ;;  %v26841_v23 = vadd.f32 %v26778_v19, %v38464_v40  ;;  %v16669_v46 = vpop.f32.mrb[31].mxu1  ;;  %v34958_v55 = vmax.f32 %v34901_v50, %v17021_v18  ;;  %v28975_v50 = vld [vmem:[%s36661_s5 + $0x324] ss:$16 sps:$4 sm:$0xff]   ;;  %v38472_v19 = vld [vmem:[#allocation303_spill] sm:$0xff] }
 0xfa7   :  { %v34960_v39 = vmax.f32 %v17016_v7, %v17020_v54  ;;  %v16908_v32 = vadd.f32 %v26840_v51, %v34830_v27  ;;  %v26842_v49 = vadd.f32 %v16669_v46, %v38465_v38  ;;  %v28984_v62 = vld [vmem:[%s36661_s5 + $0x384] ss:$16 sps:$4 sm:$0xff]   ;;  %v28982_v38 = vld [vmem:[%s36661_s5 + $0x380] ss:$16 sps:$4 sm:$0xff]  }
 0xfa8   :  { %v16911_v1 = vadd.f32 %v26841_v23, %v34830_v27  ;;  %20222 = vmatpush1.bf16.msra.mxu0 %v28967_v2  ;;  %v16974_v7 = vmax.f32 %v16910_v59, 0.0  ;;  %v38473_v23 = vld [vmem:[#allocation42_spill] sm:$0xff] }
 0xfa9   :  { %v16909_v34 = vadd.f32 %v26842_v49, %v34830_v27  ;;  %20223 = vmatprep.subr.bf16.mxu0 %v28972_v11  ;;  %v16972_v58 = vmax.f32 %v16908_v32, 0.0 }
 0xfaa   :  { %v16975_v57 = vmax.f32 %v16911_v1, 0.0  ;;  %v28987_v1 = vld [vmem:[%s36661_s5 + $0x3a4] ss:$16 sps:$4 sm:$0xff]  }
 0xfab   :  { %v16973_v42 = vmax.f32 %v16909_v34, 0.0  ;;  %v26781_v48 = vpop.f32.mrb[32].mxu1 }
 0xfac   :  { %v17023_v43 = vmax.f32 %v16974_v7, %v16975_v57  ;;  %v26843_v60 = vadd.f32 %v26781_v48, %v38466_v28  ;;  %20224 = vmatpush1.bf16.msra.mxu0 %v28970_v45  ;;  %v16682_v8 = vpop.f32.mrb[33].mxu1  ;;  %v28985_v28 = vld [vmem:[%s36661_s5 + $0x3a0] ss:$16 sps:$4 sm:$0xff]  }
 0xfad   :  { %v17022_v35 = vmax.f32 %v16972_v58, %v16973_v42  ;;  %v26844_v22 = vadd.f32 %v16682_v8, %v38467_v31  ;;  %v26782_v53 = vpop.f32.mrb[34].mxu1  ;;  %20225 = vmatprep.subr.bf16.mxu0 %v28975_v50  ;;  %v38474_v42 = vld [vmem:[#allocation181_spill] sm:$0xff]  ;;  %v38475_v8 = vld [vmem:[#allocation304_spill] sm:$0xff] }
 0xfae   :  { %v16914_v61 = vadd.f32 %v26843_v60, %v34830_v27  ;;  %v26845_v24 = vadd.f32 %v26782_v53, %v38468_v63  ;;  %v16685_v13 = vpop.f32.mrb[35].mxu1  ;;  %v34983_v3 = vmax.f32 %v34923_v52, %v17023_v43  ;;  %v28981_v52 = vld [vmem:[%s36661_s5 + $0x364] ss:$16 sps:$4 sm:$0xff]   ;;  %v38476_v53 = vld [vmem:[#allocation43_spill] sm:$0xff] }
 0xfaf   :  { %v34986_v10 = vmax.f32 %v34929_v30, %v17022_v35  ;;  %v16912_v4 = vadd.f32 %v26844_v22, %v34830_v27  ;;  %v26846_v25 = vadd.f32 %v16685_v13, %v38469_v17  ;;  %v28990_v31 = vld [vmem:[%s36661_s5 + $0x3c4] ss:$16 sps:$4 sm:$0xff]   ;;  %v28988_v17 = vld [vmem:[%s36661_s5 + $0x3c0] ss:$16 sps:$4 sm:$0xff]  }
 0xfb0   :  { %v16915_v15 = vadd.f32 %v26845_v24, %v34830_v27  ;;  %20226 = vmatpush1.bf16.msra.mxu0 %v28973_v56  ;;  %v16978_v30 = vmax.f32 %v16914_v61, 0.0  ;;  %v38477_v24 = vld [vmem:[#allocation182_spill] sm:$0xff] }
 0xfb1   :  { %v16913_v33 = vadd.f32 %v26846_v25, %v34830_v27  ;;  %20227 = vmatprep.subr.bf16.mxu0 %v28978_v29  ;;  %v16976_v44 = vmax.f32 %v16912_v4, 0.0 }
 0xfb2   :  { %v16979_v36 = vmax.f32 %v16915_v15, 0.0  ;;  %v28993_v15 = vld [vmem:[%s36661_s5 + $0x3e4] ss:$16 sps:$4 sm:$0xff]  }
 0xfb3   :  { %v16977_v21 = vmax.f32 %v16913_v33, 0.0  ;;  %v26785_v14 = vpop.f32.mrb[36].mxu1 }
 0xfb4   :  { %v34998_v20 = vmax.f32 %v16978_v30, %v16979_v36  ;;  %v26847_v47 = vadd.f32 %v26785_v14, %v38470_v16  ;;  %20228 = vmatpush1.bf16.msra.mxu0 %v28976_v26  ;;  %v16698_v18 = vpop.f32.mrb[37].mxu1 }
 0xfb5   :  { %v17024_v5 = vmax.f32 %v16976_v44, %v16977_v21  ;;  %v26848_v2 = vadd.f32 %v16698_v18, %v38471_v12  ;;  %v26786_v54 = vpop.f32.mrb[38].mxu1  ;;  %20229 = vmatprep.subr.bf16.mxu0 %v28981_v52  ;;  %v38478_v21 = vld [vmem:[#allocation44_spill] sm:$0xff] }
 0xfb6   :  { %v16918_v51 = vadd.f32 %v26847_v47, %v34830_v27  ;;  %v26849_v11 = vadd.f32 %v26786_v54, %v38472_v19  ;;  %v16701_v59 = vpop.f32.mrb[39].mxu1  ;;  %v28991_v47 = vld [vmem:[%s36661_s5 + $0x3e0] ss:$16 sps:$4 sm:$0xff]   ;;  %v28996_v54 = vld [vmem:[%s36661_s5 + $0x404] ss:$16 sps:$4 sm:$0xff]  }
 0xfb7   :  { %v16916_v40 = vadd.f32 %v26848_v2, %v34830_v27  ;;  %v26850_v46 = vadd.f32 %v16701_v59, %v38473_v23 }
 0xfb8   :  { %v16919_v32 = vadd.f32 %v26849_v11, %v34830_v27  ;;  %20230 = vmatpush1.bf16.msra.mxu0 %v28979_v9  ;;  %v16982_v45 = vmax.f32 %v16918_v51, 0.0  ;;  %v38479_v9 = vld [vmem:[#allocation183_spill] sm:$0xff]  ;;  %v38480_v51 = vld [vmem:[#allocation305_spill] sm:$0xff] }
 0xfb9   :  { %v16917_v49 = vadd.f32 %v26850_v46, %v34830_v27  ;;  %20231 = vmatprep.subr.bf16.mxu0 %v28984_v62  ;;  %v16980_v50 = vmax.f32 %v16916_v40, 0.0  ;;  %v38481_v46 = vld [vmem:[#allocation306_spill] sm:$0xff] }
 0xfba   :  { %v16983_v34 = vmax.f32 %v16919_v32, 0.0 }
 0xfbb   :  { %v16981_v7 = vmax.f32 %v16917_v49, 0.0  ;;  %v26789_v57 = vpop.f32.mrb[40].mxu1  ;;  %v28994_v49 = vld [vmem:[%s36661_s5 + $0x400] ss:$16 sps:$4 sm:$0xff]  }
 0xfbc   :  { %v35020_v58 = vmax.f32 %v16982_v45, %v16983_v34  ;;  %v26851_v48 = vadd.f32 %v26789_v57, %v38474_v42  ;;  %20232 = vmatpush1.bf16.msra.mxu0 %v28982_v38  ;;  %v16714_v43 = vpop.f32.mrb[41].mxu1 }
 0xfbd   :  { %v35026_v60 = vmax.f32 %v16980_v50, %v16981_v7  ;;  %v26852_v56 = vadd.f32 %v16714_v43, %v38475_v8  ;;  %v26790_v35 = vpop.f32.mrb[42].mxu1  ;;  %20233 = vmatprep.subr.bf16.mxu0 %v28987_v1  ;;  %v35067_v1 = vpack.c.bf16 %v34886_v41, %v34886_v41  ;;  %v35075_v50 = vpack.c.bf16 %v34958_v55, %v34958_v55  ;;  %v28997_v8 = vld [vmem:[%s36661_s5 + $0x420] ss:$16 sps:$4 sm:$0xff]  }
 0xfbe   :  { %v16922_v22 = vadd.f32 %v26851_v48, %v34830_v27  ;;  %v26853_v29 = vadd.f32 %v26790_v35, %v38476_v53  ;;  %v16717_v61 = vpop.f32.mrb[43].mxu1  ;;  %v38482_v48 = vld [vmem:[#allocation45_spill] sm:$0xff]  ;;  %v38483_v35 = vld [vmem:[#allocation184_spill] sm:$0xff] }
 0xfbf   :  { %v16920_v63 = vadd.f32 %v26852_v56, %v34830_v27  ;;  %v26854_v13 = vadd.f32 %v16717_v61, %v38477_v24 }
 0xfc0   :  { %v16923_v4 = vadd.f32 %v26853_v29, %v34830_v27  ;;  %20234 = vmatpush1.bf16.msra.mxu0 %v28985_v28  ;;  %v16986_v26 = vmax.f32 %v16922_v22, 0.0  ;;  %v29002_v22 = vld [vmem:[%s36661_s5 + $0x444] ss:$16 sps:$4 sm:$0xff]   ;;  %v38484_v29 = vld [vmem:[#allocation307_spill] sm:$0xff] }
 0xfc1   :  { %v16921_v25 = vadd.f32 %v26854_v13, %v34830_v27  ;;  %20235 = vmatprep.subr.bf16.mxu0 %v28990_v31  ;;  %v16984_v52 = vmax.f32 %v16920_v63, 0.0 }
 0xfc2   :  { %v16987_v33 = vmax.f32 %v16923_v4, 0.0 }
 0xfc3   :  { %v16985_v30 = vmax.f32 %v16921_v25, 0.0  ;;  %v26793_v36 = vpop.f32.mrb[44].mxu1 }
 0xfc4   :  { %v17029_v44 = vmax.f32 %v16986_v26, %v16987_v33  ;;  %v26855_v14 = vadd.f32 %v26793_v36, %v38478_v21  ;;  %20236 = vmatpush1.bf16.msra.mxu0 %v28988_v17  ;;  %v16730_v16 = vpop.f32.mrb[45].mxu1  ;;  %v38485_v17 = vld [vmem:[#allocation46_spill] sm:$0xff] }
 0xfc5   :  { %v17028_v18 = vmax.f32 %v16984_v52, %v16985_v30  ;;  %v26856_v12 = vadd.f32 %v16730_v16, %v38479_v9  ;;  %v26794_v2 = vpop.f32.mrb[46].mxu1  ;;  %20237 = vmatprep.subr.bf16.mxu0 %v28993_v15  ;;  %v29000_v26 = vld [vmem:[%s36661_s5 + $0x440] ss:$16 sps:$4 sm:$0xff]  }
 0xfc6   :  { %v16926_v62 = vadd.f32 %v26855_v14, %v34830_v27  ;;  %v26857_v19 = vadd.f32 %v26794_v2, %v38480_v51  ;;  %v16733_v11 = vpop.f32.mrb[47].mxu1  ;;  %v35055_v59 = vmax.f32 %v34998_v20, %v17029_v44  ;;  %v38486_v14 = vld [vmem:[#allocation185_spill] sm:$0xff] }
 0xfc7   :  { %v35057_v40 = vmax.f32 %v17024_v5, %v17028_v18  ;;  %v16924_v23 = vadd.f32 %v26856_v12, %v34830_v27  ;;  %v26858_v32 = vadd.f32 %v16733_v11, %v38481_v46  ;;  %v28999_v5 = vld [vmem:[%s36661_s5 + $0x424] ss:$16 sps:$4 sm:$0xff]   ;;  %v29003_v18 = vld [vmem:[%s36661_s5 + $0x460] ss:$16 sps:$4 sm:$0xff]  }
 0xfc8   :  { %v16927_v38 = vadd.f32 %v26857_v19, %v34830_v27  ;;  %20238 = vmatpush1.bf16.msra.mxu0 %v28991_v47  ;;  %v16990_v45 = vmax.f32 %v16926_v62, 0.0  ;;  %v38487_v12 = vld [vmem:[#allocation308_spill] sm:$0xff]  ;;  %v38488_v19 = vld [vmem:[#allocation47_spill] sm:$0xff] }
 0xfc9   :  { %v16925_v20 = vadd.f32 %v26858_v32, %v34830_v27  ;;  %20248 = vmatprep.subr.bf16.mxu0 %v28996_v54  ;;  %v16988_v7 = vmax.f32 %v16924_v23, 0.0  ;;  %v29008_v62 = vld [vmem:[%s36661_s5 + $0x484] ss:$16 sps:$4 sm:$0xff]  }
 0xfca   :  { %v16991_v34 = vmax.f32 %v16927_v38, 0.0  ;;  %v38489_v32 = vld [vmem:[#allocation186_spill] sm:$0xff] }
 0xfcb   :  { %v16989_v57 = vmax.f32 %v16925_v20, 0.0  ;;  %20240 = vmatmul.mubr.bf16.vlgmr.msra.gmra.mrb[128].mxu0 %v35067_v1  ;;  %v26797_v42 = vpop.f32.mrb[48].mxu1  ;;  %v29006_v20 = vld [vmem:[%s36661_s5 + $0x480] ss:$16 sps:$4 sm:$0xff]  }
 0xfcc   :  { %v17031_v41 = vmax.f32 %v16990_v45, %v16991_v34  ;;  %v26859_v43 = vadd.f32 %v26797_v42, %v38482_v48  ;;  %20249 = vmatpush1.bf16.msra.mxu0 %v28994_v49  ;;  %20280 = vmatprep.mubr.bf16.mxu0 %v35075_v50  ;;  %v16746_v28 = vpop.f32.mrb[49].mxu1  ;;  %v29011_v45 = vld [vmem:[%s36661_s5 + $0x4a4] ss:$16 sps:$4 sm:$0xff]  }
 0xfcd   :  { %v17030_v56 = vmax.f32 %v16988_v7, %v16989_v57  ;;  %v26860_v55 = vadd.f32 %v16746_v28, %v38483_v35  ;;  %v26798_v31 = vpop.f32.mrb[50].mxu1  ;;  %20250 = vmatprep.subr.bf16.mxu0 %v28999_v5 }
 0xfce   :  { %v16930_v53 = vadd.f32 %v26859_v43, %v34830_v27  ;;  %v26861_v61 = vadd.f32 %v26798_v31, %v38484_v29  ;;  %v16749_v63 = vpop.f32.mrb[51].mxu1  ;;  %v35090_v24 = vmax.f32 %v35020_v58, %v17031_v41  ;;  %v29005_v58 = vld [vmem:[%s36661_s5 + $0x464] ss:$16 sps:$4 sm:$0xff]  }
 0xfcf   :  { %v35093_v13 = vmax.f32 %v35026_v60, %v17030_v56  ;;  %v16928_v4 = vadd.f32 %v26860_v55, %v34830_v27  ;;  %v26862_v25 = vadd.f32 %v16749_v63, %v38485_v17  ;;  %v38490_v43 = vld [vmem:[#allocation48_spill] sm:$0xff]  ;;  %v38491_v55 = vld [vmem:[#allocation187_spill] sm:$0xff] }
 0xfd0   :  { %v16931_v15 = vadd.f32 %v26861_v61, %v34830_v27  ;;  %20251 = vmatpush1.bf16.msra.mxu0 %v28997_v8  ;;  %v16994_v60 = vmax.f32 %v16930_v53, 0.0  ;;  %v29009_v56 = vld [vmem:[%s36661_s5 + $0x4a0] ss:$16 sps:$4 sm:$0xff]   ;;  %v29014_v53 = vld [vmem:[%s36661_s5 + $0x4c4] ss:$16 sps:$4 sm:$0xff]   ;;  %v38492_v61 = vld [vmem:[#allocation309_spill] sm:$0xff] }
 0xfd1   :  { %v16929_v33 = vadd.f32 %v26862_v25, %v34830_v27  ;;  %20252 = vmatprep.subr.bf16.mxu0 %v29002_v22  ;;  %v16992_v30 = vmax.f32 %v16928_v4, 0.0  ;;  %v38493_v25 = vld [vmem:[#allocation310_spill] sm:$0xff] }
 0xfd2   :  { %v16995_v52 = vmax.f32 %v16931_v15, 0.0 }
 0xfd3   :  { %v16993_v36 = vmax.f32 %v16929_v33, 0.0  ;;  %v26801_v44 = vpop.f32.mrb[52].mxu1  ;;  %v29012_v33 = vld [vmem:[%s36661_s5 + $0x4c0] ss:$16 sps:$4 sm:$0xff]  }
 0xfd4   :  { %v35105_v21 = vmax.f32 %v16994_v60, %v16995_v52  ;;  %v26863_v16 = vadd.f32 %v26801_v44, %v38486_v14  ;;  %20253 = vmatpush1.bf16.msra.mxu0 %v29000_v26  ;;  %v16762_v47 = vpop.f32.mrb[53].mxu1  ;;  %v29017_v60 = vld [vmem:[%s36661_s5 + $0x4e4] ss:$16 sps:$4 sm:$0xff]  }
 0xfd5   :  { %v17032_v9 = vmax.f32 %v16992_v30, %v16993_v36  ;;  %v26864_v2 = vadd.f32 %v16762_v47, %v38487_v12  ;;  %v26802_v54 = vpop.f32.mrb[54].mxu1  ;;  %20254 = vmatprep.subr.bf16.mxu0 %v29005_v58  ;;  %v38494_v47 = vld [vmem:[#allocation49_spill] sm:$0xff] }
 0xfd6   :  { %v16934_v51 = vadd.f32 %v26863_v16, %v34830_v27  ;;  %v26865_v11 = vadd.f32 %v26802_v54, %v38488_v19  ;;  %v16765_v23 = vpop.f32.mrb[55].mxu1 }
 0xfd7   :  { %v16932_v46 = vadd.f32 %v26864_v2, %v34830_v27  ;;  %v26866_v38 = vadd.f32 %v16765_v23, %v38489_v32  ;;  %v29015_v2 = vld [vmem:[%s36661_s5 + $0x4e0] ss:$16 sps:$4 sm:$0xff]  }
 0xfd8   :  { %v16935_v49 = vadd.f32 %v26865_v11, %v34830_v27  ;;  %20255 = vmatpush1.bf16.msra.mxu0 %v29003_v18  ;;  %v16998_v34 = vmax.f32 %v16934_v51, 0.0  ;;  %v29020_v11 = vld [vmem:[%s36661_s5 + $0x504] ss:$16 sps:$4 sm:$0xff]  }
 0xfd9   :  { %v16933_v5 = vadd.f32 %v26866_v38, %v34830_v27  ;;  %20256 = vmatprep.subr.bf16.mxu0 %v29008_v62  ;;  %v16996_v57 = vmax.f32 %v16932_v46, 0.0  ;;  %v38495_v62 = vld [vmem:[#allocation188_spill] sm:$0xff]  ;;  %v38496_v46 = vld [vmem:[#allocation311_spill] sm:$0xff] }
 0xfda   :  { %v16999_v7 = vmax.f32 %v16935_v49, 0.0 }
 0xfdb   :  { %v16997_v42 = vmax.f32 %v16933_v5, 0.0  ;;  %v26805_v41 = vpop.f32.mrb[56].mxu1 }
 0xfdc   :  { %v17035_v48 = vmax.f32 %v16998_v34, %v16999_v7  ;;  %v26867_v28 = vadd.f32 %v26805_v41, %v38490_v43  ;;  %20257 = vmatpush1.bf16.msra.mxu0 %v29006_v20  ;;  %v16778_v8 = vpop.f32.mrb[57].mxu1 }
 0xfdd   :  { %v17034_v35 = vmax.f32 %v16996_v57, %v16997_v42  ;;  %v26868_v31 = vadd.f32 %v16778_v8, %v38491_v55  ;;  %v26806_v22 = vpop.f32.mrb[58].mxu1  ;;  %20258 = vmatprep.subr.bf16.mxu0 %v29011_v45  ;;  %v38497_v45 = vld [vmem:[#allocation50_spill] sm:$0xff] }
 0xfde   :  { %v16938_v29 = vadd.f32 %v26867_v28, %v34830_v27  ;;  %v26869_v63 = vadd.f32 %v26806_v22, %v38492_v61  ;;  %v16781_v4 = vpop.f32.mrb[59].mxu1  ;;  %v29018_v57 = vld [vmem:[%s36661_s5 + $0x500] ss:$16 sps:$4 sm:$0xff]  }
 0xfdf   :  { %v16936_v17 = vadd.f32 %v26868_v31, %v34830_v27  ;;  %v26870_v15 = vadd.f32 %v16781_v4, %v38493_v25  ;;  %v29027_v61 = vld [vmem:[%s36661_s5 + $0x560] ss:$16 sps:$4 sm:$0xff]  }
 0xfe0   :  { %v16939_v26 = vadd.f32 %v26869_v63, %v34830_v27  ;;  %20259 = vmatpush1.bf16.msra.mxu0 %v29009_v56  ;;  %v17002_v52 = vmax.f32 %v16938_v29, 0.0  ;;  %v29021_v56 = vld [vmem:[%s36661_s5 + $0x520] ss:$16 sps:$4 sm:$0xff]   ;;  %v29029_v29 = vld [vmem:[%s36661_s5 + $0x564] ss:$16 sps:$4 sm:$0xff]  }
 0xfe1   :  { %v16937_v58 = vadd.f32 %v26870_v15, %v34830_v27  ;;  %20260 = vmatprep.subr.bf16.mxu0 %v29014_v53  ;;  %v17000_v36 = vmax.f32 %v16936_v17, 0.0  ;;  %v29024_v53 = vld [vmem:[%s36661_s5 + $0x540] ss:$16 sps:$4 sm:$0xff]   ;;  %v29035_v63 = vld [vmem:[%s36661_s5 + $0x5a4] ss:$16 sps:$4 sm:$0xff]  }
 0xfe2   :  { %v17003_v30 = vmax.f32 %v16939_v26, 0.0  ;;  %v29033_v4 = vld [vmem:[%s36661_s5 + $0x5a0] ss:$16 sps:$4 sm:$0xff]   ;;  %v29038_v17 = vld [vmem:[%s36661_s5 + $0x5c4] ss:$16 sps:$4 sm:$0xff]  }
 0xfe3   :  { %v17001_v44 = vmax.f32 %v16937_v58, 0.0  ;;  %v26809_v14 = vpop.f32.mrb[60].mxu1  ;;  %v29036_v25 = vld [vmem:[%s36661_s5 + $0x5c0] ss:$16 sps:$4 sm:$0xff]   ;;  %v29041_v15 = vld [vmem:[%s36661_s5 + $0x5e4] ss:$16 sps:$4 sm:$0xff]  }
 0xfe4   :  { %v17037_v16 = vmax.f32 %v17002_v52, %v17003_v30  ;;  %v26871_v18 = vadd.f32 %v26809_v14, %v38494_v47  ;;  %20261 = vmatpush1.bf16.msra.mxu0 %v29012_v33  ;;  %v16794_v12 = vpop.f32.mrb[61].mxu1  ;;  %v29039_v26 = vld [vmem:[%s36661_s5 + $0x5e0] ss:$16 sps:$4 sm:$0xff]   ;;  %v29044_v33 = vld [vmem:[%s36661_s5 + $0x604] ss:$16 sps:$4 sm:$0xff]   ;;  %v35230_v30 = vpack.c.bf16 %v34983_v3, %v34983_v3 }
 0xfe5   :  { %v17036_v54 = vmax.f32 %v17000_v36, %v17001_v44  ;;  %v26872_v51 = vadd.f32 %v16794_v12, %v38495_v62  ;;  %v26810_v19 = vpop.f32.mrb[62].mxu1  ;;  %20262 = vmatprep.subr.bf16.mxu0 %v29017_v60  ;;  %v29042_v58 = vld [vmem:[%s36661_s5 + $0x600] ss:$16 sps:$4 sm:$0xff]   ;;  %v35223_v60 = vpack.c.bf16 %v34960_v39, %v34960_v39  ;;  %v29047_v52 = vld [vmem:[%s36661_s5 + $0x624] ss:$16 sps:$4 sm:$0xff]  }
 0xfe6   :  { %v16942_v23 = vadd.f32 %v26871_v18, %v34830_v27  ;;  %v26873_v32 = vadd.f32 %v26810_v19, %v38496_v46  ;;  %v16797_v38 = vpop.f32.mrb[63].mxu1  ;;  %v35158_v49 = vmax.f32 %v35105_v21, %v17037_v16  ;;  %v29023_v21 = vld [vmem:[%s36661_s5 + $0x524] ss:$16 sps:$4 sm:$0xff]   ;;  %v29045_v36 = vld [vmem:[%s36661_s5 + $0x620] ss:$16 sps:$4 sm:$0xff]  }
 0xfe7   :  { %v35160_v20 = vmax.f32 %v17032_v9, %v17036_v54  ;;  %v16940_v5 = vadd.f32 %v26872_v51, %v34830_v27  ;;  %v26874_v34 = vadd.f32 %v16797_v38, %v38497_v45  ;;  %v29050_v39 = vld [vmem:[%s36661_s5 + $0x644] ss:$16 sps:$4 sm:$0xff]   ;;  %v29048_v3 = vld [vmem:[%s36661_s5 + $0x640] ss:$16 sps:$4 sm:$0xff]  }
 0xfe8   :  { %v16943_v7 = vadd.f32 %v26873_v32, %v34830_v27  ;;  %20263 = vmatpush1.bf16.msra.mxu0 %v29015_v2  ;;  %v17006_v9 = vmax.f32 %v16942_v23, 0.0  ;;  %v29053_v44 = vld [vmem:[%s36661_s5 + $0x664] ss:$16 sps:$4 sm:$0xff]   ;;  %v29051_v14 = vld [vmem:[%s36661_s5 + $0x660] ss:$16 sps:$4 sm:$0xff]  }
 0xfe9   :  { %v16941_v42 = vadd.f32 %v26874_v34, %v34830_v27  ;;  %20264 = vmatprep.subr.bf16.mxu0 %v29020_v11  ;;  %v17004_v43 = vmax.f32 %v16940_v5, 0.0  ;;  %v29026_v27 = vld [vmem:[%s36661_s5 + $0x544] ss:$16 sps:$4 sm:$0xff]   ;;  %v29054_v47 = vld [vmem:[%s36661_s5 + $0x680] ss:$16 sps:$4 sm:$0xff]  }
 0xfea   :  { %v17007_v41 = vmax.f32 %v16943_v7, 0.0  ;;  %v29056_v16 = vld [vmem:[%s36661_s5 + $0x684] ss:$16 sps:$4 sm:$0xff]   ;;  %v29057_v12 = vld [vmem:[%s36661_s5 + $0x6a0] ss:$16 sps:$4 sm:$0xff]  }
 0xfeb   :  { %v17005_v28 = vmax.f32 %v16941_v42, 0.0  ;;  %v29059_v18 = vld [vmem:[%s36661_s5 + $0x6a4] ss:$16 sps:$4 sm:$0xff]   ;;  %v29060_v54 = vld [vmem:[%s36661_s5 + $0x6c0] ss:$16 sps:$4 sm:$0xff]  }
 0xfec   :  { %v17039_v8 = vmax.f32 %v17006_v9, %v17007_v41  ;;  %20265 = vmatpush1.bf16.msra.mxu0 %v29018_v57  ;;  %v29062_v2 = vld [vmem:[%s36661_s5 + $0x6c4] ss:$16 sps:$4 sm:$0xff]   ;;  %v29063_v51 = vld [vmem:[%s36661_s5 + $0x6e0] ss:$16 sps:$4 sm:$0xff]  }
 0xfed   :  { %v17038_v55 = vmax.f32 %v17004_v43, %v17005_v28  ;;  %20266 = vmatprep.subr.bf16.mxu0 %v29023_v21  ;;  %v29065_v62 = vld [vmem:[%s36661_s5 + $0x6e4] ss:$16 sps:$4 sm:$0xff]   ;;  %v29066_v11 = vld [vmem:[%s36661_s5 + $0x700] ss:$16 sps:$4 sm:$0xff]  }
 0xfee   :  { %v35178_v31 = vmax.f32 %v17035_v48, %v17039_v8  ;;  %v29032_v48 = vld [vmem:[%s36661_s5 + $0x584] ss:$16 sps:$4 sm:$0xff]   ;;  %v29069_v46 = vld [vmem:[%s36661_s5 + $0x720] ss:$16 sps:$4 sm:$0xff]  }
 0xfef   :  { %v35180_v22 = vmax.f32 %v17034_v35, %v17038_v55  ;;  %v29030_v35 = vld [vmem:[%s36661_s5 + $0x580] ss:$16 sps:$4 sm:$0xff]   ;;  %v29068_v19 = vld [vmem:[%s36661_s5 + $0x704] ss:$16 sps:$4 sm:$0xff]  }
 0xff0   :  { %20267 = vmatpush1.bf16.msra.mxu0 %v29021_v56  ;;  %v29071_v23 = vld [vmem:[%s36661_s5 + $0x724] ss:$16 sps:$4 sm:$0xff]   ;;  %v29072_v38 = vld [vmem:[%s36661_s5 + $0x740] ss:$16 sps:$4 sm:$0xff]   ;;  %v35329_v56 = vpack.c.bf16 %v34986_v10, %v34986_v10 }
 0xff1   :  { %20268 = vmatprep.subr.bf16.mxu0 %v29026_v27  ;;  %v29074_v32 = vld [vmem:[%s36661_s5 + $0x744] ss:$16 sps:$4 sm:$0xff]   ;;  %v29075_v45 = vld [vmem:[%s36661_s5 + $0x760] ss:$16 sps:$4 sm:$0xff]   ;;  %v35336_v27 = vpack.c.bf16 %v35055_v59, %v35055_v59 }
 0xff2   :  { %v29077_v5 = vld [vmem:[%s36661_s5 + $0x764] ss:$16 sps:$4 sm:$0xff]   ;;  %v29078_v7 = vld [vmem:[%s36661_s5 + $0x780] ss:$16 sps:$4 sm:$0xff]  }
 0xff3   :  { %v29080_v34 = vld [vmem:[%s36661_s5 + $0x784] ss:$16 sps:$4 sm:$0xff]   ;;  %v29081_v42 = vld [vmem:[%s36661_s5 + $0x7a0] ss:$16 sps:$4 sm:$0xff]  }
 0xff4   :  { %20269 = vmatpush1.bf16.msra.mxu0 %v29024_v53  ;;  %v29083_v57 = vld [vmem:[%s36661_s5 + $0x7a4] ss:$16 sps:$4 sm:$0xff]   ;;  %v29084_v9 = vld [vmem:[%s36661_s5 + $0x7c0] ss:$16 sps:$4 sm:$0xff]  }
 0xff5   :  { %20270 = vmatprep.subr.bf16.mxu0 %v29029_v29  ;;  %v29086_v21 = vld [vmem:[%s36661_s5 + $0x7c4] ss:$16 sps:$4 sm:$0xff]   ;;  %v29087_v43 = vld [vmem:[%s36661_s5 + $0x7e0] ss:$16 sps:$4 sm:$0xff]  }
 0xff6   :  { %v29089_v41 = vld [vmem:[%s36661_s5 + $0x7e4] ss:$16 sps:$4 sm:$0xff]   ;;  %v29090_v8 = vld [vmem:[%s36661_s5 + $0x800] ss:$16 sps:$4 sm:$0xff]  }
 0xff7   :  { %v29092_v28 = vld [vmem:[%s36661_s5 + $0x804] ss:$16 sps:$4 sm:$0xff]   ;;  %v29093_v53 = vld [vmem:[%s36661_s5 + $0x820] ss:$16 sps:$4 sm:$0xff]  }
 0xff8   :  { %20271 = vmatpush1.bf16.msra.mxu0 %v29027_v61  ;;  %v29095_v55 = vld [vmem:[%s36661_s5 + $0x824] ss:$16 sps:$4 sm:$0xff]   ;;  %v29096_v59 = vld [vmem:[%s36661_s5 + $0x840] ss:$16 sps:$4 sm:$0xff]  }
 0xff9   :  { %20272 = vmatprep.subr.bf16.mxu0 %v29032_v48  ;;  %v29098_v10 = vld [vmem:[%s36661_s5 + $0x844] ss:$16 sps:$4 sm:$0xff]   ;;  %v29099_v61 = vld [vmem:[%s36661_s5 + $0x860] ss:$16 sps:$4 sm:$0xff]  }
 0xffa   :  { %v29101_v29 = vld [vmem:[%s36661_s5 + $0x864] ss:$16 sps:$4 sm:$0xff]  }
 0xffb   :  { %v29104_v48 = vld [vmem:[%s36661_s5 + $0x884] ss:$16 sps:$4 sm:$0xff]  }
 0xffc   :  { %20273 = vmatpush1.bf16.msra.mxu0 %v29030_v35  ;;  %v29102_v35 = vld [vmem:[%s36661_s5 + $0x880] ss:$16 sps:$4 sm:$0xff]  }
 0xffd   :  { %20274 = vmatprep.subr.bf16.mxu0 %v29035_v63  ;;  %v29107_v63 = vld [vmem:[%s36661_s5 + $0x8a4] ss:$16 sps:$4 sm:$0xff]  }
0x1000   :  { %20275 = vmatpush1.bf16.msra.mxu0 %v29033_v4  ;;  %v29105_v4 = vld [vmem:[%s36661_s5 + $0x8a0] ss:$16 sps:$4 sm:$0xff]  }
0x1001   :  { %20276 = vmatprep.subr.bf16.mxu0 %v29038_v17  ;;  %v29110_v17 = vld [vmem:[%s36661_s5 + $0x8c4] ss:$16 sps:$4 sm:$0xff]  }
0x1004   :  { %20277 = vmatpush1.bf16.msra.mxu0 %v29036_v25  ;;  %v29108_v25 = vld [vmem:[%s36661_s5 + $0x8c0] ss:$16 sps:$4 sm:$0xff]  }
0x1005   :  { %20278 = vmatprep.subr.bf16.mxu0 %v29041_v15  ;;  %v29113_v15 = vld [vmem:[%s36661_s5 + $0x8e4] ss:$16 sps:$4 sm:$0xff]  }
0x1008   :  { %20279 = vmatpush1.bf16.msra.mxu0 %v29039_v26  ;;  %v29111_v26 = vld [vmem:[%s36661_s5 + $0x8e0] ss:$16 sps:$4 sm:$0xff]  }
0x1009   :  { %20289 = vmatprep.subr.bf16.mxu0 %v29044_v33  ;;  %v29116_v33 = vld [vmem:[%s36661_s5 + $0x904] ss:$16 sps:$4 sm:$0xff]  }
0x100b   :  { %20281 = vmatmul.mubr.bf16.vlgmr.msra.gmra.mrb[128].mxu0 %v35223_v60 }
0x100c   :  { %20290 = vmatpush1.bf16.msra.mxu0 %v29042_v58  ;;  %20321 = vmatprep.mubr.bf16.mxu0 %v35230_v30  ;;  %v29114_v58 = vld [vmem:[%s36661_s5 + $0x900] ss:$16 sps:$4 sm:$0xff]  }
0x100d   :  { %20291 = vmatprep.subr.bf16.mxu0 %v29047_v52  ;;  %v29119_v52 = vld [vmem:[%s36661_s5 + $0x924] ss:$16 sps:$4 sm:$0xff]  }
0x1010   :  { %20292 = vmatpush1.bf16.msra.mxu0 %v29045_v36  ;;  %v29117_v36 = vld [vmem:[%s36661_s5 + $0x920] ss:$16 sps:$4 sm:$0xff]  }
0x1011   :  { %20293 = vmatprep.subr.bf16.mxu0 %v29050_v39  ;;  %v29122_v39 = vld [vmem:[%s36661_s5 + $0x944] ss:$16 sps:$4 sm:$0xff]  }
0x1014   :  { %20294 = vmatpush1.bf16.msra.mxu0 %v29048_v3  ;;  %v29120_v3 = vld [vmem:[%s36661_s5 + $0x940] ss:$16 sps:$4 sm:$0xff]  }
0x1015   :  { %20295 = vmatprep.subr.bf16.mxu0 %v29053_v44  ;;  %v29125_v44 = vld [vmem:[%s36661_s5 + $0x964] ss:$16 sps:$4 sm:$0xff]  }
0x1018   :  { %20296 = vmatpush1.bf16.msra.mxu0 %v29051_v14  ;;  %v29123_v14 = vld [vmem:[%s36661_s5 + $0x960] ss:$16 sps:$4 sm:$0xff]  }
0x1019   :  { %20297 = vmatprep.subr.bf16.mxu0 %v29056_v16  ;;  %v29128_v16 = vld [vmem:[%s36661_s5 + $0x984] ss:$16 sps:$4 sm:$0xff]  }
0x101c   :  { %20298 = vmatpush1.bf16.msra.mxu0 %v29054_v47  ;;  %v29126_v47 = vld [vmem:[%s36661_s5 + $0x980] ss:$16 sps:$4 sm:$0xff]  }
0x101d   :  { %20299 = vmatprep.subr.bf16.mxu0 %v29059_v18  ;;  %v29131_v18 = vld [vmem:[%s36661_s5 + $0x9a4] ss:$16 sps:$4 sm:$0xff]  }
0x1020   :  { %20300 = vmatpush1.bf16.msra.mxu0 %v29057_v12  ;;  %v29129_v12 = vld [vmem:[%s36661_s5 + $0x9a0] ss:$16 sps:$4 sm:$0xff]  }
0x1021   :  { %20301 = vmatprep.subr.bf16.mxu0 %v29062_v2  ;;  %v29134_v2 = vld [vmem:[%s36661_s5 + $0x9c4] ss:$16 sps:$4 sm:$0xff]  }
0x1024   :  { %20302 = vmatpush1.bf16.msra.mxu0 %v29060_v54  ;;  %v29132_v54 = vld [vmem:[%s36661_s5 + $0x9c0] ss:$16 sps:$4 sm:$0xff]  }
0x1025   :  { %20303 = vmatprep.subr.bf16.mxu0 %v29065_v62  ;;  %v29137_v62 = vld [vmem:[%s36661_s5 + $0x9e4] ss:$16 sps:$4 sm:$0xff]  }
0x1028   :  { %20304 = vmatpush1.bf16.msra.mxu0 %v29063_v51  ;;  %v29135_v51 = vld [vmem:[%s36661_s5 + $0x9e0] ss:$16 sps:$4 sm:$0xff]  }
0x1029   :  { %20305 = vmatprep.subr.bf16.mxu0 %v29068_v19  ;;  %v29140_v19 = vld [vmem:[%s36661_s5 + $0xa04] ss:$16 sps:$4 sm:$0xff]  }
0x102c   :  { %20306 = vmatpush1.bf16.msra.mxu0 %v29066_v11  ;;  %v29138_v11 = vld [vmem:[%s36661_s5 + $0xa00] ss:$16 sps:$4 sm:$0xff]  }
0x102d   :  { %20307 = vmatprep.subr.bf16.mxu0 %v29071_v23  ;;  %v35435_v23 = vpack.c.bf16 %v35057_v40, %v35057_v40  ;;  %v29146_v40 = vld [vmem:[%s36661_s5 + $0xa44] ss:$16 sps:$4 sm:$0xff]  }
0x1030   :  { %20308 = vmatpush1.bf16.msra.mxu0 %v29069_v46  ;;  %v29143_v46 = vld [vmem:[%s36661_s5 + $0xa24] ss:$16 sps:$4 sm:$0xff]  }
0x1031   :  { %20309 = vmatprep.subr.bf16.mxu0 %v29074_v32  ;;  %v35442_v32 = vpack.c.bf16 %v35090_v24, %v35090_v24  ;;  %v29144_v24 = vld [vmem:[%s36661_s5 + $0xa40] ss:$16 sps:$4 sm:$0xff]  }
0x1034   :  { %20310 = vmatpush1.bf16.msra.mxu0 %v29072_v38  ;;  %v29141_v38 = vld [vmem:[%s36661_s5 + $0xa20] ss:$16 sps:$4 sm:$0xff]  }
0x1035   :  { %20311 = vmatprep.subr.bf16.mxu0 %v29077_v5  ;;  %v29149_v5 = vld [vmem:[%s36661_s5 + $0xa64] ss:$16 sps:$4 sm:$0xff]  }
0x1038   :  { %20312 = vmatpush1.bf16.msra.mxu0 %v29075_v45  ;;  %v29147_v45 = vld [vmem:[%s36661_s5 + $0xa60] ss:$16 sps:$4 sm:$0xff]  }
0x1039   :  { %20313 = vmatprep.subr.bf16.mxu0 %v29080_v34  ;;  %v29152_v34 = vld [vmem:[%s36661_s5 + $0xa84] ss:$16 sps:$4 sm:$0xff]  }
0x103c   :  { %20314 = vmatpush1.bf16.msra.mxu0 %v29078_v7  ;;  %v29150_v7 = vld [vmem:[%s36661_s5 + $0xa80] ss:$16 sps:$4 sm:$0xff]  }
0x103d   :  { %20315 = vmatprep.subr.bf16.mxu0 %v29083_v57  ;;  %v29155_v57 = vld [vmem:[%s36661_s5 + $0xaa4] ss:$16 sps:$4 sm:$0xff]  }
0x1040   :  { %20316 = vmatpush1.bf16.msra.mxu0 %v29081_v42  ;;  %v29153_v42 = vld [vmem:[%s36661_s5 + $0xaa0] ss:$16 sps:$4 sm:$0xff]  }
0x1041   :  { %20317 = vmatprep.subr.bf16.mxu0 %v29086_v21  ;;  %v29158_v21 = vld [vmem:[%s36661_s5 + $0xac4] ss:$16 sps:$4 sm:$0xff]  }
0x1044   :  { %20318 = vmatpush1.bf16.msra.mxu0 %v29084_v9  ;;  %v29156_v9 = vld [vmem:[%s36661_s5 + $0xac0] ss:$16 sps:$4 sm:$0xff]  }
0x1045   :  { %20319 = vmatprep.subr.bf16.mxu0 %v29089_v41  ;;  %v29161_v41 = vld [vmem:[%s36661_s5 + $0xae4] ss:$16 sps:$4 sm:$0xff]  }
0x1048   :  { %20320 = vmatpush1.bf16.msra.mxu0 %v29087_v43  ;;  %v29159_v43 = vld [vmem:[%s36661_s5 + $0xae0] ss:$16 sps:$4 sm:$0xff]  }
0x1049   :  { %20330 = vmatprep.subr.bf16.mxu0 %v29092_v28  ;;  %v29164_v28 = vld [vmem:[%s36661_s5 + $0xb04] ss:$16 sps:$4 sm:$0xff]  }
0x104b   :  { %20322 = vmatmul.mubr.bf16.vlgmr.msra.gmra.mrb[128].mxu0 %v35329_v56 }
0x104c   :  { %20331 = vmatpush1.bf16.msra.mxu0 %v29090_v8  ;;  %20362 = vmatprep.mubr.bf16.mxu0 %v35336_v27  ;;  %v29162_v8 = vld [vmem:[%s36661_s5 + $0xb00] ss:$16 sps:$4 sm:$0xff]  }
0x104d   :  { %20332 = vmatprep.subr.bf16.mxu0 %v29095_v55  ;;  %v29167_v55 = vld [vmem:[%s36661_s5 + $0xb24] ss:$16 sps:$4 sm:$0xff]  }
0x1050   :  { %20333 = vmatpush1.bf16.msra.mxu0 %v29093_v53  ;;  %v29165_v53 = vld [vmem:[%s36661_s5 + $0xb20] ss:$16 sps:$4 sm:$0xff]  }
0x1051   :  { %20334 = vmatprep.subr.bf16.mxu0 %v29098_v10  ;;  %v29170_v10 = vld [vmem:[%s36661_s5 + $0xb44] ss:$16 sps:$4 sm:$0xff]  }
0x1054   :  { %20335 = vmatpush1.bf16.msra.mxu0 %v29096_v59  ;;  %v29168_v59 = vld [vmem:[%s36661_s5 + $0xb40] ss:$16 sps:$4 sm:$0xff]  }
0x1055   :  { %20336 = vmatprep.subr.bf16.mxu0 %v29101_v29  ;;  %v29173_v29 = vld [vmem:[%s36661_s5 + $0xb64] ss:$16 sps:$4 sm:$0xff]  }
0x1058   :  { %20337 = vmatpush1.bf16.msra.mxu0 %v29099_v61  ;;  %v29171_v61 = vld [vmem:[%s36661_s5 + $0xb60] ss:$16 sps:$4 sm:$0xff]  }
0x1059   :  { %20338 = vmatprep.subr.bf16.mxu0 %v29104_v48  ;;  %v29176_v48 = vld [vmem:[%s36661_s5 + $0xb84] ss:$16 sps:$4 sm:$0xff]  }
0x105c   :  { %20339 = vmatpush1.bf16.msra.mxu0 %v29102_v35  ;;  %v29174_v35 = vld [vmem:[%s36661_s5 + $0xb80] ss:$16 sps:$4 sm:$0xff]  }
0x105d   :  { %20340 = vmatprep.subr.bf16.mxu0 %v29107_v63  ;;  %v29179_v63 = vld [vmem:[%s36661_s5 + $0xba4] ss:$16 sps:$4 sm:$0xff]  }
0x1060   :  { %20341 = vmatpush1.bf16.msra.mxu0 %v29105_v4  ;;  %v29177_v4 = vld [vmem:[%s36661_s5 + $0xba0] ss:$16 sps:$4 sm:$0xff]  }
0x1061   :  { %20342 = vmatprep.subr.bf16.mxu0 %v29110_v17  ;;  %v29182_v17 = vld [vmem:[%s36661_s5 + $0xbc4] ss:$16 sps:$4 sm:$0xff]  }
0x1064   :  { %20343 = vmatpush1.bf16.msra.mxu0 %v29108_v25  ;;  %v29180_v25 = vld [vmem:[%s36661_s5 + $0xbc0] ss:$16 sps:$4 sm:$0xff]  }
0x1065   :  { %20344 = vmatprep.subr.bf16.mxu0 %v29113_v15  ;;  %v29185_v15 = vld [vmem:[%s36661_s5 + $0xbe4] ss:$16 sps:$4 sm:$0xff]  }
0x1068   :  { %20345 = vmatpush1.bf16.msra.mxu0 %v29111_v26  ;;  %v29183_v26 = vld [vmem:[%s36661_s5 + $0xbe0] ss:$16 sps:$4 sm:$0xff]  }
0x1069   :  { %20346 = vmatprep.subr.bf16.mxu0 %v29116_v33  ;;  %v29188_v33 = vld [vmem:[%s36661_s5 + $0xc04] ss:$16 sps:$4 sm:$0xff]  }
0x106c   :  { %20347 = vmatpush1.bf16.msra.mxu0 %v29114_v58  ;;  %v29186_v58 = vld [vmem:[%s36661_s5 + $0xc00] ss:$16 sps:$4 sm:$0xff]  }
0x106d   :  { %20348 = vmatprep.subr.bf16.mxu0 %v29119_v52  ;;  %v35541_v52 = vpack.c.bf16 %v35093_v13, %v35093_v13  ;;  %v29194_v13 = vld [vmem:[%s36661_s5 + $0xc44] ss:$16 sps:$4 sm:$0xff]  }
0x1070   :  { %20349 = vmatpush1.bf16.msra.mxu0 %v29117_v36  ;;  %v29191_v36 = vld [vmem:[%s36661_s5 + $0xc24] ss:$16 sps:$4 sm:$0xff]  }
0x1071   :  { %20350 = vmatprep.subr.bf16.mxu0 %v29122_v39  ;;  %v35548_v39 = vpack.c.bf16 %v35158_v49, %v35158_v49  ;;  %v29192_v49 = vld [vmem:[%s36661_s5 + $0xc40] ss:$16 sps:$4 sm:$0xff]  }
0x1074   :  { %20351 = vmatpush1.bf16.msra.mxu0 %v29120_v3  ;;  %v29189_v3 = vld [vmem:[%s36661_s5 + $0xc20] ss:$16 sps:$4 sm:$0xff]  }
0x1075   :  { %20352 = vmatprep.subr.bf16.mxu0 %v29125_v44  ;;  %v29197_v44 = vld [vmem:[%s36661_s5 + $0xc64] ss:$16 sps:$4 sm:$0xff]  }
0x1078   :  { %20353 = vmatpush1.bf16.msra.mxu0 %v29123_v14  ;;  %v29195_v14 = vld [vmem:[%s36661_s5 + $0xc60] ss:$16 sps:$4 sm:$0xff]  }
0x1079   :  { %20354 = vmatprep.subr.bf16.mxu0 %v29128_v16  ;;  %v29200_v16 = vld [vmem:[%s36661_s5 + $0xc84] ss:$16 sps:$4 sm:$0xff]  }
0x107c   :  { %20355 = vmatpush1.bf16.msra.mxu0 %v29126_v47  ;;  %v29198_v47 = vld [vmem:[%s36661_s5 + $0xc80] ss:$16 sps:$4 sm:$0xff]  }
0x107d   :  { %20356 = vmatprep.subr.bf16.mxu0 %v29131_v18  ;;  %v29203_v18 = vld [vmem:[%s36661_s5 + $0xca4] ss:$16 sps:$4 sm:$0xff]  }
0x1080   :  { %20357 = vmatpush1.bf16.msra.mxu0 %v29129_v12  ;;  %v29201_v12 = vld [vmem:[%s36661_s5 + $0xca0] ss:$16 sps:$4 sm:$0xff]  }
0x1081   :  { %20358 = vmatprep.subr.bf16.mxu0 %v29134_v2  ;;  %v29206_v2 = vld [vmem:[%s36661_s5 + $0xcc4] ss:$16 sps:$4 sm:$0xff]  }
0x1084   :  { %20359 = vmatpush1.bf16.msra.mxu0 %v29132_v54  ;;  %v29204_v54 = vld [vmem:[%s36661_s5 + $0xcc0] ss:$16 sps:$4 sm:$0xff]  }
0x1085   :  { %20360 = vmatprep.subr.bf16.mxu0 %v29137_v62  ;;  %v29209_v62 = vld [vmem:[%s36661_s5 + $0xce4] ss:$16 sps:$4 sm:$0xff]  }
0x1088   :  { %20361 = vmatpush1.bf16.msra.mxu0 %v29135_v51  ;;  %v29207_v51 = vld [vmem:[%s36661_s5 + $0xce0] ss:$16 sps:$4 sm:$0xff]  }
0x1089   :  { %20371 = vmatprep.subr.bf16.mxu0 %v29140_v19  ;;  %v29212_v19 = vld [vmem:[%s36661_s5 + $0xd04] ss:$16 sps:$4 sm:$0xff]  }
0x108b   :  { %20363 = vmatmul.mubr.bf16.vlgmr.msra.gmra.mrb[128].mxu0 %v35435_v23 }
0x108c   :  { %20372 = vmatpush1.bf16.msra.mxu0 %v29138_v11  ;;  %20403 = vmatprep.mubr.bf16.mxu0 %v35442_v32  ;;  %v29210_v11 = vld [vmem:[%s36661_s5 + $0xd00] ss:$16 sps:$4 sm:$0xff]  }
0x108d   :  { %20373 = vmatprep.subr.bf16.mxu0 %v29143_v46  ;;  %v29215_v46 = vld [vmem:[%s36661_s5 + $0xd24] ss:$16 sps:$4 sm:$0xff]  }
0x1090   :  { %20374 = vmatpush1.bf16.msra.mxu0 %v29141_v38  ;;  %v29213_v38 = vld [vmem:[%s36661_s5 + $0xd20] ss:$16 sps:$4 sm:$0xff]  }
0x1091   :  { %20375 = vmatprep.subr.bf16.mxu0 %v29146_v40  ;;  %v29218_v40 = vld [vmem:[%s36661_s5 + $0xd44] ss:$16 sps:$4 sm:$0xff]  }
0x1094   :  { %20376 = vmatpush1.bf16.msra.mxu0 %v29144_v24  ;;  %v29216_v24 = vld [vmem:[%s36661_s5 + $0xd40] ss:$16 sps:$4 sm:$0xff]  }
0x1095   :  { %20377 = vmatprep.subr.bf16.mxu0 %v29149_v5  ;;  %v29221_v5 = vld [vmem:[%s36661_s5 + $0xd64] ss:$16 sps:$4 sm:$0xff]  }
0x1098   :  { %20378 = vmatpush1.bf16.msra.mxu0 %v29147_v45  ;;  %v29219_v45 = vld [vmem:[%s36661_s5 + $0xd60] ss:$16 sps:$4 sm:$0xff]  }
0x1099   :  { %20379 = vmatprep.subr.bf16.mxu0 %v29152_v34  ;;  %v29224_v34 = vld [vmem:[%s36661_s5 + $0xd84] ss:$16 sps:$4 sm:$0xff]  }
0x109c   :  { %20380 = vmatpush1.bf16.msra.mxu0 %v29150_v7  ;;  %v29222_v7 = vld [vmem:[%s36661_s5 + $0xd80] ss:$16 sps:$4 sm:$0xff]  }
0x109d   :  { %20381 = vmatprep.subr.bf16.mxu0 %v29155_v57  ;;  %v29227_v57 = vld [vmem:[%s36661_s5 + $0xda4] ss:$16 sps:$4 sm:$0xff]  }
0x10a0   :  { %20382 = vmatpush1.bf16.msra.mxu0 %v29153_v42  ;;  %v29225_v42 = vld [vmem:[%s36661_s5 + $0xda0] ss:$16 sps:$4 sm:$0xff]  }
0x10a1   :  { %20383 = vmatprep.subr.bf16.mxu0 %v29158_v21  ;;  %v29230_v21 = vld [vmem:[%s36661_s5 + $0xdc4] ss:$16 sps:$4 sm:$0xff]  }
0x10a4   :  { %20384 = vmatpush1.bf16.msra.mxu0 %v29156_v9  ;;  %v29228_v9 = vld [vmem:[%s36661_s5 + $0xdc0] ss:$16 sps:$4 sm:$0xff]  }
0x10a5   :  { %20385 = vmatprep.subr.bf16.mxu0 %v29161_v41  ;;  %v29233_v41 = vld [vmem:[%s36661_s5 + $0xde4] ss:$16 sps:$4 sm:$0xff]  }
0x10a8   :  { %20386 = vmatpush1.bf16.msra.mxu0 %v29159_v43  ;;  %v29231_v43 = vld [vmem:[%s36661_s5 + $0xde0] ss:$16 sps:$4 sm:$0xff]  }
0x10a9   :  { %20387 = vmatprep.subr.bf16.mxu0 %v29164_v28  ;;  %v29236_v28 = vld [vmem:[%s36661_s5 + $0xe04] ss:$16 sps:$4 sm:$0xff]  }
0x10ac   :  { %20388 = vmatpush1.bf16.msra.mxu0 %v29162_v8  ;;  %v29234_v8 = vld [vmem:[%s36661_s5 + $0xe00] ss:$16 sps:$4 sm:$0xff]  }
0x10ad   :  { %20389 = vmatprep.subr.bf16.mxu0 %v29167_v55  ;;  %v35647_v55 = vpack.c.bf16 %v35160_v20, %v35160_v20  ;;  %v29242_v20 = vld [vmem:[%s36661_s5 + $0xe44] ss:$16 sps:$4 sm:$0xff]  }
0x10b0   :  { %20390 = vmatpush1.bf16.msra.mxu0 %v29165_v53  ;;  %v29239_v53 = vld [vmem:[%s36661_s5 + $0xe24] ss:$16 sps:$4 sm:$0xff]  }
0x10b1   :  { %20391 = vmatprep.subr.bf16.mxu0 %v29170_v10  ;;  %v35654_v10 = vpack.c.bf16 %v35178_v31, %v35178_v31  ;;  %v29240_v31 = vld [vmem:[%s36661_s5 + $0xe40] ss:$16 sps:$4 sm:$0xff]  }
0x10b4   :  { %20392 = vmatpush1.bf16.msra.mxu0 %v29168_v59  ;;  %v29237_v59 = vld [vmem:[%s36661_s5 + $0xe20] ss:$16 sps:$4 sm:$0xff]  }
0x10b5   :  { %20393 = vmatprep.subr.bf16.mxu0 %v29173_v29  ;;  %v29245_v29 = vld [vmem:[%s36661_s5 + $0xe64] ss:$16 sps:$4 sm:$0xff]  }
0x10b8   :  { %20394 = vmatpush1.bf16.msra.mxu0 %v29171_v61  ;;  %v29243_v61 = vld [vmem:[%s36661_s5 + $0xe60] ss:$16 sps:$4 sm:$0xff]  }
0x10b9   :  { %20395 = vmatprep.subr.bf16.mxu0 %v29176_v48  ;;  %v29248_v48 = vld [vmem:[%s36661_s5 + $0xe84] ss:$16 sps:$4 sm:$0xff]  }
0x10bc   :  { %20396 = vmatpush1.bf16.msra.mxu0 %v29174_v35  ;;  %v29246_v35 = vld [vmem:[%s36661_s5 + $0xe80] ss:$16 sps:$4 sm:$0xff]  }
0x10bd   :  { %20397 = vmatprep.subr.bf16.mxu0 %v29179_v63  ;;  %v29251_v63 = vld [vmem:[%s36661_s5 + $0xea4] ss:$16 sps:$4 sm:$0xff]  }
0x10c0   :  { %20398 = vmatpush1.bf16.msra.mxu0 %v29177_v4  ;;  %v29249_v4 = vld [vmem:[%s36661_s5 + $0xea0] ss:$16 sps:$4 sm:$0xff]  }
0x10c1   :  { %20399 = vmatprep.subr.bf16.mxu0 %v29182_v17  ;;  %v29254_v17 = vld [vmem:[%s36661_s5 + $0xec4] ss:$16 sps:$4 sm:$0xff]  }
0x10c4   :  { %20400 = vmatpush1.bf16.msra.mxu0 %v29180_v25  ;;  %v29252_v25 = vld [vmem:[%s36661_s5 + $0xec0] ss:$16 sps:$4 sm:$0xff]  }
0x10c5   :  { %20401 = vmatprep.subr.bf16.mxu0 %v29185_v15  ;;  %v29257_v15 = vld [vmem:[%s36661_s5 + $0xee4] ss:$16 sps:$4 sm:$0xff]  }
0x10c8   :  { %20402 = vmatpush1.bf16.msra.mxu0 %v29183_v26  ;;  %v29255_v26 = vld [vmem:[%s36661_s5 + $0xee0] ss:$16 sps:$4 sm:$0xff]  }
0x10c9   :  { %20412 = vmatprep.subr.bf16.mxu0 %v29188_v33  ;;  %v29260_v33 = vld [vmem:[%s36661_s5 + $0xf04] ss:$16 sps:$4 sm:$0xff]  }
0x10cb   :  { %20404 = vmatmul.mubr.bf16.vlgmr.msra.gmra.mrb[128].mxu0 %v35541_v52 }
0x10cc   :  { %20413 = vmatpush1.bf16.msra.mxu0 %v29186_v58  ;;  %20444 = vmatprep.mubr.bf16.mxu0 %v35548_v39  ;;  %v29258_v58 = vld [vmem:[%s36661_s5 + $0xf00] ss:$16 sps:$4 sm:$0xff]  }
0x10cd   :  { %20414 = vmatprep.subr.bf16.mxu0 %v29191_v36  ;;  %v29263_v36 = vld [vmem:[%s36661_s5 + $0xf24] ss:$16 sps:$4 sm:$0xff]  }
0x10d0   :  { %20415 = vmatpush1.bf16.msra.mxu0 %v29189_v3  ;;  %v29261_v3 = vld [vmem:[%s36661_s5 + $0xf20] ss:$16 sps:$4 sm:$0xff]  }
0x10d1   :  { %20416 = vmatprep.subr.bf16.mxu0 %v29194_v13  ;;  %v29266_v13 = vld [vmem:[%s36661_s5 + $0xf44] ss:$16 sps:$4 sm:$0xff]  }
0x10d4   :  { %20417 = vmatpush1.bf16.msra.mxu0 %v29192_v49  ;;  %v29264_v49 = vld [vmem:[%s36661_s5 + $0xf40] ss:$16 sps:$4 sm:$0xff]  }
0x10d5   :  { %20418 = vmatprep.subr.bf16.mxu0 %v29197_v44  ;;  %v29269_v44 = vld [vmem:[%s36661_s5 + $0xf64] ss:$16 sps:$4 sm:$0xff]  }
0x10d8   :  { %20419 = vmatpush1.bf16.msra.mxu0 %v29195_v14  ;;  %v29267_v14 = vld [vmem:[%s36661_s5 + $0xf60] ss:$16 sps:$4 sm:$0xff]  }
0x10d9   :  { %20420 = vmatprep.subr.bf16.mxu0 %v29200_v16  ;;  %v29272_v16 = vld [vmem:[%s36661_s5 + $0xf84] ss:$16 sps:$4 sm:$0xff]  }
0x10dc   :  { %20421 = vmatpush1.bf16.msra.mxu0 %v29198_v47  ;;  %v29270_v47 = vld [vmem:[%s36661_s5 + $0xf80] ss:$16 sps:$4 sm:$0xff]  }
0x10dd   :  { %20422 = vmatprep.subr.bf16.mxu0 %v29203_v18  ;;  %v29275_v18 = vld [vmem:[%s36661_s5 + $0xfa4] ss:$16 sps:$4 sm:$0xff]  }
0x10e0   :  { %20423 = vmatpush1.bf16.msra.mxu0 %v29201_v12  ;;  %v29273_v12 = vld [vmem:[%s36661_s5 + $0xfa0] ss:$16 sps:$4 sm:$0xff]  }
0x10e1   :  { %20424 = vmatprep.subr.bf16.mxu0 %v29206_v2  ;;  %v29278_v2 = vld [vmem:[%s36661_s5 + $0xfc4] ss:$16 sps:$4 sm:$0xff]  }
0x10e4   :  { %20425 = vmatpush1.bf16.msra.mxu0 %v29204_v54  ;;  %v29276_v54 = vld [vmem:[%s36661_s5 + $0xfc0] ss:$16 sps:$4 sm:$0xff]  }
0x10e5   :  { %20426 = vmatprep.subr.bf16.mxu0 %v29209_v62  ;;  %v29281_v62 = vld [vmem:[%s36661_s5 + $0xfe4] ss:$16 sps:$4 sm:$0xff]  }
0x10e8   :  { %20427 = vmatpush1.bf16.msra.mxu0 %v29207_v51  ;;  %v29279_v51 = vld [vmem:[%s36661_s5 + $0xfe0] ss:$16 sps:$4 sm:$0xff]  }
0x10e9   :  { %20428 = vmatprep.subr.bf16.mxu0 %v29212_v19  ;;  %v29284_v19 = vld [vmem:[%s36661_s5 + $0xc] ss:$16 sps:$4 sm:$0xff]  }
0x10ec   :  { %20429 = vmatpush1.bf16.msra.mxu0 %v29210_v11  ;;  %v29282_v11 = vld [vmem:[%s36661_s5 + $0x8] ss:$16 sps:$4 sm:$0xff]  }
0x10ed   :  { %20430 = vmatprep.subr.bf16.mxu0 %v29215_v46  ;;  %v35753_v46 = vpack.c.bf16 %v35180_v22, %v35180_v22  ;;  %v29290_v22 = vld [vmem:[%s36661_s5 + $0x4c] ss:$16 sps:$4 sm:$0xff]  }
0x10f0   :  { %20431 = vmatpush1.bf16.msra.mxu0 %v29213_v38  ;;  %v29287_v38 = vld [vmem:[%s36661_s5 + $0x2c] ss:$16 sps:$4 sm:$0xff]  }
0x10f1   :  { %20432 = vmatprep.subr.bf16.mxu0 %v29218_v40  ;;  %v29285_v40 = vld [vmem:[%s36661_s5 + $0x28] ss:$16 sps:$4 sm:$0xff]  }
0x10f4   :  { %20433 = vmatpush1.bf16.msra.mxu0 %v29216_v24  ;;  %v29288_v24 = vld [vmem:[%s36661_s5 + $0x48] ss:$16 sps:$4 sm:$0xff]  }
0x10f5   :  { %20434 = vmatprep.subr.bf16.mxu0 %v29221_v5  ;;  %v29293_v5 = vld [vmem:[%s36661_s5 + $0x6c] ss:$16 sps:$4 sm:$0xff]  }
0x10f8   :  { %20435 = vmatpush1.bf16.msra.mxu0 %v29219_v45  ;;  %v29296_v45 = vld [vmem:[%s36661_s5 + $0x8c] ss:$16 sps:$4 sm:$0xff]  }
0x10f9   :  { %20436 = vmatprep.subr.bf16.mxu0 %v29224_v34  ;;  %v29294_v34 = vld [vmem:[%s36661_s5 + $0x88] ss:$16 sps:$4 sm:$0xff]  }
0x10fc   :  { %20437 = vmatpush1.bf16.msra.mxu0 %v29222_v7  ;;  %v29299_v7 = vld [vmem:[%s36661_s5 + $0xac] ss:$16 sps:$4 sm:$0xff]  }
0x10fd   :  { %20438 = vmatprep.subr.bf16.mxu0 %v29227_v57  ;;  %v29297_v57 = vld [vmem:[%s36661_s5 + $0xa8] ss:$16 sps:$4 sm:$0xff]  }
0x1100   :  { %20439 = vmatpush1.bf16.msra.mxu0 %v29225_v42  ;;  %v29302_v42 = vld [vmem:[%s36661_s5 + $0xcc] ss:$16 sps:$4 sm:$0xff]  }
0x1101   :  { %20440 = vmatprep.subr.bf16.mxu0 %v29230_v21  ;;  %v29300_v21 = vld [vmem:[%s36661_s5 + $0xc8] ss:$16 sps:$4 sm:$0xff]  }
0x1104   :  { %20441 = vmatpush1.bf16.msra.mxu0 %v29228_v9  ;;  %v29305_v9 = vld [vmem:[%s36661_s5 + $0xec] ss:$16 sps:$4 sm:$0xff]  }
0x1105   :  { %20442 = vmatprep.subr.bf16.mxu0 %v29233_v41  ;;  %v29303_v41 = vld [vmem:[%s36661_s5 + $0xe8] ss:$16 sps:$4 sm:$0xff]  }
0x1108   :  { %20443 = vmatpush1.bf16.msra.mxu0 %v29231_v43  ;;  %v29308_v43 = vld [vmem:[%s36661_s5 + $0x10c] ss:$16 sps:$4 sm:$0xff]  }
0x1109   :  { %20453 = vmatprep.subr.bf16.mxu0 %v29236_v28  ;;  %v29306_v28 = vld [vmem:[%s36661_s5 + $0x108] ss:$16 sps:$4 sm:$0xff]  }
0x110b   :  { %20445 = vmatmul.mubr.bf16.vlgmr.msra.gmra.mrb[128].mxu0 %v35647_v55 }
0x110c   :  { %20454 = vmatpush1.bf16.msra.mxu0 %v29234_v8  ;;  %20485 = vmatprep.mubr.bf16.mxu0 %v35654_v10  ;;  %v29311_v8 = vld [vmem:[%s36661_s5 + $0x12c] ss:$16 sps:$4 sm:$0xff]  }
0x110d   :  { %20455 = vmatprep.subr.bf16.mxu0 %v29239_v53  ;;  %v29309_v53 = vld [vmem:[%s36661_s5 + $0x128] ss:$16 sps:$4 sm:$0xff]  }
0x1110   :  { %20456 = vmatpush1.bf16.msra.mxu0 %v29237_v59  ;;  %v29314_v59 = vld [vmem:[%s36661_s5 + $0x14c] ss:$16 sps:$4 sm:$0xff]  }
0x1111   :  { %20457 = vmatprep.subr.bf16.mxu0 %v29242_v20  ;;  %v29312_v20 = vld [vmem:[%s36661_s5 + $0x148] ss:$16 sps:$4 sm:$0xff]  }
0x1114   :  { %20458 = vmatpush1.bf16.msra.mxu0 %v29240_v31  ;;  %v29317_v31 = vld [vmem:[%s36661_s5 + $0x16c] ss:$16 sps:$4 sm:$0xff]  }
0x1115   :  { %20459 = vmatprep.subr.bf16.mxu0 %v29245_v29  ;;  %v29315_v29 = vld [vmem:[%s36661_s5 + $0x168] ss:$16 sps:$4 sm:$0xff]  }
0x1118   :  { %20460 = vmatpush1.bf16.msra.mxu0 %v29243_v61  ;;  %v29320_v61 = vld [vmem:[%s36661_s5 + $0x18c] ss:$16 sps:$4 sm:$0xff]  }
0x1119   :  { %20461 = vmatprep.subr.bf16.mxu0 %v29248_v48  ;;  %v29318_v48 = vld [vmem:[%s36661_s5 + $0x188] ss:$16 sps:$4 sm:$0xff]  }
0x111c   :  { %20462 = vmatpush1.bf16.msra.mxu0 %v29246_v35  ;;  %v29323_v35 = vld [vmem:[%s36661_s5 + $0x1ac] ss:$16 sps:$4 sm:$0xff]  }
0x111d   :  { %20463 = vmatprep.subr.bf16.mxu0 %v29251_v63  ;;  %v29321_v63 = vld [vmem:[%s36661_s5 + $0x1a8] ss:$16 sps:$4 sm:$0xff]  }
0x1120   :  { %20464 = vmatpush1.bf16.msra.mxu0 %v29249_v4  ;;  %v29326_v4 = vld [vmem:[%s36661_s5 + $0x1cc] ss:$16 sps:$4 sm:$0xff]  }
0x1121   :  { %20465 = vmatprep.subr.bf16.mxu0 %v29254_v17  ;;  %v29324_v17 = vld [vmem:[%s36661_s5 + $0x1c8] ss:$16 sps:$4 sm:$0xff]  }
0x1124   :  { %20466 = vmatpush1.bf16.msra.mxu0 %v29252_v25  ;;  %v29329_v25 = vld [vmem:[%s36661_s5 + $0x1ec] ss:$16 sps:$4 sm:$0xff]  }
0x1125   :  { %20467 = vmatprep.subr.bf16.mxu0 %v29257_v15  ;;  %v29327_v15 = vld [vmem:[%s36661_s5 + $0x1e8] ss:$16 sps:$4 sm:$0xff]  }
0x1128   :  { %20468 = vmatpush1.bf16.msra.mxu0 %v29255_v26  ;;  %v29332_v26 = vld [vmem:[%s36661_s5 + $0x20c] ss:$16 sps:$4 sm:$0xff]  }
0x1129   :  { %20469 = vmatprep.subr.bf16.mxu0 %v29260_v33  ;;  %v29330_v33 = vld [vmem:[%s36661_s5 + $0x208] ss:$16 sps:$4 sm:$0xff]  }
0x112c   :  { %20470 = vmatpush1.bf16.msra.mxu0 %v29258_v58  ;;  %v29335_v58 = vld [vmem:[%s36661_s5 + $0x22c] ss:$16 sps:$4 sm:$0xff]  }
0x112d   :  { %20471 = vmatprep.subr.bf16.mxu0 %v29263_v36  ;;  %v29333_v36 = vld [vmem:[%s36661_s5 + $0x228] ss:$16 sps:$4 sm:$0xff]  }
0x1130   :  { %20472 = vmatpush1.bf16.msra.mxu0 %v29261_v3  ;;  %v29338_v3 = vld [vmem:[%s36661_s5 + $0x24c] ss:$16 sps:$4 sm:$0xff]  }
0x1131   :  { %20473 = vmatprep.subr.bf16.mxu0 %v29266_v13  ;;  %v29336_v13 = vld [vmem:[%s36661_s5 + $0x248] ss:$16 sps:$4 sm:$0xff]  }
0x1134   :  { %20474 = vmatpush1.bf16.msra.mxu0 %v29264_v49  ;;  %v29344_v49 = vld [vmem:[%s36661_s5 + $0x28c] ss:$16 sps:$4 sm:$0xff]  }
0x1135   :  { %20475 = vmatprep.subr.bf16.mxu0 %v29269_v44  ;;  %v29342_v44 = vld [vmem:[%s36661_s5 + $0x288] ss:$16 sps:$4 sm:$0xff]  }
0x1138   :  { %20476 = vmatpush1.bf16.msra.mxu0 %v29267_v14  ;;  %v29347_v14 = vld [vmem:[%s36661_s5 + $0x2ac] ss:$16 sps:$4 sm:$0xff]  }
0x1139   :  { %20477 = vmatprep.subr.bf16.mxu0 %v29272_v16  ;;  %v29345_v16 = vld [vmem:[%s36661_s5 + $0x2a8] ss:$16 sps:$4 sm:$0xff]  }
0x113c   :  { %20478 = vmatpush1.bf16.msra.mxu0 %v29270_v47  ;;  %v29350_v47 = vld [vmem:[%s36661_s5 + $0x2cc] ss:$16 sps:$4 sm:$0xff]  }
0x113d   :  { %20479 = vmatprep.subr.bf16.mxu0 %v29275_v18  ;;  %v29348_v18 = vld [vmem:[%s36661_s5 + $0x2c8] ss:$16 sps:$4 sm:$0xff]  }
0x1140   :  { %20480 = vmatpush1.bf16.msra.mxu0 %v29273_v12  ;;  %v29353_v12 = vld [vmem:[%s36661_s5 + $0x2ec] ss:$16 sps:$4 sm:$0xff]  }
0x1141   :  { %20481 = vmatprep.subr.bf16.mxu0 %v29278_v2  ;;  %v29351_v2 = vld [vmem:[%s36661_s5 + $0x2e8] ss:$16 sps:$4 sm:$0xff]  }
0x1144   :  { %20482 = vmatpush1.bf16.msra.mxu0 %v29276_v54  ;;  %v29356_v54 = vld [vmem:[%s36661_s5 + $0x30c] ss:$16 sps:$4 sm:$0xff]  }
0x1145   :  { %20483 = vmatprep.subr.bf16.mxu0 %v29281_v62  ;;  %v29354_v62 = vld [vmem:[%s36661_s5 + $0x308] ss:$16 sps:$4 sm:$0xff]  }
0x1148   :  { %20484 = vmatpush1.bf16.msra.mxu0 %v29279_v51  ;;  %v29359_v51 = vld [vmem:[%s36661_s5 + $0x32c] ss:$16 sps:$4 sm:$0xff]  }
0x1149   :  { %20494 = vmatprep.subr.bf16.mxu0 %v29284_v19  ;;  %v29357_v19 = vld [vmem:[%s36661_s5 + $0x328] ss:$16 sps:$4 sm:$0xff]  }
0x114b   :  { %20486 = vmatmul.mubr.bf16.vlgmr.msra.gmra.mrb[128].mxu0 %v35753_v46 }
0x114c   :  { %20495 = vmatpush1.bf16.msra.mxu0 %v29282_v11  ;;  %20526 = vmatprep.mubr.bf16.mxu0 %v34863_v6  ;;  %v29291_v6 = vld [vmem:[%s36661_s5 + $0x68] ss:$16 sps:$4 sm:$0xff]   ;;  %v29362_v11 = vld [vmem:[%s36661_s5 + $0x34c] ss:$16 sps:$4 sm:$0xff]  }
0x114d   :  { %20496 = vmatprep.subr.bf16.mxu0 %v29287_v38  ;;  %v29360_v38 = vld [vmem:[%s36661_s5 + $0x348] ss:$16 sps:$4 sm:$0xff]  }
0x1150   :  { %20497 = vmatpush1.bf16.msra.mxu0 %v29285_v40  ;;  %v29365_v40 = vld [vmem:[%s36661_s5 + $0x36c] ss:$16 sps:$4 sm:$0xff]  }
0x1151   :  { %20498 = vmatprep.subr.bf16.mxu0 %v29290_v22  ;;  %v29363_v22 = vld [vmem:[%s36661_s5 + $0x368] ss:$16 sps:$4 sm:$0xff]  }
0x1154   :  { %20499 = vmatpush1.bf16.msra.mxu0 %v29288_v24  ;;  %v29368_v24 = vld [vmem:[%s36661_s5 + $0x38c] ss:$16 sps:$4 sm:$0xff]  }
0x1155   :  { %20500 = vmatprep.subr.bf16.mxu0 %v29293_v5  ;;  %v29366_v5 = vld [vmem:[%s36661_s5 + $0x388] ss:$16 sps:$4 sm:$0xff]  }
0x1158   :  { %20501 = vmatpush1.bf16.msra.mxu0 %v29291_v6  ;;  %v29371_v6 = vld [vmem:[%s36661_s5 + $0x3ac] ss:$16 sps:$4 sm:$0xff]  }
0x1159   :  { %20502 = vmatprep.subr.bf16.mxu0 %v29296_v45  ;;  %v29369_v45 = vld [vmem:[%s36661_s5 + $0x3a8] ss:$16 sps:$4 sm:$0xff]  }
0x115c   :  { %20503 = vmatpush1.bf16.msra.mxu0 %v29294_v34  ;;  %v29374_v34 = vld [vmem:[%s36661_s5 + $0x3cc] ss:$16 sps:$4 sm:$0xff]  }
0x115d   :  { %20504 = vmatprep.subr.bf16.mxu0 %v29299_v7  ;;  %v29372_v7 = vld [vmem:[%s36661_s5 + $0x3c8] ss:$16 sps:$4 sm:$0xff]  }
0x1160   :  { %20505 = vmatpush1.bf16.msra.mxu0 %v29297_v57  ;;  %v29377_v57 = vld [vmem:[%s36661_s5 + $0x3ec] ss:$16 sps:$4 sm:$0xff]  }
0x1161   :  { %20506 = vmatprep.subr.bf16.mxu0 %v29302_v42  ;;  %v29375_v42 = vld [vmem:[%s36661_s5 + $0x3e8] ss:$16 sps:$4 sm:$0xff]  }
0x1164   :  { %20507 = vmatpush1.bf16.msra.mxu0 %v29300_v21  ;;  %v29380_v21 = vld [vmem:[%s36661_s5 + $0x40c] ss:$16 sps:$4 sm:$0xff]  }
0x1165   :  { %20508 = vmatprep.subr.bf16.mxu0 %v29305_v9  ;;  %v29378_v9 = vld [vmem:[%s36661_s5 + $0x408] ss:$16 sps:$4 sm:$0xff]  }
0x1168   :  { %20509 = vmatpush1.bf16.msra.mxu0 %v29303_v41  ;;  %v29383_v41 = vld [vmem:[%s36661_s5 + $0x42c] ss:$16 sps:$4 sm:$0xff]  }
0x1169   :  { %20510 = vmatprep.subr.bf16.mxu0 %v29308_v43  ;;  %v29381_v43 = vld [vmem:[%s36661_s5 + $0x428] ss:$16 sps:$4 sm:$0xff]  }
0x116c   :  { %20511 = vmatpush1.bf16.msra.mxu0 %v29306_v28  ;;  %v29386_v28 = vld [vmem:[%s36661_s5 + $0x44c] ss:$16 sps:$4 sm:$0xff]  }
0x116d   :  { %20512 = vmatprep.subr.bf16.mxu0 %v29311_v8  ;;  %v29384_v8 = vld [vmem:[%s36661_s5 + $0x448] ss:$16 sps:$4 sm:$0xff]  }
0x1170   :  { %20513 = vmatpush1.bf16.msra.mxu0 %v29309_v53  ;;  %v29392_v53 = vld [vmem:[%s36661_s5 + $0x48c] ss:$16 sps:$4 sm:$0xff]  }
0x1171   :  { %20514 = vmatprep.subr.bf16.mxu0 %v29314_v59  ;;  %v29390_v59 = vld [vmem:[%s36661_s5 + $0x488] ss:$16 sps:$4 sm:$0xff]  }
0x1174   :  { %20515 = vmatpush1.bf16.msra.mxu0 %v29312_v20  ;;  %v29395_v20 = vld [vmem:[%s36661_s5 + $0x4ac] ss:$16 sps:$4 sm:$0xff]  }
0x1175   :  { %20516 = vmatprep.subr.bf16.mxu0 %v29317_v31  ;;  %v29393_v31 = vld [vmem:[%s36661_s5 + $0x4a8] ss:$16 sps:$4 sm:$0xff]  }
0x1178   :  { %20517 = vmatpush1.bf16.msra.mxu0 %v29315_v29  ;;  %v29398_v29 = vld [vmem:[%s36661_s5 + $0x4cc] ss:$16 sps:$4 sm:$0xff]  }
0x1179   :  { %20518 = vmatprep.subr.bf16.mxu0 %v29320_v61  ;;  %v29396_v61 = vld [vmem:[%s36661_s5 + $0x4c8] ss:$16 sps:$4 sm:$0xff]  }
0x117c   :  { %20519 = vmatpush1.bf16.msra.mxu0 %v29318_v48  ;;  %v29401_v48 = vld [vmem:[%s36661_s5 + $0x4ec] ss:$16 sps:$4 sm:$0xff]  }
0x117d   :  { %20520 = vmatprep.subr.bf16.mxu0 %v29323_v35  ;;  %v29399_v35 = vld [vmem:[%s36661_s5 + $0x4e8] ss:$16 sps:$4 sm:$0xff]  }
0x1180   :  { %20521 = vmatpush1.bf16.msra.mxu0 %v29321_v63  ;;  %v29404_v63 = vld [vmem:[%s36661_s5 + $0x50c] ss:$16 sps:$4 sm:$0xff]  }
0x1181   :  { %20522 = vmatprep.subr.bf16.mxu0 %v29326_v4  ;;  %v29402_v4 = vld [vmem:[%s36661_s5 + $0x508] ss:$16 sps:$4 sm:$0xff]  }
0x1184   :  { %20523 = vmatpush1.bf16.msra.mxu0 %v29324_v17  ;;  %v29407_v17 = vld [vmem:[%s36661_s5 + $0x52c] ss:$16 sps:$4 sm:$0xff]  }
0x1185   :  { %20524 = vmatprep.subr.bf16.mxu0 %v29329_v25  ;;  %v29405_v25 = vld [vmem:[%s36661_s5 + $0x528] ss:$16 sps:$4 sm:$0xff]  }
0x1188   :  { %20525 = vmatpush1.bf16.msra.mxu0 %v29327_v15  ;;  %v29410_v15 = vld [vmem:[%s36661_s5 + $0x54c] ss:$16 sps:$4 sm:$0xff]  }
0x1189   :  { %20535 = vmatprep.subr.bf16.mxu0 %v29332_v26  ;;  %v29408_v26 = vld [vmem:[%s36661_s5 + $0x548] ss:$16 sps:$4 sm:$0xff]  }
0x118b   :  { %20527 = vmatmul.mubr.bf16.vlgmr.msra.gmra.mrb[132].mxu0 %v34868_v0  ;;  %v29341_v0 = vld [vmem:[%s36661_s5 + $0x26c] ss:$16 sps:$4 sm:$0xff]  }
0x118c   :  { %20536 = vmatpush1.bf16.msra.mxu0 %v29330_v33  ;;  %20567 = vmatprep.mubr.bf16.mxu0 %v34894_v37  ;;  %v29339_v37 = vld [vmem:[%s36661_s5 + $0x268] ss:$16 sps:$4 sm:$0xff]   ;;  %v29413_v33 = vld [vmem:[%s36661_s5 + $0x56c] ss:$16 sps:$4 sm:$0xff]  }
0x118d   :  { %20537 = vmatprep.subr.bf16.mxu0 %v29335_v58  ;;  %v29411_v58 = vld [vmem:[%s36661_s5 + $0x568] ss:$16 sps:$4 sm:$0xff]  }
0x1190   :  { %20538 = vmatpush1.bf16.msra.mxu0 %v29333_v36  ;;  %v29416_v36 = vld [vmem:[%s36661_s5 + $0x58c] ss:$16 sps:$4 sm:$0xff]  }
0x1191   :  { %20539 = vmatprep.subr.bf16.mxu0 %v29338_v3  ;;  %v29414_v3 = vld [vmem:[%s36661_s5 + $0x588] ss:$16 sps:$4 sm:$0xff]  }
0x1194   :  { %20540 = vmatpush1.bf16.msra.mxu0 %v29336_v13  ;;  %v29419_v13 = vld [vmem:[%s36661_s5 + $0x5ac] ss:$16 sps:$4 sm:$0xff]  }
0x1195   :  { %20541 = vmatprep.subr.bf16.mxu0 %v29341_v0  ;;  %v29417_v0 = vld [vmem:[%s36661_s5 + $0x5a8] ss:$16 sps:$4 sm:$0xff]  }
0x1198   :  { %20542 = vmatpush1.bf16.msra.mxu0 %v29339_v37  ;;  %v29422_v37 = vld [vmem:[%s36661_s5 + $0x5cc] ss:$16 sps:$4 sm:$0xff]  }
0x1199   :  { %20543 = vmatprep.subr.bf16.mxu0 %v29344_v49  ;;  %v29420_v49 = vld [vmem:[%s36661_s5 + $0x5c8] ss:$16 sps:$4 sm:$0xff]  }
0x119c   :  { %20544 = vmatpush1.bf16.msra.mxu0 %v29342_v44  ;;  %v29425_v44 = vld [vmem:[%s36661_s5 + $0x5ec] ss:$16 sps:$4 sm:$0xff]  }
0x119d   :  { %20545 = vmatprep.subr.bf16.mxu0 %v29347_v14  ;;  %v29423_v14 = vld [vmem:[%s36661_s5 + $0x5e8] ss:$16 sps:$4 sm:$0xff]  }
0x11a0   :  { %20546 = vmatpush1.bf16.msra.mxu0 %v29345_v16  ;;  %v29428_v16 = vld [vmem:[%s36661_s5 + $0x60c] ss:$16 sps:$4 sm:$0xff]  }
0x11a1   :  { %20547 = vmatprep.subr.bf16.mxu0 %v29350_v47  ;;  %v29426_v47 = vld [vmem:[%s36661_s5 + $0x608] ss:$16 sps:$4 sm:$0xff]  }
0x11a4   :  { %20548 = vmatpush1.bf16.msra.mxu0 %v29348_v18  ;;  %v29431_v18 = vld [vmem:[%s36661_s5 + $0x62c] ss:$16 sps:$4 sm:$0xff]  }
0x11a5   :  { %20549 = vmatprep.subr.bf16.mxu0 %v29353_v12  ;;  %v29429_v12 = vld [vmem:[%s36661_s5 + $0x628] ss:$16 sps:$4 sm:$0xff]  }
0x11a8   :  { %20550 = vmatpush1.bf16.msra.mxu0 %v29351_v2  ;;  %v29434_v2 = vld [vmem:[%s36661_s5 + $0x64c] ss:$16 sps:$4 sm:$0xff]  }
0x11a9   :  { %20551 = vmatprep.subr.bf16.mxu0 %v29356_v54  ;;  %v29432_v54 = vld [vmem:[%s36661_s5 + $0x648] ss:$16 sps:$4 sm:$0xff]  }
0x11ac   :  { %20552 = vmatpush1.bf16.msra.mxu0 %v29354_v62  ;;  %v29440_v62 = vld [vmem:[%s36661_s5 + $0x68c] ss:$16 sps:$4 sm:$0xff]  }
0x11ad   :  { %20553 = vmatprep.subr.bf16.mxu0 %v29359_v51  ;;  %v29438_v51 = vld [vmem:[%s36661_s5 + $0x688] ss:$16 sps:$4 sm:$0xff]  }
0x11b0   :  { %20554 = vmatpush1.bf16.msra.mxu0 %v29357_v19  ;;  %v29443_v19 = vld [vmem:[%s36661_s5 + $0x6ac] ss:$16 sps:$4 sm:$0xff]  }
0x11b1   :  { %20555 = vmatprep.subr.bf16.mxu0 %v29362_v11  ;;  %v29441_v11 = vld [vmem:[%s36661_s5 + $0x6a8] ss:$16 sps:$4 sm:$0xff]  }
0x11b4   :  { %20556 = vmatpush1.bf16.msra.mxu0 %v29360_v38  ;;  %v29446_v38 = vld [vmem:[%s36661_s5 + $0x6cc] ss:$16 sps:$4 sm:$0xff]  }
0x11b5   :  { %20557 = vmatprep.subr.bf16.mxu0 %v29365_v40 }
0x11b8   :  { %20558 = vmatpush1.bf16.msra.mxu0 %v29363_v22 }
0x11b9   :  { %20559 = vmatprep.subr.bf16.mxu0 %v29368_v24 }
0x11bc   :  { %20560 = vmatpush1.bf16.msra.mxu0 %v29366_v5  ;;  %v29444_v5 = vld [vmem:[%s36661_s5 + $0x6c8] ss:$16 sps:$4 sm:$0xff]  }
0x11bd   :  { %20561 = vmatprep.subr.bf16.mxu0 %v29371_v6 }
0x11c0   :  { %20562 = vmatpush1.bf16.msra.mxu0 %v29369_v45  ;;  %v29449_v45 = vld [vmem:[%s36661_s5 + $0x6ec] ss:$16 sps:$4 sm:$0xff]  }
0x11c1   :  { %20563 = vmatprep.subr.bf16.mxu0 %v29374_v34  ;;  %v29447_v34 = vld [vmem:[%s36661_s5 + $0x6e8] ss:$16 sps:$4 sm:$0xff]  }
0x11c4   :  { %20564 = vmatpush1.bf16.msra.mxu0 %v29372_v7  ;;  %v29452_v7 = vld [vmem:[%s36661_s5 + $0x70c] ss:$16 sps:$4 sm:$0xff]  }
0x11c5   :  { %20565 = vmatprep.subr.bf16.mxu0 %v29377_v57  ;;  %v29450_v57 = vld [vmem:[%s36661_s5 + $0x708] ss:$16 sps:$4 sm:$0xff]  }
0x11c8   :  { %20566 = vmatpush1.bf16.msra.mxu0 %v29375_v42  ;;  %v29455_v42 = vld [vmem:[%s36661_s5 + $0x72c] ss:$16 sps:$4 sm:$0xff]  }
0x11c9   :  { %20576 = vmatprep.subr.bf16.mxu0 %v29380_v21  ;;  %v29453_v21 = vld [vmem:[%s36661_s5 + $0x728] ss:$16 sps:$4 sm:$0xff]  }
0x11cb   :  { %20568 = vmatmul.mubr.bf16.vlgmr.msra.gmra.mrb[132].mxu0 %v35067_v1  ;;  %v29389_v1 = vld [vmem:[%s36661_s5 + $0x46c] ss:$16 sps:$4 sm:$0xff]  }
0x11cc   :  { %20577 = vmatpush1.bf16.msra.mxu0 %v29378_v9  ;;  %20608 = vmatprep.mubr.bf16.mxu0 %v35075_v50  ;;  %v29387_v50 = vld [vmem:[%s36661_s5 + $0x468] ss:$16 sps:$4 sm:$0xff]   ;;  %v29458_v9 = vld [vmem:[%s36661_s5 + $0x74c] ss:$16 sps:$4 sm:$0xff]  }
0x11cd   :  { %20578 = vmatprep.subr.bf16.mxu0 %v29383_v41  ;;  %v29456_v41 = vld [vmem:[%s36661_s5 + $0x748] ss:$16 sps:$4 sm:$0xff]  }
0x11d0   :  { %20579 = vmatpush1.bf16.msra.mxu0 %v29381_v43  ;;  %v29461_v43 = vld [vmem:[%s36661_s5 + $0x76c] ss:$16 sps:$4 sm:$0xff]  }
0x11d1   :  { %20580 = vmatprep.subr.bf16.mxu0 %v29386_v28  ;;  %v29459_v28 = vld [vmem:[%s36661_s5 + $0x768] ss:$16 sps:$4 sm:$0xff]  }
0x11d4   :  { %20581 = vmatpush1.bf16.msra.mxu0 %v29384_v8  ;;  %v29464_v8 = vld [vmem:[%s36661_s5 + $0x78c] ss:$16 sps:$4 sm:$0xff]  }
0x11d5   :  { %20582 = vmatprep.subr.bf16.mxu0 %v29389_v1  ;;  %v29462_v1 = vld [vmem:[%s36661_s5 + $0x788] ss:$16 sps:$4 sm:$0xff]  }
0x11d8   :  { %20583 = vmatpush1.bf16.msra.mxu0 %v29387_v50  ;;  %v29467_v50 = vld [vmem:[%s36661_s5 + $0x7ac] ss:$16 sps:$4 sm:$0xff]  }
0x11d9   :  { %20584 = vmatprep.subr.bf16.mxu0 %v29392_v53  ;;  %v29465_v53 = vld [vmem:[%s36661_s5 + $0x7a8] ss:$16 sps:$4 sm:$0xff]  }
0x11dc   :  { %20585 = vmatpush1.bf16.msra.mxu0 %v29390_v59  ;;  %v29470_v59 = vld [vmem:[%s36661_s5 + $0x7cc] ss:$16 sps:$4 sm:$0xff]  }
0x11dd   :  { %20586 = vmatprep.subr.bf16.mxu0 %v29395_v20  ;;  %v29468_v20 = vld [vmem:[%s36661_s5 + $0x7c8] ss:$16 sps:$4 sm:$0xff]  }
0x11e0   :  { %20587 = vmatpush1.bf16.msra.mxu0 %v29393_v31  ;;  %v29473_v31 = vld [vmem:[%s36661_s5 + $0x7ec] ss:$16 sps:$4 sm:$0xff]  }
0x11e1   :  { %20588 = vmatprep.subr.bf16.mxu0 %v29398_v29  ;;  %v29471_v29 = vld [vmem:[%s36661_s5 + $0x7e8] ss:$16 sps:$4 sm:$0xff]  }
0x11e4   :  { %20589 = vmatpush1.bf16.msra.mxu0 %v29396_v61  ;;  %v29476_v61 = vld [vmem:[%s36661_s5 + $0x80c] ss:$16 sps:$4 sm:$0xff]  }
0x11e5   :  { %20590 = vmatprep.subr.bf16.mxu0 %v29401_v48  ;;  %v29474_v48 = vld [vmem:[%s36661_s5 + $0x808] ss:$16 sps:$4 sm:$0xff]  }
0x11e8   :  { %20591 = vmatpush1.bf16.msra.mxu0 %v29399_v35  ;;  %v29479_v35 = vld [vmem:[%s36661_s5 + $0x82c] ss:$16 sps:$4 sm:$0xff]  }
0x11e9   :  { %20592 = vmatprep.subr.bf16.mxu0 %v29404_v63  ;;  %v29477_v63 = vld [vmem:[%s36661_s5 + $0x828] ss:$16 sps:$4 sm:$0xff]  }
0x11ec   :  { %20593 = vmatpush1.bf16.msra.mxu0 %v29402_v4  ;;  %v29482_v4 = vld [vmem:[%s36661_s5 + $0x84c] ss:$16 sps:$4 sm:$0xff]  }
0x11ed   :  { %20594 = vmatprep.subr.bf16.mxu0 %v29407_v17  ;;  %v29480_v17 = vld [vmem:[%s36661_s5 + $0x848] ss:$16 sps:$4 sm:$0xff]  }
0x11f0   :  { %20595 = vmatpush1.bf16.msra.mxu0 %v29405_v25  ;;  %v29488_v25 = vld [vmem:[%s36661_s5 + $0x88c] ss:$16 sps:$4 sm:$0xff]  }
0x11f1   :  { %20596 = vmatprep.subr.bf16.mxu0 %v29410_v15  ;;  %v29486_v15 = vld [vmem:[%s36661_s5 + $0x888] ss:$16 sps:$4 sm:$0xff]  }
0x11f4   :  { %20597 = vmatpush1.bf16.msra.mxu0 %v29408_v26  ;;  %v29491_v26 = vld [vmem:[%s36661_s5 + $0x8ac] ss:$16 sps:$4 sm:$0xff]  }
0x11f5   :  { %20598 = vmatprep.subr.bf16.mxu0 %v29413_v33  ;;  %v29489_v33 = vld [vmem:[%s36661_s5 + $0x8a8] ss:$16 sps:$4 sm:$0xff]  }
0x11f8   :  { %20599 = vmatpush1.bf16.msra.mxu0 %v29411_v58  ;;  %v29494_v58 = vld [vmem:[%s36661_s5 + $0x8cc] ss:$16 sps:$4 sm:$0xff]  }
0x11f9   :  { %20600 = vmatprep.subr.bf16.mxu0 %v29416_v36  ;;  %v29492_v36 = vld [vmem:[%s36661_s5 + $0x8c8] ss:$16 sps:$4 sm:$0xff]  }
0x11fc   :  { %20601 = vmatpush1.bf16.msra.mxu0 %v29414_v3  ;;  %v29497_v3 = vld [vmem:[%s36661_s5 + $0x8ec] ss:$16 sps:$4 sm:$0xff]  }
0x11fd   :  { %20602 = vmatprep.subr.bf16.mxu0 %v29419_v13  ;;  %v29495_v13 = vld [vmem:[%s36661_s5 + $0x8e8] ss:$16 sps:$4 sm:$0xff]  }
0x1200   :  { %20603 = vmatpush1.bf16.msra.mxu0 %v29417_v0  ;;  %v29500_v0 = vld [vmem:[%s36661_s5 + $0x90c] ss:$16 sps:$4 sm:$0xff]  }
0x1201   :  { %20604 = vmatprep.subr.bf16.mxu0 %v29422_v37  ;;  %v29498_v37 = vld [vmem:[%s36661_s5 + $0x908] ss:$16 sps:$4 sm:$0xff]  }
0x1204   :  { %20605 = vmatpush1.bf16.msra.mxu0 %v29420_v49  ;;  %v29503_v49 = vld [vmem:[%s36661_s5 + $0x92c] ss:$16 sps:$4 sm:$0xff]  }
0x1205   :  { %20606 = vmatprep.subr.bf16.mxu0 %v29425_v44  ;;  %v29501_v44 = vld [vmem:[%s36661_s5 + $0x928] ss:$16 sps:$4 sm:$0xff]  }
0x1208   :  { %20607 = vmatpush1.bf16.msra.mxu0 %v29423_v14  ;;  %v29506_v14 = vld [vmem:[%s36661_s5 + $0x94c] ss:$16 sps:$4 sm:$0xff]  }
0x1209   :  { %20617 = vmatprep.subr.bf16.mxu0 %v29428_v16  ;;  %v29504_v16 = vld [vmem:[%s36661_s5 + $0x948] ss:$16 sps:$4 sm:$0xff]  }
0x120b   :  { %20609 = vmatmul.mubr.bf16.vlgmr.msra.gmra.mrb[132].mxu0 %v35223_v60  ;;  %v29437_v60 = vld [vmem:[%s36661_s5 + $0x66c] ss:$16 sps:$4 sm:$0xff]  }
0x120c   :  { %20618 = vmatpush1.bf16.msra.mxu0 %v29426_v47  ;;  %20649 = vmatprep.mubr.bf16.mxu0 %v35230_v30  ;;  %v29435_v30 = vld [vmem:[%s36661_s5 + $0x668] ss:$16 sps:$4 sm:$0xff]   ;;  %v29509_v47 = vld [vmem:[%s36661_s5 + $0x96c] ss:$16 sps:$4 sm:$0xff]  }
0x120d   :  { %20619 = vmatprep.subr.bf16.mxu0 %v29431_v18  ;;  %v29507_v18 = vld [vmem:[%s36661_s5 + $0x968] ss:$16 sps:$4 sm:$0xff]  }
0x1210   :  { %20620 = vmatpush1.bf16.msra.mxu0 %v29429_v12  ;;  %v29512_v12 = vld [vmem:[%s36661_s5 + $0x98c] ss:$16 sps:$4 sm:$0xff]  }
0x1211   :  { %20621 = vmatprep.subr.bf16.mxu0 %v29434_v2  ;;  %v29510_v2 = vld [vmem:[%s36661_s5 + $0x988] ss:$16 sps:$4 sm:$0xff]  }
0x1214   :  { %20622 = vmatpush1.bf16.msra.mxu0 %v29432_v54  ;;  %v29515_v54 = vld [vmem:[%s36661_s5 + $0x9ac] ss:$16 sps:$4 sm:$0xff]  }
0x1215   :  { %20623 = vmatprep.subr.bf16.mxu0 %v29437_v60  ;;  %v29513_v60 = vld [vmem:[%s36661_s5 + $0x9a8] ss:$16 sps:$4 sm:$0xff]  }
0x1218   :  { %20624 = vmatpush1.bf16.msra.mxu0 %v29435_v30  ;;  %v29518_v30 = vld [vmem:[%s36661_s5 + $0x9cc] ss:$16 sps:$4 sm:$0xff]  }
0x1219   :  { %20625 = vmatprep.subr.bf16.mxu0 %v29440_v62  ;;  %v29516_v62 = vld [vmem:[%s36661_s5 + $0x9c8] ss:$16 sps:$4 sm:$0xff]  }
0x121c   :  { %20626 = vmatpush1.bf16.msra.mxu0 %v29438_v51  ;;  %v29521_v51 = vld [vmem:[%s36661_s5 + $0x9ec] ss:$16 sps:$4 sm:$0xff]  }
0x121d   :  { %20627 = vmatprep.subr.bf16.mxu0 %v29443_v19  ;;  %v29519_v19 = vld [vmem:[%s36661_s5 + $0x9e8] ss:$16 sps:$4 sm:$0xff]  }
0x121e   :  { %v36084_v40 = vpop.f32.mrb[128].mxu0 }
0x121f   :  { %v36086_v22 = vpop.f32.mrb[129].mxu0 }
0x1220   :  { %v20491_v24 = vpop.f32.mrb[130].mxu0  ;;  %20628 = vmatpush1.bf16.msra.mxu0 %v29441_v11  ;;  %v29524_v11 = vld [vmem:[%s36661_s5 + $0xa0c] ss:$16 sps:$4 sm:$0xff]  }
0x1221   :  { %v20492_v6 = vpop.f32.mrb[131].mxu0  ;;  %20629 = vmatprep.subr.bf16.mxu0 %v29446_v38  ;;  %v29522_v38 = vld [vmem:[%s36661_s5 + $0xa08] ss:$16 sps:$4 sm:$0xff]   ;;  %v29527_v24 = vld [vmem:[%s36661_s5 + $0xa2c] ss:$16 sps:$4 sm:$0xff]  }
0x1222   :  { %v29530_v6 = vld [vmem:[%s36661_s5 + $0xa4c] ss:$16 sps:$4 sm:$0xff]  }
0x1224   :  { %20630 = vmatpush1.bf16.msra.mxu0 %v29444_v5  ;;  %v29525_v5 = vld [vmem:[%s36661_s5 + $0xa28] ss:$16 sps:$4 sm:$0xff]  }
0x1225   :  { %20631 = vmatprep.subr.bf16.mxu0 %v29449_v45  ;;  %v29528_v45 = vld [vmem:[%s36661_s5 + $0xa48] ss:$16 sps:$4 sm:$0xff]  }
0x1228   :  { %20632 = vmatpush1.bf16.msra.mxu0 %v29447_v34  ;;  %v29536_v34 = vld [vmem:[%s36661_s5 + $0xa8c] ss:$16 sps:$4 sm:$0xff]  }
0x1229   :  { %20633 = vmatprep.subr.bf16.mxu0 %v29452_v7  ;;  %v29534_v7 = vld [vmem:[%s36661_s5 + $0xa88] ss:$16 sps:$4 sm:$0xff]  }
0x122c   :  { %20634 = vmatpush1.bf16.msra.mxu0 %v29450_v57  ;;  %v29539_v57 = vld [vmem:[%s36661_s5 + $0xaac] ss:$16 sps:$4 sm:$0xff]  }
0x122d   :  { %20635 = vmatprep.subr.bf16.mxu0 %v29455_v42  ;;  %v29537_v42 = vld [vmem:[%s36661_s5 + $0xaa8] ss:$16 sps:$4 sm:$0xff]  }
0x1230   :  { %20636 = vmatpush1.bf16.msra.mxu0 %v29453_v21  ;;  %v29542_v21 = vld [vmem:[%s36661_s5 + $0xacc] ss:$16 sps:$4 sm:$0xff]  }
0x1231   :  { %20637 = vmatprep.subr.bf16.mxu0 %v29458_v9  ;;  %v29540_v9 = vld [vmem:[%s36661_s5 + $0xac8] ss:$16 sps:$4 sm:$0xff]  }
0x1234   :  { %20638 = vmatpush1.bf16.msra.mxu0 %v29456_v41  ;;  %v29545_v41 = vld [vmem:[%s36661_s5 + $0xaec] ss:$16 sps:$4 sm:$0xff]  }
0x1235   :  { %20639 = vmatprep.subr.bf16.mxu0 %v29461_v43  ;;  %v29543_v43 = vld [vmem:[%s36661_s5 + $0xae8] ss:$16 sps:$4 sm:$0xff]  }
0x1238   :  { %20640 = vmatpush1.bf16.msra.mxu0 %v29459_v28  ;;  %v29548_v28 = vld [vmem:[%s36661_s5 + $0xb0c] ss:$16 sps:$4 sm:$0xff]  }
0x1239   :  { %20641 = vmatprep.subr.bf16.mxu0 %v29464_v8  ;;  %v29546_v8 = vld [vmem:[%s36661_s5 + $0xb08] ss:$16 sps:$4 sm:$0xff]  }
0x123c   :  { %20642 = vmatpush1.bf16.msra.mxu0 %v29462_v1  ;;  %v29551_v1 = vld [vmem:[%s36661_s5 + $0xb2c] ss:$16 sps:$4 sm:$0xff]  }
0x123d   :  { %20643 = vmatprep.subr.bf16.mxu0 %v29467_v50  ;;  %v29549_v50 = vld [vmem:[%s36661_s5 + $0xb28] ss:$16 sps:$4 sm:$0xff]  }
0x1240   :  { %20644 = vmatpush1.bf16.msra.mxu0 %v29465_v53  ;;  %v29554_v53 = vld [vmem:[%s36661_s5 + $0xb4c] ss:$16 sps:$4 sm:$0xff]  }
0x1241   :  { %20645 = vmatprep.subr.bf16.mxu0 %v29470_v59  ;;  %v29552_v59 = vld [vmem:[%s36661_s5 + $0xb48] ss:$16 sps:$4 sm:$0xff]  }
0x1244   :  { %20646 = vmatpush1.bf16.msra.mxu0 %v29468_v20  ;;  %v29557_v20 = vld [vmem:[%s36661_s5 + $0xb6c] ss:$16 sps:$4 sm:$0xff]  }
0x1245   :  { %20647 = vmatprep.subr.bf16.mxu0 %v29473_v31  ;;  %v29555_v31 = vld [vmem:[%s36661_s5 + $0xb68] ss:$16 sps:$4 sm:$0xff]  }
0x1248   :  { %20648 = vmatpush1.bf16.msra.mxu0 %v29471_v29  ;;  %v29560_v29 = vld [vmem:[%s36661_s5 + $0xb8c] ss:$16 sps:$4 sm:$0xff]  }
0x1249   :  { %20658 = vmatprep.subr.bf16.mxu0 %v29476_v61  ;;  %v29558_v61 = vld [vmem:[%s36661_s5 + $0xb88] ss:$16 sps:$4 sm:$0xff]  }
0x124b   :  { %20650 = vmatmul.mubr.bf16.vlgmr.msra.gmra.mrb[132].mxu0 %v35329_v56  ;;  %v29485_v56 = vld [vmem:[%s36661_s5 + $0x86c] ss:$16 sps:$4 sm:$0xff]  }
0x124c   :  { %20659 = vmatpush1.bf16.msra.mxu0 %v29474_v48  ;;  %20690 = vmatprep.mubr.bf16.mxu0 %v35336_v27  ;;  %v29483_v27 = vld [vmem:[%s36661_s5 + $0x868] ss:$16 sps:$4 sm:$0xff]   ;;  %v29563_v48 = vld [vmem:[%s36661_s5 + $0xbac] ss:$16 sps:$4 sm:$0xff]  }
0x124d   :  { %20660 = vmatprep.subr.bf16.mxu0 %v29479_v35  ;;  %v29561_v35 = vld [vmem:[%s36661_s5 + $0xba8] ss:$16 sps:$4 sm:$0xff]  }
0x1250   :  { %20661 = vmatpush1.bf16.msra.mxu0 %v29477_v63  ;;  %v29566_v63 = vld [vmem:[%s36661_s5 + $0xbcc] ss:$16 sps:$4 sm:$0xff]  }
0x1251   :  { %20662 = vmatprep.subr.bf16.mxu0 %v29482_v4  ;;  %v29564_v4 = vld [vmem:[%s36661_s5 + $0xbc8] ss:$16 sps:$4 sm:$0xff]  }
0x1254   :  { %20663 = vmatpush1.bf16.msra.mxu0 %v29480_v17  ;;  %v29569_v17 = vld [vmem:[%s36661_s5 + $0xbec] ss:$16 sps:$4 sm:$0xff]  }
0x1255   :  { %20664 = vmatprep.subr.bf16.mxu0 %v29485_v56  ;;  %v29567_v56 = vld [vmem:[%s36661_s5 + $0xbe8] ss:$16 sps:$4 sm:$0xff]  }
0x1258   :  { %20665 = vmatpush1.bf16.msra.mxu0 %v29483_v27  ;;  %v29572_v27 = vld [vmem:[%s36661_s5 + $0xc0c] ss:$16 sps:$4 sm:$0xff]  }
0x1259   :  { %20666 = vmatprep.subr.bf16.mxu0 %v29488_v25  ;;  %v29570_v25 = vld [vmem:[%s36661_s5 + $0xc08] ss:$16 sps:$4 sm:$0xff]  }
0x125c   :  { %20667 = vmatpush1.bf16.msra.mxu0 %v29486_v15  ;;  %v29575_v15 = vld [vmem:[%s36661_s5 + $0xc2c] ss:$16 sps:$4 sm:$0xff]  }
0x125d   :  { %20668 = vmatprep.subr.bf16.mxu0 %v29491_v26  ;;  %v29573_v26 = vld [vmem:[%s36661_s5 + $0xc28] ss:$16 sps:$4 sm:$0xff]  }
0x1260   :  { %20669 = vmatpush1.bf16.msra.mxu0 %v29489_v33  ;;  %v29578_v33 = vld [vmem:[%s36661_s5 + $0xc4c] ss:$16 sps:$4 sm:$0xff]  }
0x1261   :  { %20670 = vmatprep.subr.bf16.mxu0 %v29494_v58  ;;  %v29576_v58 = vld [vmem:[%s36661_s5 + $0xc48] ss:$16 sps:$4 sm:$0xff]  }
0x1264   :  { %20671 = vmatpush1.bf16.msra.mxu0 %v29492_v36  ;;  %v29584_v36 = vld [vmem:[%s36661_s5 + $0xc8c] ss:$16 sps:$4 sm:$0xff]  }
0x1265   :  { %20672 = vmatprep.subr.bf16.mxu0 %v29497_v3  ;;  %v29582_v3 = vld [vmem:[%s36661_s5 + $0xc88] ss:$16 sps:$4 sm:$0xff]  }
0x1268   :  { %20673 = vmatpush1.bf16.msra.mxu0 %v29495_v13  ;;  %v29587_v13 = vld [vmem:[%s36661_s5 + $0xcac] ss:$16 sps:$4 sm:$0xff]  }
0x1269   :  { %20674 = vmatprep.subr.bf16.mxu0 %v29500_v0  ;;  %v29585_v0 = vld [vmem:[%s36661_s5 + $0xca8] ss:$16 sps:$4 sm:$0xff]  }
0x126c   :  { %20675 = vmatpush1.bf16.msra.mxu0 %v29498_v37  ;;  %v29590_v37 = vld [vmem:[%s36661_s5 + $0xccc] ss:$16 sps:$4 sm:$0xff]  }
0x126d   :  { %20676 = vmatprep.subr.bf16.mxu0 %v29503_v49  ;;  %v29588_v49 = vld [vmem:[%s36661_s5 + $0xcc8] ss:$16 sps:$4 sm:$0xff]  }
0x1270   :  { %20677 = vmatpush1.bf16.msra.mxu0 %v29501_v44  ;;  %v29593_v44 = vld [vmem:[%s36661_s5 + $0xcec] ss:$16 sps:$4 sm:$0xff]  }
0x1271   :  { %20678 = vmatprep.subr.bf16.mxu0 %v29506_v14  ;;  %v29591_v14 = vld [vmem:[%s36661_s5 + $0xce8] ss:$16 sps:$4 sm:$0xff]  }
0x1274   :  { %20679 = vmatpush1.bf16.msra.mxu0 %v29504_v16  ;;  %v29596_v16 = vld [vmem:[%s36661_s5 + $0xd0c] ss:$16 sps:$4 sm:$0xff]  }
0x1275   :  { %20680 = vmatprep.subr.bf16.mxu0 %v29509_v47  ;;  %v29594_v47 = vld [vmem:[%s36661_s5 + $0xd08] ss:$16 sps:$4 sm:$0xff]  }
0x1278   :  { %20681 = vmatpush1.bf16.msra.mxu0 %v29507_v18  ;;  %v29599_v18 = vld [vmem:[%s36661_s5 + $0xd2c] ss:$16 sps:$4 sm:$0xff]  }
0x1279   :  { %20682 = vmatprep.subr.bf16.mxu0 %v29512_v12  ;;  %v29597_v12 = vld [vmem:[%s36661_s5 + $0xd28] ss:$16 sps:$4 sm:$0xff]  }
0x127c   :  { %20683 = vmatpush1.bf16.msra.mxu0 %v29510_v2  ;;  %v29602_v2 = vld [vmem:[%s36661_s5 + $0xd4c] ss:$16 sps:$4 sm:$0xff]  }
0x127d   :  { %20684 = vmatprep.subr.bf16.mxu0 %v29515_v54  ;;  %v29600_v54 = vld [vmem:[%s36661_s5 + $0xd48] ss:$16 sps:$4 sm:$0xff]  }
0x1280   :  { %20685 = vmatpush1.bf16.msra.mxu0 %v29513_v60  ;;  %v29605_v60 = vld [vmem:[%s36661_s5 + $0xd6c] ss:$16 sps:$4 sm:$0xff]  }
0x1281   :  { %20686 = vmatprep.subr.bf16.mxu0 %v29518_v30  ;;  %v29603_v30 = vld [vmem:[%s36661_s5 + $0xd68] ss:$16 sps:$4 sm:$0xff]  }
0x1284   :  { %20687 = vmatpush1.bf16.msra.mxu0 %v29516_v62  ;;  %v29608_v62 = vld [vmem:[%s36661_s5 + $0xd8c] ss:$16 sps:$4 sm:$0xff]  }
0x1285   :  { %20688 = vmatprep.subr.bf16.mxu0 %v29521_v51  ;;  %v29606_v51 = vld [vmem:[%s36661_s5 + $0xd88] ss:$16 sps:$4 sm:$0xff]  }
0x1288   :  { %20689 = vmatpush1.bf16.msra.mxu0 %v29519_v19  ;;  %v29611_v19 = vld [vmem:[%s36661_s5 + $0xdac] ss:$16 sps:$4 sm:$0xff]  }
0x1289   :  { %20699 = vmatprep.subr.bf16.mxu0 %v29524_v11  ;;  %v29609_v11 = vld [vmem:[%s36661_s5 + $0xda8] ss:$16 sps:$4 sm:$0xff]  }
0x128b   :  { %20691 = vmatmul.mubr.bf16.vlgmr.msra.gmra.mrb[132].mxu0 %v35435_v23  ;;  %v29533_v23 = vld [vmem:[%s36661_s5 + $0xa6c] ss:$16 sps:$4 sm:$0xff]  }
0x128c   :  { %20700 = vmatpush1.bf16.msra.mxu0 %v29522_v38  ;;  %20731 = vmatprep.mubr.bf16.mxu0 %v35442_v32  ;;  %v29531_v32 = vld [vmem:[%s36661_s5 + $0xa68] ss:$16 sps:$4 sm:$0xff]   ;;  %v29614_v38 = vld [vmem:[%s36661_s5 + $0xdcc] ss:$16 sps:$4 sm:$0xff]  }
0x128d   :  { %20701 = vmatprep.subr.bf16.mxu0 %v29527_v24  ;;  %v29612_v24 = vld [vmem:[%s36661_s5 + $0xdc8] ss:$16 sps:$4 sm:$0xff]  }
0x1290   :  { %20702 = vmatpush1.bf16.msra.mxu0 %v29525_v5  ;;  %v29617_v5 = vld [vmem:[%s36661_s5 + $0xdec] ss:$16 sps:$4 sm:$0xff]  }
0x1291   :  { %20703 = vmatprep.subr.bf16.mxu0 %v29530_v6  ;;  %v29615_v6 = vld [vmem:[%s36661_s5 + $0xde8] ss:$16 sps:$4 sm:$0xff]  }
0x1294   :  { %20704 = vmatpush1.bf16.msra.mxu0 %v29528_v45  ;;  %v29620_v45 = vld [vmem:[%s36661_s5 + $0xe0c] ss:$16 sps:$4 sm:$0xff]  }
0x1295   :  { %20705 = vmatprep.subr.bf16.mxu0 %v29533_v23  ;;  %v29618_v23 = vld [vmem:[%s36661_s5 + $0xe08] ss:$16 sps:$4 sm:$0xff]  }
0x1298   :  { %20706 = vmatpush1.bf16.msra.mxu0 %v29531_v32  ;;  %v29623_v32 = vld [vmem:[%s36661_s5 + $0xe2c] ss:$16 sps:$4 sm:$0xff]  }
0x1299   :  { %20707 = vmatprep.subr.bf16.mxu0 %v29536_v34  ;;  %v29621_v34 = vld [vmem:[%s36661_s5 + $0xe28] ss:$16 sps:$4 sm:$0xff]  }
0x129c   :  { %20708 = vmatpush1.bf16.msra.mxu0 %v29534_v7  ;;  %v29626_v7 = vld [vmem:[%s36661_s5 + $0xe4c] ss:$16 sps:$4 sm:$0xff]  }
0x129d   :  { %20709 = vmatprep.subr.bf16.mxu0 %v29539_v57  ;;  %v29624_v57 = vld [vmem:[%s36661_s5 + $0xe48] ss:$16 sps:$4 sm:$0xff]  }
0x12a0   :  { %20710 = vmatpush1.bf16.msra.mxu0 %v29537_v42  ;;  %v29632_v42 = vld [vmem:[%s36661_s5 + $0xe8c] ss:$16 sps:$4 sm:$0xff]  }
0x12a1   :  { %20711 = vmatprep.subr.bf16.mxu0 %v29542_v21  ;;  %v29630_v21 = vld [vmem:[%s36661_s5 + $0xe88] ss:$16 sps:$4 sm:$0xff]  }
0x12a4   :  { %20712 = vmatpush1.bf16.msra.mxu0 %v29540_v9  ;;  %v29635_v9 = vld [vmem:[%s36661_s5 + $0xeac] ss:$16 sps:$4 sm:$0xff]  }
0x12a5   :  { %20713 = vmatprep.subr.bf16.mxu0 %v29545_v41  ;;  %v29633_v41 = vld [vmem:[%s36661_s5 + $0xea8] ss:$16 sps:$4 sm:$0xff]  }
0x12a8   :  { %20714 = vmatpush1.bf16.msra.mxu0 %v29543_v43  ;;  %v29638_v43 = vld [vmem:[%s36661_s5 + $0xecc] ss:$16 sps:$4 sm:$0xff]  }
0x12a9   :  { %20715 = vmatprep.subr.bf16.mxu0 %v29548_v28  ;;  %v29636_v28 = vld [vmem:[%s36661_s5 + $0xec8] ss:$16 sps:$4 sm:$0xff]  }
0x12ac   :  { %20716 = vmatpush1.bf16.msra.mxu0 %v29546_v8  ;;  %v29641_v8 = vld [vmem:[%s36661_s5 + $0xeec] ss:$16 sps:$4 sm:$0xff]  }
0x12ad   :  { %20717 = vmatprep.subr.bf16.mxu0 %v29551_v1  ;;  %v29639_v1 = vld [vmem:[%s36661_s5 + $0xee8] ss:$16 sps:$4 sm:$0xff]  }
0x12b0   :  { %20718 = vmatpush1.bf16.msra.mxu0 %v29549_v50  ;;  %v29644_v50 = vld [vmem:[%s36661_s5 + $0xf0c] ss:$16 sps:$4 sm:$0xff]  }
0x12b1   :  { %20719 = vmatprep.subr.bf16.mxu0 %v29554_v53  ;;  %v29642_v53 = vld [vmem:[%s36661_s5 + $0xf08] ss:$16 sps:$4 sm:$0xff]  }
0x12b4   :  { %20720 = vmatpush1.bf16.msra.mxu0 %v29552_v59  ;;  %v29647_v59 = vld [vmem:[%s36661_s5 + $0xf2c] ss:$16 sps:$4 sm:$0xff]  }
0x12b5   :  { %20721 = vmatprep.subr.bf16.mxu0 %v29557_v20  ;;  %v29645_v20 = vld [vmem:[%s36661_s5 + $0xf28] ss:$16 sps:$4 sm:$0xff]  }
0x12b8   :  { %20722 = vmatpush1.bf16.msra.mxu0 %v29555_v31  ;;  %v29650_v31 = vld [vmem:[%s36661_s5 + $0xf4c] ss:$16 sps:$4 sm:$0xff]  }
0x12b9   :  { %20723 = vmatprep.subr.bf16.mxu0 %v29560_v29  ;;  %v29648_v29 = vld [vmem:[%s36661_s5 + $0xf48] ss:$16 sps:$4 sm:$0xff]  }
0x12bc   :  { %20724 = vmatpush1.bf16.msra.mxu0 %v29558_v61  ;;  %v29653_v61 = vld [vmem:[%s36661_s5 + $0xf6c] ss:$16 sps:$4 sm:$0xff]  }
0x12bd   :  { %20725 = vmatprep.subr.bf16.mxu0 %v29563_v48  ;;  %v17586_v48 = vlaneseq }
0x12c0   :  { %20726 = vmatpush1.bf16.msra.mxu0 %v29561_v35  ;;  %v29651_v35 = vld [vmem:[%s36661_s5 + $0xf68] ss:$16 sps:$4 sm:$0xff]  }
0x12c1   :  { %20727 = vmatprep.subr.bf16.mxu0 %v29566_v63  ;;  %v29656_v63 = vld [vmem:[%s36661_s5 + $0xf8c] ss:$16 sps:$4 sm:$0xff]  }
0x12c4   :  { %20728 = vmatpush1.bf16.msra.mxu0 %v29564_v4  ;;  %v36516_v4 = vshrl.u32 %v17586_v48, 7 }
0x12c5   :  { %20729 = vmatprep.subr.bf16.mxu0 %v29569_v17  ;;  %v29654_v17 = vld [vmem:[%s36661_s5 + $0xf88] ss:$16 sps:$4 sm:$0xff]  }
0x12c8   :  { %20730 = vmatpush1.bf16.msra.mxu0 %v29567_v56  ;;  %v29659_v56 = vld [vmem:[%s36661_s5 + $0xfac] ss:$16 sps:$4 sm:$0xff]  }
0x12c9   :  { %20740 = vmatprep.subr.bf16.mxu0 %v29572_v27  ;;  %v17592_v27 = vsub.s32 1, %v36516_v4 }
0x12cb   :  { %20732 = vmatmul.mubr.bf16.vlgmr.msra.gmra.mrb[132].mxu0 %v35541_v52  ;;  %v29581_v52 = vld [vmem:[%s36661_s5 + $0xc6c] ss:$16 sps:$4 sm:$0xff]  }
0x12cc   :  { %20741 = vmatpush1.bf16.msra.mxu0 %v29570_v25  ;;  %20772 = vmatprep.mubr.bf16.mxu0 %v35548_v39  ;;  %v29579_v39 = vld [vmem:[%s36661_s5 + $0xc68] ss:$16 sps:$4 sm:$0xff]   ;;  %v36528_v25 = vld [vmem:[%s36664_s6] sm:$0xf] }
0x12cd   :  { %20742 = vmatprep.subr.bf16.mxu0 %v29575_v15  ;;  %v29657_v15 = vld [vmem:[%s36661_s5 + $0xfa8] ss:$16 sps:$4 sm:$0xff]  }
0x12d0   :  { %20743 = vmatpush1.bf16.msra.mxu0 %v29573_v26  ;;  %v29662_v26 = vld [vmem:[%s36661_s5 + $0xfcc] ss:$16 sps:$4 sm:$0xff]  }
0x12d1   :  { %20744 = vmatprep.subr.bf16.mxu0 %v29578_v33  ;;  %v17593_v33 = vrot.slane %v36528_v25, %v17592_v27 }
0x12d4   :  { %20745 = vmatpush1.bf16.msra.mxu0 %v29576_v58  ;;  %v29660_v58 = vld [vmem:[%s36661_s5 + $0xfc8] ss:$16 sps:$4 sm:$0xff]  }
0x12d5   :  { %20746 = vmatprep.subr.bf16.mxu0 %v29581_v52  ;;  %v29665_v52 = vld [vmem:[%s36661_s5 + $0xfec] ss:$16 sps:$4 sm:$0xff]  }
0x12d8   :  { %20747 = vmatpush1.bf16.msra.mxu0 %v29579_v39  ;;  %v26876_v39 = vadd.f32 %v36086_v22, %v17593_v33  ;;  %v29668_v22 = vld [vmem:[%s36663_s7 + $0x48] sm:$0xff]  }
0x12d9   :  { %20748 = vmatprep.subr.bf16.mxu0 %v29584_v36  ;;  %v29663_v36 = vld [vmem:[%s36661_s5 + $0xfe8] ss:$16 sps:$4 sm:$0xff]  }
0x12dc   :  { %20749 = vmatpush1.bf16.msra.mxu0 %v29582_v3  ;;  %v29666_v3 = vld [vmem:[%s36663_s7 + $0x40] sm:$0xff]  }
0x12dd   :  { %20750 = vmatprep.subr.bf16.mxu0 %v29587_v13  ;;  %v20823_v13 = vmax.f32 %v26876_v39, 0.0 }
0x12e0   :  { %20751 = vmatpush1.bf16.msra.mxu0 %v29585_v0  ;;  %v29667_v0 = vld [vmem:[%s36663_s7] sm:$0xff]  }
0x12e1   :  { %20752 = vmatprep.subr.bf16.mxu0 %v29590_v37  ;;  %v20827_v37 = vpack.c.bf16 %v20823_v13, %v20823_v13 }
0x12e4   :  { %20753 = vmatpush1.bf16.msra.mxu0 %v29588_v49  ;;  %v29669_v49 = vld [vmem:[%s36663_s7 + $0x8] sm:$0xff]  }
0x12e5   :  { %20754 = vmatprep.subr.bf16.mxu0 %v29593_v44  ;;  %v29670_v44 = vld [vmem:[%s36663_s7 + $0x50] sm:$0xff]  }
0x12e8   :  { %20755 = vmatpush1.bf16.msra.mxu0 %v29591_v14  ;;  %v29671_v14 = vld [vmem:[%s36663_s7 + $0x10] sm:$0xff]  }
0x12e9   :  { %20756 = vmatprep.subr.bf16.mxu0 %v29596_v16  ;;  %v29673_v16 = vld [vmem:[%s36663_s7 + $0x18] sm:$0xff]  }
0x12ec   :  { %20757 = vmatpush1.bf16.msra.mxu0 %v29594_v47  ;;  %v29674_v47 = vld [vmem:[%s36663_s7 + $0x60] sm:$0xff]  }
0x12ed   :  { %20758 = vmatprep.subr.bf16.mxu0 %v29599_v18  ;;  %v29675_v18 = vld [vmem:[%s36663_s7 + $0x20] sm:$0xff]  }
0x12f0   :  { %20759 = vmatpush1.bf16.msra.mxu0 %v29597_v12  ;;  %v17588_v12 = vsub.s32 0, %v36516_v4 }
0x12f1   :  { %20760 = vmatprep.subr.bf16.mxu0 %v29602_v2  ;;  %v29676_v2 = vld [vmem:[%s36663_s7 + $0x68] sm:$0xff]  }
0x12f4   :  { %20761 = vmatpush1.bf16.msra.mxu0 %v29600_v54  ;;  %v29677_v54 = vld [vmem:[%s36663_s7 + $0x28] sm:$0xff]  }
0x12f5   :  { %20762 = vmatprep.subr.bf16.mxu0 %v29605_v60  ;;  %v17589_v60 = vrot.slane %v36528_v25, %v17588_v12 }
0x12f8   :  { %20763 = vmatpush1.bf16.msra.mxu0 %v29603_v30  ;;  %v29678_v30 = vld [vmem:[%s36663_s7 + $0x70] sm:$0xff]  }
0x12f9   :  { %20764 = vmatprep.subr.bf16.mxu0 %v29608_v62  ;;  %v29679_v62 = vld [vmem:[%s36663_s7 + $0x30] sm:$0xff]  }
0x12fc   :  { %20765 = vmatpush1.bf16.msra.mxu0 %v29606_v51  ;;  %v26875_v51 = vadd.f32 %v36084_v40, %v17589_v60  ;;  %v29683_v40 = vld [vmem:[%s36663_s7 + $0x80] sm:$0xff]  }
0x12fd   :  { %20766 = vmatprep.subr.bf16.mxu0 %v29611_v19  ;;  %v29680_v19 = vld [vmem:[%s36663_s7 + $0x78] sm:$0xff]  }
0x1300   :  { %20767 = vmatpush1.bf16.msra.mxu0 %v29609_v11  ;;  %v29681_v11 = vld [vmem:[%s36663_s7 + $0x38] sm:$0xff]  }
0x1301   :  { %20768 = vmatprep.subr.bf16.mxu0 %v29614_v38  ;;  %v20822_v38 = vmax.f32 %v26875_v51, 0.0 }
0x1304   :  { %20769 = vmatpush1.bf16.msra.mxu0 %v29612_v24  ;;  %v29682_v24 = vld [vmem:[%s36663_s7 + $0xc0] sm:$0xff]  }
0x1305   :  { %20770 = vmatprep.subr.bf16.mxu0 %v29617_v5  ;;  %v20826_v5 = vpack.c.bf16 %v20822_v38, %v20822_v38 }
0x1308   :  { %20771 = vmatpush1.bf16.msra.mxu0 %v29615_v6  ;;  %v29684_v6 = vld [vmem:[%s36663_s7 + $0xc8] sm:$0xff]  }
0x1309   :  { %20781 = vmatprep.subr.bf16.mxu0 %v29620_v45  ;;  %v29685_v45 = vld [vmem:[%s36663_s7 + $0x88] sm:$0xff]  }
0x130b   :  { %20773 = vmatmul.mubr.bf16.vlgmr.msra.gmra.mrb[132].mxu0 %v35647_v55  ;;  %v29629_v55 = vld [vmem:[%s36661_s5 + $0xe6c] ss:$16 sps:$4 sm:$0xff]  }
0x130c   :  { %20782 = vmatpush1.bf16.msra.mxu0 %v29618_v23  ;;  %20813 = vmatprep.mubr.bf16.mxu0 %v35654_v10  ;;  %v29627_v10 = vld [vmem:[%s36661_s5 + $0xe68] ss:$16 sps:$4 sm:$0xff]   ;;  %v29686_v23 = vld [vmem:[%s36663_s7 + $0xd0] sm:$0xff]  }
0x130d   :  { %20783 = vmatprep.subr.bf16.mxu0 %v29623_v32  ;;  %v29687_v32 = vld [vmem:[%s36663_s7 + $0x90] sm:$0xff]  }
0x1310   :  { %20784 = vmatpush1.bf16.msra.mxu0 %v29621_v34  ;;  %v29688_v34 = vld [vmem:[%s36663_s7 + $0xd8] sm:$0xff]  }
0x1311   :  { %20785 = vmatprep.subr.bf16.mxu0 %v29626_v7  ;;  %v29689_v7 = vld [vmem:[%s36663_s7 + $0x98] sm:$0xff]  }
0x1314   :  { %20786 = vmatpush1.bf16.msra.mxu0 %v29624_v57  ;;  %v29690_v57 = vld [vmem:[%s36663_s7 + $0xe0] sm:$0xff]  }
0x1315   :  { %20787 = vmatprep.subr.bf16.mxu0 %v29629_v55  ;;  %v29691_v55 = vld [vmem:[%s36663_s7 + $0xa0] sm:$0xff]  }
0x1318   :  { %20788 = vmatpush1.bf16.msra.mxu0 %v29627_v10  ;;  %v29692_v10 = vld [vmem:[%s36663_s7 + $0xe8] sm:$0xff]  }
0x1319   :  { %20789 = vmatprep.subr.bf16.mxu0 %v29632_v42  ;;  %v29693_v42 = vld [vmem:[%s36663_s7 + $0xa8] sm:$0xff]  }
0x131c   :  { %20790 = vmatpush1.bf16.msra.mxu0 %v29630_v21  ;;  %v29694_v21 = vld [vmem:[%s36663_s7 + $0xf0] sm:$0xff]  }
0x131d   :  { %20791 = vmatprep.subr.bf16.mxu0 %v29635_v9  ;;  %v29695_v9 = vld [vmem:[%s36663_s7 + $0xb0] sm:$0xff]  }
0x1320   :  { %20792 = vmatpush1.bf16.msra.mxu0 %v29633_v41  ;;  %v29696_v41 = vld [vmem:[%s36663_s7 + $0xf8] sm:$0xff]  }
0x1321   :  { %20793 = vmatprep.subr.bf16.mxu0 %v29638_v43  ;;  %v29697_v43 = vld [vmem:[%s36663_s7 + $0xb8] sm:$0xff]  }
0x1324   :  { %20794 = vmatpush1.bf16.msra.mxu0 %v29636_v28  ;;  %v17596_v28 = vsub.s32 2, %v36516_v4 }
0x1325   :  { %20795 = vmatprep.subr.bf16.mxu0 %v29641_v8  ;;  %v17600_v8 = vsub.s32 3, %v36516_v4 }
0x1328   :  { %20796 = vmatpush1.bf16.msra.mxu0 %v29639_v1  ;;  %v17597_v1 = vrot.slane %v36528_v25, %v17596_v28 }
0x1329   :  { %20797 = vmatprep.subr.bf16.mxu0 %v29644_v50  ;;  %v17601_v50 = vrot.slane %v36528_v25, %v17600_v8  ;;  %v22864_v25 = vld [vmem:[%s36665_s8] ss:$0 sm:$0xff] }
0x132c   :  { %20798 = vmatpush1.bf16.msra.mxu0 %v29642_v53 }
0x132d   :  { %20799 = vmatprep.subr.bf16.mxu0 %v29647_v59 }
0x1330   :  { %20800 = vmatpush1.bf16.msra.mxu0 %v29645_v20 }
0x1331   :  { %20801 = vmatprep.subr.bf16.mxu0 %v29650_v31 }
0x1334   :  { %20802 = vmatpush1.bf16.msra.mxu0 %v29648_v29 }
0x1335   :  { %20803 = vmatprep.subr.bf16.mxu0 %v29653_v61 }
0x1338   :  { %20804 = vmatpush1.bf16.msra.mxu0 %v29651_v35 }
0x1339   :  { %20805 = vmatprep.subr.bf16.mxu0 %v29656_v63 }
0x133c   :  { %20806 = vmatpush1.bf16.msra.mxu0 %v29654_v17 }
0x133d   :  { %20807 = vmatprep.subr.bf16.mxu0 %v29659_v56 }
0x1340   :  { %20808 = vmatpush1.bf16.msra.mxu0 %v29657_v15 }
0x1341   :  { %20809 = vmatprep.subr.bf16.mxu0 %v29662_v26 }
0x1344   :  { %20810 = vmatpush1.bf16.msra.mxu0 %v29660_v58 }
0x1345   :  { %20811 = vmatprep.subr.bf16.mxu0 %v29665_v52 }
0x1348   :  { %20812 = vmatpush1.bf16.msra.mxu0 %v29663_v36 }
0x1349   :  { %24187 = vmatprep.subr.bf16.mxu0 %v29666_v3 }
0x134b   :  { %20814 = vmatmul.mubr.bf16.vlgmr.msra.gmra.mrb[132].mxu0 %v35753_v46  ;;  %v29672_v46 = vld [vmem:[%s36663_s7 + $0x58] sm:$0xff]  }
0x134c   :  { %24188 = vmatpush3.bf16.msra.mxu0 %v29667_v0  ;;  %21125 = vmatprep.mubr.bf16.mxu0 %v20827_v37 }
0x134d   :  { %24189 = vmatprep.subr.bf16.mxu0 %v29668_v22 }
0x1350   :  { %24190 = vmatpush3.bf16.msra.mxu0 %v29669_v49 }
0x1351   :  { %24191 = vmatprep.subr.bf16.mxu0 %v29670_v44 }
0x1354   :  { %24192 = vmatpush3.bf16.msra.mxu0 %v29671_v14 }
0x1355   :  { %24193 = vmatprep.subr.bf16.mxu0 %v29672_v46 }
0x1358   :  { %24194 = vmatpush3.bf16.msra.mxu0 %v29673_v16 }
0x1359   :  { %24195 = vmatprep.subr.bf16.mxu0 %v29674_v47 }
0x135c   :  { %24196 = vmatpush3.bf16.msra.mxu0 %v29675_v18 }
0x135d   :  { %24197 = vmatprep.subr.bf16.mxu0 %v29676_v2 }
0x1360   :  { %24198 = vmatpush3.bf16.msra.mxu0 %v29677_v54 }
0x1361   :  { %24199 = vmatprep.subr.bf16.mxu0 %v29678_v30 }
0x1364   :  { %24200 = vmatpush3.bf16.msra.mxu0 %v29679_v62 }
0x1365   :  { %24201 = vmatprep.subr.bf16.mxu0 %v29680_v19 }
0x1368   :  { %24202 = vmatpush3.bf16.msra.mxu0 %v29681_v11 }
0x1369   :  { %24209 = vmatprep.subr.bf16.mxu0 %v29682_v24 }
0x136b   :  { %21126 = vmatmul.mubr.bf16.vlgmr.msra.gmra.mrb[136].mxu0 %v20826_v5 }
0x136c   :  { %24210 = vmatpush3.bf16.msra.mxu0 %v29683_v40 }
0x136d   :  { %24211 = vmatprep.subr.bf16.mxu0 %v29684_v6 }
0x1370   :  { %24212 = vmatpush3.bf16.msra.mxu0 %v29685_v45 }
0x1371   :  { %24213 = vmatprep.subr.bf16.mxu0 %v29686_v23 }
0x1374   :  { %24214 = vmatpush3.bf16.msra.mxu0 %v29687_v32 }
0x1375   :  { %24215 = vmatprep.subr.bf16.mxu0 %v29688_v34 }
0x1378   :  { %24216 = vmatpush3.bf16.msra.mxu0 %v29689_v7 }
0x1379   :  { %24217 = vmatprep.subr.bf16.mxu0 %v29690_v57 }
0x137c   :  { %24218 = vmatpush3.bf16.msra.mxu0 %v29691_v55 }
0x137d   :  { %24219 = vmatprep.subr.bf16.mxu0 %v29692_v10 }
0x1380   :  { %24220 = vmatpush3.bf16.msra.mxu0 %v29693_v42 }
0x1381   :  { %24221 = vmatprep.subr.bf16.mxu0 %v29694_v21 }
0x1384   :  { %24222 = vmatpush3.bf16.msra.mxu0 %v29695_v9 }
0x1385   :  { %24223 = vmatprep.subr.bf16.mxu0 %v29696_v41 }
0x1388   :  { %24224 = vmatpush3.bf16.msra.mxu0 %v29697_v43 }
0x141e   :  { %v20815_v53 = vpop.f32.mrb[132].mxu0 }
0x141f   :  { %v26877_v59 = vadd.f32 %v20815_v53, %v17597_v1  ;;  %v20817_v20 = vpop.f32.mrb[133].mxu0 }
0x1420   :  { %v26878_v31 = vadd.f32 %v20817_v20, %v17601_v50  ;;  %v20819_v29 = vpop.f32.mrb[134].mxu0 }
0x1421   :  { %v20824_v61 = vmax.f32 %v26877_v59, 0.0  ;;  %v20820_v48 = vpop.f32.mrb[135].mxu0 }
0x1422   :  { %v20825_v35 = vmax.f32 %v26878_v31, 0.0 }
0x1423   :  { %v20828_v17 = vpack.c.bf16 %v20824_v61, %v20824_v61 }
0x1424   :  { %v20829_v63 = vpack.c.bf16 %v20825_v35, %v20825_v35 }
0x1426   :  { %21165 = vmatprep.mubr.bf16.mxu0 %v20829_v63 }
0x1427   :  { %21166 = vmatmul.mubr.bf16.vlgmr.msra.gmra.mrb[140].mxu0 %v20828_v17 }
0x143e   :  { %v24203_v56 = vpop.f32.mrb[136].mxu0 }
0x143f   :  { %v24204_v27 = vpop.f32.mrb[137].mxu0 }
0x1440   :  { %v24205_v15 = vadd.f32 %v24204_v27, %v24203_v56  ;;  %v24206_v4 = vpop.f32.mrb[138].mxu0 }
0x1441   :  { %v24207_v26 = vpop.f32.mrb[139].mxu0 }
0x1442   :  { %v21128_v52 = vadd.f32 %v24205_v15, %v22864_v25 }
0x14fa   :  { %v24225_v33 = vpop.f32.mrb[140].mxu0 }
0x14fb   :  { %v24226_v58 = vpop.f32.mrb[141].mxu0 }
0x14fc   :  { %v24227_v39 = vadd.f32 %v24226_v58, %v24225_v33  ;;  %v24228_v36 = vpop.f32.mrb[142].mxu0 }
0x14fd   :  { %v24229_v3 = vpop.f32.mrb[143].mxu0 }
0x14fe   :  { %v21168_v13 = vadd.f32 %v24227_v39, %v21128_v52 }
0x1500   :  { %21173 = vmax.xlane.f32.xlu0 %v21168_v13 }
0x158d   :  { %v21174_v0 = vpop.xlane.xlu0 %21173 }
0x158e   :  { %v21175_v22 = vsub.f32 %v21168_v13, %v21174_v0 }
0x1590   :  { %v21176_v37 = vmul.f32 1.442695, %v21175_v22 }
0x1592   :  { %29698 = vpow2.f32 %v21176_v37 }
0x159c   :  { %v29699_v49 = vpop.eup %29698 }
0x159d   :  { %21178 = vadd.xlane.f32.xlu0 %v29699_v49 }
0x162a   :  { %v21179_v44 = vpop.xlane.xlu0 %21178 }
0x162b   :  { %29700 = vlog2.f32 %v21179_v44 }
0x1635   :  { %v29701_v14 = vpop.eup %29700 }
0x1636   :  { %v21181_v46 = vmul.f32 0.6931472, %v29701_v14 }
0x1638   :  { %v21182_v16 = vsub.f32 %v21175_v22, %v21181_v46 }
0x163a   :  { %21183 = vst [vmem:[%s36666_s9] sm:$0xff] %v21182_v16 }

</bundles_post_ra>
